<compile_context>
chip_gen: v5e
topology: v5e:2x2
jax: 0.10.0
libtpu: 0.0.40
codegen_flags: <defaults>
</compile_context>

<pallas_src>
import jax
import jax.numpy as jnp
from jax import lax
from jax.experimental import pallas as pl
from jax.experimental.pallas import tpu as pltpu


def _round_up(x, m):
    return (x + m - 1) // m * m


def _gru_encoder_kernel(x_ref, wih_ref, whh_ref, bih_ref, bhh_ref, out_ref, h_ref):
    # x_ref:   (b_blk, t_chunk, D)  batch_first chunk of the input sequence
    # wih_ref: (D,  3*Hp)           input->gate weights, gate blocks at lanes 0/Hp/2Hp
    # whh_ref: (Hp, 3*Hp)           hidden->gate weights
    # bih_ref: (1, 3*Hp)            input bias (f32)
    # bhh_ref: (1, 3*Hp)            hidden bias (f32)
    # out_ref: (1, b_blk, Hp)       final hidden state, written on the last time chunk
    # h_ref:   (b_blk, Hp) f32 VMEM scratch -- hidden state carried across time chunks
    t_idx = pl.program_id(1)
    b_blk, t_chunk, D = x_ref.shape
    Hp3 = whh_ref.shape[1]
    Hp = Hp3 // 3

    @pl.when(t_idx == 0)
    def _init():
        h_ref[...] = jnp.zeros_like(h_ref)

    # ---- hoisted input projection: ONE well-shaped matmul for the whole chunk ----
    x_c = x_ref[...]                                             # (b_blk, t_chunk, D)
    wih = wih_ref[...]
    gi = jnp.dot(x_c.reshape(b_blk * t_chunk, D), wih,
                 preferred_element_type=jnp.float32)             # (b_blk*t_chunk, 3Hp)
    gi = gi + bih_ref[...].astype(jnp.float32)                   # bias added once
    gi = gi.reshape(b_blk, t_chunk, Hp3)

    # ---- recurrent weights / bias hoisted out of the unrolled loop ---------------
    whh = whh_ref[...]
    mm_dtype = whh.dtype                                         # bf16-ready MXU path
    bhh = jnp.broadcast_to(bhh_ref[...].astype(jnp.float32), (b_blk, Hp3))

    h = h_ref[...]                                               # (b_blk, Hp) f32 carry
    # Fully unrolled at trace time (t_chunk is a static, small Python int); this is
    # the fully-unrolled equivalent of lax.fori_loop(..., unroll=True) and keeps the
    # per-step gi slice a static slice.
    for i in range(t_chunk):
        gh = jnp.dot(h.astype(mm_dtype), whh,
                     preferred_element_type=jnp.float32) + bhh   # (b_blk, 3Hp)
        gi_t = gi[:, i, :]                                       # (b_blk, 3Hp)
        # Gate blocks live at lane offsets 0 / Hp / 2Hp (multiples of 128): aligned.
        r = jax.nn.sigmoid(gi_t[:, 0:Hp] + gh[:, 0:Hp])
        z = jax.nn.sigmoid(gi_t[:, Hp:2 * Hp] + gh[:, Hp:2 * Hp])
        n = jnp.tanh(gi_t[:, 2 * Hp:] + r * gh[:, 2 * Hp:])
        h = (1.0 - z) * n + z * h

    h_ref[...] = h

    @pl.when(t_idx == pl.num_programs(1) - 1)
    def _finalize():
        out_ref[...] = h[None, :, :].astype(out_ref.dtype)


def encoder_gru_forward(x_btd, w_ih, w_hh, b_ih, b_hh, *, time_chunk=8):
    """Pallas TPU forward of EncoderGRU.

    x_btd: (B, T, D) batch_first input.
    w_ih:  (3H, D) PyTorch weight_ih_l0 (gate order [r, z, n]);  w_hh: (3H, H);
    b_ih, b_hh: (3H,).  Returns (1, B, H) — the final hidden state h_T.
    """
    B, T, D = x_btd.shape
    H = w_hh.shape[1]
    assert w_ih.shape == (3 * H, D) and w_hh.shape == (3 * H, H)
    dtype = x_btd.dtype
    wdt = w_ih.dtype

    # Pad hidden to a lane multiple (gate slices vreg-aligned) and batch to sublanes.
    Hp = _round_up(H, 128)
    B_pad = _round_up(max(B, 8), 8)
    if B_pad <= 128 or B_pad % 128 != 0:
        b_blk = B_pad
    else:
        b_blk = 128

    # Repack weights: (3H, D) -> (D, 3Hp) with gate blocks at columns 0/Hp/2Hp,
    # zero-filled in the padded region (keeps padded h columns exactly zero).
    wih_g = jnp.zeros((3, Hp, D), wdt).at[:, :H, :].set(w_ih.reshape(3, H, D))
    wih_p = jnp.transpose(wih_g, (2, 0, 1)).reshape(D, 3 * Hp)
    whh_g = jnp.zeros((3, Hp, Hp), wdt).at[:, :H, :H].set(w_hh.reshape(3, H, H))
    whh_p = jnp.transpose(whh_g, (2, 0, 1)).reshape(Hp, 3 * Hp)
    bih_p = jnp.zeros((3, Hp), jnp.float32).at[:, :H].set(
        b_ih.reshape(3, H).astype(jnp.float32)).reshape(1, 3 * Hp)
    bhh_p = jnp.zeros((3, Hp), jnp.float32).at[:, :H].set(
        b_hh.reshape(3, H).astype(jnp.float32)).reshape(1, 3 * Hp)

    # Pad batch rows with zeros (sliced off after the kernel).
    x_p = jnp.zeros((B_pad, T, D), dtype).at[:B].set(x_btd)

    # Time chunking: chunk must be a multiple of 8 (sublane tiling) dividing T;
    # otherwise fall back to a single full-T chunk (full-extent block is always legal).
    if time_chunk % 8 == 0 and T % time_chunk == 0:
        t_chunk = time_chunk
    else:
        t_chunk = T

    grid = (B_pad // b_blk, T // t_chunk)

    out = pl.pallas_call(
        _gru_encoder_kernel,
        out_shape=jax.ShapeDtypeStruct((1, B_pad, Hp), dtype),
        grid_spec=pltpu.PrefetchScalarGridSpec(
            num_scalar_prefetch=0,
            grid=grid,
            in_specs=[
                # batch_first X indexed directly via the index_map (no wrapper transpose)
                pl.BlockSpec((b_blk, t_chunk, D), lambda b, t: (b, t, 0)),
                pl.BlockSpec((D, 3 * Hp), lambda b, t: (0, 0)),
                pl.BlockSpec((Hp, 3 * Hp), lambda b, t: (0, 0)),
                pl.BlockSpec((1, 3 * Hp), lambda b, t: (0, 0)),
                pl.BlockSpec((1, 3 * Hp), lambda b, t: (0, 0)),
            ],
            out_specs=pl.BlockSpec((1, b_blk, Hp), lambda b, t: (0, b, 0)),
            scratch_shapes=[pltpu.VMEM((b_blk, Hp), jnp.float32)],
        ),
        compiler_params=pltpu.CompilerParams(
            # batch blocks independent (v7x: sharded across both TensorCores);
            # time axis carries the recurrence -> arbitrary.
            dimension_semantics=("parallel", "arbitrary"),
        ),
    )(x_p, wih_p, whh_p, bih_p, bhh_p)

    # Slice away batch/hidden padding; matches `out[:, -1, :H].view(1, -1, H)`.
    return out[:, :B, :H]


def _reference_forward(x_btd, w_ih, w_hh, b_ih, b_hh):
    """Plain-JAX reference (PyTorch nn.GRU equations, gate order r,z,n)."""
    B, T, D = x_btd.shape
    H = w_hh.shape[1]
    x_tbd = jnp.transpose(x_btd, (1, 0, 2)).astype(jnp.float32)
    w_ih_f = w_ih.astype(jnp.float32)
    w_hh_f = w_hh.astype(jnp.float32)
    b_ih_f = b_ih.astype(jnp.float32)
    b_hh_f = b_hh.astype(jnp.float32)

    def step(h, x_t):
        gi = x_t @ w_ih_f.T + b_ih_f
        gh = h @ w_hh_f.T + b_hh_f
        r = jax.nn.sigmoid(gi[:, :H] + gh[:, :H])
        z = jax.nn.sigmoid(gi[:, H:2 * H] + gh[:, H:2 * H])
        n = jnp.tanh(gi[:, 2 * H:] + r * gh[:, 2 * H:])
        h_new = (1.0 - z) * n + z * h
        return h_new, None

    h0 = jnp.zeros((B, H), jnp.float32)
    hT, _ = lax.scan(step, h0, x_tbd)
    return hT[None, :, :]


if __name__ == "__main__":
    # Small shapes consistent with the module: input_dimensions=3, hidden=32,
    # seq=16 (two time chunks of 8 to exercise the carried-scratch grid), batch=2.
    B, T, D, H = 2, 16, 3, 32

    key = jax.random.PRNGKey(0)
    kx, k1, k2, k3, k4 = jax.random.split(key, 5)

    # Deterministic parameter init (uniform(-1/sqrt(H), 1/sqrt(H)), like PyTorch GRU reset).
    bound = 1.0 / (H ** 0.5)
    w_ih = jax.random.uniform(k1, (3 * H, D), jnp.float32, -bound, bound)
    w_hh = jax.random.uniform(k2, (3 * H, H), jnp.float32, -bound, bound)
    b_ih = jax.random.uniform(k3, (3 * H,), jnp.float32, -bound, bound)
    b_hh = jax.random.uniform(k4, (3 * H,), jnp.float32, -bound, bound)

    x = jax.random.normal(kx, (B, T, D), jnp.float32)   # batch_first input, like PyTorch

    out = encoder_gru_forward(x, w_ih, w_hh, b_ih, b_hh, time_chunk=8)
    out = jax.block_until_ready(out)

    ref = _reference_forward(x, w_ih, w_hh, b_ih, b_hh)
    assert out.shape == (1, B, H), out.shape
    assert jnp.allclose(out, ref, atol=1e-5, rtol=1e-5)

    print("KERNEL_OK")
</pallas_src>

<mosaic_0001>
module attributes {stable_mosaic.version = 11 : i64} {
  func.func @_gru_encoder_kernel(%arg0: i32, %arg1: i32, %arg2: memref<8x8x3xf32, #tpu.memory_space<vmem>>, %arg3: memref<3x384xf32, #tpu.memory_space<vmem>>, %arg4: memref<128x384xf32, #tpu.memory_space<vmem>>, %arg5: memref<1x384xf32, #tpu.memory_space<vmem>>, %arg6: memref<1x384xf32, #tpu.memory_space<vmem>>, %arg7: memref<1x8x128xf32, #tpu.memory_space<vmem>>, %arg8: memref<8x128xf32, #tpu.memory_space<vmem>>) attributes {dimension_semantics = [#tpu.dimension_semantics<parallel>, #tpu.dimension_semantics<arbitrary>], iteration_bounds = array<i64: 1, 2>, scalar_prefetch = 0 : i64, scratch_operands = 1 : i64, tpu.core_type = #tpu.core_type<tc>, window_params = [{transform_indices = @transform_0, window_bounds = array<i64: 8, 8, 3>}, {pipeline_mode = #tpu.pipeline_mode<synchronous>, transform_indices = @transform_1, window_bounds = array<i64: 3, 384>}, {pipeline_mode = #tpu.pipeline_mode<synchronous>, transform_indices = @transform_2, window_bounds = array<i64: 128, 384>}, {pipeline_mode = #tpu.pipeline_mode<synchronous>, transform_indices = @transform_3, window_bounds = array<i64: 1, 384>}, {pipeline_mode = #tpu.pipeline_mode<synchronous>, transform_indices = @transform_4, window_bounds = array<i64: 1, 384>}, {transform_indices = @transform_5, window_bounds = array<i64: 1, 8, 128>}]} {
    %c0_i32 = arith.constant 0 : i32
    %0 = arith.cmpi eq, %arg1, %c0_i32 : i32
    %1 = arith.extui %0 : i1 to i32
    %c0_i32_0 = arith.constant 0 : i32
    %2 = arith.cmpi ne, %1, %c0_i32_0 : i32
    scf.if %2 {
      %cst_48 = arith.constant 0.000000e+00 : f32
      %260 = vector.broadcast %cst_48 : f32 to vector<8x128xf32>
      %c0_49 = arith.constant 0 : index
      %c0_50 = arith.constant 0 : index
      %261 = vector.load %arg8[%c0_49, %c0_50] : memref<8x128xf32, #tpu.memory_space<vmem>>, vector<8x128xf32>
      tpu.vector_store %arg8[%c0_49, %c0_50], %260 {strides = array<i32>} : memref<8x128xf32, #tpu.memory_space<vmem>>, vector<8x128xf32>,
    } else {
    }
    %c0 = arith.constant 0 : index
    %c0_1 = arith.constant 0 : index
    %c0_2 = arith.constant 0 : index
    %3 = vector.load %arg2[%c0, %c0_1, %c0_2] : memref<8x8x3xf32, #tpu.memory_space<vmem>>, vector<8x8x3xf32>
    %c0_3 = arith.constant 0 : index
    %c0_4 = arith.constant 0 : index
    %4 = vector.load %arg3[%c0_3, %c0_4] : memref<3x384xf32, #tpu.memory_space<vmem>>, vector<3x384xf32>
    %5 = vector.shape_cast %3 : vector<8x8x3xf32> to vector<64x3xf32>
    %cst = arith.constant dense<0.000000e+00> : vector<64x384xf32>
    %6 = tpu.matmul %5, %4, %cst {dimension_numbers = #tpu.dot_dimension_numbers<[1], [0], [0], [1], [0, 0, 1, 1], [], []>} : vector<64x3xf32>, vector<3x384xf32>, vector<64x384xf32> -> vector<64x384xf32>
    %c0_5 = arith.constant 0 : index
    %c0_6 = arith.constant 0 : index
    %7 = vector.load %arg5[%c0_5, %c0_6] : memref<1x384xf32, #tpu.memory_space<vmem>>, vector<1x384xf32>
    %8 = vector.broadcast %7 : vector<1x384xf32> to vector<64x384xf32>
    %9 = arith.addf %6, %8 : vector<64x384xf32>
    %10 = vector.shape_cast %9 : vector<64x384xf32> to vector<8x8x384xf32>
    %c0_7 = arith.constant 0 : index
    %c0_8 = arith.constant 0 : index
    %11 = vector.load %arg4[%c0_7, %c0_8] : memref<128x384xf32, #tpu.memory_space<vmem>>, vector<128x384xf32>
    %c0_9 = arith.constant 0 : index
    %c0_10 = arith.constant 0 : index
    %12 = vector.load %arg6[%c0_9, %c0_10] : memref<1x384xf32, #tpu.memory_space<vmem>>, vector<1x384xf32>
    %13 = vector.shape_cast %12 : vector<1x384xf32> to vector<1x384xf32>
    %14 = vector.broadcast %13 : vector<1x384xf32> to vector<8x384xf32>
    %c0_11 = arith.constant 0 : index
    %c0_12 = arith.constant 0 : index
    %15 = vector.load %arg8[%c0_11, %c0_12] : memref<8x128xf32, #tpu.memory_space<vmem>>, vector<8x128xf32>
    %cst_13 = arith.constant dense<0.000000e+00> : vector<8x384xf32>
    %16 = tpu.matmul %15, %11, %cst_13 {dimension_numbers = #tpu.dot_dimension_numbers<[1], [0], [0], [1], [0, 0, 1, 1], [], []>} : vector<8x128xf32>, vector<128x384xf32>, vector<8x384xf32> -> vector<8x384xf32>
    %17 = arith.addf %16, %14 : vector<8x384xf32>
    %18 = vector.extract_strided_slice %10 {offsets = [0, 0, 0], sizes = [8, 1, 384], strides = [1, 1, 1]} : vector<8x8x384xf32> to vector<8x1x384xf32>
    %19 = vector.shape_cast %18 : vector<8x1x384xf32> to vector<8x384xf32>
    %20 = vector.extract_strided_slice %19 {offsets = [0, 0], sizes = [8, 128], strides = [1, 1]} : vector<8x384xf32> to vector<8x128xf32>
    %21 = vector.extract_strided_slice %17 {offsets = [0, 0], sizes = [8, 128], strides = [1, 1]} : vector<8x384xf32> to vector<8x128xf32>
    %22 = arith.addf %20, %21 : vector<8x128xf32>
    %23 = arith.negf %22 : vector<8x128xf32>
    %24 = math.exp %23 : vector<8x128xf32>
    %cst_14 = arith.constant 1.000000e+00 : f32
    %25 = vector.broadcast %cst_14 : f32 to vector<8x128xf32>
    %26 = arith.addf %25, %24 : vector<8x128xf32>
    %27 = arith.divf %25, %26 : vector<8x128xf32>
    %28 = vector.extract_strided_slice %19 {offsets = [0, 128], sizes = [8, 128], strides = [1, 1]} : vector<8x384xf32> to vector<8x128xf32>
    %29 = vector.extract_strided_slice %17 {offsets = [0, 128], sizes = [8, 128], strides = [1, 1]} : vector<8x384xf32> to vector<8x128xf32>
    %30 = arith.addf %28, %29 : vector<8x128xf32>
    %31 = arith.negf %30 : vector<8x128xf32>
    %32 = math.exp %31 : vector<8x128xf32>
    %cst_15 = arith.constant 1.000000e+00 : f32
    %33 = vector.broadcast %cst_15 : f32 to vector<8x128xf32>
    %34 = arith.addf %33, %32 : vector<8x128xf32>
    %35 = arith.divf %33, %34 : vector<8x128xf32>
    %36 = vector.extract_strided_slice %19 {offsets = [0, 256], sizes = [8, 128], strides = [1, 1]} : vector<8x384xf32> to vector<8x128xf32>
    %37 = vector.extract_strided_slice %17 {offsets = [0, 256], sizes = [8, 128], strides = [1, 1]} : vector<8x384xf32> to vector<8x128xf32>
    %38 = arith.mulf %27, %37 : vector<8x128xf32>
    %39 = arith.addf %36, %38 : vector<8x128xf32>
    %40 = math.tanh %39 : vector<8x128xf32>
    %cst_16 = arith.constant 1.000000e+00 : f32
    %41 = vector.broadcast %cst_16 : f32 to vector<8x128xf32>
    %42 = arith.subf %41, %35 : vector<8x128xf32>
    %43 = arith.mulf %42, %40 : vector<8x128xf32>
    %44 = arith.mulf %35, %15 : vector<8x128xf32>
    %45 = arith.addf %43, %44 : vector<8x128xf32>
    %cst_17 = arith.constant dense<0.000000e+00> : vector<8x384xf32>
    %46 = tpu.matmul %45, %11, %cst_17 {dimension_numbers = #tpu.dot_dimension_numbers<[1], [0], [0], [1], [0, 0, 1, 1], [], []>} : vector<8x128xf32>, vector<128x384xf32>, vector<8x384xf32> -> vector<8x384xf32>
    %47 = arith.addf %46, %14 : vector<8x384xf32>
    %48 = vector.extract_strided_slice %10 {offsets = [0, 1, 0], sizes = [8, 1, 384], strides = [1, 1, 1]} : vector<8x8x384xf32> to vector<8x1x384xf32>
    %49 = vector.shape_cast %48 : vector<8x1x384xf32> to vector<8x384xf32>
    %50 = vector.extract_strided_slice %49 {offsets = [0, 0], sizes = [8, 128], strides = [1, 1]} : vector<8x384xf32> to vector<8x128xf32>
    %51 = vector.extract_strided_slice %47 {offsets = [0, 0], sizes = [8, 128], strides = [1, 1]} : vector<8x384xf32> to vector<8x128xf32>
    %52 = arith.addf %50, %51 : vector<8x128xf32>
    %53 = arith.negf %52 : vector<8x128xf32>
    %54 = math.exp %53 : vector<8x128xf32>
    %cst_18 = arith.constant 1.000000e+00 : f32
    %55 = vector.broadcast %cst_18 : f32 to vector<8x128xf32>
    %56 = arith.addf %55, %54 : vector<8x128xf32>
    %57 = arith.divf %55, %56 : vector<8x128xf32>
    %58 = vector.extract_strided_slice %49 {offsets = [0, 128], sizes = [8, 128], strides = [1, 1]} : vector<8x384xf32> to vector<8x128xf32>
    %59 = vector.extract_strided_slice %47 {offsets = [0, 128], sizes = [8, 128], strides = [1, 1]} : vector<8x384xf32> to vector<8x128xf32>
    %60 = arith.addf %58, %59 : vector<8x128xf32>
    %61 = arith.negf %60 : vector<8x128xf32>
    %62 = math.exp %61 : vector<8x128xf32>
    %cst_19 = arith.constant 1.000000e+00 : f32
    %63 = vector.broadcast %cst_19 : f32 to vector<8x128xf32>
    %64 = arith.addf %63, %62 : vector<8x128xf32>
    %65 = arith.divf %63, %64 : vector<8x128xf32>
    %66 = vector.extract_strided_slice %49 {offsets = [0, 256], sizes = [8, 128], strides = [1, 1]} : vector<8x384xf32> to vector<8x128xf32>
    %67 = vector.extract_strided_slice %47 {offsets = [0, 256], sizes = [8, 128], strides = [1, 1]} : vector<8x384xf32> to vector<8x128xf32>
    %68 = arith.mulf %57, %67 : vector<8x128xf32>
    %69 = arith.addf %66, %68 : vector<8x128xf32>
    %70 = math.tanh %69 : vector<8x128xf32>
    %cst_20 = arith.constant 1.000000e+00 : f32
    %71 = vector.broadcast %cst_20 : f32 to vector<8x128xf32>
    %72 = arith.subf %71, %65 : vector<8x128xf32>
    %73 = arith.mulf %72, %70 : vector<8x128xf32>
    %74 = arith.mulf %65, %45 : vector<8x128xf32>
    %75 = arith.addf %73, %74 : vector<8x128xf32>
    %cst_21 = arith.constant dense<0.000000e+00> : vector<8x384xf32>
    %76 = tpu.matmul %75, %11, %cst_21 {dimension_numbers = #tpu.dot_dimension_numbers<[1], [0], [0], [1], [0, 0, 1, 1], [], []>} : vector<8x128xf32>, vector<128x384xf32>, vector<8x384xf32> -> vector<8x384xf32>
    %77 = arith.addf %76, %14 : vector<8x384xf32>
    %78 = vector.extract_strided_slice %10 {offsets = [0, 2, 0], sizes = [8, 1, 384], strides = [1, 1, 1]} : vector<8x8x384xf32> to vector<8x1x384xf32>
    %79 = vector.shape_cast %78 : vector<8x1x384xf32> to vector<8x384xf32>
    %80 = vector.extract_strided_slice %79 {offsets = [0, 0], sizes = [8, 128], strides = [1, 1]} : vector<8x384xf32> to vector<8x128xf32>
    %81 = vector.extract_strided_slice %77 {offsets = [0, 0], sizes = [8, 128], strides = [1, 1]} : vector<8x384xf32> to vector<8x128xf32>
    %82 = arith.addf %80, %81 : vector<8x128xf32>
    %83 = arith.negf %82 : vector<8x128xf32>
    %84 = math.exp %83 : vector<8x128xf32>
    %cst_22 = arith.constant 1.000000e+00 : f32
    %85 = vector.broadcast %cst_22 : f32 to vector<8x128xf32>
    %86 = arith.addf %85, %84 : vector<8x128xf32>
    %87 = arith.divf %85, %86 : vector<8x128xf32>
    %88 = vector.extract_strided_slice %79 {offsets = [0, 128], sizes = [8, 128], strides = [1, 1]} : vector<8x384xf32> to vector<8x128xf32>
    %89 = vector.extract_strided_slice %77 {offsets = [0, 128], sizes = [8, 128], strides = [1, 1]} : vector<8x384xf32> to vector<8x128xf32>
    %90 = arith.addf %88, %89 : vector<8x128xf32>
    %91 = arith.negf %90 : vector<8x128xf32>
    %92 = math.exp %91 : vector<8x128xf32>
    %cst_23 = arith.constant 1.000000e+00 : f32
    %93 = vector.broadcast %cst_23 : f32 to vector<8x128xf32>
    %94 = arith.addf %93, %92 : vector<8x128xf32>
    %95 = arith.divf %93, %94 : vector<8x128xf32>
    %96 = vector.extract_strided_slice %79 {offsets = [0, 256], sizes = [8, 128], strides = [1, 1]} : vector<8x384xf32> to vector<8x128xf32>
    %97 = vector.extract_strided_slice %77 {offsets = [0, 256], sizes = [8, 128], strides = [1, 1]} : vector<8x384xf32> to vector<8x128xf32>
    %98 = arith.mulf %87, %97 : vector<8x128xf32>
    %99 = arith.addf %96, %98 : vector<8x128xf32>
    %100 = math.tanh %99 : vector<8x128xf32>
    %cst_24 = arith.constant 1.000000e+00 : f32
    %101 = vector.broadcast %cst_24 : f32 to vector<8x128xf32>
    %102 = arith.subf %101, %95 : vector<8x128xf32>
    %103 = arith.mulf %102, %100 : vector<8x128xf32>
    %104 = arith.mulf %95, %75 : vector<8x128xf32>
    %105 = arith.addf %103, %104 : vector<8x128xf32>
    %cst_25 = arith.constant dense<0.000000e+00> : vector<8x384xf32>
    %106 = tpu.matmul %105, %11, %cst_25 {dimension_numbers = #tpu.dot_dimension_numbers<[1], [0], [0], [1], [0, 0, 1, 1], [], []>} : vector<8x128xf32>, vector<128x384xf32>, vector<8x384xf32> -> vector<8x384xf32>
    %107 = arith.addf %106, %14 : vector<8x384xf32>
    %108 = vector.extract_strided_slice %10 {offsets = [0, 3, 0], sizes = [8, 1, 384], strides = [1, 1, 1]} : vector<8x8x384xf32> to vector<8x1x384xf32>
    %109 = vector.shape_cast %108 : vector<8x1x384xf32> to vector<8x384xf32>
    %110 = vector.extract_strided_slice %109 {offsets = [0, 0], sizes = [8, 128], strides = [1, 1]} : vector<8x384xf32> to vector<8x128xf32>
    %111 = vector.extract_strided_slice %107 {offsets = [0, 0], sizes = [8, 128], strides = [1, 1]} : vector<8x384xf32> to vector<8x128xf32>
    %112 = arith.addf %110, %111 : vector<8x128xf32>
    %113 = arith.negf %112 : vector<8x128xf32>
    %114 = math.exp %113 : vector<8x128xf32>
    %cst_26 = arith.constant 1.000000e+00 : f32
    %115 = vector.broadcast %cst_26 : f32 to vector<8x128xf32>
    %116 = arith.addf %115, %114 : vector<8x128xf32>
    %117 = arith.divf %115, %116 : vector<8x128xf32>
    %118 = vector.extract_strided_slice %109 {offsets = [0, 128], sizes = [8, 128], strides = [1, 1]} : vector<8x384xf32> to vector<8x128xf32>
    %119 = vector.extract_strided_slice %107 {offsets = [0, 128], sizes = [8, 128], strides = [1, 1]} : vector<8x384xf32> to vector<8x128xf32>
    %120 = arith.addf %118, %119 : vector<8x128xf32>
    %121 = arith.negf %120 : vector<8x128xf32>
    %122 = math.exp %121 : vector<8x128xf32>
    %cst_27 = arith.constant 1.000000e+00 : f32
    %123 = vector.broadcast %cst_27 : f32 to vector<8x128xf32>
    %124 = arith.addf %123, %122 : vector<8x128xf32>
    %125 = arith.divf %123, %124 : vector<8x128xf32>
    %126 = vector.extract_strided_slice %109 {offsets = [0, 256], sizes = [8, 128], strides = [1, 1]} : vector<8x384xf32> to vector<8x128xf32>
    %127 = vector.extract_strided_slice %107 {offsets = [0, 256], sizes = [8, 128], strides = [1, 1]} : vector<8x384xf32> to vector<8x128xf32>
    %128 = arith.mulf %117, %127 : vector<8x128xf32>
    %129 = arith.addf %126, %128 : vector<8x128xf32>
    %130 = math.tanh %129 : vector<8x128xf32>
    %cst_28 = arith.constant 1.000000e+00 : f32
    %131 = vector.broadcast %cst_28 : f32 to vector<8x128xf32>
    %132 = arith.subf %131, %125 : vector<8x128xf32>
    %133 = arith.mulf %132, %130 : vector<8x128xf32>
    %134 = arith.mulf %125, %105 : vector<8x128xf32>
    %135 = arith.addf %133, %134 : vector<8x128xf32>
    %cst_29 = arith.constant dense<0.000000e+00> : vector<8x384xf32>
    %136 = tpu.matmul %135, %11, %cst_29 {dimension_numbers = #tpu.dot_dimension_numbers<[1], [0], [0], [1], [0, 0, 1, 1], [], []>} : vector<8x128xf32>, vector<128x384xf32>, vector<8x384xf32> -> vector<8x384xf32>
    %137 = arith.addf %136, %14 : vector<8x384xf32>
    %138 = vector.extract_strided_slice %10 {offsets = [0, 4, 0], sizes = [8, 1, 384], strides = [1, 1, 1]} : vector<8x8x384xf32> to vector<8x1x384xf32>
    %139 = vector.shape_cast %138 : vector<8x1x384xf32> to vector<8x384xf32>
    %140 = vector.extract_strided_slice %139 {offsets = [0, 0], sizes = [8, 128], strides = [1, 1]} : vector<8x384xf32> to vector<8x128xf32>
    %141 = vector.extract_strided_slice %137 {offsets = [0, 0], sizes = [8, 128], strides = [1, 1]} : vector<8x384xf32> to vector<8x128xf32>
    %142 = arith.addf %140, %141 : vector<8x128xf32>
    %143 = arith.negf %142 : vector<8x128xf32>
    %144 = math.exp %143 : vector<8x128xf32>
    %cst_30 = arith.constant 1.000000e+00 : f32
    %145 = vector.broadcast %cst_30 : f32 to vector<8x128xf32>
    %146 = arith.addf %145, %144 : vector<8x128xf32>
    %147 = arith.divf %145, %146 : vector<8x128xf32>
    %148 = vector.extract_strided_slice %139 {offsets = [0, 128], sizes = [8, 128], strides = [1, 1]} : vector<8x384xf32> to vector<8x128xf32>
    %149 = vector.extract_strided_slice %137 {offsets = [0, 128], sizes = [8, 128], strides = [1, 1]} : vector<8x384xf32> to vector<8x128xf32>
    %150 = arith.addf %148, %149 : vector<8x128xf32>
    %151 = arith.negf %150 : vector<8x128xf32>
    %152 = math.exp %151 : vector<8x128xf32>
    %cst_31 = arith.constant 1.000000e+00 : f32
    %153 = vector.broadcast %cst_31 : f32 to vector<8x128xf32>
    %154 = arith.addf %153, %152 : vector<8x128xf32>
    %155 = arith.divf %153, %154 : vector<8x128xf32>
    %156 = vector.extract_strided_slice %139 {offsets = [0, 256], sizes = [8, 128], strides = [1, 1]} : vector<8x384xf32> to vector<8x128xf32>
    %157 = vector.extract_strided_slice %137 {offsets = [0, 256], sizes = [8, 128], strides = [1, 1]} : vector<8x384xf32> to vector<8x128xf32>
    %158 = arith.mulf %147, %157 : vector<8x128xf32>
    %159 = arith.addf %156, %158 : vector<8x128xf32>
    %160 = math.tanh %159 : vector<8x128xf32>
    %cst_32 = arith.constant 1.000000e+00 : f32
    %161 = vector.broadcast %cst_32 : f32 to vector<8x128xf32>
    %162 = arith.subf %161, %155 : vector<8x128xf32>
    %163 = arith.mulf %162, %160 : vector<8x128xf32>
    %164 = arith.mulf %155, %135 : vector<8x128xf32>
    %165 = arith.addf %163, %164 : vector<8x128xf32>
    %cst_33 = arith.constant dense<0.000000e+00> : vector<8x384xf32>
    %166 = tpu.matmul %165, %11, %cst_33 {dimension_numbers = #tpu.dot_dimension_numbers<[1], [0], [0], [1], [0, 0, 1, 1], [], []>} : vector<8x128xf32>, vector<128x384xf32>, vector<8x384xf32> -> vector<8x384xf32>
    %167 = arith.addf %166, %14 : vector<8x384xf32>
    %168 = vector.extract_strided_slice %10 {offsets = [0, 5, 0], sizes = [8, 1, 384], strides = [1, 1, 1]} : vector<8x8x384xf32> to vector<8x1x384xf32>
    %169 = vector.shape_cast %168 : vector<8x1x384xf32> to vector<8x384xf32>
    %170 = vector.extract_strided_slice %169 {offsets = [0, 0], sizes = [8, 128], strides = [1, 1]} : vector<8x384xf32> to vector<8x128xf32>
    %171 = vector.extract_strided_slice %167 {offsets = [0, 0], sizes = [8, 128], strides = [1, 1]} : vector<8x384xf32> to vector<8x128xf32>
    %172 = arith.addf %170, %171 : vector<8x128xf32>
    %173 = arith.negf %172 : vector<8x128xf32>
    %174 = math.exp %173 : vector<8x128xf32>
    %cst_34 = arith.constant 1.000000e+00 : f32
    %175 = vector.broadcast %cst_34 : f32 to vector<8x128xf32>
    %176 = arith.addf %175, %174 : vector<8x128xf32>
    %177 = arith.divf %175, %176 : vector<8x128xf32>
    %178 = vector.extract_strided_slice %169 {offsets = [0, 128], sizes = [8, 128], strides = [1, 1]} : vector<8x384xf32> to vector<8x128xf32>
    %179 = vector.extract_strided_slice %167 {offsets = [0, 128], sizes = [8, 128], strides = [1, 1]} : vector<8x384xf32> to vector<8x128xf32>
    %180 = arith.addf %178, %179 : vector<8x128xf32>
    %181 = arith.negf %180 : vector<8x128xf32>
    %182 = math.exp %181 : vector<8x128xf32>
    %cst_35 = arith.constant 1.000000e+00 : f32
    %183 = vector.broadcast %cst_35 : f32 to vector<8x128xf32>
    %184 = arith.addf %183, %182 : vector<8x128xf32>
    %185 = arith.divf %183, %184 : vector<8x128xf32>
    %186 = vector.extract_strided_slice %169 {offsets = [0, 256], sizes = [8, 128], strides = [1, 1]} : vector<8x384xf32> to vector<8x128xf32>
    %187 = vector.extract_strided_slice %167 {offsets = [0, 256], sizes = [8, 128], strides = [1, 1]} : vector<8x384xf32> to vector<8x128xf32>
    %188 = arith.mulf %177, %187 : vector<8x128xf32>
    %189 = arith.addf %186, %188 : vector<8x128xf32>
    %190 = math.tanh %189 : vector<8x128xf32>
    %cst_36 = arith.constant 1.000000e+00 : f32
    %191 = vector.broadcast %cst_36 : f32 to vector<8x128xf32>
    %192 = arith.subf %191, %185 : vector<8x128xf32>
    %193 = arith.mulf %192, %190 : vector<8x128xf32>
    %194 = arith.mulf %185, %165 : vector<8x128xf32>
    %195 = arith.addf %193, %194 : vector<8x128xf32>
    %cst_37 = arith.constant dense<0.000000e+00> : vector<8x384xf32>
    %196 = tpu.matmul %195, %11, %cst_37 {dimension_numbers = #tpu.dot_dimension_numbers<[1], [0], [0], [1], [0, 0, 1, 1], [], []>} : vector<8x128xf32>, vector<128x384xf32>, vector<8x384xf32> -> vector<8x384xf32>
    %197 = arith.addf %196, %14 : vector<8x384xf32>
    %198 = vector.extract_strided_slice %10 {offsets = [0, 6, 0], sizes = [8, 1, 384], strides = [1, 1, 1]} : vector<8x8x384xf32> to vector<8x1x384xf32>
    %199 = vector.shape_cast %198 : vector<8x1x384xf32> to vector<8x384xf32>
    %200 = vector.extract_strided_slice %199 {offsets = [0, 0], sizes = [8, 128], strides = [1, 1]} : vector<8x384xf32> to vector<8x128xf32>
    %201 = vector.extract_strided_slice %197 {offsets = [0, 0], sizes = [8, 128], strides = [1, 1]} : vector<8x384xf32> to vector<8x128xf32>
    %202 = arith.addf %200, %201 : vector<8x128xf32>
    %203 = arith.negf %202 : vector<8x128xf32>
    %204 = math.exp %203 : vector<8x128xf32>
    %cst_38 = arith.constant 1.000000e+00 : f32
    %205 = vector.broadcast %cst_38 : f32 to vector<8x128xf32>
    %206 = arith.addf %205, %204 : vector<8x128xf32>
    %207 = arith.divf %205, %206 : vector<8x128xf32>
    %208 = vector.extract_strided_slice %199 {offsets = [0, 128], sizes = [8, 128], strides = [1, 1]} : vector<8x384xf32> to vector<8x128xf32>
    %209 = vector.extract_strided_slice %197 {offsets = [0, 128], sizes = [8, 128], strides = [1, 1]} : vector<8x384xf32> to vector<8x128xf32>
    %210 = arith.addf %208, %209 : vector<8x128xf32>
    %211 = arith.negf %210 : vector<8x128xf32>
    %212 = math.exp %211 : vector<8x128xf32>
    %cst_39 = arith.constant 1.000000e+00 : f32
    %213 = vector.broadcast %cst_39 : f32 to vector<8x128xf32>
    %214 = arith.addf %213, %212 : vector<8x128xf32>
    %215 = arith.divf %213, %214 : vector<8x128xf32>
    %216 = vector.extract_strided_slice %199 {offsets = [0, 256], sizes = [8, 128], strides = [1, 1]} : vector<8x384xf32> to vector<8x128xf32>
    %217 = vector.extract_strided_slice %197 {offsets = [0, 256], sizes = [8, 128], strides = [1, 1]} : vector<8x384xf32> to vector<8x128xf32>
    %218 = arith.mulf %207, %217 : vector<8x128xf32>
    %219 = arith.addf %216, %218 : vector<8x128xf32>
    %220 = math.tanh %219 : vector<8x128xf32>
    %cst_40 = arith.constant 1.000000e+00 : f32
    %221 = vector.broadcast %cst_40 : f32 to vector<8x128xf32>
    %222 = arith.subf %221, %215 : vector<8x128xf32>
    %223 = arith.mulf %222, %220 : vector<8x128xf32>
    %224 = arith.mulf %215, %195 : vector<8x128xf32>
    %225 = arith.addf %223, %224 : vector<8x128xf32>
    %cst_41 = arith.constant dense<0.000000e+00> : vector<8x384xf32>
    %226 = tpu.matmul %225, %11, %cst_41 {dimension_numbers = #tpu.dot_dimension_numbers<[1], [0], [0], [1], [0, 0, 1, 1], [], []>} : vector<8x128xf32>, vector<128x384xf32>, vector<8x384xf32> -> vector<8x384xf32>
    %227 = arith.addf %226, %14 : vector<8x384xf32>
    %228 = vector.extract_strided_slice %10 {offsets = [0, 7, 0], sizes = [8, 1, 384], strides = [1, 1, 1]} : vector<8x8x384xf32> to vector<8x1x384xf32>
    %229 = vector.shape_cast %228 : vector<8x1x384xf32> to vector<8x384xf32>
    %230 = vector.extract_strided_slice %229 {offsets = [0, 0], sizes = [8, 128], strides = [1, 1]} : vector<8x384xf32> to vector<8x128xf32>
    %231 = vector.extract_strided_slice %227 {offsets = [0, 0], sizes = [8, 128], strides = [1, 1]} : vector<8x384xf32> to vector<8x128xf32>
    %232 = arith.addf %230, %231 : vector<8x128xf32>
    %233 = arith.negf %232 : vector<8x128xf32>
    %234 = math.exp %233 : vector<8x128xf32>
    %cst_42 = arith.constant 1.000000e+00 : f32
    %235 = vector.broadcast %cst_42 : f32 to vector<8x128xf32>
    %236 = arith.addf %235, %234 : vector<8x128xf32>
    %237 = arith.divf %235, %236 : vector<8x128xf32>
    %238 = vector.extract_strided_slice %229 {offsets = [0, 128], sizes = [8, 128], strides = [1, 1]} : vector<8x384xf32> to vector<8x128xf32>
    %239 = vector.extract_strided_slice %227 {offsets = [0, 128], sizes = [8, 128], strides = [1, 1]} : vector<8x384xf32> to vector<8x128xf32>
    %240 = arith.addf %238, %239 : vector<8x128xf32>
    %241 = arith.negf %240 : vector<8x128xf32>
    %242 = math.exp %241 : vector<8x128xf32>
    %cst_43 = arith.constant 1.000000e+00 : f32
    %243 = vector.broadcast %cst_43 : f32 to vector<8x128xf32>
    %244 = arith.addf %243, %242 : vector<8x128xf32>
    %245 = arith.divf %243, %244 : vector<8x128xf32>
    %246 = vector.extract_strided_slice %229 {offsets = [0, 256], sizes = [8, 128], strides = [1, 1]} : vector<8x384xf32> to vector<8x128xf32>
    %247 = vector.extract_strided_slice %227 {offsets = [0, 256], sizes = [8, 128], strides = [1, 1]} : vector<8x384xf32> to vector<8x128xf32>
    %248 = arith.mulf %237, %247 : vector<8x128xf32>
    %249 = arith.addf %246, %248 : vector<8x128xf32>
    %250 = math.tanh %249 : vector<8x128xf32>
    %cst_44 = arith.constant 1.000000e+00 : f32
    %251 = vector.broadcast %cst_44 : f32 to vector<8x128xf32>
    %252 = arith.subf %251, %245 : vector<8x128xf32>
    %253 = arith.mulf %252, %250 : vector<8x128xf32>
    %254 = arith.mulf %245, %225 : vector<8x128xf32>
    %255 = arith.addf %253, %254 : vector<8x128xf32>
    %c0_45 = arith.constant 0 : index
    %c0_46 = arith.constant 0 : index
    %256 = vector.load %arg8[%c0_45, %c0_46] : memref<8x128xf32, #tpu.memory_space<vmem>>, vector<8x128xf32>
    tpu.vector_store %arg8[%c0_45, %c0_46], %255 {strides = array<i32>} : memref<8x128xf32, #tpu.memory_space<vmem>>, vector<8x128xf32>,
    %c1_i32 = arith.constant 1 : i32
    %257 = arith.cmpi eq, %arg1, %c1_i32 : i32
    %258 = arith.extui %257 : i1 to i32
    %c0_i32_47 = arith.constant 0 : i32
    %259 = arith.cmpi ne, %258, %c0_i32_47 : i32
    scf.if %259 {
      %260 = vector.shape_cast %255 : vector<8x128xf32> to vector<1x8x128xf32>
      %c0_48 = arith.constant 0 : index
      %c0_49 = arith.constant 0 : index
      %c0_50 = arith.constant 0 : index
      %261 = vector.load %arg7[%c0_48, %c0_49, %c0_50] : memref<1x8x128xf32, #tpu.memory_space<vmem>>, vector<1x8x128xf32>
      tpu.vector_store %arg7[%c0_48, %c0_49, %c0_50], %260 {strides = array<i32>} : memref<1x8x128xf32, #tpu.memory_space<vmem>>, vector<1x8x128xf32>,
    } else {
    }
    return
  }
  func.func @transform_0(%arg0: i32, %arg1: i32) -> (i32, i32, i32) {
    %c0_i32 = arith.constant 0 : i32
    %c0_i32_0 = arith.constant 0 : i32
    return %arg0, %arg1, %c0_i32 : i32, i32, i32
  }
  func.func @transform_1(%arg0: i32, %arg1: i32) -> (i32, i32) {
    %c0_i32 = arith.constant 0 : i32
    %c0_i32_0 = arith.constant 0 : i32
    %c0_i32_1 = arith.constant 0 : i32
    return %c0_i32, %c0_i32_0 : i32, i32
  }
  func.func @transform_2(%arg0: i32, %arg1: i32) -> (i32, i32) {
    %c0_i32 = arith.constant 0 : i32
    %c0_i32_0 = arith.constant 0 : i32
    %c0_i32_1 = arith.constant 0 : i32
    return %c0_i32, %c0_i32_0 : i32, i32
  }
  func.func @transform_3(%arg0: i32, %arg1: i32) -> (i32, i32) {
    %c0_i32 = arith.constant 0 : i32
    %c0_i32_0 = arith.constant 0 : i32
    %c0_i32_1 = arith.constant 0 : i32
    return %c0_i32, %c0_i32_0 : i32, i32
  }
  func.func @transform_4(%arg0: i32, %arg1: i32) -> (i32, i32) {
    %c0_i32 = arith.constant 0 : i32
    %c0_i32_0 = arith.constant 0 : i32
    %c0_i32_1 = arith.constant 0 : i32
    return %c0_i32, %c0_i32_0 : i32, i32
  }
  func.func @transform_5(%arg0: i32, %arg1: i32) -> (i32, i32, i32) {
    %c0_i32 = arith.constant 0 : i32
    %c0_i32_0 = arith.constant 0 : i32
    %c0_i32_1 = arith.constant 0 : i32
    return %c0_i32, %arg0, %c0_i32_0 : i32, i32, i32
  }
}

</mosaic_0001>

<bundles_post_ra>
// kernel: tpu_custom_call.1
= control target key start
LH: loop header
LB: loop body
LE: loop exit
PB: predicated region body
PF: predicated region fallthrough
CT: control target
= control target key end

     0   :  { %10 = vsyncpa [#allocation5], 0  ;;  %s11695_s0 = inlined_call_operand.vmem [shape: f32[8,16,3], index: 0, kind: input, shape index: {}]   ;;  %s11696_s1 = inlined_call_operand.vmem [shape: f32[3,384], index: 1, kind: input, shape index: {}]   ;;  %s11697_s2 = inlined_call_operand.hbm [shape: f32[128,384], index: 2, kind: input, shape index: {}]   ;;  %s11698_s3 = inlined_call_operand.vmem [shape: f32[1,384], index: 3, kind: input, shape index: {}]   ;;  %s11699_s4 = inlined_call_operand.vmem [shape: f32[1,384], index: 4, kind: input, shape index: {}]   ;;  %s11700_s5 = inlined_call_operand.hbm [shape: f32[1,8,128], index: 5, kind: output, shape index: {}]  }
   0x1   :  { %11 = vsyncpa [#allocation6], 0  ;;  %s5957_s18 = smov 0   ;;  %s5959_s19 = smov 0  }
   0x2   :  { %s5961_s20 = smov 0   ;;  %s5963_s21 = smov 0  }
   0x3   :  { %s5965_s22 = smov 0  }
   0x4 LB: > { %s4830_s23 = sadd.s32 4294967295, %s5920_s22   ;;  %s26_s24 = sadd.s32 1, %s5916_s21  ;;  %s5920_s22 = sphi %s5965_s22, %s17_s22   ;;  %s5916_s21 = sphi %s5963_s21, %s12808_s21   ;;  %s5912_s20 = sphi %s5961_s20, %s12807_s20   ;;  %s5908_s19 = sphi %s5959_s19, %s12806_s19   ;;  %s5904_s18 = sphi %s5957_s18, %s12805_s18  }
   0x5   : > { %p27_p0 = scmp.ge.s32.totalorder %s26_s24, 2  ;;  %s38_s25 = sadd.s32 1, %s5908_s19 }
   0x6   : > { %p45_p1 = scmp.ne.s32.totalorder %s5908_s19, %s5904_s18  ;;  %p46_p2 = scmp.eq.s32.totalorder %s5920_s22, 0 }
   0x7   : > { %s12810_s24 = smov (%p27_p0, %s26_s24), 0  ;;  %p4831_p4 = scmp.ge.s32.totalorder %s5920_s22, 1 }
   0x8   : > { %p5990_p3 = por %p46_p2, %p45_p1  ;;  %s34_s27 = ssub.s32 %s5916_s21, %s12810_s24 }
   0x9   : > { %p172_p5 = scmp.lt.s32.totalorder %s5920_s22, 3  ;;  %p36_p6 = scmp.eq.s32.totalorder %s34_s27, 0 }
   0xa   : > { %p6004_p8 = scmp.eq.s32.totalorder %s4830_s23, 0  ;;  %s186_s8 = sshll.u32 %s11697_s2, 4  ;;  %s187_s8 = int_to_ptr.hbm [resolvable:$true] %s186_s8 }
   0xb   : > { %p5998_p7 = pnand %p4831_p4, %p172_p5  ;;  %s5922_s9 = smov [#allocation4]  }
   0xc   : > { %s6009_s30 = scalar_select %p36_p6, %s5908_s19, %s38_s25  }
   0xd   : > { %p5010_p9 = pneg %p5998_p7  ;;  %s188_s10 = sshll.u32 %s5922_s9, 4  ;;  %s189_s10 = int_to_ptr.vmem [resolvable:$true] %s188_s10 }
   0xe   : > { %s5923_s11 = smov 384   ;;  %s5924_s12 = smov 24  }
   0xf   : > { %p5011_p10 = pnand %p6004_p8, %p5010_p9  ;;  %p4833_p11 = scmp.ge.s32.totalorder %s5920_s22, 2 }
  0x11   : > { %5013 = dma.hbm_to_vmem [thread:$0]  (!%p5011_p10), %s187_s8, 6144, %s189_s10, [#allocation5], %s5923_s11, %s5923_s11, %s5924_s12  }
  0x12   : > { %204 = sbr.rel (%p4833_p11) target bundleno = 35 (0x23), region = 32 }
  0x17   : > { %207 = sbr.rel (!%p5990_p3) target bundleno = 35 (0x23), region = 36  ;;  %s209_s13 = sand.u32 (%p5990_p3), 1, %s5908_s19  }
  0x18   : > { %s4835_s14 = sshll.u32 (%p5990_p3), %s5916_s21, 3  ;;  %s4834_s15 = sshll.u32 (%p5990_p3), %s209_s13, 6 }
  0x19   : > { %s216_s25 = scalar_lea.vmem (%p5990_p3), %s11695_s0, %s4835_s14  ;;  %s211_s27 = scalar_lea.vmem (%p5990_p3), [#allocation3], %s4834_s15 }
  0x1a   : > { %v259_v0 = vld [vmem:[%s216_s25] sm:$0xff] (%p5990_p3)  ;;  %v261_v1 = vld [vmem:[%s216_s25 + $0x10] sm:$0xff] (%p5990_p3) }
  0x1b   : > { %v263_v2 = vld [vmem:[%s216_s25 + $0x20] sm:$0xff] (%p5990_p3)  ;;  %260 = vst [vmem:[%s211_s27] sm:$0xff] (%p5990_p3), %v259_v0  ;;  %v265_v3 = vld [vmem:[%s216_s25 + $0x30] sm:$0xff] (%p5990_p3) }
  0x1c   : > { %262 = vst [vmem:[%s211_s27 + $0x8] sm:$0xff] %v261_v1  ;;  %v267_v4 = vld [vmem:[%s216_s25 + $0x40] sm:$0xff]  ;;  %v269_v5 = vld [vmem:[%s216_s25 + $0x50] sm:$0xff] }
  0x1d   : > { %264 = vst [vmem:[%s211_s27 + $0x10] sm:$0xff] %v263_v2  ;;  %v271_v6 = vld [vmem:[%s216_s25 + $0x60] sm:$0xff]  ;;  %v273_v7 = vld [vmem:[%s216_s25 + $0x70] sm:$0xff] }
  0x1e   : > { %266 = vst [vmem:[%s211_s27 + $0x18] sm:$0xff] %v265_v3 }
  0x1f   : > { %268 = vst [vmem:[%s211_s27 + $0x20] sm:$0xff] %v267_v4 }
  0x20   : > { %270 = vst [vmem:[%s211_s27 + $0x28] sm:$0xff] %v269_v5 }
  0x21   : > { %272 = vst [vmem:[%s211_s27 + $0x30] sm:$0xff] %v271_v6 }
  0x22   : > { %274 = vst [vmem:[%s211_s27 + $0x38] sm:$0xff] %v273_v7 }
  0x23 PF: > { %283 = sbr.rel (%p5998_p7) target bundleno = 1942 (0x796), region = 74 }
  0x28   : > { %s286_s26 = sand.u32 1, %s5904_s18  }
  0x29   : > { %s4837_s6 = sshll.u32 %s286_s26, 6 }
  0x2a   : > { %s6029_s7 = scalar_lea.vmem [#allocation3], %s4837_s6 }
  0x2b   : > { %5895 = dma.done.wait (%p6004_p8), [#allocation5], 6144  }
  0x2c   : > { %5897 = vsyncadd (%p6004_p8), [#allocation5], 4294961152  ;;  %p4839_p12 = scmp.ne.s32.totalorder %s5912_s20, 0 }
  0x2e   : > { %317 = sbr.rel (%p4839_p12) target bundleno = 53 (0x35), region = 86 }
  0x33   : > { %v5925_v8 = vmov 0.0  }
  0x34   : > { %318 = vst [vmem:[#allocation2] sm:$0xff] %v5925_v8 }
  0x35 PF: > { %v6036_v9 = vld [vmem:[#allocation4 + $0x168] sm:$0xff]  ;;  %v6038_v10 = vld [vmem:[#allocation4 + $0x150] sm:$0xff]  ;;  %v6044_v12 = vld [vmem:[#allocation4 + $0x138] sm:$0xff]  ;;  %vm370_vm0 = vcmask 1042432   ;;  %vm345_vm1 = vcmask 23552   ;;  %p4995_p13 = scmp.ne.s32.totalorder %s5912_s20, 1 }
  0x36   : > { %557 = vmatpush.msra.mxu3 %v6036_v9  ;;  %v327_v11 = vld [vmem:[%s11696_s1] sm:$0x77]  ;;  %v6047_v13 = vld [vmem:[#allocation4 + $0x120] sm:$0xff]  ;;  %v328_v14 = vld [vmem:[%s11696_s1 + $0x8] sm:$0x7] }
  0x37   : > { %339 = vst [vmem:[#allocation1] ss:$2 sm:$0xff] %v327_v11  ;;  %v6053_v15 = vld [vmem:[#allocation4 + $0x108] sm:$0xff]  ;;  %v319_v16 = vld [vmem:[%s6029_s7] sm:$0xff]  ;;  %v6058_v17 = vld [vmem:[%s6029_s7 + $0x38] sm:$0xff] }
  0x38   : > { %558 = vmatpush.msra.mxu3 %v6038_v10  ;;  %341 = vst [vmem:[#allocation1 + $0x10] ss:$2 sm:$0xff] %v328_v14  ;;  %v6060_v18 = vld [vmem:[#allocation4 + $0xf0] sm:$0xff]  ;;  %v6065_v21 = vld [vmem:[#allocation4 + $0x178] sm:$0xff]  ;;  %v6074_v23 = vld [vmem:[#allocation4 + $0x160] sm:$0xff] }
  0x39   : > { %v6070_v22 = vld [vmem:[#allocation4 + $0xd8] sm:$0xff]  ;;  %v6076_v24 = vld [vmem:[#allocation4 + $0xc0] sm:$0xff]  ;;  %v6082_v26 = vld [vmem:[#allocation4 + $0x148] sm:$0xff] }
  0x3a   : > { %559 = vmatpush.msra.mxu3 %v6044_v12  ;;  %v6084_v27 = vld [vmem:[#allocation4 + $0xa8] sm:$0xff]  ;;  %v6091_v29 = vld [vmem:[#allocation4 + $0x90] sm:$0xff]  ;;  %v6101_v31 = vld [vmem:[#allocation4 + $0x78] sm:$0xff] }
  0x3b   : > { %v320_v28 = vld [vmem:[%s6029_s7 + $0x8] sm:$0xff]  ;;  %v6094_v30 = vld [vmem:[#allocation4 + $0x130] sm:$0xff]  ;;  %v6107_v33 = vld [vmem:[#allocation4 + $0x118] sm:$0xff] }
  0x3c   : > { %560 = vmatpush.msra.mxu3 %v6047_v13  ;;  %v6104_v32 = vld [vmem:[#allocation4 + $0x170] sm:$0xff]  ;;  %v6109_v34 = vld [vmem:[#allocation4 + $0x60] sm:$0xff]  ;;  %v6115_v35 = vld [vmem:[#allocation4 + $0x158] sm:$0xff] }
  0x3d   : > { %v6117_v36 = vld [vmem:[#allocation4 + $0x100] sm:$0xff]  ;;  %v6119_v37 = vld [vmem:[#allocation4 + $0x48] sm:$0xff]  ;;  %v321_v38 = vld [vmem:[%s6029_s7 + $0x10] sm:$0xff] }
  0x3e   : > { %v342_v19 = vld.sshfl [vmem:[#allocation1] sm:$0xff pattern:$0x75316420]  ;;  %561 = vmatpush.msra.mxu3 %v6053_v15  ;;  %v343_v20 = vld.sshfl [vmem:[#allocation1 + $0x8] sm:$0xff pattern:$0x75316420] }
  0x3f   : > { %4840 = vmatpush.msk.msra.mxu0 %vm370_vm0, %v342_v19  ;;  %5000 = vmatpush.msk.msra.mxu2 %vm370_vm0, %v342_v19  ;;  %v344_v25 = vld.sshfl [vmem:[#allocation1 + $0x10] sm:$0xff pattern:$0x75316420]  ;;  %v6128_v40 = vld [vmem:[#allocation4 + $0x30] sm:$0xff]  ;;  %v6131_v41 = vld [vmem:[#allocation4 + $0xe8] sm:$0xff] }
  0x40   : > { %4841 = vmatmul.msk.f32.vlgmr.msra.gmra.mxu0 %vm345_vm1, %v319_v16  ;;  %4848 = vmatmul.msk.f32.vlgmr.msra.gmra.mxu2 %vm345_vm1, %v6058_v17  ;;  %v6125_v39 = vld [vmem:[#allocation4 + $0x140] sm:$0xff]  ;;  %v6138_v42 = vld [vmem:[#allocation4 + $0x18] sm:$0xff]  ;;  %v6141_v43 = vld [vmem:[#allocation4 + $0x128] sm:$0xff] }
  0x41   : > { %562 = vmatpush.msra.mxu3 %v6060_v18  ;;  %5001 = vmatpush.msk.msrb.mxu2 %vm370_vm0, %v343_v20  ;;  %v6144_v44 = vld [vmem:[#allocation4 + $0xd0] sm:$0xff]  ;;  %v6146_v45 = vld [vmem:[#allocation4] sm:$0xff]  ;;  %v6151_v46 = vld [vmem:[#allocation2] sm:$0xff] }
  0x42   : > { %4849 = vmatpush.msk.msra.mxu1 %vm370_vm0, %v343_v20  ;;  %597 = vmatpush.msrb.mxu0 %v6065_v21  ;;  %v6154_v47 = vld [vmem:[#allocation4 + $0x110] sm:$0xff]  ;;  %v6156_v48 = vld [vmem:[#allocation4 + $0xb8] sm:$0xff]  ;;  %v6167_v51 = vld [vmem:[#allocation4 + $0xa0] sm:$0xff] }
  0x43   : > { %563 = vmatpush.msra.mxu3 %v6070_v22  ;;  %4850 = vmatmul.msk.f32.vlgmr.msra.gmra.mxu1 %vm345_vm1, %v319_v16  ;;  %v322_v49 = vld [vmem:[%s6029_s7 + $0x18] sm:$0xff]  ;;  %v6174_v52 = vld [vmem:[#allocation4 + $0xe0] sm:$0xff]  ;;  %v6177_v53 = vld [vmem:[#allocation4 + $0x88] sm:$0xff] }
  0x44   : > { %4858 = vmatpush.msk.msra.mxu2 %vm370_vm0, %v344_v25  ;;  %598 = vmatpush.msrb.mxu0 %v6074_v23  ;;  %v6164_v50 = vld [vmem:[#allocation4 + $0xf8] sm:$0xff]  ;;  %v6182_v54 = vld [vmem:[#allocation4 + $0xc8] sm:$0xff]  ;;  %v6185_v55 = vld [vmem:[#allocation4 + $0x70] sm:$0xff] }
  0x45   : > { %564 = vmatpush.msra.mxu3 %v6076_v24  ;;  %1087 = vmatpush.msrb.mxu1 %v6036_v9  ;;  %v323_v56 = vld [vmem:[%s6029_s7 + $0x20] sm:$0xff]  ;;  %v6191_v57 = vld [vmem:[#allocation4 + $0xb0] sm:$0xff]  ;;  %v6195_v58 = vld [vmem:[#allocation4 + $0x58] sm:$0xff] }
  0x46   : > { %599 = vmatpush.msrb.mxu0 %v6082_v26  ;;  %v6203_v59 = vld [vmem:[#allocation4 + $0x98] sm:$0xff]  ;;  %v6206_v60 = vld [vmem:[#allocation4 + $0x40] sm:$0xff]  ;;  %v6214_v62 = vld [vmem:[#allocation4 + $0x28] sm:$0xff] }
  0x47   : > { %565 = vmatpush.msra.mxu3 %v6084_v27  ;;  %1088 = vmatpush.msrb.mxu1 %v6038_v10  ;;  %v6211_v61 = vld [vmem:[#allocation4 + $0x80] sm:$0xff]  ;;  %v324_v63 = vld [vmem:[%s6029_s7 + $0x28] sm:$0xff]  ;;  %v6224_v1 = vld [vmem:[#allocation4 + $0x10] sm:$0xff] }
  0x48   : > { %4842 = vmatmul.msk.f32.gmra.mxu0 %vm345_vm1, %v320_v28  ;;  %4857 = vmatmul.msk.f32.vlgmr.msrb.gmra.mxu2 %vm345_vm1, %v6058_v17  ;;  %v6220_v0 = vld [vmem:[#allocation4 + $0x68] sm:$0xff]  ;;  %v6232_v2 = vld [vmem:[#allocation4 + $0x50] sm:$0xff]  ;;  %v6238_v3 = vld [vmem:[#allocation4 + $0x38] sm:$0xff] }
  0x49   : > { %566 = vmatpush.msra.mxu3 %v6091_v29  ;;  %600 = vmatpush.msrb.mxu0 %v6094_v30  ;;  %v325_v4 = vld [vmem:[%s6029_s7 + $0x30] sm:$0xff]  ;;  %v6245_v5 = vld [vmem:[#allocation4 + $0x20] sm:$0xff]  ;;  %v6254_v6 = vld [vmem:[#allocation4 + $0x8] sm:$0xff] }
  0x4a   : > { %1107 = vmatpush.msrb.mxu2 %v6104_v32  ;;  %1089 = vmatpush.msrb.mxu1 %v6044_v12 }
  0x4b   : > { %567 = vmatpush.msra.mxu3 %v6101_v31  ;;  %4851 = vmatmul.msk.f32.gmra.mxu1 %vm345_vm1, %v320_v28 }
  0x4c   : > { %601 = vmatpush.msrb.mxu0 %v6107_v33  ;;  %1108 = vmatpush.msrb.mxu2 %v6115_v35 }
  0x4d   : > { %568 = vmatpush.msra.mxu3 %v6109_v34  ;;  %1090 = vmatpush.msrb.mxu1 %v6047_v13 }
  0x4e   : > { %602 = vmatpush.msrb.mxu0 %v6117_v36  ;;  %1109 = vmatpush.msrb.mxu2 %v6125_v39 }
  0x4f   : > { %569 = vmatpush.msra.mxu3 %v6119_v37  ;;  %1091 = vmatpush.msrb.mxu1 %v6053_v15 }
  0x50   : > { %4843 = vmatmul.msk.f32.gmra.mxu0 %vm345_vm1, %v321_v38  ;;  %4859 = vmatmul.msk.f32.vlgmr.msra.gmra.mxu2 %vm345_vm1, %v319_v16  ;;  %v6374_v16 = vld [vmem:[%s11699_s4] sm:$0x7] }
  0x51   : > { %570 = vmatpush.msra.mxu3 %v6128_v40  ;;  %603 = vmatpush.msrb.mxu0 %v6131_v41  ;;  %v6380_v19 = vperm.slane %v6374_v16, 0 }
  0x52   : > { %1110 = vmatpush.msrb.mxu2 %v6141_v43  ;;  %1092 = vmatpush.msrb.mxu1 %v6060_v18 }
  0x53   : > { %571 = vmatpush.msra.mxu3 %v6138_v42  ;;  %4852 = vmatmul.msk.f32.gmra.mxu1 %vm345_vm1, %v321_v38  ;;  %11863 = vst [vmem:[#allocation10_spill] sm:$0xff] %v6380_v19 }
  0x54   : > { %604 = vmatpush.msrb.mxu0 %v6144_v44  ;;  %1111 = vmatpush.msrb.mxu2 %v6154_v47 }
  0x55   : > { %572 = vmatpush.msra.mxu3 %v6146_v45  ;;  %1093 = vmatpush.msrb.mxu1 %v6070_v22 }
  0x56   : > { %573 = vmatmul.f32.vlgmr.msra.gmra.mxu3 %v6151_v46  ;;  %605 = vmatpush.msrb.mxu0 %v6156_v48 }
  0x57   : > { %577 = vmatpush.msrb.mxu3 %v6104_v32  ;;  %1112 = vmatpush.msrb.mxu2 %v6164_v50 }
  0x58   : > { %4844 = vmatmul.msk.f32.gmra.mxu0 %vm345_vm1, %v322_v49  ;;  %4860 = vmatmul.msk.f32.gmra.mxu2 %vm345_vm1, %v320_v28 }
  0x59   : > { %578 = vmatpush.msrb.mxu3 %v6115_v35  ;;  %606 = vmatpush.msrb.mxu0 %v6167_v51 }
  0x5a   : > { %1113 = vmatpush.msrb.mxu2 %v6174_v52  ;;  %1094 = vmatpush.msrb.mxu1 %v6076_v24 }
  0x5b   : > { %579 = vmatpush.msrb.mxu3 %v6125_v39  ;;  %4853 = vmatmul.msk.f32.gmra.mxu1 %vm345_vm1, %v322_v49 }
  0x5c   : > { %607 = vmatpush.msrb.mxu0 %v6177_v53  ;;  %1114 = vmatpush.msrb.mxu2 %v6182_v54 }
  0x5d   : > { %580 = vmatpush.msrb.mxu3 %v6141_v43  ;;  %1095 = vmatpush.msrb.mxu1 %v6084_v27 }
  0x5e   : > { %608 = vmatpush.msrb.mxu0 %v6185_v55  ;;  %1115 = vmatpush.msrb.mxu2 %v6191_v57 }
  0x5f   : > { %581 = vmatpush.msrb.mxu3 %v6154_v47  ;;  %1096 = vmatpush.msrb.mxu1 %v6091_v29 }
  0x60   : > { %4845 = vmatmul.msk.f32.gmra.mxu0 %vm345_vm1, %v323_v56  ;;  %4861 = vmatmul.msk.f32.gmra.mxu2 %vm345_vm1, %v321_v38 }
  0x61   : > { %582 = vmatpush.msrb.mxu3 %v6164_v50  ;;  %609 = vmatpush.msrb.mxu0 %v6195_v58 }
  0x62   : > { %1116 = vmatpush.msrb.mxu2 %v6203_v59  ;;  %1097 = vmatpush.msrb.mxu1 %v6101_v31 }
  0x63   : > { %583 = vmatpush.msrb.mxu3 %v6174_v52  ;;  %4854 = vmatmul.msk.f32.gmra.mxu1 %vm345_vm1, %v323_v56 }
  0x64   : > { %610 = vmatpush.msrb.mxu0 %v6206_v60  ;;  %1117 = vmatpush.msrb.mxu2 %v6211_v61 }
  0x65   : > { %584 = vmatpush.msrb.mxu3 %v6182_v54  ;;  %1098 = vmatpush.msrb.mxu1 %v6109_v34 }
  0x66   : > { %611 = vmatpush.msrb.mxu0 %v6214_v62  ;;  %1118 = vmatpush.msrb.mxu2 %v6220_v0 }
  0x67   : > { %585 = vmatpush.msrb.mxu3 %v6191_v57  ;;  %1099 = vmatpush.msrb.mxu1 %v6119_v37 }
  0x68   : > { %4846 = vmatmul.msk.f32.gmra.mxu0 %vm345_vm1, %v324_v63  ;;  %4862 = vmatmul.msk.f32.gmra.mxu2 %vm345_vm1, %v322_v49 }
  0x69   : > { %586 = vmatpush.msrb.mxu3 %v6203_v59  ;;  %612 = vmatpush.msrb.mxu0 %v6224_v1 }
  0x6a   : > { %1119 = vmatpush.msrb.mxu2 %v6232_v2  ;;  %1100 = vmatpush.msrb.mxu1 %v6128_v40 }
  0x6b   : > { %587 = vmatpush.msrb.mxu3 %v6211_v61  ;;  %4855 = vmatmul.msk.f32.gmra.mxu1 %vm345_vm1, %v324_v63 }
  0x6c   : > { %1120 = vmatpush.msrb.mxu2 %v6238_v3  ;;  %1101 = vmatpush.msrb.mxu1 %v6138_v42 }
  0x6d   : > { %588 = vmatpush.msrb.mxu3 %v6220_v0  ;;  %1609 = vmatpush.msra.mxu0 %v6036_v9 }
  0x6e   : > { %1121 = vmatpush.msrb.mxu2 %v6245_v5  ;;  %1102 = vmatpush.msrb.mxu1 %v6146_v45 }
  0x6f   : > { %589 = vmatpush.msrb.mxu3 %v6232_v2  ;;  %1610 = vmatpush.msra.mxu0 %v6038_v10 }
  0x70   : > { %1629 = vmatpush.msra.mxu1 %v6104_v32  ;;  %4847 = vmatmul.msk.f32.gmra.mxu0 %vm345_vm1, %v325_v4 }
  0x71   : > { %4863 = vmatmul.msk.f32.gmra.mxu2 %vm345_vm1, %v323_v56  ;;  %590 = vmatpush.msrb.mxu3 %v6238_v3 }
  0x72   : > { %1122 = vmatpush.msrb.mxu2 %v6254_v6  ;;  %1630 = vmatpush.msra.mxu1 %v6115_v35 }
  0x73   : > { %591 = vmatpush.msrb.mxu3 %v6245_v5  ;;  %4856 = vmatmul.msk.f32.gmra.mxu1 %vm345_vm1, %v325_v4 }
  0x74   : > { %1649 = vmatpush.msra.mxu2 %v6065_v21  ;;  %1611 = vmatpush.msra.mxu0 %v6044_v12 }
  0x75   : > { %592 = vmatpush.msrb.mxu3 %v6254_v6  ;;  %1631 = vmatpush.msra.mxu1 %v6125_v39 }
  0x76   : > { %1650 = vmatpush.msra.mxu2 %v6074_v23  ;;  %593 = vmatmul.f32.vlgmr.msrb.gmra.mxu3 %v6151_v46 }
  0x77   : > { %1127 = vmatpush.msra.mxu3 %v6065_v21  ;;  %1612 = vmatpush.msra.mxu0 %v6047_v13 }
  0x78   : > { %1651 = vmatpush.msra.mxu2 %v6082_v26  ;;  %613 = vmatmul.f32.vlgmr.msrb.gmra.mxu0 %v6151_v46 }
  0x79   : > { %4864 = vmatmul.msk.f32.gmra.mxu2 %vm345_vm1, %v324_v63  ;;  %1128 = vmatpush.msra.mxu3 %v6074_v23 }
  0x7a   : > { %1632 = vmatpush.msra.mxu1 %v6141_v43  ;;  %1652 = vmatpush.msra.mxu2 %v6094_v30 }
  0x7b   : > { %1129 = vmatpush.msra.mxu3 %v6082_v26  ;;  %1613 = vmatpush.msra.mxu0 %v6053_v15 }
  0x7c   : > { %1633 = vmatpush.msra.mxu1 %v6154_v47  ;;  %1653 = vmatpush.msra.mxu2 %v6107_v33 }
  0x7d   : > { %1130 = vmatpush.msra.mxu3 %v6094_v30  ;;  %1614 = vmatpush.msra.mxu0 %v6060_v18 }
  0x7e   : > { %1634 = vmatpush.msra.mxu1 %v6164_v50  ;;  %1654 = vmatpush.msra.mxu2 %v6117_v36 }
  0x7f   : > { %1131 = vmatpush.msra.mxu3 %v6107_v33  ;;  %1615 = vmatpush.msra.mxu0 %v6070_v22 }
  0x80   : > { %1635 = vmatpush.msra.mxu1 %v6174_v52  ;;  %1655 = vmatpush.msra.mxu2 %v6131_v41 }
  0x81   : > { %4865 = vmatmul.msk.f32.gmra.mxu2 %vm345_vm1, %v325_v4  ;;  %1132 = vmatpush.msra.mxu3 %v6117_v36 }
  0x82   : > { %1616 = vmatpush.msra.mxu0 %v6076_v24  ;;  %1636 = vmatpush.msra.mxu1 %v6182_v54 }
  0x83   : > { %1133 = vmatpush.msra.mxu3 %v6131_v41  ;;  %1656 = vmatpush.msra.mxu2 %v6144_v44 }
  0x84   : > { %1617 = vmatpush.msra.mxu0 %v6084_v27  ;;  %1637 = vmatpush.msra.mxu1 %v6191_v57 }
  0x85   : > { %1134 = vmatpush.msra.mxu3 %v6144_v44  ;;  %1657 = vmatpush.msra.mxu2 %v6156_v48 }
  0x86   : > { %1618 = vmatpush.msra.mxu0 %v6091_v29  ;;  %1638 = vmatpush.msra.mxu1 %v6203_v59 }
  0x87   : > { %1135 = vmatpush.msra.mxu3 %v6156_v48  ;;  %1658 = vmatpush.msra.mxu2 %v6167_v51 }
  0x88   : > { %1619 = vmatpush.msra.mxu0 %v6101_v31  ;;  %1639 = vmatpush.msra.mxu1 %v6211_v61 }
  0x89   : > { %4866 = vmatmul.msk.f32.gmra.mxu2 %vm345_vm1, %v6058_v17  ;;  %1136 = vmatpush.msra.mxu3 %v6167_v51  ;;  %v329_v17 = vld [vmem:[%s11698_s3] sm:$0x7] }
  0x8a   : > { %1659 = vmatpush.msra.mxu2 %v6177_v53  ;;  %1620 = vmatpush.msra.mxu0 %v6109_v34  ;;  %v6382_v20 = vperm.slane %v329_v17, 0  ;;  %v332_v63 = vperm.slane %v329_v17, 1  ;;  %v6436_v4 = vperm.slane %v329_v17, 2 }
  0x8b   : > { %1137 = vmatpush.msra.mxu3 %v6177_v53  ;;  %1640 = vmatpush.msra.mxu1 %v6220_v0 }
  0x8c   : > { %1660 = vmatpush.msra.mxu2 %v6185_v55  ;;  %1621 = vmatpush.msra.mxu0 %v6119_v37 }
  0x8d   : > { %1138 = vmatpush.msra.mxu3 %v6185_v55  ;;  %1641 = vmatpush.msra.mxu1 %v6232_v2 }
  0x8e   : > { %1661 = vmatpush.msra.mxu2 %v6195_v58  ;;  %1622 = vmatpush.msra.mxu0 %v6128_v40 }
  0x8f   : > { %1139 = vmatpush.msra.mxu3 %v6195_v58  ;;  %1642 = vmatpush.msra.mxu1 %v6238_v3 }
  0x90   : > { %1662 = vmatpush.msra.mxu2 %v6206_v60  ;;  %1623 = vmatpush.msra.mxu0 %v6138_v42 }
  0x91   : > { %1140 = vmatpush.msra.mxu3 %v6206_v60  ;;  %1643 = vmatpush.msra.mxu1 %v6245_v5 }
  0x92   : > { %1663 = vmatpush.msra.mxu2 %v6214_v62  ;;  %1624 = vmatpush.msra.mxu0 %v6146_v45 }
  0x93   : > { %1141 = vmatpush.msra.mxu3 %v6214_v62  ;;  %1644 = vmatpush.msra.mxu1 %v6254_v6 }
  0x94   : > { %1664 = vmatpush.msra.mxu2 %v6224_v1  ;;  %2151 = vmatpush.msrb.mxu0 %v6104_v32 }
  0x95   : > { %1142 = vmatpush.msra.mxu3 %v6224_v1 }
  0x96   : > { %2152 = vmatpush.msrb.mxu0 %v6115_v35 }
  0x97   : > { %2131 = vmatpush.msrb.mxu3 %v6036_v9 }
  0x98   : > { %2153 = vmatpush.msrb.mxu0 %v6125_v39 }
  0x99   : > { %2132 = vmatpush.msrb.mxu3 %v6038_v10 }
  0x9a   : > { %2154 = vmatpush.msrb.mxu0 %v6141_v43 }
  0x9b   : > { %2133 = vmatpush.msrb.mxu3 %v6044_v12 }
  0x9c   : > { %2155 = vmatpush.msrb.mxu0 %v6154_v47 }
  0x9d   : > { %2134 = vmatpush.msrb.mxu3 %v6047_v13 }
  0x9e   : > { %2156 = vmatpush.msrb.mxu0 %v6164_v50 }
  0x9f   : > { %2135 = vmatpush.msrb.mxu3 %v6053_v15 }
  0xa0   : > { %2157 = vmatpush.msrb.mxu0 %v6174_v52 }
  0xa1   : > { %2136 = vmatpush.msrb.mxu3 %v6060_v18 }
  0xa2   : > { %2158 = vmatpush.msrb.mxu0 %v6182_v54 }
  0xa3   : > { %2137 = vmatpush.msrb.mxu3 %v6070_v22 }
  0xa4   : > { %2159 = vmatpush.msrb.mxu0 %v6191_v57 }
  0xa5   : > { %2138 = vmatpush.msrb.mxu3 %v6076_v24 }
  0xa6   : > { %2160 = vmatpush.msrb.mxu0 %v6203_v59 }
  0xa7   : > { %2139 = vmatpush.msrb.mxu3 %v6084_v27 }
  0xa8   : > { %2161 = vmatpush.msrb.mxu0 %v6211_v61 }
  0xa9   : > { %2140 = vmatpush.msrb.mxu3 %v6091_v29 }
  0xaa   : > { %2162 = vmatpush.msrb.mxu0 %v6220_v0 }
  0xab   : > { %2141 = vmatpush.msrb.mxu3 %v6101_v31 }
  0xac   : > { %2163 = vmatpush.msrb.mxu0 %v6232_v2 }
  0xad   : > { %2142 = vmatpush.msrb.mxu3 %v6109_v34 }
  0xae   : > { %2164 = vmatpush.msrb.mxu0 %v6238_v3 }
  0xaf   : > { %2143 = vmatpush.msrb.mxu3 %v6119_v37 }
  0xb0   : > { %2165 = vmatpush.msrb.mxu0 %v6245_v5 }
  0xb1   : > { %2144 = vmatpush.msrb.mxu3 %v6128_v40 }
  0xb2   : > { %2166 = vmatpush.msrb.mxu0 %v6254_v6 }
  0xb3   : > { %2145 = vmatpush.msrb.mxu3 %v6138_v42 }
  0xb5   : > { %2146 = vmatpush.msrb.mxu3 %v6146_v45 }
  0xbd   : > { %v394_v7 = vpop.f32.mrf.mxu0 }
  0xbe   : > { %v6393_v25 = vadd.f32 %v394_v7, %v6382_v20 }
  0xc0   : > { %v6361_v8 = vpop.f32.mrf.mxu1  ;;  %11865 = vst [vmem:[#allocation12_spill] sm:$0xff] %v6393_v25 }
  0xc3   : > { %v415_v9 = vpop.f32.mrf.mxu2 }
  0xc4   : > { %v6414_v39 = vadd.f32 %v415_v9, %v6382_v20 }
  0xc5   : > { %v397_v10 = vpop.f32.mrf.mxu0 }
  0xc6   : > { %v6396_v26 = vadd.f32 %v397_v10, %v6382_v20  ;;  %11868 = vst [vmem:[#allocation15_spill] sm:$0xff] %v6414_v39 }
  0xc8   : > { %v6363_v11 = vpop.f32.mrf.mxu1  ;;  %11866 = vst [vmem:[#allocation13_spill] sm:$0xff] %v6396_v26 }
  0xcb   : > { %v6365_v12 = vpop.f32.mrf.mxu2 }
  0xcc   : > { %v6450_v17 = vadd.f32 %v6365_v12, %v332_v63  ;;  %v6475_v12 = vperm.slane %v6374_v16, 2 }
  0xcd   : > { %v400_v13 = vpop.f32.mrf.mxu0 }
  0xce   : > { %v6401_v28 = vadd.f32 %v400_v13, %v6382_v20  ;;  %v6447_v13 = vadd.f32 %v6361_v8, %v332_v63  ;;  %11873 = vst [vmem:[#allocation20_spill] sm:$0xff] %v6450_v17 }
  0xcf   : > { %11877 = vst [vmem:[#allocation24_spill] sm:$0xff] %v6475_v12 }
  0xd0   : > { %v6367_v14 = vpop.f32.mrf.mxu1  ;;  %11867 = vst [vmem:[#allocation14_spill] sm:$0xff] %v6401_v28 }
  0xd1   : > { %11872 = vst [vmem:[#allocation19_spill] sm:$0xff] %v6447_v13 }
  0xd3   : > { %v6369_v15 = vpop.f32.mrf.mxu2 }
  0xd5   : > { %v403_v18 = vpop.f32.mrf.mxu0 }
  0xd6   : > { %v6387_v23 = vadd.f32 %v403_v18, %v6382_v20  ;;  %v6453_v18 = vadd.f32 %v6363_v11, %v332_v63 }
  0xd8   : > { %v6384_v21 = vpop.f32.mrf.mxu1  ;;  %11864 = vst [vmem:[#allocation11_spill] sm:$0xff] %v6387_v23 }
  0xd9   : > { %v574_v22 = vpop.f32.mrf.mxu3  ;;  %11874 = vst [vmem:[#allocation21_spill] sm:$0xff] %v6453_v18 }
  0xda   : > { %v6390_v24 = vadd.f32 %v574_v22, %v6380_v19 }
  0xdb   : > { %v6398_v27 = vpop.f32.mrf.mxu2 }
  0xdc   : > { %v618_v29 = vrot.slane %v6390_v24, 1  ;;  %v619_v30 = vrot.slane %v6390_v24, 2  ;;  %v620_v31 = vrot.slane %v6390_v24, 3  ;;  %v621_v32 = vrot.slane %v6390_v24, 4 }
  0xdd   : > { %v624_v33 = vrot.slane %v6390_v24, 7  ;;  %v633_v34 = vadd.f32 %v6390_v24, %v6393_v25  ;;  %v406_v35 = vpop.f32.mrf.mxu0  ;;  %v622_v50 = vrot.slane %v6390_v24, 5  ;;  %v623_v5 = vrot.slane %v6390_v24, 6 }
  0xde   : > { %v634_v36 = vadd.f32 %v618_v29, %v6396_v26  ;;  %v635_v37 = vadd.f32 %v619_v30, %v6401_v28  ;;  %v636_v38 = vadd.f32 %v620_v31, %v6387_v23  ;;  %v6417_v41 = vadd.f32 %v406_v35, %v6382_v20 }
  0xdf   : > { %v4867_v40 = vmul.f32 -1.442695, %v633_v34  ;;  %v640_v45 = vadd.f32 %v624_v33, %v6414_v39  ;;  %v6459_v24 = vadd.f32 %v6369_v15, %v6436_v4  ;;  %v6462_v29 = vadd.f32 %v6367_v14, %v332_v63 }
  0xe0   : > { %11869 = vst [vmem:[#allocation16_spill] sm:$0xff] %v6417_v41  ;;  %v4868_v42 = vmul.f32 -1.442695, %v634_v36  ;;  %v4869_v43 = vmul.f32 -1.442695, %v635_v37  ;;  %v637_v46 = vadd.f32 %v621_v32, %v6417_v41  ;;  %v447_v47 = vpop.f32.mrf.mxu1  ;;  %v6472_v11 = vadd.f32 %v6398_v27, %v6436_v4 }
  0xe1   : > { %v4870_v44 = vmul.f32 -1.442695, %v636_v38  ;;  %5063 = vpow2.f32 %v4867_v40  ;;  %v4874_v51 = vmul.f32 -1.442695, %v640_v45  ;;  %11875 = vst [vmem:[#allocation22_spill] sm:$0xff] %v6462_v29  ;;  %v6478_v15 = vperm.slane %v6374_v16, 1 }
  0xe2   : > { %5065 = vpow2.f32 %v4868_v42  ;;  %v4871_v48 = vmul.f32 -1.442695, %v637_v46  ;;  %v6493_v16 = vadd.f32 %v447_v47, %v332_v63 }
  0xe3   : > { %5067 = vpow2.f32 %v4869_v43  ;;  %v482_v49 = vpop.f32.mrf.mxu2  ;;  %11878 = vst [vmem:[#allocation25_spill] sm:$0xff] %v6478_v15 }
  0xe4   : > { %5069 = vpow2.f32 %v4870_v44  ;;  %v6491_v34 = vadd.f32 %v482_v49, %v6436_v4  ;;  %11879 = vst [vmem:[#allocation26_spill] sm:$0xff] %v6493_v16 }
  0xe5   : > { %v409_v52 = vpop.f32.mrf.mxu0  ;;  %5071 = vpow2.f32 %v4871_v48 }
  0xe6   : > { %v6423_v53 = vadd.f32 %v409_v52, %v6382_v20  ;;  %5073 = vpow2.f32 %v4874_v51 }
  0xe7   : > { %v5064_v54 = vpop.eup %5063 }
  0xe8   : > { %11870 = vst [vmem:[#allocation17_spill] sm:$0xff] %v6423_v53  ;;  %v5066_v55 = vpop.eup %5065  ;;  %v6425_v56 = vadd.f32 1.0, %v5064_v54  ;;  %v638_v57 = vadd.f32 %v622_v50, %v6423_v53  ;;  %v450_v2 = vpop.f32.mrf.mxu1 }
  0xe9   : > { %v5068_v58 = vpop.eup %5067  ;;  %v6428_v59 = vadd.f32 1.0, %v5066_v55  ;;  %v6498_v38 = vadd.f32 %v450_v2, %v332_v63 }
  0xea   : > { %v5070_v60 = vpop.eup %5069  ;;  %v6430_v61 = vadd.f32 1.0, %v5068_v58  ;;  %5075 = vrcp.f32 %v6425_v56  ;;  %v4872_v62 = vmul.f32 -1.442695, %v638_v57  ;;  %v684_v32 = vand.u32 2147483648, %v6425_v56 }
  0xeb   : > { %v6433_v0 = vadd.f32 1.0, %v5070_v60  ;;  %5077 = vrcp.f32 %v6428_v59  ;;  %v485_v1 = vpop.f32.mrf.mxu2  ;;  %v5072_v3 = vpop.eup %5071  ;;  %v699_v35 = vand.u32 2147483648, %v6428_v59  ;;  %11880 = vst [vmem:[#allocation27_spill] sm:$0xff] %v6498_v38  ;;  %v682_v47 = vand.u32 2147483647, %v6425_v56 }
  0xec   : > { %5079 = vrcp.f32 %v6430_v61  ;;  %v6441_v7 = vadd.f32 1.0, %v5072_v3  ;;  %v5074_v10 = vpop.eup %5073  ;;  %v714_v42 = vand.u32 2147483648, %v6430_v61  ;;  %v6504_v44 = vadd.f32 %v485_v1, %v6436_v4 }
  0xed   : > { %5081 = vrcp.f32 %v6433_v0  ;;  %v412_v6 = vpop.f32.mrf.mxu0  ;;  %v6509_v50 = vadd.f32 1.0, %v5074_v10  ;;  %vm678_vm2 = vweird.f32 %v6425_v56  ;;  %v6512_v51 = vor.u32 1.1754944e-38, %v684_v32 }
  0xee   : > { %5083 = vpow2.f32 %v4872_v62  ;;  %v6444_v9 = vadd.f32 %v412_v6, %v6382_v20  ;;  %v6465_v20 = vadd.f32 %v6384_v21, %v332_v63  ;;  %vm693_vm3 = vweird.f32 %v6428_v59 }
  0xef   : > { %5085 = vrcp.f32 %v6441_v7  ;;  %v697_v54 = vand.u32 2147483647, %v6428_v59  ;;  %v6516_v55 = vor.u32 1.1754944e-38, %v699_v35  ;;  %v712_v57 = vand.u32 2147483647, %v6430_v61 }
  0xf0   : > { %11871 = vst [vmem:[#allocation18_spill] sm:$0xff] %v6444_v9  ;;  %v6455_v22 = vpop.eup %5075  ;;  %v639_v8 = vadd.f32 %v623_v5, %v6444_v9  ;;  %v453_v45 = vpop.f32.mrf.mxu1  ;;  %vm708_vm6 = vweird.f32 %v6430_v61  ;;  %v6526_v1 = vor.u32 1.1754944e-38, %v714_v42  ;;  %vm723_vm8 = vweird.f32 %v6433_v0 }
  0xf1   : > { %11876 = vst [vmem:[#allocation23_spill] sm:$0xff] %v6465_v20  ;;  %v6468_v30 = vpop.eup %5077  ;;  %v674_v14 = vmul.f32 %v6455_v22, %v6425_v56  ;;  %v6521_v62 = vadd.f32 %v453_v45, %v332_v63  ;;  %vm679_vm4 = vweird.f32 %v6455_v22  ;;  %v727_v63 = vand.u32 2147483647, %v6433_v0 }
  0xf2   : > { %v6482_v31 = vpop.eup %5079  ;;  %v4873_v21 = vmul.f32 -1.442695, %v639_v8  ;;  %v689_v27 = vmul.f32 %v6468_v30, %v6428_v59  ;;  %vm694_vm5 = vweird.f32 %v6468_v30  ;;  %vm6543_vm9 = vcmp.eq.f32.partialorder %v682_v47, 8.507059e+37  ;;  %vm6578_vm13 = vmor %vm678_vm2, %vm679_vm4 }
  0xf3   : > { %v6488_v33 = vpop.eup %5081  ;;  %v704_v36 = vmul.f32 %v6482_v31, %v6430_v61  ;;  %v675_v46 = vsub.f32 1.0, %v674_v14  ;;  %11881 = vst [vmem:[#allocation28_spill] sm:$0xff] %v6521_v62  ;;  %vm709_vm7 = vweird.f32 %v6482_v31  ;;  %vm6547_vm10 = vcmp.eq.f32.partialorder %v697_v54, 8.507059e+37  ;;  %vm6594_vm15 = vmor %vm693_vm3, %vm694_vm5 }
  0xf4   : > { %v5084_v37 = vpop.eup %5083  ;;  %5087 = vpow2.f32 %v4873_v21  ;;  %v488_v40 = vpop.f32.mrf.mxu2  ;;  %v719_v43 = vmul.f32 %v6488_v33, %v6433_v0  ;;  %v690_v48 = vsub.f32 1.0, %v689_v27  ;;  %vm724_vm11 = vweird.f32 %v6488_v33  ;;  %vm6610_vm0 = vmor %vm708_vm6, %vm709_vm7 }
  0xf5   : > { %v6507_v49 = vadd.f32 1.0, %v5084_v37  ;;  %v705_v52 = vsub.f32 1.0, %v704_v36  ;;  %v6519_v60 = vpop.eup %5085  ;;  %v614_v2 = vpop.f32.mrf.mxu0  ;;  %v676_v5 = vmul.f32 %v6455_v22, %v675_v46  ;;  %v6535_v8 = vadd.f32 %v488_v40, %v6436_v4  ;;  %vm6623_vm1 = vmor %vm723_vm8, %vm724_vm11 }
  0xf6   : > { %v720_v58 = vsub.f32 1.0, %v719_v43  ;;  %v691_v6 = vmul.f32 %v6468_v30, %v690_v48  ;;  %v734_v37 = vmul.f32 %v6519_v60, %v6441_v7  ;;  %v6556_v40 = vadd.f32 %v614_v2, %v6475_v12 }
  0xf7   : > { %5089 = vrcp.f32 %v6507_v49  ;;  %v706_v21 = vmul.f32 %v6482_v31, %v705_v52  ;;  %v677_v47 = vadd.f32 %v6455_v22, %v676_v5  ;;  %vm6566_vm12 = vcmp.eq.f32.partialorder %v712_v57, 8.507059e+37 }
  0xf8   : > { %v721_v36 = vmul.f32 %v6488_v33, %v720_v58  ;;  %v692_v48 = vadd.f32 %v6468_v30, %v691_v6  ;;  %vm6583_vm14 = vcmp.eq.f32.partialorder %v727_v63, 8.507059e+37  ;;  %v729_v63 = vand.u32 2147483648, %v6433_v0 }
  0xf9   : > { %v594_v3 = vpop.f32.mrf.mxu3  ;;  %vm738_vm2 = vweird.f32 %v6441_v7  ;;  %vm739_vm3 = vweird.f32 %v6519_v60  ;;  %v744_v6 = vand.u32 2147483648, %v6441_v7  ;;  %vm753_vm4 = vweird.f32 %v6507_v49 }
  0xfa   : > { %v5088_v10 = vpop.eup %5087  ;;  %v6538_v14 = vadd.f32 %v594_v3, %v6478_v15  ;;  %v722_v57 = vadd.f32 %v6488_v33, %v721_v36  ;;  %vm6683_vm5 = vmor %vm738_vm2, %vm739_vm3  ;;  %v973_v36 = vrot.slane %v6556_v40, 4  ;;  %v976_v15 = vrot.slane %v6556_v40, 7 }
  0xfb   : > { %v6541_v32 = vadd.f32 1.0, %v5088_v10  ;;  %v707_v10 = vadd.f32 %v6482_v31, %v706_v21 }
  0xfc   : > { %v794_v42 = vrot.slane %v6538_v14, 1  ;;  %v795_v43 = vrot.slane %v6538_v14, 2  ;;  %v796_v45 = vrot.slane %v6538_v14, 3  ;;  %v809_v46 = vadd.f32 %v6538_v14, %v6447_v13  ;;  %v491_v3 = vpop.f32.mrf.mxu2 }
  0xfd   : > { %5091 = vrcp.f32 %v6541_v32  ;;  %v797_v54 = vrot.slane %v6538_v14, 4  ;;  %v6648_v5 = vadd.f32 %v491_v3, %v6436_v4  ;;  %v742_v3 = vand.u32 2147483647, %v6441_v7 }
  0xfe   : > { %v810_v58 = vadd.f32 %v794_v42, %v6453_v18  ;;  %v811_v2 = vadd.f32 %v795_v43, %v6462_v29  ;;  %v4875_v12 = vmul.f32 -1.442695, %v809_v46  ;;  %v735_v42 = vsub.f32 1.0, %v734_v37  ;;  %v6587_v43 = vpop.eup %5089 }
  0xff   : > { %v812_v21 = vadd.f32 %v796_v45, %v6465_v20  ;;  %v681_v37 = vsel %vm6578_vm13, %v6455_v22, %v677_v47  ;;  %v696_v45 = vsel %vm6594_vm15, %v6468_v30, %v692_v48  ;;  %v711_v22 = vsel %vm6610_vm0, %v6482_v31, %v707_v10 }
 0x100   : > { %v4876_v46 = vmul.f32 -1.442695, %v810_v58  ;;  %v4877_v29 = vmul.f32 -1.442695, %v811_v2  ;;  %5093 = vpow2.f32 %v4875_v12  ;;  %v813_v12 = vadd.f32 %v797_v54, %v6493_v16 }
 0x101   : > { %v726_v47 = vsel %vm6623_vm1, %v6488_v33, %v722_v57  ;;  %v736_v48 = vmul.f32 %v6519_v60, %v735_v42  ;;  %v749_v31 = vmul.f32 %v6587_v43, %v6507_v49  ;;  %v4878_v54 = vmul.f32 -1.442695, %v812_v21 }
 0x102   : > { %5095 = vpow2.f32 %v4876_v46  ;;  %v6638_v0 = vsel %vm6543_vm9, %v6512_v51, %v681_v37  ;;  %v6643_v2 = vsel %vm6547_vm10, %v6516_v55, %v696_v45  ;;  %v798_v10 = vrot.slane %v6538_v14, 5 }
 0x103   : > { %v6627_v61 = vpop.eup %5091  ;;  %5097 = vpow2.f32 %v4877_v29  ;;  %v730_v29 = vor.u32 1.1754944e-38, %v729_v63  ;;  %v799_v33 = vrot.slane %v6538_v14, 6  ;;  %v750_v57 = vsub.f32 1.0, %v749_v31 }
 0x104   : > { %v4879_v42 = vmul.f32 -1.442695, %v813_v12  ;;  %v6653_v51 = vsel %vm6566_vm12, %v6526_v1, %v711_v22  ;;  %v764_v55 = vmul.f32 %v6627_v61, %v6541_v32  ;;  %v737_v21 = vadd.f32 %v6519_v60, %v736_v48  ;;  %v494_v52 = vpop.f32.mrf.mxu2 }
 0x105   : > { %v6657_v27 = vsel %vm6583_vm14, %v730_v29, %v726_v47  ;;  %5099 = vpow2.f32 %v4878_v54  ;;  %v751_v45 = vmul.f32 %v6587_v43, %v750_v57  ;;  %v6677_v12 = vadd.f32 %v494_v52, %v6436_v4 }
 0x106   : > { %v5094_v35 = vpop.eup %5093  ;;  %v765_v56 = vsub.f32 1.0, %v764_v55  ;;  %5101 = vrcp.f32 %v6509_v50  ;;  %v757_v30 = vand.u32 2147483647, %v6507_v49  ;;  %v741_v47 = vsel %vm6683_vm5, %v6519_v60, %v737_v21 }
 0x107   : > { %v6665_v1 = vadd.f32 1.0, %v5094_v35  ;;  %vm743_vm6 = vcmp.eq.f32.partialorder %v742_v3, 8.507059e+37  ;;  %v745_v31 = vor.u32 1.1754944e-38, %v744_v6  ;;  %vm754_vm7 = vweird.f32 %v6587_v43 }
 0x108   : > { %v5096_v46 = vpop.eup %5095  ;;  %v766_v48 = vmul.f32 %v6627_v61, %v765_v56  ;;  %v759_v7 = vand.u32 2147483648, %v6507_v49  ;;  %v772_v54 = vand.u32 2147483647, %v6541_v32  ;;  %v752_v29 = vadd.f32 %v6587_v43, %v751_v45  ;;  %vm6719_vm11 = vmor %vm753_vm4, %vm754_vm7 }
 0x109   : > { %v5098_v63 = vpop.eup %5097  ;;  %v6668_v37 = vadd.f32 1.0, %v5096_v46  ;;  %5103 = vrcp.f32 %v6665_v1  ;;  %v800_v57 = vrot.slane %v6538_v14, 7  ;;  %v814_v55 = vadd.f32 %v798_v10, %v6498_v38 }
 0x10a   : > { %v6673_v59 = vadd.f32 1.0, %v5098_v63  ;;  %v6700_v60 = vsel %vm743_vm6, %v745_v31, %v741_v47  ;;  %vm6702_vm8 = vcmp.eq.f32.partialorder %v757_v30, 8.507059e+37  ;;  %vm768_vm9 = vweird.f32 %v6541_v32 }
 0x10b   : > { %5105 = vrcp.f32 %v6668_v37  ;;  %v5100_v35 = vpop.eup %5099  ;;  %v815_v3 = vadd.f32 %v799_v33, %v6521_v62  ;;  %v767_v52 = vadd.f32 %v6627_v61, %v766_v48  ;;  %vm769_vm10 = vweird.f32 %v6627_v61 }
 0x10c   : > { %5107 = vrcp.f32 %v6673_v59  ;;  %v6708_v46 = vpop.eup %5101  ;;  %v816_v14 = vadd.f32 %v800_v57, %v6450_v17  ;;  %v4880_v10 = vmul.f32 -1.442695, %v814_v55  ;;  %v774_v33 = vand.u32 2147483648, %v6541_v32  ;;  %v497_v31 = vpop.f32.mrf.mxu2  ;;  %vm6741_vm13 = vmor %vm768_vm9, %vm769_vm10 }
 0x10d   : > { %v779_v63 = vmul.f32 %v6708_v46, %v6509_v50  ;;  %5109 = vpow2.f32 %v4879_v42  ;;  %v4881_v45 = vmul.f32 -1.442695, %v815_v3  ;;  %v756_v30 = vsel %vm6719_vm11, %v6587_v43, %v752_v29 }
 0x10e   : > { %v760_v47 = vor.u32 1.1754944e-38, %v759_v7  ;;  %vm6731_vm12 = vcmp.eq.f32.partialorder %v772_v54, 8.507059e+37  ;;  %v787_v43 = vand.u32 2147483647, %v6509_v50  ;;  %5111 = vpow2.f32 %v4880_v10 }
 0x10f   : > { %v6713_v6 = vpop.eup %5103  ;;  %v780_v57 = vsub.f32 1.0, %v779_v63  ;;  %v4882_v7 = vmul.f32 -1.442695, %v816_v14  ;;  %v771_v29 = vsel %vm6741_vm13, %v6627_v61, %v767_v52  ;;  %v789_v55 = vand.u32 2147483648, %v6509_v50 }
 0x110   : > { %v850_v48 = vmul.f32 %v6713_v6, %v6665_v1  ;;  %v775_v56 = vor.u32 1.1754944e-38, %v774_v33  ;;  %vm783_vm14 = vweird.f32 %v6509_v50  ;;  %5113 = vpow2.f32 %v4881_v45 }
 0x111   : > { %v6726_v22 = vpop.eup %5105  ;;  %v781_v58 = vmul.f32 %v6708_v46, %v780_v57  ;;  %v6757_v14 = vadd.f32 %v497_v31, %v6436_v4  ;;  %v6761_v10 = vsel %vm6702_vm8, %v760_v47, %v756_v30  ;;  %5115 = vpow2.f32 %v4882_v7 }
 0x112   : > { %v6746_v54 = vpop.eup %5107  ;;  %v851_v3 = vsub.f32 1.0, %v850_v48  ;;  %v865_v32 = vmul.f32 %v6726_v22, %v6668_v37  ;;  %v6766_v48 = vsel %vm6731_vm12, %v775_v56, %v771_v29  ;;  %v6768_v33 = vadd.f32 1.0, %v5100_v35 }
 0x113   : > { %11908 = vst [vmem:[#allocation29_spill] sm:$0xff] %v6757_v14  ;;  %v5110_v63 = vpop.eup %5109  ;;  %v880_v45 = vmul.f32 %v6746_v54, %v6673_v59  ;;  %vm784_vm15 = vweird.f32 %v6708_v46  ;;  %vm6773_vm0 = vcmp.eq.f32.partialorder %v787_v43, 8.507059e+37  ;;  %v790_v21 = vor.u32 1.1754944e-38, %v789_v55 }
 0x114   : > { %v852_v61 = vmul.f32 %v6713_v6, %v851_v3  ;;  %v866_v52 = vsub.f32 1.0, %v865_v32  ;;  %v858_v30 = vand.u32 2147483647, %v6665_v1  ;;  %v5112_v49 = vpop.eup %5111  ;;  %v782_v31 = vadd.f32 %v6708_v46, %v781_v58  ;;  %vm6795_vm5 = vmor %vm783_vm14, %vm784_vm15 }
 0x115   : > { %vm854_vm1 = vweird.f32 %v6665_v1  ;;  %v860_v35 = vand.u32 2147483648, %v6665_v1  ;;  %v881_v42 = vsub.f32 1.0, %v880_v45  ;;  %v6782_v57 = vadd.f32 1.0, %v5110_v63 }
 0x116   : > { %v867_v47 = vmul.f32 %v6726_v22, %v866_v52  ;;  %v853_v43 = vadd.f32 %v6713_v6, %v852_v61  ;;  %vm855_vm2 = vweird.f32 %v6713_v6  ;;  %vm869_vm3 = vweird.f32 %v6668_v37  ;;  %v5114_v7 = vpop.eup %5113 }
 0x117   : > { %vm870_vm4 = vweird.f32 %v6726_v22  ;;  %v873_v58 = vand.u32 2147483647, %v6668_v37  ;;  %v882_v55 = vmul.f32 %v6746_v54, %v881_v42  ;;  %v6799_v32 = vadd.f32 1.0, %v5112_v49  ;;  %v5116_v52 = vpop.eup %5115  ;;  %vm6812_vm7 = vmor %vm854_vm1, %vm855_vm2 }
 0x118   : > { %v868_v29 = vadd.f32 %v6726_v22, %v867_v47  ;;  %vm6801_vm6 = vcmp.eq.f32.partialorder %v858_v30, 8.507059e+37  ;;  %v875_v61 = vand.u32 2147483648, %v6668_v37  ;;  %5117 = vrcp.f32 %v6768_v33  ;;  %vm6827_vm9 = vmor %vm869_vm3, %vm870_vm4 }
 0x119   : > { %v786_v63 = vsel %vm6795_vm5, %v6708_v46, %v782_v31  ;;  %v861_v45 = vor.u32 1.1754944e-38, %v860_v35  ;;  %v883_v30 = vadd.f32 %v6746_v54, %v882_v55  ;;  %vm885_vm8 = vweird.f32 %v6746_v54 }
 0x11a   : > { %v6818_v47 = vadd.f32 1.0, %v5114_v7  ;;  %v857_v49 = vsel %vm6812_vm7, %v6713_v6, %v853_v43  ;;  %v890_v46 = vand.u32 2147483648, %v6673_v59  ;;  %5119 = vrcp.f32 %v6782_v57 }
 0x11b   : > { %v872_v31 = vsel %vm6827_vm9, %v6726_v22, %v868_v29  ;;  %vm874_vm10 = vcmp.eq.f32.partialorder %v873_v58, 8.507059e+37  ;;  %vm884_vm11 = vweird.f32 %v6673_v59  ;;  %v888_v6 = vand.u32 2147483647, %v6673_v59 }
 0x11c   : > { %v6838_v35 = vadd.f32 1.0, %v5116_v52  ;;  %v876_v37 = vor.u32 1.1754944e-38, %v875_v61  ;;  %vm6840_vm12 = vmor %vm884_vm11, %vm885_vm8  ;;  %v905_v43 = vand.u32 2147483648, %v6768_v33  ;;  %5121 = vrcp.f32 %v6799_v32 }
 0x11d   : > { %v6848_v7 = vsel %vm6773_vm0, %v790_v21, %v786_v63  ;;  %v6852_v22 = vsel %vm6801_vm6, %v861_v45, %v857_v49  ;;  %v887_v59 = vsel %vm6840_vm12, %v6746_v54, %v883_v30  ;;  %v920_v29 = vand.u32 2147483648, %v6782_v57 }
 0x11e   : > { %v6858_v58 = vpop.eup %5117  ;;  %v6860_v55 = vsel %vm874_vm10, %v876_v37, %v872_v31  ;;  %v891_v3 = vor.u32 1.1754944e-38, %v890_v46  ;;  %v935_v61 = vand.u32 2147483648, %v6799_v32  ;;  %5123 = vrcp.f32 %v6818_v47 }
 0x11f   : > { %vm889_vm13 = vcmp.eq.f32.partialorder %v888_v6, 8.507059e+37  ;;  %v895_v4 = vmul.f32 %v6858_v58, %v6768_v33  ;;  %vm899_vm14 = vweird.f32 %v6768_v33  ;;  %v903_v21 = vand.u32 2147483647, %v6768_v33 }
 0x120   : > { %v950_v54 = vand.u32 2147483648, %v6818_v47  ;;  %v6869_v56 = vpop.eup %5119  ;;  %v6871_v52 = vsel %vm889_vm13, %v891_v3, %v887_v59  ;;  %v6873_v63 = vor.u32 1.1754944e-38, %v905_v43  ;;  %vm914_vm15 = vweird.f32 %v6782_v57 }
 0x121   : > { %v918_v50 = vand.u32 2147483647, %v6782_v57  ;;  %5125 = vrcp.f32 %v6838_v35  ;;  %v896_v45 = vsub.f32 1.0, %v895_v4  ;;  %v910_v30 = vmul.f32 %v6869_v56, %v6782_v57 }
 0x122   : > { %v6880_v49 = vor.u32 1.1754944e-38, %v920_v29  ;;  %vm929_vm0 = vweird.f32 %v6799_v32  ;;  %v933_v1 = vand.u32 2147483647, %v6799_v32  ;;  %v6884_v46 = vpop.eup %5121  ;;  %vm900_vm1 = vweird.f32 %v6858_v58 }
 0x123   : > { %v936_v31 = vor.u32 1.1754944e-38, %v935_v61  ;;  %v948_v6 = vand.u32 2147483647, %v6818_v47  ;;  %v965_v37 = vand.u32 2147483648, %v6838_v35  ;;  %v897_v42 = vmul.f32 %v6858_v58, %v896_v45  ;;  %vm6928_vm10 = vmor %vm899_vm14, %vm900_vm1 }
 0x124   : > { %v911_v43 = vsub.f32 1.0, %v910_v30  ;;  %v925_v59 = vmul.f32 %v6884_v46, %v6799_v32  ;;  %vm944_vm2 = vweird.f32 %v6818_v47  ;;  %v951_v29 = vor.u32 1.1754944e-38, %v950_v54  ;;  %v5124_v3 = vpop.eup %5123 }
 0x125   : > { %vm6893_vm3 = vcmp.eq.f32.partialorder %v903_v21, 8.507059e+37  ;;  %vm915_vm4 = vweird.f32 %v6869_v56  ;;  %vm6898_vm5 = vcmp.eq.f32.partialorder %v918_v50, 8.507059e+37  ;;  %v963_v45 = vand.u32 2147483647, %v6838_v35 }
 0x126   : > { %v972_v30 = vrot.slane %v6556_v40, 3  ;;  %v898_v17 = vadd.f32 %v6858_v58, %v897_v42  ;;  %v912_v54 = vmul.f32 %v6869_v56, %v911_v43  ;;  %v926_v21 = vsub.f32 1.0, %v925_v59  ;;  %vm6944_vm12 = vmor %vm914_vm15, %vm915_vm4 }
 0x127   : > { %vm6907_vm6 = vcmp.eq.f32.partialorder %v933_v1, 8.507059e+37  ;;  %v940_v50 = vmul.f32 %v5124_v3, %v6818_v47  ;;  %v5126_v38 = vpop.eup %5125  ;;  %vm930_vm7 = vweird.f32 %v6884_v46  ;;  %vm6913_vm8 = vcmp.eq.f32.partialorder %v948_v6, 8.507059e+37 }
 0x128   : > { %vm959_vm9 = vweird.f32 %v6838_v35  ;;  %v966_v20 = vor.u32 1.1754944e-38, %v965_v37  ;;  %v974_v42 = vrot.slane %v6556_v40, 5  ;;  %v975_v43 = vrot.slane %v6556_v40, 6  ;;  %vm6963_vm14 = vmor %vm929_vm0, %vm930_vm7 }
 0x129   : > { %v913_v1 = vadd.f32 %v6869_v56, %v912_v54  ;;  %v927_v59 = vmul.f32 %v6884_v46, %v926_v21  ;;  %v941_v18 = vsub.f32 1.0, %v940_v50  ;;  %v985_v13 = vmul.f32 %v6638_v0, %v6556_v40 }
 0x12a   : > { %vm945_vm11 = vweird.f32 %v5124_v3  ;;  %v955_v37 = vmul.f32 %v5126_v38, %v6838_v35  ;;  %v11931_v54 = vrot.slane %v6556_v40, 1  ;;  %v902_v0 = vsel %vm6928_vm10, %v6858_v58, %v898_v17 }
 0x12b   : > { %v928_v50 = vadd.f32 %v6884_v46, %v927_v59  ;;  %v942_v39 = vmul.f32 %v5124_v3, %v941_v18  ;;  %vm6949_vm13 = vcmp.eq.f32.partialorder %v963_v45, 8.507059e+37  ;;  %v917_v17 = vsel %vm6944_vm12, %v6869_v56, %v913_v1  ;;  %vm946_vm15 = vmor %vm944_vm2, %vm945_vm11 }
 0x12c   : > { %v986_v21 = vmul.f32 %v11931_v54, %v6643_v2  ;;  %v11936_v2 = vrot.slane %v6556_v40, 2  ;;  %v956_v18 = vsub.f32 1.0, %v955_v37  ;;  %v988_v58 = vmul.f32 %v972_v30, %v6657_v27 }
 0x12d   : > { %v989_v45 = vmul.f32 %v973_v36, %v6700_v60  ;;  %v932_v40 = vsel %vm6963_vm14, %v6884_v46, %v928_v50  ;;  %v990_v56 = vmul.f32 %v974_v42, %v6761_v10  ;;  %v993_v1 = vadd.f32 %v985_v13, %v6459_v24 }
 0x12e   : > { %v987_v6 = vmul.f32 %v11936_v2, %v6653_v51  ;;  %v943_v51 = vadd.f32 %v5124_v3, %v942_v39  ;;  %v957_v32 = vmul.f32 %v5126_v38, %v956_v18  ;;  %vm960_vm0 = vweird.f32 %v5126_v38 }
 0x12f   : > { %v991_v59 = vmul.f32 %v975_v43, %v6766_v48  ;;  %v994_v27 = vadd.f32 %v986_v21, %v6472_v11  ;;  %v907_v36 = vsel %vm6893_vm3, %v6873_v63, %v902_v0  ;;  %v922_v39 = vsel %vm6898_vm5, %v6880_v49, %v917_v17  ;;  %vm961_vm1 = vmor %vm959_vm9, %vm960_vm0 }
 0x130   : > { %v947_v60 = vsel %vm946_vm15, %v5124_v3, %v943_v51  ;;  %v995_v13 = vadd.f32 %v987_v6, %v6491_v34  ;;  %v937_v10 = vsel %vm6907_vm6, %v936_v31, %v932_v40  ;;  %v958_v47 = vadd.f32 %v5126_v38, %v957_v32 }
 0x131   : > { %v992_v46 = vmul.f32 %v976_v15, %v6848_v7  ;;  %v996_v48 = vadd.f32 %v988_v58, %v6504_v44  ;;  %v6992_v30 = vsel %vm6913_vm8, %v951_v29, %v947_v60  ;;  %v997_v63 = vadd.f32 %v989_v45, %v6535_v8 }
 0x132   : > { %v998_v49 = vadd.f32 %v990_v56, %v6648_v5  ;;  %5127 = vtanh.f32 %v993_v1  ;;  %v962_v3 = vsel %vm961_vm1, %v5126_v38, %v958_v47  ;;  %v999_v62 = vadd.f32 %v991_v59, %v6677_v12  ;;  %v5703_v38 = vld [vmem:[#allocation2] sm:$0xff] }
 0x133   : > { %v1000_v31 = vadd.f32 %v992_v46, %v6757_v14  ;;  %5129 = vtanh.f32 %v994_v27  ;;  %v1009_v15 = vsub.f32 1.0, %v6852_v22  ;;  %v1010_v16 = vsub.f32 1.0, %v6860_v55 }
 0x134   : > { %5131 = vtanh.f32 %v995_v13  ;;  %v1011_v7 = vsub.f32 1.0, %v6871_v52  ;;  %v967_v35 = vsel %vm6949_vm13, %v966_v20, %v962_v3  ;;  %v1012_v29 = vsub.f32 1.0, %v907_v36 }
 0x135   : > { %5133 = vtanh.f32 %v996_v48  ;;  %v1013_v4 = vsub.f32 1.0, %v922_v39  ;;  %v1026_v61 = vrot.slane %v5703_v38, 1  ;;  %v1027_v42 = vrot.slane %v5703_v38, 2 }
 0x136   : > { %5135 = vtanh.f32 %v997_v63  ;;  %v1028_v43 = vrot.slane %v5703_v38, 3  ;;  %v1029_v37 = vrot.slane %v5703_v38, 4  ;;  %v1030_v54 = vrot.slane %v5703_v38, 5 }
 0x137   : > { %5137 = vtanh.f32 %v998_v49  ;;  %v1031_v21 = vrot.slane %v5703_v38, 6  ;;  %v1014_v33 = vsub.f32 1.0, %v937_v10  ;;  %v1015_v50 = vsub.f32 1.0, %v6992_v30 }
 0x138   : > { %v5128_v0 = vpop.eup %5127  ;;  %5139 = vtanh.f32 %v999_v62  ;;  %v1032_v2 = vrot.slane %v5703_v38, 7  ;;  %v1016_v20 = vsub.f32 1.0, %v967_v35  ;;  %v1041_v17 = vmul.f32 %v5703_v38, %v6852_v22 }
 0x139   : > { %v5130_v9 = vpop.eup %5129  ;;  %5141 = vtanh.f32 %v1000_v31  ;;  %v1017_v6 = vmul.f32 %v5128_v0, %v1009_v15  ;;  %v1042_v58 = vmul.f32 %v1026_v61, %v6860_v55  ;;  %v1043_v45 = vmul.f32 %v1027_v42, %v6871_v52 }
 0x13a   : > { %v5132_v57 = vpop.eup %5131  ;;  %v1018_v18 = vmul.f32 %v5130_v9, %v1010_v16  ;;  %v1044_v40 = vmul.f32 %v1028_v43, %v907_v36  ;;  %v1045_v1 = vmul.f32 %v1029_v37, %v922_v39  ;;  %v1046_v32 = vmul.f32 %v1030_v54, %v937_v10  ;;  %v7052_v9 = vld [vmem:[#allocation4 + $0x160] sm:$0xff] }
 0x13b   : > { %v5134_v51 = vpop.eup %5133  ;;  %v1019_v56 = vmul.f32 %v5132_v57, %v1011_v7  ;;  %v1047_v59 = vmul.f32 %v1031_v21, %v6992_v30  ;;  %v1048_v13 = vmul.f32 %v1032_v2, %v967_v35  ;;  %vm11858_vm2 = vcmask 1041409   ;;  %v7049_v2 = vld [vmem:[#allocation4 + $0x170] sm:$0xff]  ;;  %11941 = vst [vmem:[#allocation32_spill] sm:$0xff] %v7052_v9  ;;  %v7064_v57 = vld [vmem:[#allocation4 + $0x138] sm:$0xff] }
 0x13c   : > { %v5136_v27 = vpop.eup %5135  ;;  %v1020_v60 = vmul.f32 %v5134_v51, %v1012_v29  ;;  %v7010_v47 = vadd.f32 %v1042_v58, %v1018_v18  ;;  %v7012_v48 = vadd.f32 %v1041_v17, %v1017_v6  ;;  %vm11793_vm3 = vcmask 1042434   ;;  %11940 = vst [vmem:[#allocation31_spill] sm:$0xff] %v7049_v2  ;;  %v7058_v6 = vld [vmem:[#allocation4 + $0x158] sm:$0xff]  ;;  %v7061_v17 = vld [vmem:[#allocation4 + $0x148] sm:$0xff]  ;;  %v7067_v18 = vld [vmem:[#allocation4 + $0x140] sm:$0xff] }
 0x13d   : > { %v5138_v22 = vpop.eup %5137  ;;  %v1021_v46 = vmul.f32 %v5136_v27, %v1013_v4  ;;  %v7014_v55 = vadd.f32 %v1043_v45, %v1019_v56  ;;  %vm11791_vm4 = vcmask 1043459   ;;  %vm11789_vm5 = vcmask 1044484   ;;  %11943 = vst [vmem:[#allocation34_spill] sm:$0xff] %v7058_v6  ;;  %v7070_v58 = vld [vmem:[#allocation4 + $0x130] sm:$0xff]  ;;  %v7073_v45 = vld [vmem:[#allocation4 + $0x120] sm:$0xff]  ;;  %v7079_v51 = vld [vmem:[#allocation4 + $0x118] sm:$0xff] }
 0x13e   : > { %v5140_v52 = vpop.eup %5139  ;;  %v1022_v36 = vmul.f32 %v5138_v22, %v1014_v33  ;;  %v7016_v63 = vadd.f32 %v1044_v40, %v1020_v60  ;;  %v11725_v39 = vrot.slane %v7010_v47, 7  ;;  %vm11788_vm6 = vcmask 1045509   ;;  %v7043_v33 = vld [vmem:[#allocation4 + $0x178] sm:$0xff]  ;;  %11944 = vst [vmem:[#allocation35_spill] sm:$0xff] %v7061_v17  ;;  %v7076_v40 = vld [vmem:[#allocation4 + $0x128] sm:$0xff]  ;;  %v7103_v22 = vld [vmem:[#allocation4 + $0xe0] sm:$0xff] }
 0x13f   : > { %v5142_v10 = vpop.eup %5141  ;;  %v1023_v30 = vmul.f32 %v5140_v52, %v1015_v50  ;;  %v7019_v49 = vadd.f32 %v1045_v1, %v1021_v46  ;;  %v1068_v3 = vrot.slane %v7014_v55, 6  ;;  %vm11786_vm7 = vcmask 1046534   ;;  %v7046_v50 = vld [vmem:[#allocation4 + $0x168] sm:$0xff]  ;;  %11945 = vst [vmem:[#allocation36_spill] sm:$0xff] %v7064_v57  ;;  %v7085_v1 = vld [vmem:[#allocation4 + $0x110] sm:$0xff]  ;;  %v7094_v27 = vld [vmem:[#allocation4 + $0xf8] sm:$0xff] }
 0x140   : > { %v1024_v62 = vmul.f32 %v5142_v10, %v1016_v20  ;;  %v7022_v31 = vadd.f32 %v1046_v32, %v1022_v36  ;;  %v1067_v15 = vsel %vm11858_vm2, %v11725_v39, %v7012_v48  ;;  %v1071_v16 = vrot.slane %v7016_v63, 5  ;;  %11939 = vst [vmem:[#allocation30_spill] sm:$0xff] %v7046_v50  ;;  %v7055_v20 = vld [vmem:[#allocation4 + $0x150] sm:$0xff]  ;;  %v7082_v56 = vld [vmem:[#allocation4 + $0x108] sm:$0xff]  ;;  %v7088_v32 = vld [vmem:[#allocation4 + $0x100] sm:$0xff] }
 0x141   : > { %v7029_v7 = vadd.f32 %v1047_v59, %v1023_v30  ;;  %v1070_v35 = vsel %vm11793_vm3, %v1068_v3, %v1067_v15  ;;  %v1074_v29 = vrot.slane %v7019_v49, 4  ;;  %vm11784_vm8 = vcmask 1047559   ;;  %11942 = vst [vmem:[#allocation33_spill] sm:$0xff] %v7055_v20  ;;  %v7091_v59 = vld [vmem:[#allocation4 + $0xf0] sm:$0xff]  ;;  %v7097_v60 = vld [vmem:[#allocation4 + $0xe8] sm:$0xff]  ;;  %v7109_v52 = vld [vmem:[#allocation4 + $0xc0] sm:$0xff] }
 0x142   : > { %v7033_v4 = vadd.f32 %v1048_v13, %v1024_v62  ;;  %v1073_v38 = vsel %vm11791_vm4, %v1071_v16, %v1070_v35  ;;  %v1077_v61 = vrot.slane %v7022_v31, 3  ;;  %11946 = vst [vmem:[#allocation37_spill] sm:$0xff] %v7067_v18  ;;  %v7100_v13 = vld [vmem:[#allocation4 + $0xd8] sm:$0xff]  ;;  %v7106_v46 = vld [vmem:[#allocation4 + $0xd0] sm:$0xff]  ;;  %v7112_v36 = vld [vmem:[#allocation4 + $0xc8] sm:$0xff] }
 0x143   : > { %v1076_v42 = vsel %vm11789_vm5, %v1074_v29, %v1073_v38  ;;  %v1080_v43 = vrot.slane %v7029_v7, 2  ;;  %11947 = vst [vmem:[#allocation38_spill] sm:$0xff] %v7070_v58  ;;  %v7115_v10 = vld [vmem:[#allocation4 + $0xb8] sm:$0xff]  ;;  %v7118_v30 = vld [vmem:[#allocation4 + $0xa8] sm:$0xff]  ;;  %v7121_v3 = vld [vmem:[#allocation4 + $0xb0] sm:$0xff] }
 0x144   : > { %v1079_v37 = vsel %vm11788_vm6, %v1077_v61, %v1076_v42  ;;  %v1083_v54 = vrot.slane %v7033_v4, 1  ;;  %11948 = vst [vmem:[#allocation39_spill] sm:$0xff] %v7073_v45  ;;  %v7124_v62 = vld [vmem:[#allocation4 + $0xa0] sm:$0xff]  ;;  %v7127_v15 = vld [vmem:[#allocation4 + $0x90] sm:$0xff]  ;;  %v7130_v16 = vld [vmem:[#allocation4 + $0x98] sm:$0xff] }
 0x145   : > { %v1082_v21 = vsel %vm11786_vm7, %v1080_v43, %v1079_v37  ;;  %11949 = vst [vmem:[#allocation40_spill] sm:$0xff] %v7076_v40  ;;  %v7133_v35 = vld [vmem:[#allocation4 + $0x88] sm:$0xff]  ;;  %v7136_v29 = vld [vmem:[#allocation4 + $0x78] sm:$0xff]  ;;  %v7139_v38 = vld [vmem:[#allocation4 + $0x80] sm:$0xff] }
 0x146   : > { %v1085_v0 = vsel %vm11784_vm8, %v1083_v54, %v1082_v21  ;;  %11950 = vst [vmem:[#allocation41_spill] sm:$0xff] %v7079_v51  ;;  %v7142_v61 = vld [vmem:[#allocation4 + $0x70] sm:$0xff]  ;;  %v7145_v42 = vld [vmem:[#allocation4 + $0x60] sm:$0xff]  ;;  %v7148_v43 = vld [vmem:[#allocation4 + $0x68] sm:$0xff] }
 0x147   : > { %1103 = vmatmul.f32.vlgmr.msrb.gmra.mxu1 %v1085_v0  ;;  %1123 = vmatmul.f32.vlgmr.msrb.gmra.mxu2 %v1085_v0  ;;  %11951 = vst [vmem:[#allocation42_spill] sm:$0xff] %v7082_v56  ;;  %v7151_v37 = vld [vmem:[#allocation4 + $0x58] sm:$0xff]  ;;  %v7154_v54 = vld [vmem:[#allocation4 + $0x48] sm:$0xff]  ;;  %v7157_v21 = vld [vmem:[#allocation4 + $0x50] sm:$0xff] }
 0x148   : > { %1143 = vmatmul.f32.vlgmr.msra.gmra.mxu3 %v1085_v0  ;;  %2171 = vmatpush.msrb.mxu1 %v7043_v33  ;;  %11952 = vst [vmem:[#allocation43_spill] sm:$0xff] %v7085_v1  ;;  %v7160_v0 = vld [vmem:[#allocation4 + $0x40] sm:$0xff]  ;;  %v7163_v39 = vld [vmem:[#allocation4 + $0x30] sm:$0xff] }
 0x149   : > { %2653 = vmatpush.msrb.mxu2 %v7046_v50  ;;  %2673 = vmatpush.msra.mxu3 %v7049_v2  ;;  %11953 = vst [vmem:[#allocation44_spill] sm:$0xff] %v7088_v32  ;;  %v12059_v50 = vrot.slane %v7012_v48, 7 }
 0x14a   : > { %2172 = vmatpush.msrb.mxu1 %v7052_v9  ;;  %11954 = vst [vmem:[#allocation45_spill] sm:$0xff] %v7091_v59 }
 0x14b   : > { %2654 = vmatpush.msrb.mxu2 %v7055_v20  ;;  %2674 = vmatpush.msra.mxu3 %v7058_v6  ;;  %11955 = vst [vmem:[#allocation46_spill] sm:$0xff] %v7094_v27 }
 0x14c   : > { %2173 = vmatpush.msrb.mxu1 %v7061_v17  ;;  %11956 = vst [vmem:[#allocation47_spill] sm:$0xff] %v7097_v60 }
 0x14d   : > { %2655 = vmatpush.msrb.mxu2 %v7064_v57  ;;  %2675 = vmatpush.msra.mxu3 %v7067_v18  ;;  %11957 = vst [vmem:[#allocation48_spill] sm:$0xff] %v7100_v13 }
 0x14e   : > { %2174 = vmatpush.msrb.mxu1 %v7070_v58  ;;  %11958 = vst [vmem:[#allocation49_spill] sm:$0xff] %v7103_v22 }
 0x14f   : > { %2656 = vmatpush.msrb.mxu2 %v7073_v45  ;;  %2676 = vmatpush.msra.mxu3 %v7076_v40  ;;  %11959 = vst [vmem:[#allocation50_spill] sm:$0xff] %v7106_v46 }
 0x150   : > { %2175 = vmatpush.msrb.mxu1 %v7079_v51  ;;  %11960 = vst [vmem:[#allocation51_spill] sm:$0xff] %v7109_v52 }
 0x151   : > { %2657 = vmatpush.msrb.mxu2 %v7082_v56  ;;  %2677 = vmatpush.msra.mxu3 %v7085_v1  ;;  %11961 = vst [vmem:[#allocation52_spill] sm:$0xff] %v7112_v36 }
 0x152   : > { %2176 = vmatpush.msrb.mxu1 %v7088_v32  ;;  %11962 = vst [vmem:[#allocation53_spill] sm:$0xff] %v7115_v10 }
 0x153   : > { %2658 = vmatpush.msrb.mxu2 %v7091_v59  ;;  %2678 = vmatpush.msra.mxu3 %v7094_v27  ;;  %11963 = vst [vmem:[#allocation54_spill] sm:$0xff] %v7118_v30 }
 0x154   : > { %2177 = vmatpush.msrb.mxu1 %v7097_v60  ;;  %11964 = vst [vmem:[#allocation55_spill] sm:$0xff] %v7121_v3 }
 0x155   : > { %2659 = vmatpush.msrb.mxu2 %v7100_v13  ;;  %2679 = vmatpush.msra.mxu3 %v7103_v22  ;;  %11965 = vst [vmem:[#allocation56_spill] sm:$0xff] %v7124_v62  ;;  %v11987_v22 = vld [vmem:[#allocation15_spill] sm:$0xff] }
 0x156   : > { %2178 = vmatpush.msrb.mxu1 %v7106_v46  ;;  %11966 = vst [vmem:[#allocation57_spill] sm:$0xff] %v7127_v15 }
 0x157   : > { %2660 = vmatpush.msrb.mxu2 %v7109_v52  ;;  %2680 = vmatpush.msra.mxu3 %v7112_v36  ;;  %11967 = vst [vmem:[#allocation58_spill] sm:$0xff] %v7130_v16 }
 0x158   : > { %2179 = vmatpush.msrb.mxu1 %v7115_v10  ;;  %11968 = vst [vmem:[#allocation59_spill] sm:$0xff] %v7133_v35 }
 0x159   : > { %2661 = vmatpush.msrb.mxu2 %v7118_v30  ;;  %2681 = vmatpush.msra.mxu3 %v7121_v3  ;;  %11969 = vst [vmem:[#allocation60_spill] sm:$0xff] %v7136_v29  ;;  %v11986_v30 = vld [vmem:[#allocation18_spill] sm:$0xff] }
 0x15a   : > { %2180 = vmatpush.msrb.mxu1 %v7124_v62  ;;  %11970 = vst [vmem:[#allocation61_spill] sm:$0xff] %v7139_v38 }
 0x15b   : > { %2662 = vmatpush.msrb.mxu2 %v7127_v15  ;;  %2682 = vmatpush.msra.mxu3 %v7130_v16  ;;  %11971 = vst [vmem:[#allocation62_spill] sm:$0xff] %v7142_v61 }
 0x15c   : > { %2181 = vmatpush.msrb.mxu1 %v7133_v35  ;;  %11972 = vst [vmem:[#allocation63_spill] sm:$0xff] %v7145_v42 }
 0x15d   : > { %2663 = vmatpush.msrb.mxu2 %v7136_v29  ;;  %2683 = vmatpush.msra.mxu3 %v7139_v38  ;;  %11973 = vst [vmem:[#allocation64_spill] sm:$0xff] %v7148_v43 }
 0x15e   : > { %2182 = vmatpush.msrb.mxu1 %v7142_v61  ;;  %11974 = vst [vmem:[#allocation65_spill] sm:$0xff] %v7151_v37 }
 0x15f   : > { %2664 = vmatpush.msrb.mxu2 %v7145_v42  ;;  %2684 = vmatpush.msra.mxu3 %v7148_v43  ;;  %11975 = vst [vmem:[#allocation66_spill] sm:$0xff] %v7154_v54  ;;  %v7166_v43 = vld [vmem:[#allocation4 + $0x38] sm:$0xff] }
 0x160   : > { %2183 = vmatpush.msrb.mxu1 %v7151_v37  ;;  %11976 = vst [vmem:[#allocation67_spill] sm:$0xff] %v7157_v21  ;;  %v7169_v37 = vld [vmem:[#allocation4 + $0x28] sm:$0xff] }
 0x161   : > { %2665 = vmatpush.msrb.mxu2 %v7154_v54  ;;  %2685 = vmatpush.msra.mxu3 %v7157_v21  ;;  %11977 = vst [vmem:[#allocation68_spill] sm:$0xff] %v7160_v0  ;;  %v7172_v54 = vld [vmem:[#allocation4 + $0x18] sm:$0xff]  ;;  %v7175_v21 = vld [vmem:[#allocation4 + $0x20] sm:$0xff] }
 0x162   : > { %2184 = vmatpush.msrb.mxu1 %v7160_v0  ;;  %11978 = vst [vmem:[#allocation69_spill] sm:$0xff] %v7163_v39  ;;  %v7178_v0 = vld [vmem:[#allocation4 + $0x10] sm:$0xff] }
 0x163   : > { %2666 = vmatpush.msrb.mxu2 %v7163_v39  ;;  %11979 = vst [vmem:[#allocation70_spill] sm:$0xff] %v7166_v43  ;;  %2686 = vmatpush.msra.mxu3 %v7166_v43  ;;  %v7181_v39 = vld [vmem:[#allocation4] sm:$0xff]  ;;  %v7184_v43 = vld [vmem:[#allocation4 + $0x8] sm:$0xff] }
 0x164   : > { %11980 = vst [vmem:[#allocation71_spill] sm:$0xff] %v7169_v37  ;;  %2185 = vmatpush.msrb.mxu1 %v7169_v37 }
 0x165   : > { %11981 = vst [vmem:[#allocation72_spill] sm:$0xff] %v7172_v54  ;;  %2667 = vmatpush.msrb.mxu2 %v7172_v54  ;;  %2687 = vmatpush.msra.mxu3 %v7175_v21 }
 0x166   : > { %11982 = vst [vmem:[#allocation73_spill] sm:$0xff] %v7175_v21  ;;  %2186 = vmatpush.msrb.mxu1 %v7178_v0 }
 0x167   : > { %11983 = vst [vmem:[#allocation74_spill] sm:$0xff] %v7178_v0  ;;  %2668 = vmatpush.msrb.mxu2 %v7181_v39  ;;  %2688 = vmatpush.msra.mxu3 %v7184_v43 }
 0x168   : > { %11984 = vst [vmem:[#allocation75_spill] sm:$0xff] %v7181_v39 }
 0x169   : > { %11985 = vst [vmem:[#allocation76_spill] sm:$0xff] %v7184_v43 }
 0x1c4   : > { %v1104_v37 = vpop.f32.mrf.mxu1 }
 0x1c5   : > { %v1105_v42 = vadd.f32 %v1104_v37, %v6380_v19 }
 0x1c7   : > { %v1148_v54 = vrot.slane %v1105_v42, 7  ;;  %v1149_v61 = vrot.slane %v1105_v42, 1  ;;  %v1150_v38 = vrot.slane %v1105_v42, 2  ;;  %v1151_v29 = vrot.slane %v1105_v42, 3 }
 0x1c8   : > { %v1152_v21 = vrot.slane %v1105_v42, 4  ;;  %v1153_v35 = vrot.slane %v1105_v42, 5  ;;  %v1154_v16 = vrot.slane %v1105_v42, 6  ;;  %v1164_v0 = vadd.f32 %v1105_v42, %v6396_v26 }
 0x1c9   : > { %v1163_v15 = vadd.f32 %v1148_v54, %v6393_v25  ;;  %v1165_v39 = vadd.f32 %v1149_v61, %v6401_v28  ;;  %v1166_v62 = vadd.f32 %v1150_v38, %v6387_v23  ;;  %v1167_v43 = vadd.f32 %v1151_v29, %v6417_v41  ;;  %v11988_v54 = vld [vmem:[#allocation25_spill] sm:$0xff]  ;;  %v11994_v25 = vld [vmem:[#allocation27_spill] sm:$0xff] }
 0x1ca   : > { %v1168_v3 = vadd.f32 %v1152_v21, %v6423_v53  ;;  %v4884_v37 = vmul.f32 -1.442695, %v1164_v0  ;;  %v1124_v19 = vpop.f32.mrf.mxu2  ;;  %v1169_v10 = vadd.f32 %v1153_v35, %v11986_v30  ;;  %v1170_v13 = vadd.f32 %v1154_v16, %v11987_v22 }
 0x1cb   : > { %v4883_v36 = vmul.f32 -1.442695, %v1163_v15  ;;  %v4885_v52 = vmul.f32 -1.442695, %v1165_v39  ;;  %v4886_v46 = vmul.f32 -1.442695, %v1166_v62  ;;  %v7197_v26 = vadd.f32 %v1124_v19, %v11988_v54 }
 0x1cc   : > { %5143 = vpow2.f32 %v4884_v37  ;;  %v4887_v42 = vmul.f32 -1.442695, %v1167_v43  ;;  %v4888_v38 = vmul.f32 -1.442695, %v1168_v3  ;;  %v4889_v29 = vmul.f32 -1.442695, %v1169_v10 }
 0x1cd   : > { %5145 = vpow2.f32 %v4883_v36  ;;  %v4890_v61 = vmul.f32 -1.442695, %v1170_v13  ;;  %v1324_v21 = vrot.slane %v7197_v26, 7  ;;  %v1325_v39 = vrot.slane %v7197_v26, 1  ;;  %v11989_v10 = vld [vmem:[#allocation19_spill] sm:$0xff] }
 0x1ce   : > { %5147 = vpow2.f32 %v4885_v52  ;;  %v1326_v19 = vrot.slane %v7197_v26, 2  ;;  %v1327_v36 = vrot.slane %v7197_v26, 3  ;;  %v1330_v53 = vrot.slane %v7197_v26, 6 }
 0x1cf   : > { %5149 = vpow2.f32 %v4886_v46  ;;  %v1339_v13 = vadd.f32 %v1324_v21, %v11989_v10  ;;  %v1328_v21 = vrot.slane %v7197_v26, 4 }
 0x1d0   : > { %5151 = vpow2.f32 %v4887_v42 }
 0x1d1   : > { %5153 = vpow2.f32 %v4888_v38  ;;  %v11990_v38 = vld [vmem:[#allocation21_spill] sm:$0xff]  ;;  %v4891_v22 = vmul.f32 -1.442695, %v1339_v13 }
 0x1d2   : > { %v5144_v35 = vpop.eup %5143  ;;  %5155 = vpow2.f32 %v4889_v29  ;;  %v1340_v29 = vadd.f32 %v7197_v26, %v11990_v38  ;;  %v7238_v38 = vadd.f32 %v1328_v21, %v11994_v25 }
 0x1d3   : > { %v5146_v62 = vpop.eup %5145  ;;  %v7201_v15 = vadd.f32 1.0, %v5144_v35  ;;  %5157 = vpow2.f32 %v4890_v61  ;;  %v11991_v61 = vld [vmem:[#allocation22_spill] sm:$0xff] }
 0x1d4   : > { %v5148_v52 = vpop.eup %5147  ;;  %v7205_v46 = vadd.f32 1.0, %v5146_v62  ;;  %v1341_v35 = vadd.f32 %v1325_v39, %v11991_v61  ;;  %v11992_v62 = vld [vmem:[#allocation23_spill] sm:$0xff] }
 0x1d5   : > { %v5150_v3 = vpop.eup %5149  ;;  %v7210_v0 = vadd.f32 1.0, %v5148_v52  ;;  %5159 = vrcp.f32 %v7201_v15  ;;  %v1342_v43 = vadd.f32 %v1326_v19, %v11992_v62  ;;  %v11993_v52 = vld [vmem:[#allocation26_spill] sm:$0xff]  ;;  %v1144_v19 = vpop.f32.mrf.mxu3  ;;  %vm1223_vm9 = vweird.f32 %v7201_v15 }
 0x1d6   : > { %v5152_v37 = vpop.eup %5151  ;;  %v7213_v42 = vadd.f32 1.0, %v5150_v3  ;;  %5161 = vrcp.f32 %v7205_v46  ;;  %v1343_v16 = vadd.f32 %v1327_v36, %v11993_v52  ;;  %v1329_v3 = vrot.slane %v7197_v26, 5  ;;  %v11995_v26 = vld [vmem:[#allocation24_spill] sm:$0xff] }
 0x1d7   : > { %5163 = vrcp.f32 %v7210_v0  ;;  %v5154_v10 = vpop.eup %5153  ;;  %v7228_v61 = vadd.f32 1.0, %v5152_v37  ;;  %v4892_v52 = vmul.f32 -1.442695, %v1340_v29  ;;  %v4893_v41 = vmul.f32 -1.442695, %v1341_v35  ;;  %v11996_v29 = vld [vmem:[#allocation28_spill] sm:$0xff] }
 0x1d8   : > { %5165 = vrcp.f32 %v7213_v42  ;;  %v5156_v30 = vpop.eup %5155  ;;  %v7235_v13 = vadd.f32 1.0, %v5154_v10  ;;  %v4894_v39 = vmul.f32 -1.442695, %v1342_v43  ;;  %v4895_v37 = vmul.f32 -1.442695, %v1343_v16  ;;  %v11997_v43 = vld [vmem:[#allocation20_spill] sm:$0xff] }
 0x1d9   : > { %v5158_v62 = vpop.eup %5157  ;;  %5167 = vpow2.f32 %v4891_v22  ;;  %v7243_v60 = vadd.f32 %v1144_v19, %v11995_v26  ;;  %v7248_v35 = vadd.f32 %v1329_v3, %v11996_v29  ;;  %v1227_v16 = vand.u32 2147483647, %v7201_v15 }
 0x1da   : > { %5169 = vrcp.f32 %v7228_v61  ;;  %v7257_v22 = vadd.f32 %v1330_v53, %v11997_v43  ;;  %v7261_v19 = vadd.f32 1.0, %v5156_v30  ;;  %v1212_v26 = vand.u32 2147483647, %v7205_v46 }
 0x1db   : > { %v7233_v23 = vpop.eup %5159  ;;  %5171 = vrcp.f32 %v7235_v13  ;;  %v1214_v53 = vand.u32 2147483648, %v7205_v46  ;;  %v1229_v43 = vand.u32 2147483648, %v7201_v15  ;;  %v7273_v59 = vadd.f32 1.0, %v5158_v62 }
 0x1dc   : > { %v7240_v28 = vpop.eup %5161  ;;  %v1219_v54 = vmul.f32 %v7233_v23, %v7201_v15  ;;  %5173 = vpow2.f32 %v4892_v52  ;;  %vm1208_vm10 = vweird.f32 %v7205_v46  ;;  %vm7278_vm11 = vcmp.eq.f32.partialorder %v1212_v26, 8.507059e+37 }
 0x1dd   : > { %v7250_v36 = vpop.eup %5163  ;;  %v1204_v10 = vmul.f32 %v7240_v28, %v7205_v46  ;;  %5175 = vpow2.f32 %v4893_v41  ;;  %vm7282_vm12 = vcmp.eq.f32.partialorder %v1227_v16, 8.507059e+37  ;;  %vm1224_vm13 = vweird.f32 %v7233_v23 }
 0x1de   : > { %v7259_v21 = vpop.eup %5165  ;;  %v1220_v3 = vsub.f32 1.0, %v1219_v54  ;;  %v1234_v29 = vmul.f32 %v7250_v36, %v7210_v0  ;;  %5177 = vrcp.f32 %v7261_v19  ;;  %vm1209_vm14 = vweird.f32 %v7240_v28  ;;  %vm7303_vm15 = vmor %vm1223_vm9, %vm1224_vm13 }
 0x1df   : > { %v1205_v25 = vsub.f32 1.0, %v1204_v10  ;;  %v1249_v27 = vmul.f32 %v7259_v21, %v7213_v42  ;;  %v5168_v1 = vpop.eup %5167  ;;  %v1215_v26 = vor.u32 1.1754944e-38, %v1214_v53  ;;  %v1244_v56 = vand.u32 2147483648, %v7210_v0  ;;  %vm7315_vm1 = vmor %vm1208_vm10, %vm1209_vm14 }
 0x1e0   : > { %v1221_v30 = vmul.f32 %v7233_v23, %v1220_v3  ;;  %v1235_v32 = vsub.f32 1.0, %v1234_v29  ;;  %v7286_v3 = vpop.eup %5169  ;;  %5179 = vrcp.f32 %v7273_v59  ;;  %v1230_v51 = vor.u32 1.1754944e-38, %v1229_v43 }
 0x1e1   : > { %v1206_v54 = vmul.f32 %v7240_v28, %v1205_v25  ;;  %v1242_v25 = vand.u32 2147483647, %v7210_v0  ;;  %v1250_v62 = vsub.f32 1.0, %v1249_v27  ;;  %v7294_v16 = vpop.eup %5171  ;;  %v1500_v40 = vrot.slane %v7243_v60, 7 }
 0x1e2   : > { %v1222_v41 = vadd.f32 %v7233_v23, %v1221_v30  ;;  %v1236_v30 = vmul.f32 %v7250_v36, %v1235_v32  ;;  %v5174_v45 = vpop.eup %5173  ;;  %v7299_v58 = vadd.f32 1.0, %v5168_v1  ;;  %vm1238_vm0 = vweird.f32 %v7210_v0 }
 0x1e3   : > { %v1207_v29 = vadd.f32 %v7240_v28, %v1206_v54  ;;  %v1264_v43 = vmul.f32 %v7286_v3, %v7228_v61  ;;  %v5176_v54 = vpop.eup %5175  ;;  %5181 = vpow2.f32 %v4894_v39  ;;  %vm7322_vm9 = vcmp.eq.f32.partialorder %v1242_v25, 8.507059e+37 }
 0x1e4   : > { %v1226_v32 = vsel %vm7303_vm15, %v7233_v23, %v1222_v41  ;;  %v1251_v53 = vmul.f32 %v7259_v21, %v1250_v62  ;;  %v7327_v18 = vpop.eup %5177  ;;  %5183 = vpow2.f32 %v4895_v37  ;;  %vm1239_vm10 = vweird.f32 %v7250_v36 }
 0x1e5   : > { %v1211_v46 = vsel %vm7315_vm1, %v7240_v28, %v1207_v29  ;;  %v1245_v39 = vor.u32 1.1754944e-38, %v1244_v56  ;;  %v7333_v57 = vadd.f32 1.0, %v5174_v45  ;;  %v1237_v23 = vadd.f32 %v7250_v36, %v1236_v30 }
 0x1e6   : > { %v1257_v41 = vand.u32 2147483647, %v7213_v42  ;;  %v1279_v25 = vmul.f32 %v7294_v16, %v7235_v13  ;;  %v7339_v62 = vadd.f32 1.0, %v5176_v54  ;;  %v1231_v37 = vsel %vm7282_vm12, %v1230_v51, %v1226_v32  ;;  %v7344_v29 = vpop.eup %5179  ;;  %vm7357_vm12 = vmor %vm1238_vm0, %vm1239_vm10 }
 0x1e7   : > { %vm1253_vm13 = vweird.f32 %v7213_v42  ;;  %v1265_v28 = vsub.f32 1.0, %v1264_v43  ;;  %v1216_v45 = vsel %vm7278_vm11, %v1215_v26, %v1211_v46  ;;  %v1252_v56 = vadd.f32 %v7259_v21, %v1251_v53 }
 0x1e8   : > { %vm1254_vm14 = vweird.f32 %v7259_v21  ;;  %v1294_v30 = vmul.f32 %v7327_v18, %v7261_v19  ;;  %5185 = vrcp.f32 %v7299_v58  ;;  %v1259_v10 = vand.u32 2147483648, %v7213_v42 }
 0x1e9   : > { %vm1268_vm11 = vweird.f32 %v7228_v61  ;;  %v1280_v52 = vsub.f32 1.0, %v1279_v25  ;;  %v5182_v26 = vpop.eup %5181  ;;  %5187 = vrcp.f32 %v7333_v57  ;;  %v7365_v27 = vmul.f32 %v1231_v37, %v7243_v60  ;;  %vm7383_vm0 = vmor %vm1253_vm13, %vm1254_vm14 }
 0x1ea   : > { %v1241_v53 = vsel %vm7357_vm12, %v7250_v36, %v1237_v23  ;;  %vm7370_vm15 = vcmp.eq.f32.partialorder %v1257_v41, 8.507059e+37  ;;  %v7374_v43 = vpop.eup %5183  ;;  %5189 = vrcp.f32 %v7339_v62  ;;  %v7377_v54 = vmul.f32 %v1500_v40, %v1216_v45 }
 0x1eb   : > { %v1266_v36 = vmul.f32 %v7286_v3, %v1265_v28  ;;  %v1309_v32 = vmul.f32 %v7344_v29, %v7273_v59  ;;  %v1256_v46 = vsel %vm7383_vm0, %v7259_v21, %v1252_v56  ;;  %v1272_v40 = vand.u32 2147483647, %v7228_v61 }
 0x1ec   : > { %v1274_v23 = vand.u32 2147483648, %v7228_v61  ;;  %v1295_v41 = vsub.f32 1.0, %v1294_v30  ;;  %v7397_v42 = vsel %vm7322_vm9, %v1245_v39, %v1241_v53  ;;  %v1260_v25 = vor.u32 1.1754944e-38, %v1259_v10 }
 0x1ed   : > { %vm1269_vm1 = vweird.f32 %v7286_v3  ;;  %v1281_v37 = vmul.f32 %v7294_v16, %v1280_v52  ;;  %vm1283_vm10 = vweird.f32 %v7235_v13  ;;  %v1289_v28 = vand.u32 2147483648, %v7235_v13 }
 0x1ee   : > { %v1310_v45 = vsub.f32 1.0, %v1309_v32  ;;  %v4896_v21 = vmul.f32 -1.442695, %v7238_v38  ;;  %v7404_v56 = vpop.eup %5185  ;;  %v7408_v30 = vsel %vm7370_vm15, %v1260_v25, %v1256_v46  ;;  %v1267_v15 = vadd.f32 %v7286_v3, %v1266_v36  ;;  %vm7430_vm12 = vmor %vm1268_vm11, %vm1269_vm1 }
 0x1ef   : > { %vm1284_vm9 = vweird.f32 %v7294_v16  ;;  %v4897_v39 = vmul.f32 -1.442695, %v7248_v35  ;;  %v7413_v51 = vpop.eup %5187  ;;  %vm7415_vm13 = vcmp.eq.f32.partialorder %v1272_v40, 8.507059e+37  ;;  %v1275_v52 = vor.u32 1.1754944e-38, %v1274_v23 }
 0x1f0   : > { %v1287_v38 = vand.u32 2147483647, %v7235_v13  ;;  %v1296_v53 = vmul.f32 %v7327_v18, %v1295_v41  ;;  %v7421_v0 = vpop.eup %5189  ;;  %v1282_v1 = vadd.f32 %v7294_v16, %v1281_v37  ;;  %vm1298_vm14 = vweird.f32 %v7261_v19  ;;  %vm7447_vm11 = vmor %vm1283_vm10, %vm1284_vm9 }
 0x1f1   : > { %5191 = vpow2.f32 %v4896_v21  ;;  %v4898_v35 = vmul.f32 -1.442695, %v7257_v22  ;;  %v1290_v32 = vor.u32 1.1754944e-38, %v1289_v28  ;;  %vm1299_vm15 = vweird.f32 %v7327_v18 }
 0x1f2   : > { %v1311_v46 = vmul.f32 %v7344_v29, %v1310_v45  ;;  %v1380_v40 = vmul.f32 %v7404_v56, %v7299_v58  ;;  %v1271_v22 = vsel %vm7430_vm12, %v7286_v3, %v1267_v15  ;;  %v1302_v23 = vand.u32 2147483647, %v7261_v19  ;;  %vm7473_vm10 = vmor %vm1298_vm14, %vm1299_vm15 }
 0x1f3   : > { %v1304_v61 = vand.u32 2147483648, %v7261_v19  ;;  %5193 = vpow2.f32 %v4897_v39  ;;  %v1297_v25 = vadd.f32 %v7327_v18, %v1296_v53  ;;  %vm1314_vm0 = vweird.f32 %v7344_v29 }
 0x1f4   : > { %v1317_v37 = vand.u32 2147483647, %v7273_v59  ;;  %v1395_v3 = vmul.f32 %v7413_v51, %v7333_v57  ;;  %v1286_v28 = vsel %vm7447_vm11, %v7294_v16, %v1282_v1  ;;  %v1319_v45 = vand.u32 2147483648, %v7273_v59 }
 0x1f5   : > { %5195 = vpow2.f32 %v4898_v35  ;;  %v1381_v13 = vsub.f32 1.0, %v1380_v40  ;;  %v1312_v21 = vadd.f32 %v7344_v29, %v1311_v46  ;;  %v7461_v15 = vadd.f32 1.0, %v5182_v26 }
 0x1f6   : > { %v1396_v39 = vsub.f32 1.0, %v1395_v3  ;;  %v1410_v53 = vmul.f32 %v7421_v0, %v7339_v62  ;;  %v7467_v17 = vsel %vm7415_vm13, %v1275_v52, %v1271_v22  ;;  %vm1288_vm1 = vcmp.eq.f32.partialorder %v1287_v38, 8.507059e+37 }
 0x1f7   : > { %v5192_v36 = vpop.eup %5191  ;;  %vm7477_vm9 = vcmp.eq.f32.partialorder %v1302_v23, 8.507059e+37  ;;  %vm1313_vm12 = vweird.f32 %v7273_v59  ;;  %v7482_v1 = vsel %vm1288_vm1, %v1290_v32, %v1286_v28  ;;  %v1301_v10 = vsel %vm7473_vm10, %v7327_v18, %v1297_v25 }
 0x1f8   : > { %v1305_v52 = vor.u32 1.1754944e-38, %v1304_v61  ;;  %v7488_v38 = vadd.f32 1.0, %v7374_v43  ;;  %vm7492_vm13 = vmor %vm1313_vm12, %vm1314_vm0  ;;  %vm7496_vm14 = vcmp.eq.f32.partialorder %v1317_v37, 8.507059e+37  ;;  %v1320_v59 = vor.u32 1.1754944e-38, %v1319_v45 }
 0x1f9   : > { %v5194_v19 = vpop.eup %5193  ;;  %v1382_v32 = vmul.f32 %v7404_v56, %v1381_v13  ;;  %v1411_v40 = vsub.f32 1.0, %v1410_v53  ;;  %v1316_v18 = vsel %vm7492_vm13, %v7344_v29, %v1312_v21  ;;  %v7504_v43 = vadd.f32 1.0, %v5192_v36 }
 0x1fa   : > { %v1397_v22 = vmul.f32 %v7413_v51, %v1396_v39  ;;  %5197 = vrcp.f32 %v7461_v15  ;;  %v7510_v61 = vsel %vm7477_vm9, %v1305_v52, %v1301_v10  ;;  %vm1384_vm15 = vweird.f32 %v7299_v58 }
 0x1fb   : > { %v5196_v23 = vpop.eup %5195  ;;  %v1388_v41 = vand.u32 2147483647, %v7299_v58  ;;  %v1412_v25 = vmul.f32 %v7421_v0, %v1411_v40  ;;  %v7515_v37 = vadd.f32 1.0, %v5194_v19  ;;  %vm1385_vm11 = vweird.f32 %v7404_v56 }
 0x1fc   : > { %v1390_v29 = vand.u32 2147483648, %v7299_v58  ;;  %5199 = vrcp.f32 %v7488_v38  ;;  %v7522_v3 = vsel %vm7496_vm14, %v1320_v59, %v1316_v18  ;;  %v1383_v28 = vadd.f32 %v7404_v56, %v1382_v32  ;;  %vm7545_vm12 = vmor %vm1384_vm15, %vm1385_vm11 }
 0x1fd   : > { %vm1400_vm0 = vweird.f32 %v7413_v51  ;;  %v1403_v45 = vand.u32 2147483647, %v7333_v57  ;;  %v7527_v13 = vadd.f32 1.0, %v5196_v23  ;;  %v1398_v21 = vadd.f32 %v7413_v51, %v1397_v22 }
 0x1fe   : > { %v1405_v39 = vand.u32 2147483648, %v7333_v57  ;;  %5201 = vrcp.f32 %v7504_v43  ;;  %vm7532_vm1 = vcmp.eq.f32.partialorder %v1388_v41, 8.507059e+37  ;;  %vm1399_vm10 = vweird.f32 %v7333_v57 }
 0x1ff   : > { %v1413_v36 = vadd.f32 %v7421_v0, %v1412_v25  ;;  %vm1415_vm9 = vweird.f32 %v7421_v0  ;;  %v1391_v10 = vor.u32 1.1754944e-38, %v1390_v29  ;;  %v1418_v52 = vand.u32 2147483647, %v7339_v62  ;;  %vm7557_vm13 = vmor %vm1399_vm10, %vm1400_vm0 }
 0x200   : > { %v7539_v16 = vpop.eup %5197  ;;  %v1420_v19 = vand.u32 2147483648, %v7339_v62  ;;  %5203 = vrcp.f32 %v7515_v37  ;;  %v1387_v57 = vsel %vm7545_vm12, %v7404_v56, %v1383_v28  ;;  %vm7561_vm14 = vcmp.eq.f32.partialorder %v1403_v45, 8.507059e+37 }
 0x201   : > { %vm1414_vm15 = vweird.f32 %v7339_v62  ;;  %v1425_v46 = vmul.f32 %v7539_v16, %v7461_v15  ;;  %v1402_v56 = vsel %vm7557_vm13, %v7413_v51, %v1398_v21  ;;  %v1406_v32 = vor.u32 1.1754944e-38, %v1405_v39 }
 0x202   : > { %v7568_v59 = vpop.eup %5199  ;;  %vm7575_vm11 = vmor %vm1414_vm15, %vm1415_vm9  ;;  %v1435_v18 = vand.u32 2147483648, %v7461_v15  ;;  %5205 = vrcp.f32 %v7527_v13  ;;  %v1450_v51 = vand.u32 2147483648, %v7488_v38  ;;  %v7591_v25 = vsel %vm7532_vm1, %v1391_v10, %v1387_v57 }
 0x203   : > { %v1417_v62 = vsel %vm7575_vm11, %v7421_v0, %v1413_v36  ;;  %v1426_v22 = vsub.f32 1.0, %v1425_v46  ;;  %v1440_v23 = vmul.f32 %v7568_v59, %v7488_v38  ;;  %vm1419_vm0 = vcmp.eq.f32.partialorder %v1418_v52, 8.507059e+37 }
 0x204   : > { %v7587_v41 = vpop.eup %5201  ;;  %v1421_v29 = vor.u32 1.1754944e-38, %v1420_v19  ;;  %v1465_v28 = vand.u32 2147483648, %v7504_v43  ;;  %v7596_v45 = vsel %vm7561_vm14, %v1406_v32, %v1402_v56  ;;  %v1433_v0 = vand.u32 2147483647, %v7461_v15 }
 0x205   : > { %v1441_v21 = vsub.f32 1.0, %v1440_v23  ;;  %v1455_v39 = vmul.f32 %v7587_v41, %v7504_v43  ;;  %vm1429_vm1 = vweird.f32 %v7461_v15  ;;  %v7606_v53 = vor.u32 1.1754944e-38, %v1435_v18 }
 0x206   : > { %v7601_v36 = vpop.eup %5203  ;;  %v7603_v26 = vsel %vm1419_vm0, %v1421_v29, %v1417_v62  ;;  %v1448_v10 = vand.u32 2147483647, %v7488_v38  ;;  %v1463_v52 = vand.u32 2147483647, %v7504_v43  ;;  %v1427_v19 = vmul.f32 %v7539_v16, %v1426_v22 }
 0x207   : > { %vm1444_vm10 = vweird.f32 %v7488_v38  ;;  %v7612_v57 = vor.u32 1.1754944e-38, %v1450_v51  ;;  %v1456_v35 = vsub.f32 1.0, %v1455_v39  ;;  %v1470_v58 = vmul.f32 %v7601_v36, %v7515_v37 }
 0x208   : > { %v7616_v46 = vpop.eup %5205  ;;  %vm1430_vm9 = vweird.f32 %v7539_v16  ;;  %vm1459_vm12 = vweird.f32 %v7504_v43  ;;  %v7620_v56 = vor.u32 1.1754944e-38, %v1465_v28  ;;  %v1478_v32 = vand.u32 2147483647, %v7515_v37 }
 0x209   : > { %v1480_v40 = vand.u32 2147483648, %v7515_v37  ;;  %v1442_v18 = vmul.f32 %v7568_v59, %v1441_v21  ;;  %vm1445_vm13 = vweird.f32 %v7568_v59  ;;  %v1471_v62 = vsub.f32 1.0, %v1470_v58  ;;  %vm7673_vm4 = vmor %vm1429_vm1, %vm1430_vm9 }
 0x20a   : > { %vm1474_vm14 = vweird.f32 %v7515_v37  ;;  %v1493_v22 = vand.u32 2147483647, %v7527_v13  ;;  %vm1460_vm15 = vweird.f32 %v7587_v41  ;;  %v1485_v23 = vmul.f32 %v7616_v46, %v7527_v13  ;;  %vm7688_vm1 = vmor %vm1444_vm10, %vm1445_vm13 }
 0x20b   : > { %v1502_v51 = vrot.slane %v7243_v60, 2  ;;  %v1503_v29 = vrot.slane %v7243_v60, 3  ;;  %v1428_v28 = vadd.f32 %v7539_v16, %v1427_v19  ;;  %vm7634_vm11 = vcmp.eq.f32.partialorder %v1433_v0, 8.507059e+37  ;;  %vm7699_vm9 = vmor %vm1459_vm12, %vm1460_vm15 }
 0x20c   : > { %v1457_v39 = vmul.f32 %v7587_v41, %v1456_v35  ;;  %v1472_v58 = vmul.f32 %v7601_v36, %v1471_v62  ;;  %vm1489_vm0 = vweird.f32 %v7527_v13  ;;  %v12040_v6 = vrot.slane %v7243_v60, 1 }
 0x20d   : > { %vm7644_vm8 = vcmp.eq.f32.partialorder %v1448_v10, 8.507059e+37  ;;  %vm1475_vm7 = vweird.f32 %v7601_v36  ;;  %v1486_v0 = vsub.f32 1.0, %v1485_v23  ;;  %v1504_v19 = vrot.slane %v7243_v60, 4 }
 0x20e   : > { %v1517_v20 = vmul.f32 %v12040_v6, %v7397_v42  ;;  %v1518_v2 = vmul.f32 %v1502_v51, %v7408_v30  ;;  %v1443_v35 = vadd.f32 %v7568_v59, %v1442_v18  ;;  %vm7652_vm6 = vcmp.eq.f32.partialorder %v1463_v52, 8.507059e+37  ;;  %vm7713_vm10 = vmor %vm1474_vm14, %vm1475_vm7 }
 0x20f   : > { %vm7656_vm5 = vcmp.eq.f32.partialorder %v1478_v32, 8.507059e+37  ;;  %v1505_v6 = vrot.slane %v7243_v60, 5  ;;  %v1506_v42 = vrot.slane %v7243_v60, 6  ;;  %v1519_v10 = vmul.f32 %v1503_v29, %v7467_v17 }
 0x210   : > { %v1487_v23 = vmul.f32 %v7616_v46, %v1486_v0  ;;  %v1520_v30 = vmul.f32 %v1504_v19, %v7482_v1  ;;  %v1523_v52 = vadd.f32 %v7377_v54, %v6459_v24  ;;  %v1524_v18 = vadd.f32 %v7365_v27, %v6472_v11 }
 0x211   : > { %v1458_v17 = vadd.f32 %v7587_v41, %v1457_v39  ;;  %v1473_v60 = vadd.f32 %v7601_v36, %v1472_v58  ;;  %v1521_v1 = vmul.f32 %v1505_v6, %v7510_v61  ;;  %v1525_v51 = vadd.f32 %v1517_v20, %v6491_v34 }
 0x212   : > { %v1432_v27 = vsel %vm7673_vm4, %v7539_v16, %v1428_v28  ;;  %v1495_v15 = vand.u32 2147483648, %v7527_v13  ;;  %v1522_v29 = vmul.f32 %v1506_v42, %v7522_v3  ;;  %v1526_v61 = vadd.f32 %v1518_v2, %v6504_v44 }
 0x213   : > { %v1488_v38 = vadd.f32 %v7616_v46, %v1487_v23  ;;  %vm1490_vm4 = vweird.f32 %v7616_v46  ;;  %v1527_v16 = vadd.f32 %v1519_v10, %v6535_v8  ;;  %5207 = vtanh.f32 %v1523_v52 }
 0x214   : > { %v1447_v3 = vsel %vm7688_vm1, %v7568_v59, %v1443_v35  ;;  %v1481_v43 = vor.u32 1.1754944e-38, %v1480_v40  ;;  %v1528_v28 = vadd.f32 %v1520_v30, %v6648_v5  ;;  %5209 = vtanh.f32 %v1524_v18  ;;  %vm7730_vm7 = vmor %vm1489_vm0, %vm1490_vm4 }
 0x215   : > { %v1462_v39 = vsel %vm7699_vm9, %v7587_v41, %v1458_v17  ;;  %v1477_v59 = vsel %vm7713_vm10, %v7601_v36, %v1473_v60  ;;  %v1529_v58 = vadd.f32 %v1521_v1, %v6677_v12  ;;  %5211 = vtanh.f32 %v1525_v51 }
 0x216   : > { %v1437_v37 = vsel %vm7634_vm11, %v7606_v53, %v1432_v27  ;;  %vm7734_vm12 = vcmp.eq.f32.partialorder %v1493_v22, 8.507059e+37  ;;  %v1530_v41 = vadd.f32 %v1522_v29, %v6757_v14  ;;  %5213 = vtanh.f32 %v1526_v61 }
 0x217   : > { %v1452_v36 = vsel %vm7644_vm8, %v7612_v57, %v1447_v3  ;;  %v1492_v53 = vsel %vm7730_vm7, %v7616_v46, %v1488_v38  ;;  %v1496_v13 = vor.u32 1.1754944e-38, %v1495_v15  ;;  %5215 = vtanh.f32 %v1527_v16 }
 0x218   : > { %v1467_v22 = vsel %vm7652_vm6, %v7620_v56, %v1462_v39  ;;  %v1482_v21 = vsel %vm7656_vm5, %v1481_v43, %v1477_v59  ;;  %5217 = vtanh.f32 %v1528_v28  ;;  %v1539_v19 = vsub.f32 1.0, %v7591_v25 }
 0x219   : > { %v5208_v35 = vpop.eup %5207  ;;  %5219 = vtanh.f32 %v1529_v58  ;;  %v1540_v9 = vsub.f32 1.0, %v7596_v45  ;;  %v1541_v57 = vsub.f32 1.0, %v7603_v26  ;;  %v1542_v6 = vsub.f32 1.0, %v1437_v37 }
 0x21a   : > { %v5210_v46 = vpop.eup %5209  ;;  %v1497_v42 = vsel %vm7734_vm12, %v1496_v13, %v1492_v53  ;;  %5221 = vtanh.f32 %v1530_v41  ;;  %v1547_v62 = vmul.f32 %v5208_v35, %v1539_v19  ;;  %v1570_v56 = vmul.f32 %v12059_v50, %v7591_v25  ;;  %v12072_v50 = vld [vmem:[#allocation30_spill] sm:$0xff] }
 0x21b   : > { %v5212_v10 = vpop.eup %5211  ;;  %v1543_v23 = vsub.f32 1.0, %v1452_v36  ;;  %v1544_v30 = vsub.f32 1.0, %v1467_v22  ;;  %v1545_v52 = vsub.f32 1.0, %v1482_v21  ;;  %v1548_v18 = vmul.f32 %v5210_v46, %v1540_v9 }
 0x21c   : > { %v5214_v32 = vpop.eup %5213  ;;  %v1549_v17 = vmul.f32 %v5212_v10, %v1541_v57  ;;  %v12060_v60 = vrot.slane %v7010_v47, 7  ;;  %v12061_v51 = vrot.slane %v7014_v55, 7  ;;  %v7764_v54 = vadd.f32 %v1570_v56, %v1547_v62  ;;  %v12073_v56 = vld [vmem:[#allocation31_spill] sm:$0xff]  ;;  %v12074_v10 = vld [vmem:[#allocation32_spill] sm:$0xff] }
 0x21d   : > { %v5216_v15 = vpop.eup %5215  ;;  %v1546_v48 = vsub.f32 1.0, %v1497_v42  ;;  %v1550_v25 = vmul.f32 %v5214_v32, %v1542_v6  ;;  %v12062_v29 = vrot.slane %v7016_v63, 7  ;;  %v12063_v20 = vrot.slane %v7019_v49, 7  ;;  %v12079_v32 = vld [vmem:[#allocation37_spill] sm:$0xff] }
 0x21e   : > { %v1571_v1 = vmul.f32 %v7596_v45, %v12060_v60  ;;  %v1572_v27 = vmul.f32 %v12061_v51, %v7603_v26  ;;  %v5218_v16 = vpop.eup %5217  ;;  %v1551_v3 = vmul.f32 %v5216_v15, %v1543_v23  ;;  %v1594_v55 = vrot.slane %v7764_v54, 1  ;;  %v12075_v23 = vld [vmem:[#allocation33_spill] sm:$0xff]  ;;  %v12081_v60 = vld [vmem:[#allocation39_spill] sm:$0xff]  ;;  %v12084_v51 = vld [vmem:[#allocation42_spill] sm:$0xff] }
 0x21f   : > { %v1573_v61 = vmul.f32 %v12062_v29, %v1437_v37  ;;  %v1574_v38 = vmul.f32 %v12063_v20, %v1452_v36  ;;  %v5220_v26 = vpop.eup %5219  ;;  %v1552_v2 = vmul.f32 %v5218_v16, %v1544_v30  ;;  %v12064_v43 = vrot.slane %v7022_v31, 7  ;;  %v12076_v30 = vld [vmem:[#allocation34_spill] sm:$0xff]  ;;  %v12086_v15 = vld [vmem:[#allocation44_spill] sm:$0xff]  ;;  %v12089_v29 = vld [vmem:[#allocation47_spill] sm:$0xff] }
 0x220   : > { %v7770_v47 = vadd.f32 %v1571_v1, %v1548_v18  ;;  %v7772_v45 = vadd.f32 %v1572_v27, %v1549_v17  ;;  %v12065_v39 = vrot.slane %v7029_v7, 7  ;;  %v5222_v49 = vpop.eup %5221  ;;  %v1553_v58 = vmul.f32 %v5220_v26, %v1545_v52  ;;  %v12077_v52 = vld [vmem:[#allocation35_spill] sm:$0xff]  ;;  %v12078_v18 = vld [vmem:[#allocation36_spill] sm:$0xff]  ;;  %v12080_v17 = vld [vmem:[#allocation38_spill] sm:$0xff] }
 0x221   : > { %v1575_v28 = vmul.f32 %v12064_v43, %v1467_v22  ;;  %v7779_v59 = vadd.f32 %v1573_v61, %v1550_v25  ;;  %v7781_v37 = vadd.f32 %v1574_v38, %v1551_v3  ;;  %v1554_v41 = vmul.f32 %v5222_v49, %v1546_v48  ;;  %v12083_v1 = vld [vmem:[#allocation41_spill] sm:$0xff]  ;;  %v12085_v27 = vld [vmem:[#allocation43_spill] sm:$0xff]  ;;  %v12088_v25 = vld [vmem:[#allocation46_spill] sm:$0xff] }
 0x222   : > { %v1576_v63 = vmul.f32 %v12065_v39, %v1482_v21  ;;  %v1595_v40 = vsel %vm11858_vm2, %v7770_v47, %v1594_v55  ;;  %v11792_v0 = vrot.slane %v7772_v45, 7  ;;  %v12066_v36 = vrot.slane %v7033_v4, 7  ;;  %v12087_v48 = vld [vmem:[#allocation45_spill] sm:$0xff]  ;;  %v12090_v61 = vld [vmem:[#allocation48_spill] sm:$0xff]  ;;  %v12092_v38 = vld [vmem:[#allocation50_spill] sm:$0xff] }
 0x223   : > { %v7788_v31 = vadd.f32 %v1575_v28, %v1552_v2  ;;  %v1598_v7 = vrot.slane %v7779_v59, 6  ;;  %v1600_v21 = vrot.slane %v7781_v37, 5  ;;  %vm12067_vm5 = vcmask 1043459   ;;  %v12091_v20 = vld [vmem:[#allocation49_spill] sm:$0xff]  ;;  %v12093_v16 = vld [vmem:[#allocation51_spill] sm:$0xff]  ;;  %v12094_v3 = vld [vmem:[#allocation52_spill] sm:$0xff] }
 0x224   : > { %v1577_v53 = vmul.f32 %v12066_v36, %v1497_v42  ;;  %v7791_v13 = vadd.f32 %v1576_v63, %v1553_v58  ;;  %v1597_v22 = vsel %vm11793_vm3, %v11792_v0, %v1595_v40  ;;  %vm12068_vm6 = vcmask 1044484   ;;  %v12095_v55 = vld [vmem:[#allocation53_spill] sm:$0xff]  ;;  %v12096_v26 = vld [vmem:[#allocation54_spill] sm:$0xff]  ;;  %v12097_v2 = vld [vmem:[#allocation55_spill] sm:$0xff] }
 0x225   : > { %v1599_v35 = vsel %vm12067_vm5, %v1598_v7, %v1597_v22  ;;  %v1602_v9 = vrot.slane %v7788_v31, 4  ;;  %vm12069_vm8 = vcmask 1045509   ;;  %vm12070_vm13 = vcmask 1046534   ;;  %v12098_v43 = vld [vmem:[#allocation56_spill] sm:$0xff]  ;;  %v12099_v28 = vld [vmem:[#allocation57_spill] sm:$0xff]  ;;  %v12100_v39 = vld [vmem:[#allocation58_spill] sm:$0xff] }
 0x226   : > { %v7797_v19 = vadd.f32 %v1577_v53, %v1554_v41  ;;  %v1601_v4 = vsel %vm12068_vm6, %v1600_v21, %v1599_v35  ;;  %v1604_v57 = vrot.slane %v7791_v13, 3  ;;  %vm12071_vm14 = vcmask 1047559   ;;  %v12101_v63 = vld [vmem:[#allocation59_spill] sm:$0xff]  ;;  %v12102_v49 = vld [vmem:[#allocation60_spill] sm:$0xff]  ;;  %v12103_v58 = vld [vmem:[#allocation61_spill] sm:$0xff] }
 0x227   : > { %v1603_v6 = vsel %vm12069_vm8, %v1602_v9, %v1601_v4  ;;  %v12104_v40 = vld [vmem:[#allocation62_spill] sm:$0xff]  ;;  %v12105_v41 = vld [vmem:[#allocation63_spill] sm:$0xff]  ;;  %v12106_v36 = vld [vmem:[#allocation64_spill] sm:$0xff] }
 0x228   : > { %v1606_v46 = vrot.slane %v7797_v19, 2  ;;  %v1605_v42 = vsel %vm12070_vm13, %v1604_v57, %v1603_v6  ;;  %v12107_v53 = vld [vmem:[#allocation65_spill] sm:$0xff]  ;;  %v12108_v7 = vld [vmem:[#allocation66_spill] sm:$0xff]  ;;  %v12109_v22 = vld [vmem:[#allocation67_spill] sm:$0xff] }
 0x229   : > { %v12110_v21 = vld [vmem:[#allocation68_spill] sm:$0xff]  ;;  %v12111_v35 = vld [vmem:[#allocation69_spill] sm:$0xff]  ;;  %v12112_v9 = vld [vmem:[#allocation70_spill] sm:$0xff] }
 0x22a   : > { %v1607_v62 = vsel %vm12071_vm14, %v1606_v46, %v1605_v42  ;;  %v12113_v4 = vld [vmem:[#allocation71_spill] sm:$0xff]  ;;  %v12114_v57 = vld [vmem:[#allocation72_spill] sm:$0xff]  ;;  %v12115_v6 = vld [vmem:[#allocation73_spill] sm:$0xff] }
 0x22b   : > { %1625 = vmatmul.f32.vlgmr.msra.gmra.mxu0 %v1607_v62  ;;  %1645 = vmatmul.f32.vlgmr.msra.gmra.mxu1 %v1607_v62  ;;  %v12116_v46 = vld [vmem:[#allocation74_spill] sm:$0xff]  ;;  %v12117_v42 = vld [vmem:[#allocation75_spill] sm:$0xff]  ;;  %v12137_v0 = vld [vmem:[#allocation20_spill] sm:$0xff] }
 0x22c   : > { %1665 = vmatmul.f32.vlgmr.msra.gmra.mxu2 %v1607_v62  ;;  %2693 = vmatpush.msra.mxu0 %v7043_v33  ;;  %v12082_v33 = vld [vmem:[#allocation40_spill] sm:$0xff] }
 0x22d   : > { %3175 = vmatpush.msra.mxu1 %v12072_v50  ;;  %3195 = vmatpush.msra.mxu2 %v12073_v56  ;;  %v12118_v62 = vld [vmem:[#allocation76_spill] sm:$0xff]  ;;  %v12119_v56 = vld [vmem:[#allocation10_spill] sm:$0xff] }
 0x22e   : > { %2694 = vmatpush.msra.mxu0 %v12074_v10 }
 0x22f   : > { %3176 = vmatpush.msra.mxu1 %v12075_v23  ;;  %3196 = vmatpush.msra.mxu2 %v12076_v30 }
 0x230   : > { %2695 = vmatpush.msra.mxu0 %v12077_v52 }
 0x231   : > { %3177 = vmatpush.msra.mxu1 %v12078_v18  ;;  %3197 = vmatpush.msra.mxu2 %v12079_v32 }
 0x232   : > { %2696 = vmatpush.msra.mxu0 %v12080_v17 }
 0x233   : > { %3178 = vmatpush.msra.mxu1 %v12081_v60  ;;  %3198 = vmatpush.msra.mxu2 %v12082_v33  ;;  %v12120_v33 = vld [vmem:[#allocation14_spill] sm:$0xff] }
 0x234   : > { %2697 = vmatpush.msra.mxu0 %v12083_v1 }
 0x235   : > { %3179 = vmatpush.msra.mxu1 %v12084_v51  ;;  %3199 = vmatpush.msra.mxu2 %v12085_v27  ;;  %v12121_v51 = vld [vmem:[#allocation12_spill] sm:$0xff] }
 0x236   : > { %2698 = vmatpush.msra.mxu0 %v12086_v15  ;;  %v12122_v15 = vld [vmem:[#allocation13_spill] sm:$0xff] }
 0x237   : > { %3180 = vmatpush.msra.mxu1 %v12087_v48  ;;  %3200 = vmatpush.msra.mxu2 %v12088_v25  ;;  %v12123_v25 = vld [vmem:[#allocation11_spill] sm:$0xff] }
 0x238   : > { %2699 = vmatpush.msra.mxu0 %v12089_v29 }
 0x239   : > { %3181 = vmatpush.msra.mxu1 %v12090_v61  ;;  %3201 = vmatpush.msra.mxu2 %v12091_v20  ;;  %v12124_v61 = vld [vmem:[#allocation16_spill] sm:$0xff] }
 0x23a   : > { %2700 = vmatpush.msra.mxu0 %v12092_v38 }
 0x23b   : > { %3182 = vmatpush.msra.mxu1 %v12093_v16  ;;  %3202 = vmatpush.msra.mxu2 %v12094_v3  ;;  %v12125_v16 = vld [vmem:[#allocation17_spill] sm:$0xff] }
 0x23c   : > { %2701 = vmatpush.msra.mxu0 %v12095_v55 }
 0x23d   : > { %3183 = vmatpush.msra.mxu1 %v12096_v26  ;;  %3203 = vmatpush.msra.mxu2 %v12097_v2  ;;  %v12126_v26 = vld [vmem:[#allocation18_spill] sm:$0xff] }
 0x23e   : > { %2702 = vmatpush.msra.mxu0 %v12098_v43 }
 0x23f   : > { %3184 = vmatpush.msra.mxu1 %v12099_v28  ;;  %3204 = vmatpush.msra.mxu2 %v12100_v39 }
 0x240   : > { %2703 = vmatpush.msra.mxu0 %v12101_v63  ;;  %v12127_v63 = vld [vmem:[#allocation15_spill] sm:$0xff] }
 0x241   : > { %3185 = vmatpush.msra.mxu1 %v12102_v49  ;;  %3205 = vmatpush.msra.mxu2 %v12103_v58 }
 0x242   : > { %2704 = vmatpush.msra.mxu0 %v12104_v40  ;;  %v12128_v40 = vld [vmem:[#allocation25_spill] sm:$0xff] }
 0x243   : > { %3186 = vmatpush.msra.mxu1 %v12105_v41  ;;  %3206 = vmatpush.msra.mxu2 %v12106_v36 }
 0x244   : > { %2705 = vmatpush.msra.mxu0 %v12107_v53 }
 0x245   : > { %3187 = vmatpush.msra.mxu1 %v12108_v7  ;;  %3207 = vmatpush.msra.mxu2 %v12109_v22 }
 0x246   : > { %2706 = vmatpush.msra.mxu0 %v12110_v21 }
 0x247   : > { %3188 = vmatpush.msra.mxu1 %v12111_v35  ;;  %3208 = vmatpush.msra.mxu2 %v12112_v9 }
 0x248   : > { %2707 = vmatpush.msra.mxu0 %v12113_v4 }
 0x249   : > { %3189 = vmatpush.msra.mxu1 %v12114_v57  ;;  %3209 = vmatpush.msra.mxu2 %v12115_v6 }
 0x24a   : > { %2708 = vmatpush.msra.mxu0 %v12116_v46 }
 0x24b   : > { %3190 = vmatpush.msra.mxu1 %v12117_v42  ;;  %3210 = vmatpush.msra.mxu2 %v12118_v62  ;;  %v12129_v62 = vld [vmem:[#allocation19_spill] sm:$0xff] }
 0x2a8   : > { %v1626_v50 = vpop.f32.mrf.mxu0  ;;  %v1646_v38 = vpop.f32.mrf.mxu1 }
 0x2a9   : > { %v1627_v10 = vadd.f32 %v1626_v50, %v12119_v56  ;;  %v7865_v41 = vadd.f32 %v1646_v38, %v12128_v40 }
 0x2ab   : > { %v1670_v23 = vrot.slane %v1627_v10, 6  ;;  %v1671_v30 = vrot.slane %v1627_v10, 7  ;;  %v1672_v52 = vrot.slane %v1627_v10, 1  ;;  %v1673_v18 = vrot.slane %v1627_v10, 2 }
 0x2ac   : > { %v1674_v32 = vrot.slane %v1627_v10, 3  ;;  %v1675_v17 = vrot.slane %v1627_v10, 4  ;;  %v1676_v60 = vrot.slane %v1627_v10, 5  ;;  %v1687_v1 = vadd.f32 %v1627_v10, %v12120_v33 }
 0x2ad   : > { %v1685_v27 = vadd.f32 %v1670_v23, %v12121_v51  ;;  %v1686_v48 = vadd.f32 %v1671_v30, %v12122_v15  ;;  %v1688_v29 = vadd.f32 %v1672_v52, %v12123_v25  ;;  %v1689_v20 = vadd.f32 %v1673_v18, %v12124_v61 }
 0x2ae   : > { %v1690_v3 = vadd.f32 %v1674_v32, %v12125_v16  ;;  %v4901_v55 = vmul.f32 -1.442695, %v1687_v1  ;;  %v1691_v2 = vadd.f32 %v1675_v17, %v12126_v26  ;;  %v1692_v49 = vadd.f32 %v1676_v60, %v12127_v63  ;;  %v12130_v60 = vld [vmem:[#allocation21_spill] sm:$0xff] }
 0x2af   : > { %v4899_v43 = vmul.f32 -1.442695, %v1685_v27  ;;  %v4900_v28 = vmul.f32 -1.442695, %v1686_v48  ;;  %v4902_v39 = vmul.f32 -1.442695, %v1688_v29 }
 0x2b0   : > { %5223 = vpow2.f32 %v4901_v55  ;;  %v4903_v58 = vmul.f32 -1.442695, %v1689_v20  ;;  %v4904_v36 = vmul.f32 -1.442695, %v1690_v3  ;;  %v4905_v53 = vmul.f32 -1.442695, %v1691_v2 }
 0x2b1   : > { %5225 = vpow2.f32 %v4899_v43  ;;  %v4906_v7 = vmul.f32 -1.442695, %v1692_v49  ;;  %v1846_v22 = vrot.slane %v7865_v41, 6  ;;  %v1847_v4 = vrot.slane %v7865_v41, 7  ;;  %v12131_v27 = vld [vmem:[#allocation22_spill] sm:$0xff]  ;;  %v12132_v20 = vld [vmem:[#allocation23_spill] sm:$0xff] }
 0x2b2   : > { %5227 = vpow2.f32 %v4900_v28  ;;  %v1848_v57 = vrot.slane %v7865_v41, 1  ;;  %v1849_v42 = vrot.slane %v7865_v41, 2  ;;  %v1850_v17 = vrot.slane %v7865_v41, 3  ;;  %v12133_v3 = vld [vmem:[#allocation26_spill] sm:$0xff] }
 0x2b3   : > { %5229 = vpow2.f32 %v4902_v39  ;;  %v1861_v50 = vadd.f32 %v1846_v22, %v12129_v62  ;;  %v1862_v1 = vadd.f32 %v1847_v4, %v12130_v60  ;;  %v1863_v48 = vadd.f32 %v7865_v41, %v12131_v27 }
 0x2b4   : > { %5231 = vpow2.f32 %v4903_v58  ;;  %v1864_v38 = vadd.f32 %v1848_v57, %v12132_v20  ;;  %v1865_v55 = vadd.f32 %v1849_v42, %v12133_v3  ;;  %v1851_v58 = vrot.slane %v7865_v41, 4 }
 0x2b5   : > { %5233 = vpow2.f32 %v4904_v36  ;;  %v4907_v2 = vmul.f32 -1.442695, %v1861_v50  ;;  %v4908_v50 = vmul.f32 -1.442695, %v1862_v1  ;;  %v12136_v1 = vld [vmem:[#allocation28_spill] sm:$0xff]  ;;  %v12196_v62 = vrot.slane %v7764_v54, 7 }
 0x2b6   : > { %v5224_v21 = vpop.eup %5223  ;;  %5235 = vpow2.f32 %v4905_v53  ;;  %v4910_v39 = vmul.f32 -1.442695, %v1864_v38  ;;  %v4911_v53 = vmul.f32 -1.442695, %v1865_v55 }
 0x2b7   : > { %v5226_v35 = vpop.eup %5225  ;;  %v7868_v9 = vadd.f32 1.0, %v5224_v21  ;;  %5237 = vpow2.f32 %v4906_v7  ;;  %v1852_v21 = vrot.slane %v7865_v41, 5  ;;  %v12135_v41 = vld [vmem:[#allocation24_spill] sm:$0xff] }
 0x2b8   : > { %v5228_v6 = vpop.eup %5227  ;;  %v7872_v46 = vadd.f32 1.0, %v5226_v35  ;;  %v1666_v35 = vpop.f32.mrf.mxu2 }
 0x2b9   : > { %v5230_v10 = vpop.eup %5229  ;;  %v7876_v23 = vadd.f32 1.0, %v5228_v6  ;;  %5239 = vrcp.f32 %v7868_v9  ;;  %v12134_v6 = vld [vmem:[#allocation27_spill] sm:$0xff]  ;;  %v7914_v28 = vadd.f32 %v1666_v35, %v12135_v41  ;;  %v7928_v18 = vadd.f32 %v1852_v21, %v12137_v0 }
 0x2ba   : > { %v5232_v30 = vpop.eup %5231  ;;  %v7881_v32 = vadd.f32 1.0, %v5230_v10  ;;  %5241 = vrcp.f32 %v7872_v46  ;;  %v1866_v42 = vadd.f32 %v1850_v17, %v12134_v6  ;;  %v4909_v10 = vmul.f32 -1.442695, %v1863_v48 }
 0x2bb   : > { %5243 = vrcp.f32 %v7876_v23  ;;  %v5234_v29 = vpop.eup %5233  ;;  %v7894_v49 = vadd.f32 1.0, %v5232_v30  ;;  %v7919_v48 = vadd.f32 %v1851_v58, %v12136_v1  ;;  %v1734_v58 = vand.u32 2147483647, %v7872_v46 }
 0x2bc   : > { %5245 = vrcp.f32 %v7881_v32  ;;  %v5236_v43 = vpop.eup %5235  ;;  %v7903_v57 = vadd.f32 1.0, %v5234_v29  ;;  %v7933_v6 = vmul.f32 -1.442695, %v1866_v42  ;;  %vm1730_vm15 = vweird.f32 %v7872_v46 }
 0x2bd   : > { %v5238_v36 = vpop.eup %5237  ;;  %5247 = vpow2.f32 %v4907_v2  ;;  %v7923_v38 = vadd.f32 1.0, %v5236_v43  ;;  %v1736_v43 = vand.u32 2147483648, %v7872_v46  ;;  %vm1745_vm11 = vweird.f32 %v7876_v23 }
 0x2be   : > { %5249 = vrcp.f32 %v7894_v49  ;;  %v7937_v3 = vadd.f32 1.0, %v5238_v36  ;;  %vm7950_vm0 = vcmp.eq.f32.partialorder %v1734_v58, 8.507059e+37  ;;  %v1751_v21 = vand.u32 2147483648, %v7876_v23 }
 0x2bf   : > { %v7901_v4 = vpop.eup %5239  ;;  %5251 = vrcp.f32 %v7903_v57  ;;  %v1737_v0 = vor.u32 1.1754944e-38, %v1736_v43  ;;  %vm1760_vm4 = vweird.f32 %v7868_v9  ;;  %vm1775_vm14 = vweird.f32 %v7881_v32 }
 0x2c0   : > { %v7906_v30 = vpop.eup %5241  ;;  %v1756_v7 = vmul.f32 %v7901_v4, %v7868_v9  ;;  %5253 = vpow2.f32 %v4908_v50  ;;  %vm1761_vm10 = vweird.f32 %v7901_v4  ;;  %v1752_v61 = vor.u32 1.1754944e-38, %v1751_v21 }
 0x2c1   : > { %v7910_v22 = vpop.eup %5243  ;;  %v1726_v17 = vmul.f32 %v7906_v30, %v7872_v46  ;;  %5255 = vrcp.f32 %v7923_v38  ;;  %vm1731_vm1 = vweird.f32 %v7906_v30  ;;  %vm7978_vm12 = vmor %vm1760_vm4, %vm1761_vm10 }
 0x2c2   : > { %v7921_v29 = vpop.eup %5245  ;;  %v1741_v55 = vmul.f32 %v7910_v22, %v7876_v23  ;;  %v1757_v2 = vsub.f32 1.0, %v1756_v7  ;;  %v1749_v7 = vand.u32 2147483647, %v7876_v23  ;;  %5257 = vpow2.f32 %v4909_v10  ;;  %vm7992_vm6 = vmor %vm1730_vm15, %vm1731_vm1 }
 0x2c3   : > { %v1727_v35 = vsub.f32 1.0, %v1726_v17  ;;  %v1771_v52 = vmul.f32 %v7921_v29, %v7881_v32  ;;  %v5248_v17 = vpop.eup %5247  ;;  %5259 = vrcp.f32 %v7937_v3  ;;  %vm1746_vm7 = vweird.f32 %v7910_v22 }
 0x2c4   : > { %v1742_v1 = vsub.f32 1.0, %v1741_v55  ;;  %v1758_v50 = vmul.f32 %v7901_v4, %v1757_v2  ;;  %v7945_v20 = vpop.eup %5249  ;;  %vm7961_vm9 = vcmp.eq.f32.partialorder %v1749_v7, 8.507059e+37  ;;  %5261 = vpow2.f32 %v4910_v39  ;;  %vm8005_vm13 = vmor %vm1745_vm11, %vm1746_vm7 }
 0x2c5   : > { %v1728_v42 = vmul.f32 %v7906_v30, %v1727_v35  ;;  %v1772_v41 = vsub.f32 1.0, %v1771_v52  ;;  %v1764_v35 = vand.u32 2147483647, %v7868_v9  ;;  %v1766_v52 = vand.u32 2147483648, %v7868_v9  ;;  %v7957_v2 = vpop.eup %5251 }
 0x2c6   : > { %v1743_v36 = vmul.f32 %v7910_v22, %v1742_v1  ;;  %v5254_v1 = vpop.eup %5253  ;;  %v1759_v43 = vadd.f32 %v7901_v4, %v1758_v50  ;;  %v1786_v26 = vmul.f32 %v7945_v20, %v7894_v49  ;;  %v7972_v16 = vadd.f32 1.0, %v5248_v17 }
 0x2c7   : > { %v1729_v58 = vadd.f32 %v7906_v30, %v1728_v42  ;;  %v1773_v63 = vmul.f32 %v7921_v29, %v1772_v41  ;;  %v7976_v9 = vpop.eup %5255  ;;  %5263 = vpow2.f32 %v4911_v53  ;;  %vm7982_vm5 = vcmp.eq.f32.partialorder %v1764_v35, 8.507059e+37 }
 0x2c8   : > { %v1744_v7 = vadd.f32 %v7910_v22, %v1743_v36  ;;  %v1767_v50 = vor.u32 1.1754944e-38, %v1766_v52  ;;  %v5258_v39 = vpop.eup %5257  ;;  %v7986_v17 = vadd.f32 1.0, %v5254_v1  ;;  %vm1776_vm8 = vweird.f32 %v7921_v29 }
 0x2c9   : > { %v1779_v53 = vand.u32 2147483647, %v7881_v32  ;;  %v1801_v21 = vmul.f32 %v7957_v2, %v7903_v57  ;;  %v1733_v35 = vsel %vm7992_vm6, %v7906_v30, %v1729_v58  ;;  %v1763_v46 = vsel %vm7978_vm12, %v7901_v4, %v1759_v43  ;;  %v8013_v33 = vpop.eup %5259  ;;  %vm8035_vm11 = vmor %vm1775_vm14, %vm1776_vm8 }
 0x2ca   : > { %v1774_v1 = vadd.f32 %v7921_v29, %v1773_v63  ;;  %v1787_v25 = vsub.f32 1.0, %v1786_v26  ;;  %v1748_v36 = vsel %vm8005_vm13, %v7910_v22, %v1744_v7  ;;  %v1781_v23 = vand.u32 2147483648, %v7881_v32  ;;  %v5262_v63 = vpop.eup %5261 }
 0x2cb   : > { %v1816_v30 = vmul.f32 %v7976_v9, %v7923_v38  ;;  %v8022_v58 = vadd.f32 1.0, %v5258_v39  ;;  %5265 = vrcp.f32 %v7972_v16  ;;  %vm1790_vm15 = vweird.f32 %v7894_v49 }
 0x2cc   : > { %v1802_v26 = vsub.f32 1.0, %v1801_v21  ;;  %5267 = vrcp.f32 %v7986_v17  ;;  %v1738_v22 = vsel %vm7950_vm0, %v1737_v0, %v1733_v35  ;;  %v8031_v4 = vsel %vm7982_vm5, %v1767_v50, %v1763_v46 }
 0x2cd   : > { %vm1780_vm1 = vcmp.eq.f32.partialorder %v1779_v53, 8.507059e+37  ;;  %v8039_v43 = vpop.eup %5263  ;;  %v1753_v7 = vsel %vm7961_vm9, %v1752_v61, %v1748_v36  ;;  %v1778_v0 = vsel %vm8035_vm11, %v7921_v29, %v1774_v1  ;;  %v1788_v55 = vmul.f32 %v7945_v20, %v1787_v25 }
 0x2ce   : > { %v1831_v42 = vmul.f32 %v8013_v33, %v7937_v3  ;;  %v1782_v41 = vor.u32 1.1754944e-38, %v1781_v23  ;;  %v1794_v50 = vand.u32 2147483647, %v7894_v49  ;;  %v1796_v39 = vand.u32 2147483648, %v7894_v49 }
 0x2cf   : > { %v1817_v53 = vsub.f32 1.0, %v1816_v30  ;;  %5269 = vrcp.f32 %v8022_v58  ;;  %v12152_v10 = vrot.slane %v7914_v28, 6  ;;  %v1803_v21 = vmul.f32 %v7957_v2, %v1802_v26 }
 0x2d0   : > { %v1811_v29 = vand.u32 2147483648, %v7903_v57  ;;  %v12153_v25 = vrot.slane %v7914_v28, 7  ;;  %v8062_v52 = vsel %vm1780_vm1, %v1782_v41, %v1778_v0  ;;  %vm1791_vm0 = vweird.f32 %v7945_v20 }
 0x2d1   : > { %v8054_v61 = vmul.f32 %v12152_v10, %v1738_v22  ;;  %v1832_v46 = vsub.f32 1.0, %v1831_v42  ;;  %v8065_v1 = vpop.eup %5265  ;;  %v1789_v36 = vadd.f32 %v7945_v20, %v1788_v55  ;;  %vm1805_vm9 = vweird.f32 %v7903_v57  ;;  %vm8086_vm7 = vmor %vm1790_vm15, %vm1791_vm0 }
 0x2d2   : > { %v8060_v35 = vmul.f32 %v12153_v25, %v1753_v7  ;;  %vm1806_vm4 = vweird.f32 %v7957_v2  ;;  %v4913_v23 = vmul.f32 -1.442695, %v7919_v48  ;;  %v8071_v30 = vpop.eup %5267  ;;  %vm8073_vm10 = vcmp.eq.f32.partialorder %v1794_v50, 8.507059e+37 }
 0x2d3   : > { %v1797_v22 = vor.u32 1.1754944e-38, %v1796_v39  ;;  %v1809_v32 = vand.u32 2147483647, %v7903_v57  ;;  %v1818_v7 = vmul.f32 %v7976_v9, %v1817_v53  ;;  %v1804_v0 = vadd.f32 %v7957_v2, %v1803_v21  ;;  %vm8107_vm6 = vmor %vm1805_vm9, %vm1806_vm4 }
 0x2d4   : > { %v1812_v55 = vor.u32 1.1754944e-38, %v1811_v29  ;;  %5271 = vpow2.f32 %v7933_v6  ;;  %v4914_v42 = vmul.f32 -1.442695, %v7928_v18  ;;  %vm1820_vm12 = vweird.f32 %v7923_v38 }
 0x2d5   : > { %vm1821_vm5 = vweird.f32 %v7976_v9  ;;  %v1833_v41 = vmul.f32 %v8013_v33, %v1832_v46  ;;  %v1902_v50 = vmul.f32 %v8065_v1, %v7972_v16  ;;  %v8095_v6 = vpop.eup %5269  ;;  %v1793_v18 = vsel %vm8086_vm7, %v7945_v20, %v1789_v36 }
 0x2d6   : > { %v1824_v49 = vand.u32 2147483647, %v7923_v38  ;;  %5273 = vpow2.f32 %v4913_v23  ;;  %v1917_v39 = vmul.f32 %v8071_v30, %v7986_v17  ;;  %v1819_v10 = vadd.f32 %v7976_v9, %v1818_v7  ;;  %vm8132_vm14 = vmor %vm1820_vm12, %vm1821_vm5 }
 0x2d7   : > { %v1826_v21 = vand.u32 2147483648, %v7923_v38  ;;  %vm1836_vm8 = vweird.f32 %v8013_v33  ;;  %v1839_v20 = vand.u32 2147483647, %v7937_v3  ;;  %v1808_v29 = vsel %vm8107_vm6, %v7957_v2, %v1804_v0 }
 0x2d8   : > { %v1841_v25 = vand.u32 2147483648, %v7937_v3  ;;  %5275 = vpow2.f32 %v4914_v42  ;;  %v1903_v57 = vsub.f32 1.0, %v1902_v50  ;;  %v1834_v46 = vadd.f32 %v8013_v33, %v1833_v41 }
 0x2d9   : > { %v8120_v36 = vadd.f32 1.0, %v5262_v63  ;;  %v1918_v23 = vsub.f32 1.0, %v1917_v39  ;;  %v1932_v7 = vmul.f32 %v8095_v6, %v8022_v58  ;;  %v8126_v27 = vsel %vm8073_vm10, %v1797_v22, %v1793_v18 }
 0x2da   : > { %v5272_v48 = vpop.eup %5271  ;;  %vm1810_vm13 = vcmp.eq.f32.partialorder %v1809_v32, 8.507059e+37  ;;  %vm8136_vm15 = vcmp.eq.f32.partialorder %v1824_v49, 8.507059e+37  ;;  %vm1835_vm11 = vweird.f32 %v7937_v3  ;;  %v1823_v26 = vsel %vm8132_vm14, %v7976_v9, %v1819_v10 }
 0x2db   : > { %v8141_v0 = vsel %vm1810_vm13, %v1812_v55, %v1808_v29  ;;  %v1827_v22 = vor.u32 1.1754944e-38, %v1826_v21  ;;  %v8147_v32 = vadd.f32 1.0, %v8039_v43  ;;  %vm8151_vm1 = vmor %vm1835_vm11, %vm1836_vm8  ;;  %vm8155_vm0 = vcmp.eq.f32.partialorder %v1839_v20, 8.507059e+37 }
 0x2dc   : > { %v5274_v38 = vpop.eup %5273  ;;  %v1842_v3 = vor.u32 1.1754944e-38, %v1841_v25  ;;  %v1904_v55 = vmul.f32 %v8065_v1, %v1903_v57  ;;  %v1933_v50 = vsub.f32 1.0, %v1932_v7  ;;  %v1838_v9 = vsel %vm8151_vm1, %v8013_v33, %v1834_v46 }
 0x2dd   : > { %v8163_v43 = vadd.f32 1.0, %v5272_v48  ;;  %v1919_v18 = vmul.f32 %v8071_v30, %v1918_v23  ;;  %5277 = vrcp.f32 %v8120_v36  ;;  %v8169_v39 = vsel %vm8136_vm15, %v1827_v22, %v1823_v26 }
 0x2de   : > { %v5276_v49 = vpop.eup %5275  ;;  %vm1906_vm9 = vweird.f32 %v7972_v16  ;;  %vm1907_vm4 = vweird.f32 %v8065_v1  ;;  %v1934_v53 = vmul.f32 %v8095_v6, %v1933_v50  ;;  %v8174_v10 = vadd.f32 1.0, %v5274_v38 }
 0x2df   : > { %v1910_v33 = vand.u32 2147483647, %v7972_v16  ;;  %v1912_v21 = vand.u32 2147483648, %v7972_v16  ;;  %5279 = vrcp.f32 %v8147_v32  ;;  %v8181_v20 = vsel %vm8155_vm0, %v1842_v3, %v1838_v9  ;;  %vm8201_vm5 = vmor %vm1906_vm9, %vm1907_vm4 }
 0x2e0   : > { %v1905_v29 = vadd.f32 %v8065_v1, %v1904_v55  ;;  %vm1922_vm10 = vweird.f32 %v8071_v30  ;;  %v1925_v25 = vand.u32 2147483647, %v7986_v17  ;;  %v8186_v57 = vadd.f32 1.0, %v5276_v49 }
 0x2e1   : > { %v1920_v46 = vadd.f32 %v8071_v30, %v1919_v18  ;;  %v1927_v23 = vand.u32 2147483648, %v7986_v17  ;;  %5281 = vrcp.f32 %v8163_v43  ;;  %vm1921_vm7 = vweird.f32 %v7986_v17 }
 0x2e2   : > { %v1935_v7 = vadd.f32 %v8095_v6, %v1934_v53  ;;  %vm1937_vm12 = vweird.f32 %v8095_v6  ;;  %v1940_v48 = vand.u32 2147483647, %v8022_v58  ;;  %vm8205_vm6 = vcmp.eq.f32.partialorder %v1910_v33, 8.507059e+37  ;;  %vm8216_vm8 = vmor %vm1921_vm7, %vm1922_vm10 }
 0x2e3   : > { %v8195_v2 = vpop.eup %5277  ;;  %v1913_v17 = vor.u32 1.1754944e-38, %v1912_v21  ;;  %v1942_v22 = vand.u32 2147483648, %v8022_v58  ;;  %5283 = vrcp.f32 %v8174_v10  ;;  %v1909_v38 = vsel %vm8201_vm5, %v8065_v1, %v1905_v29 }
 0x2e4   : > { %vm8220_vm13 = vcmp.eq.f32.partialorder %v1925_v25, 8.507059e+37  ;;  %vm1936_vm14 = vweird.f32 %v8022_v58  ;;  %v1947_v41 = vmul.f32 %v8195_v2, %v8120_v36  ;;  %v1924_v1 = vsel %vm8216_vm8, %v8071_v30, %v1920_v46 }
 0x2e5   : > { %v8227_v3 = vpop.eup %5279  ;;  %v1928_v55 = vor.u32 1.1754944e-38, %v1927_v23  ;;  %vm8234_vm15 = vmor %vm1936_vm14, %vm1937_vm12  ;;  %v1957_v9 = vand.u32 2147483648, %v8120_v36  ;;  %5285 = vrcp.f32 %v8186_v57  ;;  %vm1941_vm11 = vcmp.eq.f32.partialorder %v1940_v48, 8.507059e+37 }
 0x2e6   : > { %v1939_v58 = vsel %vm8234_vm15, %v8095_v6, %v1935_v7  ;;  %v1962_v18 = vmul.f32 %v8227_v3, %v8147_v32  ;;  %v1972_v30 = vand.u32 2147483648, %v8147_v32  ;;  %v8250_v53 = vsel %vm8205_vm6, %v1913_v17, %v1909_v38 }
 0x2e7   : > { %v8246_v49 = vpop.eup %5281  ;;  %v1943_v33 = vor.u32 1.1754944e-38, %v1942_v22  ;;  %v1948_v21 = vsub.f32 1.0, %v1947_v41  ;;  %v1987_v29 = vand.u32 2147483648, %v8163_v43  ;;  %v8255_v25 = vsel %vm8220_vm13, %v1928_v55, %v1924_v1 }
 0x2e8   : > { %v1955_v6 = vand.u32 2147483647, %v8120_v36  ;;  %v1970_v46 = vand.u32 2147483647, %v8147_v32  ;;  %v1977_v23 = vmul.f32 %v8246_v49, %v8163_v43  ;;  %vm1951_vm1 = vweird.f32 %v8120_v36 }
 0x2e9   : > { %v8261_v7 = vpop.eup %5283  ;;  %v8263_v48 = vsel %vm1941_vm11, %v1943_v33, %v1939_v58  ;;  %v8266_v63 = vor.u32 1.1754944e-38, %v1957_v9  ;;  %v1963_v26 = vsub.f32 1.0, %v1962_v18  ;;  %v1985_v17 = vand.u32 2147483647, %v8163_v43 }
 0x2ea   : > { %vm1952_vm0 = vweird.f32 %v8195_v2  ;;  %vm1966_vm9 = vweird.f32 %v8147_v32  ;;  %v8271_v22 = vor.u32 1.1754944e-38, %v1972_v30  ;;  %v1978_v38 = vsub.f32 1.0, %v1977_v23 }
 0x2eb   : > { %v1992_v16 = vmul.f32 %v8261_v7, %v8174_v10  ;;  %v8275_v42 = vpop.eup %5285  ;;  %v1949_v41 = vmul.f32 %v8195_v2, %v1948_v21  ;;  %vm1981_vm4 = vweird.f32 %v8163_v43  ;;  %v8279_v1 = vor.u32 1.1754944e-38, %v1987_v29  ;;  %vm8331_vm11 = vmor %vm1951_vm1, %vm1952_vm0 }
 0x2ec   : > { %v2000_v55 = vand.u32 2147483647, %v8174_v10  ;;  %v2002_v50 = vand.u32 2147483648, %v8174_v10  ;;  %vm1967_vm10 = vweird.f32 %v8227_v3  ;;  %vm1996_vm7 = vweird.f32 %v8174_v10 }
 0x2ed   : > { %v1993_v9 = vsub.f32 1.0, %v1992_v16  ;;  %v2015_v58 = vand.u32 2147483647, %v8186_v57  ;;  %v2024_v18 = vrot.slane %v7914_v28, 1  ;;  %v1964_v30 = vmul.f32 %v8227_v3, %v1963_v26  ;;  %vm8343_vm3 = vmor %vm1966_vm9, %vm1967_vm10 }
 0x2ee   : > { %vm1982_vm12 = vweird.f32 %v8246_v49  ;;  %v2007_v33 = vmul.f32 %v8275_v42, %v8186_v57  ;;  %vm2011_vm5 = vweird.f32 %v8186_v57  ;;  %v2025_v21 = vrot.slane %v7914_v28, 2 }
 0x2ef   : > { %v1979_v29 = vmul.f32 %v8246_v49, %v1978_v38  ;;  %v1994_v23 = vmul.f32 %v8261_v7, %v1993_v9  ;;  %v2026_v16 = vrot.slane %v7914_v28, 3  ;;  %v2039_v15 = vmul.f32 %v8031_v4, %v7914_v28  ;;  %vm8355_vm0 = vmor %vm1981_vm4, %vm1982_vm12 }
 0x2f0   : > { %v1950_v26 = vadd.f32 %v8195_v2, %v1949_v41  ;;  %vm8299_vm6 = vcmp.eq.f32.partialorder %v1955_v6, 8.507059e+37  ;;  %vm8303_vm8 = vcmp.eq.f32.partialorder %v1970_v46, 8.507059e+37  ;;  %vm1997_vm13 = vweird.f32 %v8261_v7 }
 0x2f1   : > { %v2008_v38 = vsub.f32 1.0, %v2007_v33  ;;  %v2040_v9 = vmul.f32 %v2024_v18, %v8062_v52  ;;  %vm8309_vm14 = vcmp.eq.f32.partialorder %v1985_v17, 8.507059e+37  ;;  %vm8313_vm15 = vcmp.eq.f32.partialorder %v2000_v55, 8.507059e+37  ;;  %vm8371_vm9 = vmor %vm1996_vm7, %vm1997_vm13 }
 0x2f2   : > { %v2027_v6 = vrot.slane %v7914_v28, 4  ;;  %v2028_v46 = vrot.slane %v7914_v28, 5  ;;  %v2041_v41 = vmul.f32 %v2025_v21, %v8126_v27  ;;  %v2045_v56 = vadd.f32 %v8054_v61, %v6459_v24 }
 0x2f3   : > { %v1965_v33 = vadd.f32 %v8227_v3, %v1964_v30  ;;  %v2009_v52 = vmul.f32 %v8275_v42, %v2008_v38  ;;  %v2042_v17 = vmul.f32 %v2026_v16, %v8141_v0  ;;  %v2046_v55 = vadd.f32 %v8060_v35, %v6472_v11 }
 0x2f4   : > { %v1980_v27 = vadd.f32 %v8246_v49, %v1979_v29  ;;  %v1995_v61 = vadd.f32 %v8261_v7, %v1994_v23  ;;  %v2043_v18 = vmul.f32 %v2027_v6, %v8169_v39  ;;  %v2047_v30 = vadd.f32 %v2039_v15, %v6491_v34 }
 0x2f5   : > { %v2010_v36 = vadd.f32 %v8275_v42, %v2009_v52  ;;  %vm2012_vm1 = vweird.f32 %v8275_v42  ;;  %v2044_v0 = vmul.f32 %v2028_v46, %v8181_v20  ;;  %v2048_v21 = vadd.f32 %v2040_v9, %v6504_v44 }
 0x2f6   : > { %v2003_v32 = vor.u32 1.1754944e-38, %v2002_v50  ;;  %v2017_v39 = vand.u32 2147483648, %v8186_v57  ;;  %v2049_v29 = vadd.f32 %v2041_v41, %v6535_v8  ;;  %5287 = vtanh.f32 %v2045_v56 }
 0x2f7   : > { %v1954_v20 = vsel %vm8331_vm11, %v8195_v2, %v1950_v26  ;;  %v1969_v23 = vsel %vm8343_vm3, %v8227_v3, %v1965_v33  ;;  %v2050_v50 = vadd.f32 %v2042_v17, %v6648_v5  ;;  %5289 = vtanh.f32 %v2046_v55  ;;  %vm8386_vm3 = vmor %vm2011_vm5, %vm2012_vm1 }
 0x2f8   : > { %v1984_v56 = vsel %vm8355_vm0, %v8246_v49, %v1980_v27  ;;  %v1999_v2 = vsel %vm8371_vm9, %v8261_v7, %v1995_v61  ;;  %v2051_v3 = vadd.f32 %v2043_v18, %v6677_v12  ;;  %5291 = vtanh.f32 %v2047_v30 }
 0x2f9   : > { %v2014_v16 = vsel %vm8386_vm3, %v8275_v42, %v2010_v36  ;;  %vm2016_vm4 = vcmp.eq.f32.partialorder %v2015_v58, 8.507059e+37  ;;  %v2052_v49 = vadd.f32 %v2044_v0, %v6757_v14  ;;  %5293 = vtanh.f32 %v2048_v21 }
 0x2fa   : > { %v1959_v7 = vsel %vm8299_vm6, %v8266_v63, %v1954_v20  ;;  %v1974_v57 = vsel %vm8303_vm8, %v8271_v22, %v1969_v23  ;;  %v2018_v26 = vor.u32 1.1754944e-38, %v2017_v39  ;;  %5295 = vtanh.f32 %v2049_v29 }
 0x2fb   : > { %v1989_v38 = vsel %vm8309_vm14, %v8279_v1, %v1984_v56  ;;  %v2004_v42 = vsel %vm8313_vm15, %v2003_v32, %v1999_v2  ;;  %5297 = vtanh.f32 %v2050_v50  ;;  %v2061_v58 = vsub.f32 1.0, %v8250_v53 }
 0x2fc   : > { %v5288_v9 = vpop.eup %5287  ;;  %v2019_v6 = vsel %vm2016_vm4, %v2018_v26, %v2014_v16  ;;  %5299 = vtanh.f32 %v2051_v3  ;;  %v2062_v51 = vsub.f32 1.0, %v8255_v25  ;;  %v2063_v60 = vsub.f32 1.0, %v8263_v48 }
 0x2fd   : > { %v5290_v63 = vpop.eup %5289  ;;  %5301 = vtanh.f32 %v2052_v49  ;;  %v2064_v22 = vsub.f32 1.0, %v1959_v7  ;;  %v2069_v46 = vmul.f32 %v5288_v9, %v2061_v58  ;;  %v2092_v1 = vmul.f32 %v12196_v62, %v8250_v53  ;;  %v8461_v62 = vld [vmem:[#allocation4 + $0x178] sm:$0xff] }
 0x2fe   : > { %v5292_v4 = vpop.eup %5291  ;;  %v2065_v41 = vsub.f32 1.0, %v1974_v57  ;;  %v2066_v33 = vsub.f32 1.0, %v1989_v38  ;;  %v2070_v52 = vmul.f32 %v5290_v63, %v2062_v51  ;;  %v12197_v17 = vrot.slane %v7770_v47, 7  ;;  %12214 = vst [vmem:[#allocation34_spill] sm:$0xff] %v8461_v62 }
 0x2ff   : > { %v5294_v28 = vpop.eup %5293  ;;  %v2067_v27 = vsub.f32 1.0, %v2004_v42  ;;  %v2068_v61 = vsub.f32 1.0, %v2019_v6  ;;  %v2071_v18 = vmul.f32 %v5292_v4, %v2063_v60  ;;  %v8415_v30 = vadd.f32 %v2092_v1, %v2069_v46  ;;  %v8464_v1 = vld [vmem:[#allocation4 + $0x168] sm:$0xff]  ;;  %v8467_v4 = vld [vmem:[#allocation4 + $0x170] sm:$0xff] }
 0x300   : > { %v2093_v55 = vmul.f32 %v12197_v17, %v8255_v25  ;;  %v5296_v35 = vpop.eup %5295  ;;  %v2072_v36 = vmul.f32 %v5294_v28, %v2064_v22  ;;  %v12198_v0 = vrot.slane %v7772_v45, 7  ;;  %v12199_v53 = vrot.slane %v7779_v59, 7  ;;  %12215 = vst [vmem:[#allocation35_spill] sm:$0xff] %v8464_v1  ;;  %v8479_v17 = vld [vmem:[#allocation4 + $0x148] sm:$0xff]  ;;  %v8485_v28 = vld [vmem:[#allocation4 + $0x140] sm:$0xff] }
 0x301   : > { %v5298_v32 = vpop.eup %5297  ;;  %v2073_v47 = vmul.f32 %v5296_v35, %v2065_v41  ;;  %v12200_v25 = vrot.slane %v7781_v37, 7  ;;  %v12201_v29 = vrot.slane %v7788_v31, 7  ;;  %v2116_v23 = vrot.slane %v8415_v30, 2  ;;  %12216 = vst [vmem:[#allocation36_spill] sm:$0xff] %v8467_v4  ;;  %v8470_v41 = vld [vmem:[#allocation4 + $0x160] sm:$0xff]  ;;  %v8497_v35 = vld [vmem:[#allocation4 + $0x118] sm:$0xff] }
 0x302   : > { %v2094_v54 = vmul.f32 %v8263_v48, %v12198_v0  ;;  %v2095_v21 = vmul.f32 %v12199_v53, %v1959_v7  ;;  %v8422_v15 = vadd.f32 %v2093_v55, %v2070_v52  ;;  %v5300_v43 = vpop.eup %5299  ;;  %v2074_v50 = vmul.f32 %v5298_v32, %v2066_v33  ;;  %12217 = vst [vmem:[#allocation37_spill] sm:$0xff] %v8470_v41  ;;  %v8473_v33 = vld [vmem:[#allocation4 + $0x150] sm:$0xff]  ;;  %v8476_v52 = vld [vmem:[#allocation4 + $0x158] sm:$0xff]  ;;  %v8515_v32 = vld [vmem:[#allocation4 + $0xe8] sm:$0xff] }
 0x303   : > { %v2096_v39 = vmul.f32 %v12200_v25, %v1974_v57  ;;  %v2097_v20 = vmul.f32 %v12201_v29, %v1989_v38  ;;  %v12202_v45 = vrot.slane %v7791_v13, 7  ;;  %v5302_v2 = vpop.eup %5301  ;;  %v2075_v10 = vmul.f32 %v5300_v43, %v2067_v27  ;;  %12218 = vst [vmem:[#allocation38_spill] sm:$0xff] %v8473_v33  ;;  %v8482_v55 = vld [vmem:[#allocation4 + $0x138] sm:$0xff]  ;;  %v8488_v27 = vld [vmem:[#allocation4 + $0x130] sm:$0xff]  ;;  %v8521_v25 = vld [vmem:[#allocation4 + $0xe0] sm:$0xff] }
 0x304   : > { %v8431_v56 = vadd.f32 %v2095_v21, %v2072_v36  ;;  %v2117_v59 = vrot.slane %v8422_v15, 1  ;;  %v12203_v3 = vrot.slane %v7797_v19, 7  ;;  %v8436_v16 = vadd.f32 %v2094_v54, %v2071_v18  ;;  %12219 = vst [vmem:[#allocation39_spill] sm:$0xff] %v8476_v52  ;;  %v8494_v18 = vld [vmem:[#allocation4 + $0x128] sm:$0xff]  ;;  %v8503_v0 = vld [vmem:[#allocation4 + $0x110] sm:$0xff]  ;;  %v8506_v54 = vld [vmem:[#allocation4 + $0x100] sm:$0xff] }
 0x305   : > { %v2098_v48 = vmul.f32 %v12202_v45, %v2004_v42  ;;  %v8438_v31 = vadd.f32 %v2096_v39, %v2073_v47  ;;  %v2076_v49 = vmul.f32 %v5302_v2, %v2068_v61  ;;  %v8440_v7 = vadd.f32 %v2097_v20, %v2074_v50  ;;  %12220 = vst [vmem:[#allocation40_spill] sm:$0xff] %v8479_v17  ;;  %v8491_v61 = vld [vmem:[#allocation4 + $0x120] sm:$0xff]  ;;  %v8500_v36 = vld [vmem:[#allocation4 + $0x108] sm:$0xff]  ;;  %v8509_v53 = vld [vmem:[#allocation4 + $0xf0] sm:$0xff] }
 0x306   : > { %v2099_v37 = vmul.f32 %v12203_v3, %v2019_v6  ;;  %v2118_v57 = vsel %vm11858_vm2, %v2117_v59, %v2116_v23  ;;  %v11794_v13 = vrot.slane %v8431_v56, 7  ;;  %vm12207_vm10 = vcmask 1042434   ;;  %12221 = vst [vmem:[#allocation41_spill] sm:$0xff] %v8482_v55  ;;  %v8512_v21 = vld [vmem:[#allocation4 + $0xf8] sm:$0xff]  ;;  %v8524_v39 = vld [vmem:[#allocation4 + $0xd0] sm:$0xff]  ;;  %v8527_v29 = vld [vmem:[#allocation4 + $0xc0] sm:$0xff] }
 0x307   : > { %12204 = vst [vmem:[#allocation30_spill] sm:$0xff] %v8438_v31  ;;  %v8444_v26 = vadd.f32 %v2098_v48, %v2075_v10  ;;  %v2119_v38 = vsel %vm12207_vm10, %v8436_v16, %v2118_v57  ;;  %v2122_v42 = vrot.slane %v8438_v31, 6  ;;  %vm12209_vm7 = vcmask 1043459   ;;  %v8518_v47 = vld [vmem:[#allocation4 + $0xd8] sm:$0xff]  ;;  %v8530_v20 = vld [vmem:[#allocation4 + $0xc8] sm:$0xff]  ;;  %v8539_v50 = vld [vmem:[#allocation4 + $0xb0] sm:$0xff] }
 0x308   : > { %12205 = vst [vmem:[#allocation31_spill] sm:$0xff] %v8440_v7  ;;  %v8449_v19 = vadd.f32 %v2099_v37, %v2076_v49  ;;  %v2121_v58 = vsel %vm12209_vm7, %v11794_v13, %v2119_v38  ;;  %v2124_v9 = vrot.slane %v8440_v7, 5  ;;  %vm12210_vm12 = vcmask 1044484   ;;  %v8533_v23 = vld [vmem:[#allocation4 + $0xb8] sm:$0xff]  ;;  %v8536_v43 = vld [vmem:[#allocation4 + $0xa8] sm:$0xff]  ;;  %v8542_v45 = vld [vmem:[#allocation4 + $0xa0] sm:$0xff] }
 0x309   : > { %12206 = vst [vmem:[#allocation32_spill] sm:$0xff] %v8444_v26  ;;  %v2123_v6 = vsel %vm12210_vm12, %v2122_v42, %v2121_v58  ;;  %v2126_v51 = vrot.slane %v8444_v26, 4  ;;  %vm12211_vm5 = vcmask 1045509   ;;  %vm12212_vm6 = vcmask 1046534   ;;  %v8545_v48 = vld [vmem:[#allocation4 + $0x90] sm:$0xff]  ;;  %v8548_v59 = vld [vmem:[#allocation4 + $0x98] sm:$0xff] }
 0x30a   : > { %12208 = vst [vmem:[#allocation33_spill] sm:$0xff] %v8449_v19  ;;  %v2125_v60 = vsel %vm12211_vm5, %v2124_v9, %v2123_v6  ;;  %v2128_v63 = vrot.slane %v8449_v19, 3  ;;  %vm12213_vm8 = vcmask 1047559   ;;  %v8551_v2 = vld [vmem:[#allocation4 + $0x88] sm:$0xff]  ;;  %v8554_v10 = vld [vmem:[#allocation4 + $0x78] sm:$0xff]  ;;  %v8557_v3 = vld [vmem:[#allocation4 + $0x80] sm:$0xff] }
 0x30b   : > { %v2127_v22 = vsel %vm12212_vm6, %v2126_v51, %v2125_v60  ;;  %12222 = vst [vmem:[#allocation42_spill] sm:$0xff] %v8485_v28  ;;  %v8560_v37 = vld [vmem:[#allocation4 + $0x70] sm:$0xff]  ;;  %v8563_v49 = vld [vmem:[#allocation4 + $0x60] sm:$0xff]  ;;  %v8566_v57 = vld [vmem:[#allocation4 + $0x68] sm:$0xff] }
 0x30c   : > { %v2129_v46 = vsel %vm12213_vm8, %v2128_v63, %v2127_v22  ;;  %12223 = vst [vmem:[#allocation43_spill] sm:$0xff] %v8488_v27  ;;  %v8569_v38 = vld [vmem:[#allocation4 + $0x58] sm:$0xff]  ;;  %v8572_v42 = vld [vmem:[#allocation4 + $0x48] sm:$0xff]  ;;  %v8575_v58 = vld [vmem:[#allocation4 + $0x50] sm:$0xff] }
 0x30d   : > { %2147 = vmatmul.f32.vlgmr.msrb.gmra.mxu3 %v2129_v46  ;;  %2167 = vmatmul.f32.vlgmr.msrb.gmra.mxu0 %v2129_v46  ;;  %12224 = vst [vmem:[#allocation44_spill] sm:$0xff] %v8491_v61  ;;  %v8578_v9 = vld [vmem:[#allocation4 + $0x40] sm:$0xff]  ;;  %v8581_v6 = vld [vmem:[#allocation4 + $0x30] sm:$0xff]  ;;  %v8584_v51 = vld [vmem:[#allocation4 + $0x38] sm:$0xff] }
 0x30e   : > { %2187 = vmatmul.f32.vlgmr.msrb.gmra.mxu1 %v2129_v46  ;;  %3215 = vmatpush.msrb.mxu3 %v8461_v62  ;;  %12225 = vst [vmem:[#allocation45_spill] sm:$0xff] %v8494_v18  ;;  %v8587_v60 = vld [vmem:[#allocation4 + $0x28] sm:$0xff]  ;;  %v8590_v63 = vld [vmem:[#allocation4 + $0x18] sm:$0xff]  ;;  %v8593_v22 = vld [vmem:[#allocation4 + $0x20] sm:$0xff] }
 0x30f   : > { %3697 = vmatpush.msrb.mxu0 %v8464_v1  ;;  %3717 = vmatpush.msrb.mxu1 %v8467_v4  ;;  %12226 = vst [vmem:[#allocation46_spill] sm:$0xff] %v8497_v35  ;;  %v8596_v46 = vld [vmem:[#allocation4 + $0x10] sm:$0xff]  ;;  %v8599_v13 = vld [vmem:[#allocation4] sm:$0xff] }
 0x310   : > { %3216 = vmatpush.msrb.mxu3 %v8470_v41  ;;  %12227 = vst [vmem:[#allocation47_spill] sm:$0xff] %v8500_v36 }
 0x311   : > { %3698 = vmatpush.msrb.mxu0 %v8473_v33  ;;  %3718 = vmatpush.msrb.mxu1 %v8476_v52  ;;  %12228 = vst [vmem:[#allocation48_spill] sm:$0xff] %v8503_v0 }
 0x312   : > { %3217 = vmatpush.msrb.mxu3 %v8479_v17  ;;  %12229 = vst [vmem:[#allocation49_spill] sm:$0xff] %v8506_v54 }
 0x313   : > { %3699 = vmatpush.msrb.mxu0 %v8482_v55  ;;  %3719 = vmatpush.msrb.mxu1 %v8485_v28  ;;  %12230 = vst [vmem:[#allocation50_spill] sm:$0xff] %v8509_v53 }
 0x314   : > { %3218 = vmatpush.msrb.mxu3 %v8488_v27  ;;  %12231 = vst [vmem:[#allocation51_spill] sm:$0xff] %v8512_v21 }
 0x315   : > { %3700 = vmatpush.msrb.mxu0 %v8491_v61  ;;  %3720 = vmatpush.msrb.mxu1 %v8494_v18  ;;  %12232 = vst [vmem:[#allocation52_spill] sm:$0xff] %v8515_v32 }
 0x316   : > { %3219 = vmatpush.msrb.mxu3 %v8497_v35  ;;  %12233 = vst [vmem:[#allocation53_spill] sm:$0xff] %v8518_v47 }
 0x317   : > { %3701 = vmatpush.msrb.mxu0 %v8500_v36  ;;  %3721 = vmatpush.msrb.mxu1 %v8503_v0  ;;  %12234 = vst [vmem:[#allocation54_spill] sm:$0xff] %v8521_v25 }
 0x318   : > { %3220 = vmatpush.msrb.mxu3 %v8506_v54  ;;  %12235 = vst [vmem:[#allocation55_spill] sm:$0xff] %v8524_v39 }
 0x319   : > { %3702 = vmatpush.msrb.mxu0 %v8509_v53  ;;  %3722 = vmatpush.msrb.mxu1 %v8512_v21  ;;  %12236 = vst [vmem:[#allocation56_spill] sm:$0xff] %v8527_v29 }
 0x31a   : > { %3221 = vmatpush.msrb.mxu3 %v8515_v32  ;;  %12237 = vst [vmem:[#allocation57_spill] sm:$0xff] %v8530_v20 }
 0x31b   : > { %3703 = vmatpush.msrb.mxu0 %v8518_v47  ;;  %3723 = vmatpush.msrb.mxu1 %v8521_v25  ;;  %12238 = vst [vmem:[#allocation58_spill] sm:$0xff] %v8533_v23 }
 0x31c   : > { %3222 = vmatpush.msrb.mxu3 %v8524_v39  ;;  %12239 = vst [vmem:[#allocation59_spill] sm:$0xff] %v8536_v43 }
 0x31d   : > { %3704 = vmatpush.msrb.mxu0 %v8527_v29  ;;  %3724 = vmatpush.msrb.mxu1 %v8530_v20  ;;  %12240 = vst [vmem:[#allocation60_spill] sm:$0xff] %v8539_v50  ;;  %v12269_v20 = vld [vmem:[#allocation11_spill] sm:$0xff] }
 0x31e   : > { %3223 = vmatpush.msrb.mxu3 %v8533_v23  ;;  %12241 = vst [vmem:[#allocation61_spill] sm:$0xff] %v8542_v45  ;;  %v12268_v23 = vld [vmem:[#allocation14_spill] sm:$0xff] }
 0x31f   : > { %3705 = vmatpush.msrb.mxu0 %v8536_v43  ;;  %3725 = vmatpush.msrb.mxu1 %v8539_v50  ;;  %12242 = vst [vmem:[#allocation62_spill] sm:$0xff] %v8545_v48 }
 0x320   : > { %3224 = vmatpush.msrb.mxu3 %v8542_v45  ;;  %12243 = vst [vmem:[#allocation63_spill] sm:$0xff] %v8548_v59  ;;  %v12267_v45 = vld [vmem:[#allocation22_spill] sm:$0xff] }
 0x321   : > { %3706 = vmatpush.msrb.mxu0 %v8545_v48  ;;  %3726 = vmatpush.msrb.mxu1 %v8548_v59  ;;  %12244 = vst [vmem:[#allocation64_spill] sm:$0xff] %v8551_v2  ;;  %v12266_v59 = vld [vmem:[#allocation13_spill] sm:$0xff] }
 0x322   : > { %3225 = vmatpush.msrb.mxu3 %v8551_v2  ;;  %12245 = vst [vmem:[#allocation65_spill] sm:$0xff] %v8554_v10 }
 0x323   : > { %3707 = vmatpush.msrb.mxu0 %v8554_v10  ;;  %12246 = vst [vmem:[#allocation66_spill] sm:$0xff] %v8557_v3  ;;  %3727 = vmatpush.msrb.mxu1 %v8557_v3 }
 0x324   : > { %12247 = vst [vmem:[#allocation67_spill] sm:$0xff] %v8560_v37  ;;  %3226 = vmatpush.msrb.mxu3 %v8560_v37 }
 0x325   : > { %12248 = vst [vmem:[#allocation68_spill] sm:$0xff] %v8563_v49  ;;  %3708 = vmatpush.msrb.mxu0 %v8563_v49  ;;  %3728 = vmatpush.msrb.mxu1 %v8566_v57  ;;  %v12263_v49 = vld [vmem:[#allocation19_spill] sm:$0xff] }
 0x326   : > { %12249 = vst [vmem:[#allocation69_spill] sm:$0xff] %v8566_v57  ;;  %3227 = vmatpush.msrb.mxu3 %v8569_v38 }
 0x327   : > { %12250 = vst [vmem:[#allocation70_spill] sm:$0xff] %v8569_v38  ;;  %3709 = vmatpush.msrb.mxu0 %v8572_v42  ;;  %3729 = vmatpush.msrb.mxu1 %v8575_v58 }
 0x328   : > { %12251 = vst [vmem:[#allocation71_spill] sm:$0xff] %v8572_v42  ;;  %3228 = vmatpush.msrb.mxu3 %v8578_v9 }
 0x329   : > { %12252 = vst [vmem:[#allocation72_spill] sm:$0xff] %v8575_v58  ;;  %3710 = vmatpush.msrb.mxu0 %v8581_v6  ;;  %3730 = vmatpush.msrb.mxu1 %v8584_v51  ;;  %v12262_v58 = vld [vmem:[#allocation10_spill] sm:$0xff] }
 0x32a   : > { %12253 = vst [vmem:[#allocation73_spill] sm:$0xff] %v8578_v9  ;;  %3229 = vmatpush.msrb.mxu3 %v8587_v60 }
 0x32b   : > { %12254 = vst [vmem:[#allocation74_spill] sm:$0xff] %v8581_v6  ;;  %3711 = vmatpush.msrb.mxu0 %v8590_v63  ;;  %3731 = vmatpush.msrb.mxu1 %v8593_v22 }
 0x32c   : > { %12255 = vst [vmem:[#allocation75_spill] sm:$0xff] %v8584_v51  ;;  %3230 = vmatpush.msrb.mxu3 %v8596_v46  ;;  %v8602_v51 = vld [vmem:[#allocation4 + $0x8] sm:$0xff] }
 0x32d   : > { %12256 = vst [vmem:[#allocation76_spill] sm:$0xff] %v8587_v60  ;;  %3712 = vmatpush.msrb.mxu0 %v8599_v13  ;;  %3732 = vmatpush.msrb.mxu1 %v8602_v51 }
 0x32e   : > { %12257 = vst [vmem:[#allocation77_spill] sm:$0xff] %v8590_v63 }
 0x32f   : > { %12258 = vst [vmem:[#allocation78_spill] sm:$0xff] %v8593_v22 }
 0x330   : > { %12259 = vst [vmem:[#allocation79_spill] sm:$0xff] %v8596_v46 }
 0x331   : > { %12260 = vst [vmem:[#allocation80_spill] sm:$0xff] %v8599_v13 }
 0x332   : > { %12261 = vst [vmem:[#allocation81_spill] sm:$0xff] %v8602_v51  ;;  %v12264_v51 = vld [vmem:[#allocation21_spill] sm:$0xff] }
 0x38a   : > { %v2168_v60 = vpop.f32.mrf.mxu0 }
 0x38b   : > { %v8606_v6 = vadd.f32 %v2168_v60, %v12128_v40  ;;  %v12265_v60 = vld [vmem:[#allocation12_spill] sm:$0xff] }
 0x38d   : > { %v2368_v63 = vrot.slane %v8606_v6, 5  ;;  %v2369_v22 = vrot.slane %v8606_v6, 6  ;;  %v2370_v46 = vrot.slane %v8606_v6, 7 }
 0x38f   : > { %v2383_v37 = vadd.f32 %v2368_v63, %v12263_v49  ;;  %v2384_v10 = vadd.f32 %v2369_v22, %v12264_v51  ;;  %v2385_v50 = vadd.f32 %v2370_v46, %v12267_v45  ;;  %v12270_v63 = vld [vmem:[#allocation16_spill] sm:$0xff]  ;;  %v12271_v51 = vld [vmem:[#allocation17_spill] sm:$0xff]  ;;  %v12273_v46 = vld [vmem:[#allocation15_spill] sm:$0xff] }
 0x390   : > { %v2148_v9 = vpop.f32.mrf.mxu3 }
 0x391   : > { %v2149_v42 = vadd.f32 %v2148_v9, %v12262_v58  ;;  %v4923_v47 = vmul.f32 -1.442695, %v2383_v37  ;;  %v4924_v22 = vmul.f32 -1.442695, %v2384_v10  ;;  %v12274_v37 = vld [vmem:[#allocation23_spill] sm:$0xff] }
 0x392   : > { %v2386_v10 = vadd.f32 %v8606_v6, %v12274_v37 }
 0x393   : > { %v2192_v38 = vrot.slane %v2149_v42, 5  ;;  %v2193_v57 = vrot.slane %v2149_v42, 6  ;;  %v2194_v13 = vrot.slane %v2149_v42, 7  ;;  %v2195_v3 = vrot.slane %v2149_v42, 1 }
 0x394   : > { %v2196_v2 = vrot.slane %v2149_v42, 2  ;;  %v2197_v43 = vrot.slane %v2149_v42, 3  ;;  %v2198_v58 = vrot.slane %v2149_v42, 4  ;;  %v2210_v29 = vadd.f32 %v2149_v42, %v12269_v20 }
 0x395   : > { %v2207_v40 = vadd.f32 %v2192_v38, %v12265_v60  ;;  %v2208_v48 = vadd.f32 %v2193_v57, %v12266_v59  ;;  %v2209_v9 = vadd.f32 %v2194_v13, %v12268_v23  ;;  %v2211_v49 = vadd.f32 %v2195_v3, %v12270_v63  ;;  %v12272_v57 = vld [vmem:[#allocation18_spill] sm:$0xff] }
 0x396   : > { %v2212_v21 = vadd.f32 %v2196_v2, %v12271_v51  ;;  %v4925_v38 = vmul.f32 -1.442695, %v2385_v50  ;;  %v2213_v59 = vadd.f32 %v2197_v43, %v12272_v57  ;;  %v2214_v45 = vadd.f32 %v2198_v58, %v12273_v46  ;;  %v12277_v46 = vld [vmem:[#allocation27_spill] sm:$0xff] }
 0x397   : > { %v4915_v39 = vmul.f32 -1.442695, %v2207_v40  ;;  %v4916_v25 = vmul.f32 -1.442695, %v2208_v48  ;;  %v4917_v32 = vmul.f32 -1.442695, %v2209_v9  ;;  %v2188_v9 = vpop.f32.mrf.mxu1 }
 0x398   : > { %v4918_v13 = vmul.f32 -1.442695, %v2210_v29  ;;  %v4919_v42 = vmul.f32 -1.442695, %v2211_v49  ;;  %v4920_v40 = vmul.f32 -1.442695, %v2212_v21 }
 0x399   : > { %5303 = vpow2.f32 %v4915_v39  ;;  %v4921_v48 = vmul.f32 -1.442695, %v2213_v59  ;;  %v4922_v39 = vmul.f32 -1.442695, %v2214_v45  ;;  %v2371_v45 = vrot.slane %v8606_v6, 1  ;;  %v12276_v21 = vld [vmem:[#allocation26_spill] sm:$0xff] }
 0x39a   : > { %5305 = vpow2.f32 %v4916_v25  ;;  %v4926_v58 = vmul.f32 -1.442695, %v2386_v10 }
 0x39b   : > { %5307 = vpow2.f32 %v4917_v32  ;;  %v2387_v29 = vadd.f32 %v2371_v45, %v12276_v21  ;;  %v12278_v45 = vld [vmem:[#allocation28_spill] sm:$0xff] }
 0x39c   : > { %5309 = vpow2.f32 %v4923_v47 }
 0x39d   : > { %5311 = vpow2.f32 %v4924_v22 }
 0x39e   : > { %5313 = vpow2.f32 %v4925_v38 }
 0x39f   : > { %v5304_v3 = vpop.eup %5303  ;;  %5315 = vpow2.f32 %v4918_v13 }
 0x3a0   : > { %v5306_v50 = vpop.eup %5305  ;;  %5317 = vpow2.f32 %v4919_v42  ;;  %v8625_v43 = vadd.f32 1.0, %v5304_v3  ;;  %v2372_v42 = vrot.slane %v8606_v6, 2  ;;  %v2373_v3 = vrot.slane %v8606_v6, 3 }
 0x3a1   : > { %v5308_v25 = vpop.eup %5307  ;;  %5319 = vpow2.f32 %v4920_v40  ;;  %v8627_v32 = vadd.f32 1.0, %v5306_v50  ;;  %v2374_v50 = vrot.slane %v8606_v6, 4 }
 0x3a2   : > { %v5310_v47 = vpop.eup %5309  ;;  %5321 = vpow2.f32 %v4921_v48  ;;  %v8631_v59 = vadd.f32 1.0, %v5308_v25  ;;  %v12275_v25 = vld [vmem:[#allocation24_spill] sm:$0xff]  ;;  %v2388_v57 = vadd.f32 %v2372_v42, %v12277_v46  ;;  %v2258_v23 = vand.u32 2147483648, %v8625_v43 }
 0x3a3   : > { %v5312_v2 = vpop.eup %5311  ;;  %5323 = vpow2.f32 %v4922_v39  ;;  %v8645_v38 = vadd.f32 %v2188_v9, %v12275_v25  ;;  %v8651_v48 = vadd.f32 1.0, %v5310_v47  ;;  %v12279_v47 = vld [vmem:[#allocation20_spill] sm:$0xff]  ;;  %v2256_v63 = vand.u32 2147483647, %v8625_v43 }
 0x3a4   : > { %v5314_v22 = vpop.eup %5313  ;;  %5325 = vrcp.f32 %v8625_v43  ;;  %v8656_v51 = vadd.f32 1.0, %v5312_v2  ;;  %v2390_v21 = vadd.f32 %v2374_v50, %v12279_v47  ;;  %v8686_v2 = vmul.f32 -1.442695, %v2388_v57 }
 0x3a5   : > { %v5316_v40 = vpop.eup %5315  ;;  %5327 = vrcp.f32 %v8627_v32  ;;  %v8668_v25 = vadd.f32 1.0, %v5314_v22  ;;  %v2273_v53 = vand.u32 2147483648, %v8627_v32  ;;  %v2271_v0 = vand.u32 2147483647, %v8627_v32 }
 0x3a6   : > { %v5318_v10 = vpop.eup %5317  ;;  %v8647_v13 = vadd.f32 1.0, %v5316_v40  ;;  %5329 = vrcp.f32 %v8631_v59  ;;  %vm2252_vm13 = vweird.f32 %v8625_v43  ;;  %vm2267_vm14 = vweird.f32 %v8627_v32 }
 0x3a7   : > { %v5320_v49 = vpop.eup %5319  ;;  %5331 = vpow2.f32 %v4926_v58  ;;  %v8653_v37 = vadd.f32 1.0, %v5318_v10  ;;  %v2389_v58 = vadd.f32 %v2373_v3, %v12278_v45  ;;  %v8693_v45 = vmul.f32 -1.442695, %v2390_v21 }
 0x3a8   : > { %v5322_v6 = vpop.eup %5321  ;;  %v8658_v39 = vadd.f32 1.0, %v5320_v49  ;;  %5333 = vrcp.f32 %v8647_v13  ;;  %v2259_v27 = vor.u32 1.1754944e-38, %v2258_v23  ;;  %vm2282_vm15 = vweird.f32 %v8631_v59 }
 0x3a9   : > { %v5324_v9 = vpop.eup %5323  ;;  %v8661_v40 = vadd.f32 1.0, %v5322_v6  ;;  %5335 = vrcp.f32 %v8653_v37  ;;  %v4927_v6 = vmul.f32 -1.442695, %v2387_v29  ;;  %v8691_v46 = vmul.f32 -1.442695, %v2389_v58 }
 0x3aa   : > { %v8666_v10 = vpop.eup %5325  ;;  %5337 = vrcp.f32 %v8658_v39  ;;  %v8682_v22 = vadd.f32 1.0, %v5324_v9  ;;  %v2274_v17 = vor.u32 1.1754944e-38, %v2273_v53  ;;  %vm8729_vm11 = vcmp.eq.f32.partialorder %v2256_v63, 8.507059e+37 }
 0x3ab   : > { %v8673_v42 = vpop.eup %5327  ;;  %5339 = vrcp.f32 %v8651_v48  ;;  %v2248_v3 = vmul.f32 %v8666_v10, %v8625_v43  ;;  %vm8733_vm1 = vcmp.eq.f32.partialorder %v2271_v0, 8.507059e+37  ;;  %vm2253_vm0 = vweird.f32 %v8666_v10 }
 0x3ac   : > { %v8679_v50 = vpop.eup %5329  ;;  %5341 = vrcp.f32 %v8656_v51  ;;  %v2263_v49 = vmul.f32 %v8673_v42, %v8627_v32  ;;  %vm2297_vm3 = vweird.f32 %v8647_v13  ;;  %v2301_v53 = vand.u32 2147483647, %v8647_v13  ;;  %vm8763_vm12 = vmor %vm2252_vm13, %vm2253_vm0 }
 0x3ad   : > { %v5332_v47 = vpop.eup %5331  ;;  %5343 = vrcp.f32 %v8661_v40  ;;  %v2278_v29 = vmul.f32 %v8679_v50, %v8631_v59  ;;  %v2249_v9 = vsub.f32 1.0, %v2248_v3  ;;  %v2288_v3 = vand.u32 2147483648, %v8631_v59 }
 0x3ae   : > { %v8695_v20 = vpop.eup %5333  ;;  %5345 = vrcp.f32 %v8668_v25  ;;  %v2264_v60 = vsub.f32 1.0, %v2263_v49  ;;  %v8738_v62 = vadd.f32 1.0, %v5332_v47  ;;  %v2316_v0 = vand.u32 2147483647, %v8653_v37 }
 0x3af   : > { %v8699_v57 = vpop.eup %5335  ;;  %v2279_v54 = vsub.f32 1.0, %v2278_v29  ;;  %v2293_v58 = vmul.f32 %v8695_v20, %v8647_v13  ;;  %5347 = vrcp.f32 %v8682_v22  ;;  %v2286_v29 = vand.u32 2147483647, %v8631_v59 }
 0x3b0   : > { %v8705_v21 = vpop.eup %5337  ;;  %v2308_v49 = vmul.f32 %v8699_v57, %v8653_v37  ;;  %v2250_v61 = vmul.f32 %v8666_v10, %v2249_v9  ;;  %v2265_v28 = vmul.f32 %v8673_v42, %v2264_v60  ;;  %5349 = vpow2.f32 %v4927_v6 }
 0x3b1   : > { %v8712_v36 = vpop.eup %5339  ;;  %v2323_v35 = vmul.f32 %v8705_v21, %v8658_v39  ;;  %v2280_v52 = vmul.f32 %v8679_v50, %v2279_v54  ;;  %v2294_v33 = vsub.f32 1.0, %v2293_v58  ;;  %v2289_v23 = vor.u32 1.1754944e-38, %v2288_v3 }
 0x3b2   : > { %v8719_v18 = vpop.eup %5341  ;;  %v2303_v60 = vand.u32 2147483648, %v8647_v13  ;;  %v2309_v1 = vsub.f32 1.0, %v2308_v49  ;;  %vm8741_vm9 = vcmp.eq.f32.partialorder %v2286_v29, 8.507059e+37  ;;  %v2251_v58 = vadd.f32 %v8666_v10, %v2250_v61 }
 0x3b3   : > { %v8724_v55 = vpop.eup %5343  ;;  %v2324_v63 = vsub.f32 1.0, %v2323_v35  ;;  %v2266_v47 = vadd.f32 %v8673_v42, %v2265_v28  ;;  %vm2268_vm4 = vweird.f32 %v8673_v42  ;;  %v2281_v49 = vadd.f32 %v8679_v50, %v2280_v52 }
 0x3b4   : > { %v8727_v41 = vpop.eup %5345  ;;  %v2338_v3 = vmul.f32 %v8724_v55, %v8661_v40  ;;  %vm2283_vm10 = vweird.f32 %v8679_v50  ;;  %v2295_v29 = vmul.f32 %v8695_v20, %v2294_v33  ;;  %vm2312_vm7 = vweird.f32 %v8653_v37  ;;  %vm8772_vm5 = vmor %vm2267_vm14, %vm2268_vm4 }
 0x3b5   : > { %v8748_v6 = vpop.eup %5347  ;;  %v2304_v28 = vor.u32 1.1754944e-38, %v2303_v60  ;;  %v2310_v35 = vmul.f32 %v8699_v57, %v2309_v1  ;;  %v2318_v19 = vand.u32 2147483648, %v8653_v37  ;;  %v2331_v52 = vand.u32 2147483647, %v8658_v39  ;;  %vm8795_vm14 = vmor %vm2282_vm15, %vm2283_vm10 }
 0x3b6   : > { %v5350_v26 = vpop.eup %5349  ;;  %vm2298_vm6 = vweird.f32 %v8695_v20  ;;  %vm8777_vm8 = vcmp.eq.f32.partialorder %v2301_v53, 8.507059e+37  ;;  %v2325_v60 = vmul.f32 %v8705_v21, %v2324_v63  ;;  %vm2327_vm13 = vweird.f32 %v8658_v39 }
 0x3b7   : > { %v2353_v1 = vmul.f32 %v8748_v6, %v8682_v22  ;;  %v2255_v32 = vsel %vm8763_vm12, %v8666_v10, %v2251_v58  ;;  %v2270_v7 = vsel %vm8772_vm5, %v8673_v42, %v2266_v47  ;;  %vm8799_vm0 = vcmp.eq.f32.partialorder %v2316_v0, 8.507059e+37  ;;  %vm8834_vm12 = vmor %vm2297_vm3, %vm2298_vm6 }
 0x3b8   : > { %v2333_v31 = vand.u32 2147483648, %v8658_v39  ;;  %v2339_v61 = vsub.f32 1.0, %v2338_v3  ;;  %v2285_v10 = vsel %vm8795_vm14, %v8679_v50, %v2281_v49  ;;  %v2296_v42 = vadd.f32 %v8695_v20, %v2295_v29 }
 0x3b9   : > { %vm2313_vm4 = vweird.f32 %v8699_v57  ;;  %v2354_v59 = vsub.f32 1.0, %v2353_v1  ;;  %v2311_v58 = vadd.f32 %v8699_v57, %v2310_v35  ;;  %v2319_v47 = vor.u32 1.1754944e-38, %v2318_v19 }
 0x3ba   : > { %vm2328_vm15 = vweird.f32 %v8705_v21  ;;  %vm8811_vm10 = vcmp.eq.f32.partialorder %v2331_v52, 8.507059e+37  ;;  %v8817_v3 = vsel %vm8729_vm11, %v2259_v27, %v2255_v32  ;;  %v8821_v50 = vsel %vm8733_vm1, %v2274_v17, %v2270_v7  ;;  %vm8847_vm11 = vmor %vm2312_vm7, %vm2313_vm4 }
 0x3bb   : > { %v2326_v49 = vadd.f32 %v8705_v21, %v2325_v60  ;;  %v2424_v29 = vmul.f32 %v8712_v36, %v8651_v48  ;;  %v8828_v19 = vsel %vm8741_vm9, %v2289_v23, %v2285_v10  ;;  %v2334_v27 = vor.u32 1.1754944e-38, %v2333_v31  ;;  %vm8861_vm9 = vmor %vm2327_vm13, %vm2328_vm15 }
 0x3bc   : > { %v2340_v7 = vmul.f32 %v8724_v55, %v2339_v61  ;;  %5351 = vpow2.f32 %v8686_v2  ;;  %v2300_v17 = vsel %vm8834_vm12, %v8695_v20, %v2296_v42  ;;  %vm2342_vm1 = vweird.f32 %v8661_v40 }
 0x3bd   : > { %v2355_v31 = vmul.f32 %v8748_v6, %v2354_v59  ;;  %5353 = vpow2.f32 %v8691_v46  ;;  %v2315_v13 = vsel %vm8847_vm11, %v8699_v57, %v2311_v58  ;;  %v2346_v37 = vand.u32 2147483647, %v8661_v40 }
 0x3be   : > { %v2425_v2 = vsub.f32 1.0, %v2424_v29  ;;  %v2439_v23 = vmul.f32 %v8719_v18, %v8656_v51  ;;  %v2330_v46 = vsel %vm8861_vm9, %v8705_v21, %v2326_v49  ;;  %vm2343_vm3 = vweird.f32 %v8724_v55 }
 0x3bf   : > { %v2348_v57 = vand.u32 2147483648, %v8661_v40  ;;  %v2361_v39 = vand.u32 2147483647, %v8682_v22  ;;  %v8876_v54 = vsel %vm8777_vm8, %v2304_v28, %v2300_v17  ;;  %v2341_v35 = vadd.f32 %v8724_v55, %v2340_v7  ;;  %vm8902_vm6 = vmor %vm2342_vm1, %vm2343_vm3 }
 0x3c0   : > { %v2363_v52 = vand.u32 2147483648, %v8682_v22  ;;  %5355 = vpow2.f32 %v8693_v45  ;;  %v8883_v33 = vsel %vm8799_vm0, %v2319_v47, %v2315_v13  ;;  %v2356_v21 = vadd.f32 %v8748_v6, %v2355_v31 }
 0x3c1   : > { %vm2358_vm7 = vweird.f32 %v8748_v6  ;;  %v2440_v60 = vsub.f32 1.0, %v2439_v23  ;;  %v8889_v28 = vsel %vm8811_vm10, %v2334_v27, %v2330_v46  ;;  %vm8891_vm5 = vcmp.eq.f32.partialorder %v2346_v37, 8.507059e+37 }
 0x3c2   : > { %v5352_v1 = vpop.eup %5351  ;;  %v2426_v45 = vmul.f32 %v8712_v36, %v2425_v2  ;;  %v2454_v32 = vmul.f32 %v8727_v41, %v8668_v25  ;;  %v2349_v61 = vor.u32 1.1754944e-38, %v2348_v57  ;;  %vm2357_vm8 = vweird.f32 %v8682_v22 }
 0x3c3   : > { %v5354_v53 = vpop.eup %5353  ;;  %vm8907_vm13 = vcmp.eq.f32.partialorder %v2361_v39, 8.507059e+37  ;;  %v8911_v42 = vadd.f32 1.0, %v5350_v26  ;;  %v2345_v59 = vsel %vm8902_vm6, %v8724_v55, %v2341_v35  ;;  %vm8916_vm14 = vmor %vm2357_vm8, %vm2358_vm7  ;;  %v2364_v40 = vor.u32 1.1754944e-38, %v2363_v52 }
 0x3c4   : > { %vm2428_vm0 = vweird.f32 %v8651_v48  ;;  %v2455_v47 = vsub.f32 1.0, %v2454_v32  ;;  %v2360_v22 = vsel %vm8916_vm14, %v8748_v6, %v2356_v21  ;;  %v8924_v0 = vadd.f32 1.0, %v5352_v1 }
 0x3c5   : > { %v2441_v26 = vmul.f32 %v8719_v18, %v2440_v60  ;;  %5357 = vrcp.f32 %v8738_v62  ;;  %v8928_v55 = vadd.f32 1.0, %v5354_v53  ;;  %v2427_v29 = vadd.f32 %v8712_v36, %v2426_v45 }
 0x3c6   : > { %v5356_v49 = vpop.eup %5355  ;;  %vm2429_vm4 = vweird.f32 %v8712_v36  ;;  %v2456_v4 = vmul.f32 %v8727_v41, %v2455_v47  ;;  %v8935_v27 = vsel %vm8891_vm5, %v2349_v61, %v2345_v59  ;;  %v2432_v6 = vand.u32 2147483647, %v8651_v48 }
 0x3c7   : > { %v2434_v7 = vand.u32 2147483648, %v8651_v48  ;;  %5359 = vrcp.f32 %v8911_v42  ;;  %v8942_v17 = vsel %vm8907_vm13, %v2364_v40, %v2360_v22  ;;  %vm2443_vm15 = vweird.f32 %v8656_v51  ;;  %vm8951_vm12 = vmor %vm2428_vm0, %vm2429_vm4 }
 0x3c8   : > { %vm2444_vm10 = vweird.f32 %v8719_v18  ;;  %v2447_v9 = vand.u32 2147483647, %v8656_v51  ;;  %v8947_v31 = vadd.f32 1.0, %v5356_v49  ;;  %v2442_v20 = vadd.f32 %v8719_v18, %v2441_v26 }
 0x3c9   : > { %v2449_v37 = vand.u32 2147483648, %v8656_v51  ;;  %5361 = vrcp.f32 %v8924_v0  ;;  %v2431_v2 = vsel %vm8951_vm12, %v8712_v36, %v2427_v29  ;;  %v2457_v23 = vadd.f32 %v8727_v41, %v2456_v4  ;;  %vm8972_vm9 = vmor %vm2443_vm15, %vm2444_vm10 }
 0x3ca   : > { %vm2459_vm11 = vweird.f32 %v8727_v41  ;;  %5363 = vrcp.f32 %v8928_v55  ;;  %vm2433_vm1 = vcmp.eq.f32.partialorder %v2432_v6, 8.507059e+37  ;;  %v2435_v46 = vor.u32 1.1754944e-38, %v2434_v7 }
 0x3cb   : > { %v8964_v48 = vpop.eup %5357  ;;  %v2462_v57 = vand.u32 2147483647, %v8668_v25  ;;  %v2464_v39 = vand.u32 2147483648, %v8668_v25  ;;  %vm8976_vm3 = vcmp.eq.f32.partialorder %v2447_v9, 8.507059e+37  ;;  %vm2458_vm7 = vweird.f32 %v8668_v25 }
 0x3cc   : > { %v2469_v52 = vmul.f32 %v8964_v48, %v8738_v62  ;;  %v2479_v21 = vand.u32 2147483648, %v8738_v62  ;;  %v8986_v1 = vsel %vm2433_vm1, %v2435_v46, %v2431_v2  ;;  %v2446_v51 = vsel %vm8972_vm9, %v8719_v18, %v2442_v20  ;;  %vm8993_vm5 = vmor %vm2458_vm7, %vm2459_vm11 }
 0x3cd   : > { %v8984_v60 = vpop.eup %5359  ;;  %v2450_v43 = vor.u32 1.1754944e-38, %v2449_v37  ;;  %5365 = vrcp.f32 %v8947_v31  ;;  %v2461_v25 = vsel %vm8993_vm5, %v8727_v41, %v2457_v23  ;;  %v2494_v53 = vand.u32 2147483648, %v8911_v42 }
 0x3ce   : > { %v2484_v32 = vmul.f32 %v8984_v60, %v8911_v42  ;;  %v2509_v18 = vand.u32 2147483648, %v8924_v0  ;;  %vm2463_vm6 = vcmp.eq.f32.partialorder %v2462_v57, 8.507059e+37  ;;  %v2465_v61 = vor.u32 1.1754944e-38, %v2464_v39 }
 0x3cf   : > { %v9005_v63 = vpop.eup %5361  ;;  %v2470_v10 = vsub.f32 1.0, %v2469_v52  ;;  %v2477_v59 = vand.u32 2147483647, %v8738_v62  ;;  %v9012_v40 = vsel %vm8976_vm3, %v2450_v43, %v2446_v51  ;;  %v9014_v41 = vor.u32 1.1754944e-38, %v2479_v21 }
 0x3d0   : > { %v9008_v58 = vpop.eup %5363  ;;  %v2492_v47 = vand.u32 2147483647, %v8911_v42  ;;  %v2499_v22 = vmul.f32 %v9005_v63, %v8924_v0  ;;  %v9019_v26 = vsel %vm2463_vm6, %v2465_v61, %v2461_v25  ;;  %vm2473_vm8 = vweird.f32 %v8738_v62 }
 0x3d1   : > { %v2485_v49 = vsub.f32 1.0, %v2484_v32  ;;  %v2507_v29 = vand.u32 2147483647, %v8924_v0  ;;  %v2514_v4 = vmul.f32 %v9008_v58, %v8928_v55  ;;  %vm2474_vm13 = vweird.f32 %v8964_v48 }
 0x3d2   : > { %vm2488_vm14 = vweird.f32 %v8911_v42  ;;  %v9027_v6 = vor.u32 1.1754944e-38, %v2494_v53  ;;  %v2500_v7 = vsub.f32 1.0, %v2499_v22  ;;  %v9029_v9 = vor.u32 1.1754944e-38, %v2509_v18  ;;  %vm9090_vm5 = vmor %vm2473_vm8, %vm2474_vm13 }
 0x3d3   : > { %v9031_v13 = vpop.eup %5365  ;;  %v2471_v20 = vmul.f32 %v8964_v48, %v2470_v10  ;;  %vm2503_vm0 = vweird.f32 %v8924_v0  ;;  %v2515_v37 = vsub.f32 1.0, %v2514_v4  ;;  %v2522_v2 = vand.u32 2147483647, %v8928_v55 }
 0x3d4   : > { %v2524_v23 = vand.u32 2147483648, %v8928_v55  ;;  %vm2489_vm4 = vweird.f32 %v8984_v60  ;;  %vm2518_vm15 = vweird.f32 %v8928_v55  ;;  %v2529_v46 = vmul.f32 %v9031_v13, %v8947_v31 }
 0x3d5   : > { %v2537_v57 = vand.u32 2147483647, %v8947_v31  ;;  %v2547_v39 = vrot.slane %v8645_v38, 1  ;;  %v2486_v36 = vmul.f32 %v8984_v60, %v2485_v49  ;;  %vm2504_vm10 = vweird.f32 %v9005_v63  ;;  %vm9102_vm6 = vmor %vm2488_vm14, %vm2489_vm4 }
 0x3d6   : > { %vm2533_vm12 = vweird.f32 %v8947_v31  ;;  %v12320_v35 = vrot.slane %v8645_v38, 5  ;;  %v12321_v21 = vrot.slane %v8645_v38, 6  ;;  %v2501_v43 = vmul.f32 %v9005_v63, %v2500_v7  ;;  %vm9114_vm13 = vmor %vm2503_vm0, %vm2504_vm10 }
 0x3d7   : > { %v2516_v45 = vmul.f32 %v9008_v58, %v2515_v37  ;;  %v2530_v25 = vsub.f32 1.0, %v2529_v46  ;;  %v12322_v32 = vrot.slane %v8645_v38, 7  ;;  %v2472_v18 = vadd.f32 %v8964_v48, %v2471_v20 }
 0x3d8   : > { %v2559_v52 = vmul.f32 %v12320_v35, %v8817_v3  ;;  %v2560_v51 = vmul.f32 %v12321_v21, %v8821_v50  ;;  %vm9058_vm11 = vcmp.eq.f32.partialorder %v2477_v59, 8.507059e+37  ;;  %vm9062_vm1 = vcmp.eq.f32.partialorder %v2492_v47, 8.507059e+37 }
 0x3d9   : > { %v2561_v53 = vmul.f32 %v12322_v32, %v8828_v19  ;;  %vm2519_vm9 = vweird.f32 %v9008_v58  ;;  %v2548_v50 = vrot.slane %v8645_v38, 2  ;;  %v2562_v10 = vmul.f32 %v8876_v54, %v8645_v38 }
 0x3da   : > { %vm9070_vm3 = vcmp.eq.f32.partialorder %v2507_v29, 8.507059e+37  ;;  %vm9074_vm7 = vcmp.eq.f32.partialorder %v2522_v2, 8.507059e+37  ;;  %v2531_v59 = vmul.f32 %v9031_v13, %v2530_v25  ;;  %v2549_v47 = vrot.slane %v8645_v38, 3  ;;  %vm9130_vm14 = vmor %vm2518_vm15, %vm2519_vm9 }
 0x3db   : > { %v2550_v49 = vrot.slane %v8645_v38, 4  ;;  %v2563_v4 = vmul.f32 %v2547_v39, %v8883_v33  ;;  %v2487_v7 = vadd.f32 %v8984_v60, %v2486_v36  ;;  %v2564_v54 = vmul.f32 %v2548_v50, %v8889_v28 }
 0x3dc   : > { %v2567_v29 = vadd.f32 %v2559_v52, %v6459_v24  ;;  %v2568_v20 = vadd.f32 %v2560_v51, %v6472_v11  ;;  %v2502_v38 = vadd.f32 %v9005_v63, %v2501_v43  ;;  %v2517_v33 = vadd.f32 %v9008_v58, %v2516_v45 }
 0x3dd   : > { %v2565_v2 = vmul.f32 %v2549_v47, %v8935_v27  ;;  %v2569_v28 = vadd.f32 %v2561_v53, %v6491_v34  ;;  %v2532_v62 = vadd.f32 %v9031_v13, %v2531_v59  ;;  %vm2534_vm8 = vweird.f32 %v9031_v13 }
 0x3de   : > { %v2566_v39 = vmul.f32 %v2550_v49, %v8942_v17  ;;  %v2570_v36 = vadd.f32 %v2562_v10, %v6504_v44  ;;  %v2525_v42 = vor.u32 1.1754944e-38, %v2524_v23  ;;  %v2539_v35 = vand.u32 2147483648, %v8947_v31  ;;  %vm9145_vm0 = vmor %vm2533_vm12, %vm2534_vm8 }
 0x3df   : > { %v2571_v52 = vadd.f32 %v2563_v4, %v6535_v8  ;;  %5367 = vtanh.f32 %v2567_v29  ;;  %v2476_v17 = vsel %vm9090_vm5, %v8964_v48, %v2472_v18  ;;  %v2491_v21 = vsel %vm9102_vm6, %v8984_v60, %v2487_v7 }
 0x3e0   : > { %v2572_v23 = vadd.f32 %v2564_v54, %v6648_v5  ;;  %5369 = vtanh.f32 %v2568_v20  ;;  %v2506_v51 = vsel %vm9114_vm13, %v9005_v63, %v2502_v38  ;;  %v2521_v48 = vsel %vm9130_vm14, %v9008_v58, %v2517_v33 }
 0x3e1   : > { %v2573_v60 = vadd.f32 %v2565_v2, %v6677_v12  ;;  %5371 = vtanh.f32 %v2569_v28  ;;  %v2536_v43 = vsel %vm9145_vm0, %v9031_v13, %v2532_v62  ;;  %vm2538_vm4 = vcmp.eq.f32.partialorder %v2537_v57, 8.507059e+37 }
 0x3e2   : > { %v2574_v63 = vadd.f32 %v2566_v39, %v6757_v14  ;;  %5373 = vtanh.f32 %v2570_v36  ;;  %v2481_v58 = vsel %vm9058_vm11, %v9014_v41, %v2476_v17  ;;  %v2496_v31 = vsel %vm9062_vm1, %v9027_v6, %v2491_v21  ;;  %v12349_v17 = vld [vmem:[#allocation32_spill] sm:$0xff] }
 0x3e3   : > { %v2540_v45 = vor.u32 1.1754944e-38, %v2539_v35  ;;  %5375 = vtanh.f32 %v2571_v52  ;;  %v2511_v25 = vsel %vm9070_vm3, %v9029_v9, %v2506_v51  ;;  %v2526_v13 = vsel %vm9074_vm7, %v2525_v42, %v2521_v48  ;;  %v12347_v42 = vld [vmem:[#allocation31_spill] sm:$0xff]  ;;  %v12351_v48 = vld [vmem:[#allocation33_spill] sm:$0xff] }
 0x3e4   : > { %5377 = vtanh.f32 %v2572_v23  ;;  %v2583_v57 = vsub.f32 1.0, %v8986_v1  ;;  %v2584_v41 = vsub.f32 1.0, %v9012_v40  ;;  %v2585_v18 = vsub.f32 1.0, %v9019_v26 }
 0x3e5   : > { %v5368_v32 = vpop.eup %5367  ;;  %v2541_v53 = vsel %vm2538_vm4, %v2540_v45, %v2536_v43  ;;  %5379 = vtanh.f32 %v2573_v60  ;;  %v2586_v61 = vsub.f32 1.0, %v2481_v58  ;;  %v12341_v9 = vrot.slane %v8415_v30, 7 }
 0x3e6   : > { %v5370_v6 = vpop.eup %5369  ;;  %5381 = vtanh.f32 %v2574_v63  ;;  %v2591_v3 = vmul.f32 %v5368_v32, %v2583_v57  ;;  %v2587_v22 = vsub.f32 1.0, %v2496_v31  ;;  %v2588_v19 = vsub.f32 1.0, %v2511_v25 }
 0x3e7   : > { %v2614_v50 = vmul.f32 %v12341_v9, %v8986_v1  ;;  %v5372_v10 = vpop.eup %5371  ;;  %v2592_v59 = vmul.f32 %v5370_v6, %v2584_v41  ;;  %v12342_v47 = vrot.slane %v8422_v15, 7  ;;  %v2589_v7 = vsub.f32 1.0, %v2526_v13 }
 0x3e8   : > { %v5374_v4 = vpop.eup %5373  ;;  %v2593_v54 = vmul.f32 %v5372_v10, %v2585_v18  ;;  %v12343_v29 = vrot.slane %v8436_v16, 7  ;;  %v2590_v30 = vsub.f32 1.0, %v2541_v53  ;;  %v12344_v33 = vrot.slane %v8431_v56, 7 }
 0x3e9   : > { %v2615_v49 = vmul.f32 %v12342_v47, %v9012_v40  ;;  %v9177_v37 = vadd.f32 %v2614_v50, %v2591_v3  ;;  %v5376_v38 = vpop.eup %5375  ;;  %v2594_v1 = vmul.f32 %v5374_v4, %v2586_v61  ;;  %v12345_v40 = vld [vmem:[#allocation30_spill] sm:$0xff]  ;;  %v12348_v35 = vrot.slane %v12347_v42, 7  ;;  %v12362_v47 = vld [vmem:[#allocation37_spill] sm:$0xff]  ;;  %v12364_v4 = vld [vmem:[#allocation39_spill] sm:$0xff] }
 0x3ea   : > { %v2616_v20 = vmul.f32 %v12343_v29, %v9019_v26  ;;  %v2617_v2 = vmul.f32 %v2481_v58, %v12344_v33  ;;  %v5378_v46 = vpop.eup %5377  ;;  %v2595_v15 = vmul.f32 %v5376_v38, %v2587_v22  ;;  %v12346_v62 = vrot.slane %v12345_v40, 7  ;;  %v12359_v22 = vld [vmem:[#allocation34_spill] sm:$0xff]  ;;  %v12369_v38 = vld [vmem:[#allocation44_spill] sm:$0xff]  ;;  %v12372_v33 = vld [vmem:[#allocation47_spill] sm:$0xff] }
 0x3eb   : > { %v9181_v28 = vadd.f32 %v2615_v49, %v2592_v59  ;;  %v2638_v16 = vrot.slane %v9177_v37, 3  ;;  %v5380_v26 = vpop.eup %5379  ;;  %v2596_v27 = vmul.f32 %v5378_v46, %v2588_v19  ;;  %v2619_v52 = vmul.f32 %v12348_v35, %v2511_v25  ;;  %v12360_v19 = vld [vmem:[#allocation35_spill] sm:$0xff]  ;;  %v12361_v59 = vld [vmem:[#allocation36_spill] sm:$0xff]  ;;  %v12363_v49 = vld [vmem:[#allocation38_spill] sm:$0xff] }
 0x3ec   : > { %v2618_v39 = vmul.f32 %v12346_v62, %v2496_v31  ;;  %v9185_v36 = vadd.f32 %v2616_v20, %v2593_v54  ;;  %v12350_v21 = vrot.slane %v12349_v17, 7  ;;  %v5382_v23 = vpop.eup %5381  ;;  %v2597_v51 = vmul.f32 %v5380_v26, %v2589_v7  ;;  %v12365_v7 = vld [vmem:[#allocation40_spill] sm:$0xff]  ;;  %v12366_v54 = vld [vmem:[#allocation41_spill] sm:$0xff]  ;;  %v12367_v29 = vld [vmem:[#allocation42_spill] sm:$0xff] }
 0x3ed   : > { %v2639_v0 = vrot.slane %v9181_v28, 2  ;;  %v12352_v55 = vrot.slane %v12351_v48, 7  ;;  %v2598_v58 = vmul.f32 %v5382_v23, %v2590_v30  ;;  %v9198_v31 = vadd.f32 %v2617_v2, %v2594_v1  ;;  %v12368_v20 = vld [vmem:[#allocation43_spill] sm:$0xff]  ;;  %v12370_v30 = vld [vmem:[#allocation45_spill] sm:$0xff]  ;;  %v12371_v1 = vld [vmem:[#allocation46_spill] sm:$0xff] }
 0x3ee   : > { %v2620_v56 = vmul.f32 %v12350_v21, %v2526_v13  ;;  %v9195_v43 = vadd.f32 %v2618_v39, %v2595_v15  ;;  %v2641_v63 = vrot.slane %v9185_v36, 1  ;;  %v9200_v45 = vadd.f32 %v2619_v52, %v2596_v27  ;;  %v12373_v2 = vld [vmem:[#allocation48_spill] sm:$0xff]  ;;  %v12374_v46 = vld [vmem:[#allocation49_spill] sm:$0xff]  ;;  %v12375_v15 = vld [vmem:[#allocation50_spill] sm:$0xff] }
 0x3ef   : > { %v2621_v60 = vmul.f32 %v12352_v55, %v2541_v53  ;;  %v2640_v25 = vsel %vm11858_vm2, %v2639_v0, %v2638_v16  ;;  %vm12353_vm15 = vcmask 1042434   ;;  %vm12354_vm10 = vcmask 1043459   ;;  %v12376_v40 = vld [vmem:[#allocation51_spill] sm:$0xff]  ;;  %v12377_v62 = vld [vmem:[#allocation52_spill] sm:$0xff]  ;;  %v12378_v39 = vld [vmem:[#allocation53_spill] sm:$0xff] }
 0x3f0   : > { %v9203_v57 = vadd.f32 %v2620_v56, %v2597_v51  ;;  %v2642_v13 = vsel %vm12353_vm15, %v2641_v63, %v2640_v25  ;;  %v11848_v32 = vrot.slane %v9195_v43, 7  ;;  %v2646_v18 = vrot.slane %v9200_v45, 6  ;;  %v12379_v16 = vld [vmem:[#allocation54_spill] sm:$0xff]  ;;  %v12380_v26 = vld [vmem:[#allocation55_spill] sm:$0xff]  ;;  %v12381_v27 = vld [vmem:[#allocation56_spill] sm:$0xff] }
 0x3f1   : > { %v9207_v41 = vadd.f32 %v2621_v60, %v2598_v58  ;;  %v2643_v53 = vsel %vm12354_vm10, %v9198_v31, %v2642_v13  ;;  %vm12355_vm12 = vcmask 1044484   ;;  %vm12356_vm11 = vcmask 1045509   ;;  %v12382_v42 = vld [vmem:[#allocation57_spill] sm:$0xff]  ;;  %v12383_v35 = vld [vmem:[#allocation58_spill] sm:$0xff]  ;;  %v12384_v52 = vld [vmem:[#allocation59_spill] sm:$0xff] }
 0x3f2   : > { %v2645_v6 = vsel %vm12355_vm12, %v11848_v32, %v2643_v53  ;;  %v2648_v61 = vrot.slane %v9203_v57, 5  ;;  %vm12357_vm1 = vcmask 1046534   ;;  %vm12358_vm9 = vcmask 1047559   ;;  %v12385_v17 = vld [vmem:[#allocation60_spill] sm:$0xff]  ;;  %v12386_v21 = vld [vmem:[#allocation61_spill] sm:$0xff]  ;;  %v12387_v56 = vld [vmem:[#allocation62_spill] sm:$0xff] }
 0x3f3   : > { %v2647_v3 = vsel %vm12356_vm11, %v2646_v18, %v2645_v6  ;;  %v2650_v9 = vrot.slane %v9207_v41, 4  ;;  %v12388_v0 = vld [vmem:[#allocation63_spill] sm:$0xff]  ;;  %v12389_v23 = vld [vmem:[#allocation64_spill] sm:$0xff]  ;;  %v12390_v51 = vld [vmem:[#allocation65_spill] sm:$0xff] }
 0x3f4   : > { %v2649_v50 = vsel %vm12357_vm1, %v2648_v61, %v2647_v3  ;;  %v12391_v48 = vld [vmem:[#allocation66_spill] sm:$0xff]  ;;  %v12392_v55 = vld [vmem:[#allocation67_spill] sm:$0xff]  ;;  %v12393_v60 = vld [vmem:[#allocation68_spill] sm:$0xff] }
 0x3f5   : > { %v2651_v10 = vsel %vm12358_vm9, %v2650_v9, %v2649_v50  ;;  %v12394_v63 = vld [vmem:[#allocation69_spill] sm:$0xff]  ;;  %v12395_v58 = vld [vmem:[#allocation70_spill] sm:$0xff]  ;;  %v12396_v25 = vld [vmem:[#allocation71_spill] sm:$0xff] }
 0x3f6   : > { %2669 = vmatmul.f32.vlgmr.msrb.gmra.mxu2 %v2651_v10  ;;  %2689 = vmatmul.f32.vlgmr.msra.gmra.mxu3 %v2651_v10  ;;  %v12397_v13 = vld [vmem:[#allocation72_spill] sm:$0xff]  ;;  %v12398_v53 = vld [vmem:[#allocation73_spill] sm:$0xff]  ;;  %v12399_v18 = vld [vmem:[#allocation74_spill] sm:$0xff] }
 0x3f7   : > { %2709 = vmatmul.f32.vlgmr.msra.gmra.mxu0 %v2651_v10  ;;  %3737 = vmatpush.msrb.mxu2 %v12359_v22  ;;  %v12400_v6 = vld [vmem:[#allocation75_spill] sm:$0xff]  ;;  %v12401_v61 = vld [vmem:[#allocation76_spill] sm:$0xff]  ;;  %v12402_v3 = vld [vmem:[#allocation77_spill] sm:$0xff] }
 0x3f8   : > { %4219 = vmatpush.msra.mxu3 %v12360_v19  ;;  %4239 = vmatpush.msra.mxu0 %v12361_v59  ;;  %v12403_v9 = vld [vmem:[#allocation78_spill] sm:$0xff]  ;;  %v12404_v50 = vld [vmem:[#allocation79_spill] sm:$0xff]  ;;  %v12405_v10 = vld [vmem:[#allocation80_spill] sm:$0xff] }
 0x3f9   : > { %3738 = vmatpush.msrb.mxu2 %v12362_v47  ;;  %v12406_v22 = vld [vmem:[#allocation81_spill] sm:$0xff]  ;;  %v12407_v59 = vld [vmem:[#allocation10_spill] sm:$0xff] }
 0x3fa   : > { %4220 = vmatpush.msra.mxu3 %v12363_v49  ;;  %4240 = vmatpush.msra.mxu0 %v12364_v4 }
 0x3fb   : > { %3739 = vmatpush.msrb.mxu2 %v12365_v7 }
 0x3fc   : > { %4221 = vmatpush.msra.mxu3 %v12366_v54  ;;  %4241 = vmatpush.msra.mxu0 %v12367_v29 }
 0x3fd   : > { %3740 = vmatpush.msrb.mxu2 %v12368_v20 }
 0x3fe   : > { %4222 = vmatpush.msra.mxu3 %v12369_v38  ;;  %4242 = vmatpush.msra.mxu0 %v12370_v30  ;;  %v12408_v30 = vld [vmem:[#allocation16_spill] sm:$0xff] }
 0x3ff   : > { %3741 = vmatpush.msrb.mxu2 %v12371_v1 }
 0x400   : > { %4223 = vmatpush.msra.mxu3 %v12372_v33  ;;  %4243 = vmatpush.msra.mxu0 %v12373_v2  ;;  %v12409_v33 = vld [vmem:[#allocation12_spill] sm:$0xff] }
 0x401   : > { %3742 = vmatpush.msrb.mxu2 %v12374_v46  ;;  %v12410_v46 = vld [vmem:[#allocation13_spill] sm:$0xff] }
 0x402   : > { %4224 = vmatpush.msra.mxu3 %v12375_v15  ;;  %4244 = vmatpush.msra.mxu0 %v12376_v40  ;;  %v12411_v40 = vld [vmem:[#allocation14_spill] sm:$0xff] }
 0x403   : > { %3743 = vmatpush.msrb.mxu2 %v12377_v62 }
 0x404   : > { %4225 = vmatpush.msra.mxu3 %v12378_v39  ;;  %4245 = vmatpush.msra.mxu0 %v12379_v16  ;;  %v12412_v39 = vld [vmem:[#allocation11_spill] sm:$0xff] }
 0x405   : > { %3744 = vmatpush.msrb.mxu2 %v12380_v26 }
 0x406   : > { %4226 = vmatpush.msra.mxu3 %v12381_v27  ;;  %4246 = vmatpush.msra.mxu0 %v12382_v42  ;;  %v12413_v27 = vld [vmem:[#allocation17_spill] sm:$0xff] }
 0x407   : > { %3745 = vmatpush.msrb.mxu2 %v12383_v35 }
 0x408   : > { %4227 = vmatpush.msra.mxu3 %v12384_v52  ;;  %4247 = vmatpush.msra.mxu0 %v12385_v17  ;;  %v12414_v52 = vld [vmem:[#allocation18_spill] sm:$0xff] }
 0x409   : > { %3746 = vmatpush.msrb.mxu2 %v12386_v21 }
 0x40a   : > { %4228 = vmatpush.msra.mxu3 %v12387_v56  ;;  %4248 = vmatpush.msra.mxu0 %v12388_v0 }
 0x40b   : > { %3747 = vmatpush.msrb.mxu2 %v12389_v23  ;;  %v12415_v23 = vld [vmem:[#allocation15_spill] sm:$0xff] }
 0x40c   : > { %4229 = vmatpush.msra.mxu3 %v12390_v51  ;;  %4249 = vmatpush.msra.mxu0 %v12391_v48 }
 0x40d   : > { %3748 = vmatpush.msrb.mxu2 %v12392_v55  ;;  %v12416_v55 = vld [vmem:[#allocation25_spill] sm:$0xff] }
 0x40e   : > { %4230 = vmatpush.msra.mxu3 %v12393_v60  ;;  %4250 = vmatpush.msra.mxu0 %v12394_v63 }
 0x40f   : > { %3749 = vmatpush.msrb.mxu2 %v12395_v58 }
 0x410   : > { %4231 = vmatpush.msra.mxu3 %v12396_v25  ;;  %4251 = vmatpush.msra.mxu0 %v12397_v13 }
 0x411   : > { %3750 = vmatpush.msrb.mxu2 %v12398_v53 }
 0x412   : > { %4232 = vmatpush.msra.mxu3 %v12399_v18  ;;  %4252 = vmatpush.msra.mxu0 %v12400_v6  ;;  %v12424_v18 = vld [vmem:[#allocation28_spill] sm:$0xff] }
 0x413   : > { %3751 = vmatpush.msrb.mxu2 %v12401_v61 }
 0x414   : > { %4233 = vmatpush.msra.mxu3 %v12402_v3  ;;  %4253 = vmatpush.msra.mxu0 %v12403_v9 }
 0x415   : > { %3752 = vmatpush.msrb.mxu2 %v12404_v50 }
 0x416   : > { %4234 = vmatpush.msra.mxu3 %v12405_v10  ;;  %4254 = vmatpush.msra.mxu0 %v12406_v22 }
 0x474   : > { %v2710_v10 = vpop.f32.mrf.mxu0 }
 0x479   : > { %v2670_v19 = vpop.f32.mrf.mxu2  ;;  %v2690_v26 = vpop.f32.mrf.mxu3 }
 0x47a   : > { %v2671_v47 = vadd.f32 %v2670_v19, %v12407_v59  ;;  %v9278_v60 = vadd.f32 %v2690_v26, %v12416_v55  ;;  %v12419_v26 = vld [vmem:[#allocation26_spill] sm:$0xff] }
 0x47c   : > { %v2714_v49 = vrot.slane %v2671_v47, 4  ;;  %v2715_v4 = vrot.slane %v2671_v47, 5  ;;  %v2716_v7 = vrot.slane %v2671_v47, 6  ;;  %v2717_v54 = vrot.slane %v2671_v47, 7 }
 0x47d   : > { %v2718_v29 = vrot.slane %v2671_v47, 1  ;;  %v2719_v20 = vrot.slane %v2671_v47, 2  ;;  %v2720_v38 = vrot.slane %v2671_v47, 3  ;;  %v2733_v1 = vadd.f32 %v2671_v47, %v12408_v30  ;;  %v12417_v47 = vld [vmem:[#allocation19_spill] sm:$0xff] }
 0x47e   : > { %v2729_v2 = vadd.f32 %v2714_v49, %v12409_v33  ;;  %v2730_v15 = vadd.f32 %v2715_v4, %v12410_v46  ;;  %v2731_v62 = vadd.f32 %v2716_v7, %v12411_v40  ;;  %v2732_v16 = vadd.f32 %v2717_v54, %v12412_v39 }
 0x47f   : > { %v2734_v42 = vadd.f32 %v2718_v29, %v12413_v27  ;;  %v4935_v35 = vmul.f32 -1.442695, %v2733_v1  ;;  %v2735_v17 = vadd.f32 %v2719_v20, %v12414_v52  ;;  %v2736_v51 = vadd.f32 %v2720_v38, %v12415_v23 }
 0x480   : > { %v4931_v21 = vmul.f32 -1.442695, %v2729_v2  ;;  %v4932_v56 = vmul.f32 -1.442695, %v2730_v15  ;;  %v4933_v0 = vmul.f32 -1.442695, %v2731_v62 }
 0x481   : > { %v4934_v48 = vmul.f32 -1.442695, %v2732_v16  ;;  %5383 = vpow2.f32 %v4935_v35  ;;  %v4936_v63 = vmul.f32 -1.442695, %v2734_v42  ;;  %v4937_v58 = vmul.f32 -1.442695, %v2735_v17 }
 0x482   : > { %5385 = vpow2.f32 %v4931_v21  ;;  %v4938_v25 = vmul.f32 -1.442695, %v2736_v51  ;;  %v2890_v13 = vrot.slane %v9278_v60, 4  ;;  %v2891_v9 = vrot.slane %v9278_v60, 5  ;;  %v12418_v15 = vld [vmem:[#allocation24_spill] sm:$0xff]  ;;  %v12420_v17 = vld [vmem:[#allocation21_spill] sm:$0xff] }
 0x483   : > { %5387 = vpow2.f32 %v4932_v56  ;;  %v2892_v19 = vrot.slane %v9278_v60, 6  ;;  %v2893_v29 = vrot.slane %v9278_v60, 7  ;;  %v2894_v2 = vrot.slane %v9278_v60, 1  ;;  %v12421_v56 = vld [vmem:[#allocation22_spill] sm:$0xff] }
 0x484   : > { %5389 = vpow2.f32 %v4933_v0  ;;  %v2905_v49 = vadd.f32 %v2890_v13, %v12417_v47  ;;  %v9301_v62 = vadd.f32 %v2710_v10, %v12418_v15  ;;  %v2909_v42 = vadd.f32 %v9278_v60, %v12419_v26 }
 0x485   : > { %5391 = vpow2.f32 %v4934_v48  ;;  %v2906_v21 = vadd.f32 %v2891_v9, %v12420_v17  ;;  %v2907_v0 = vadd.f32 %v2892_v19, %v12421_v56  ;;  %v2896_v10 = vrot.slane %v9278_v60, 3  ;;  %v12423_v9 = vld [vmem:[#allocation27_spill] sm:$0xff] }
 0x486   : > { %5393 = vpow2.f32 %v4936_v63  ;;  %v4939_v51 = vmul.f32 -1.442695, %v2905_v49 }
 0x487   : > { %v5384_v53 = vpop.eup %5383  ;;  %5395 = vpow2.f32 %v4937_v58  ;;  %v2895_v58 = vrot.slane %v9278_v60, 2  ;;  %v4941_v38 = vmul.f32 -1.442695, %v2907_v0 }
 0x488   : > { %v5386_v6 = vpop.eup %5385  ;;  %v9283_v3 = vadd.f32 1.0, %v5384_v53  ;;  %5397 = vpow2.f32 %v4938_v25  ;;  %v12422_v25 = vld [vmem:[#allocation23_spill] sm:$0xff] }
 0x489   : > { %v5388_v50 = vpop.eup %5387  ;;  %v9286_v22 = vadd.f32 1.0, %v5386_v6  ;;  %v2908_v13 = vadd.f32 %v2893_v29, %v12422_v25  ;;  %v4940_v6 = vmul.f32 -1.442695, %v2906_v21  ;;  %v12425_v21 = vld [vmem:[#allocation20_spill] sm:$0xff] }
 0x48a   : > { %v5390_v4 = vpop.eup %5389  ;;  %v9291_v54 = vadd.f32 1.0, %v5388_v50  ;;  %5399 = vrcp.f32 %v9283_v3  ;;  %v9328_v50 = vmul.f32 -1.442695, %v2909_v42  ;;  %v9344_v0 = vadd.f32 %v2896_v10, %v12425_v21 }
 0x48b   : > { %v5392_v20 = vpop.eup %5391  ;;  %v9296_v1 = vadd.f32 1.0, %v5390_v4  ;;  %5401 = vrcp.f32 %v9286_v22  ;;  %v2910_v4 = vadd.f32 %v2894_v2, %v12423_v9  ;;  %v4942_v7 = vmul.f32 -1.442695, %v2908_v13 }
 0x48c   : > { %v9303_v16 = vadd.f32 1.0, %v5392_v20  ;;  %5403 = vrcp.f32 %v9291_v54  ;;  %v5394_v35 = vpop.eup %5393  ;;  %v9337_v20 = vadd.f32 %v2895_v58, %v12424_v18  ;;  %v2780_v13 = vand.u32 2147483648, %v9286_v22 }
 0x48d   : > { %5405 = vrcp.f32 %v9296_v1  ;;  %v5396_v48 = vpop.eup %5395  ;;  %v9324_v32 = vadd.f32 1.0, %v5394_v35  ;;  %v9346_v42 = vmul.f32 -1.442695, %v2910_v4  ;;  %vm2774_vm3 = vweird.f32 %v9286_v22 }
 0x48e   : > { %5407 = vrcp.f32 %v9303_v16  ;;  %v5398_v53 = vpop.eup %5397  ;;  %v9332_v2 = vadd.f32 1.0, %v5396_v48  ;;  %v2795_v15 = vand.u32 2147483648, %v9291_v54  ;;  %vm2789_vm7 = vweird.f32 %v9291_v54 }
 0x48f   : > { %5409 = vpow2.f32 %v4939_v51  ;;  %v9356_v18 = vadd.f32 1.0, %v5398_v53  ;;  %v2808_v49 = vand.u32 2147483647, %v9296_v1  ;;  %vm2804_vm5 = vweird.f32 %v9296_v1 }
 0x490   : > { %v9319_v19 = vpop.eup %5399  ;;  %5411 = vrcp.f32 %v9324_v32  ;;  %v2796_v23 = vor.u32 1.1754944e-38, %v2795_v15  ;;  %vm2819_vm6 = vweird.f32 %v9303_v16  ;;  %vm2834_vm15 = vweird.f32 %v9283_v3 }
 0x491   : > { %v9326_v29 = vpop.eup %5401  ;;  %5413 = vpow2.f32 %v4940_v6  ;;  %v2830_v53 = vmul.f32 %v9319_v19, %v9283_v3  ;;  %v2778_v6 = vand.u32 2147483647, %v9286_v22  ;;  %vm9393_vm4 = vcmp.eq.f32.partialorder %v2808_v49, 8.507059e+37 }
 0x492   : > { %v9330_v60 = vpop.eup %5403  ;;  %v2770_v61 = vmul.f32 %v9326_v29, %v9286_v22  ;;  %5415 = vrcp.f32 %v9332_v2  ;;  %vm2775_vm8 = vweird.f32 %v9326_v29  ;;  %v2825_v22 = vand.u32 2147483648, %v9303_v16 }
 0x493   : > { %v9339_v35 = vpop.eup %5405  ;;  %v2785_v51 = vmul.f32 %v9330_v60, %v9291_v54  ;;  %5417 = vpow2.f32 %v4941_v38  ;;  %v2810_v38 = vand.u32 2147483648, %v9296_v1  ;;  %vm9384_vm13 = vcmp.eq.f32.partialorder %v2778_v6, 8.507059e+37  ;;  %vm9414_vm12 = vmor %vm2774_vm3, %vm2775_vm8 }
 0x494   : > { %v9349_v63 = vpop.eup %5407  ;;  %v2800_v58 = vmul.f32 %v9339_v35, %v9296_v1  ;;  %v2771_v10 = vsub.f32 1.0, %v2770_v61  ;;  %v2793_v61 = vand.u32 2147483647, %v9291_v54  ;;  %5419 = vrcp.f32 %v9356_v18 }
 0x495   : > { %v2815_v4 = vmul.f32 %v9349_v63, %v9303_v16  ;;  %v2786_v48 = vsub.f32 1.0, %v2785_v51  ;;  %v5410_v9 = vpop.eup %5409  ;;  %vm2790_vm14 = vweird.f32 %v9330_v60  ;;  %5421 = vpow2.f32 %v4942_v7 }
 0x496   : > { %v2801_v21 = vsub.f32 1.0, %v2800_v58  ;;  %v2772_v51 = vmul.f32 %v9326_v29, %v2771_v10  ;;  %v2781_v58 = vor.u32 1.1754944e-38, %v2780_v13  ;;  %v9372_v25 = vpop.eup %5411  ;;  %v2831_v10 = vsub.f32 1.0, %v2830_v53  ;;  %vm9427_vm1 = vmor %vm2789_vm7, %vm2790_vm14 }
 0x497   : > { %v2816_v26 = vsub.f32 1.0, %v2815_v4  ;;  %v9374_v4 = vadd.f32 1.0, %v5410_v9  ;;  %v2787_v56 = vmul.f32 %v9330_v60, %v2786_v48  ;;  %v5414_v47 = vpop.eup %5413  ;;  %vm9389_vm0 = vcmp.eq.f32.partialorder %v2793_v61, 8.507059e+37 }
 0x498   : > { %v2802_v17 = vmul.f32 %v9339_v35, %v2801_v21  ;;  %v9381_v13 = vpop.eup %5415  ;;  %v2773_v53 = vadd.f32 %v9326_v29, %v2772_v51  ;;  %v2811_v6 = vor.u32 1.1754944e-38, %v2810_v38  ;;  %v2845_v55 = vmul.f32 %v9372_v25, %v9324_v32 }
 0x499   : > { %v2817_v52 = vmul.f32 %v9349_v63, %v2816_v26  ;;  %v2823_v26 = vand.u32 2147483647, %v9303_v16  ;;  %v5418_v48 = vpop.eup %5417  ;;  %v9402_v61 = vadd.f32 1.0, %v5414_v47  ;;  %v2788_v30 = vadd.f32 %v9330_v60, %v2787_v56 }
 0x49a   : > { %v2803_v49 = vadd.f32 %v9339_v35, %v2802_v17  ;;  %vm2805_vm10 = vweird.f32 %v9339_v35  ;;  %v9407_v39 = vpop.eup %5419  ;;  %5423 = vrcp.f32 %v9374_v4  ;;  %vm2820_vm11 = vweird.f32 %v9349_v63 }
 0x49b   : > { %v2818_v47 = vadd.f32 %v9349_v63, %v2817_v52  ;;  %v2832_v17 = vmul.f32 %v9319_v19, %v2831_v10  ;;  %v9421_v56 = vadd.f32 1.0, %v5418_v48  ;;  %v2846_v38 = vsub.f32 1.0, %v2845_v55  ;;  %vm9440_vm9 = vmor %vm2804_vm5, %vm2805_vm10 }
 0x49c   : > { %v2860_v52 = vmul.f32 %v9381_v13, %v9332_v2  ;;  %5425 = vpow2.f32 %v9328_v50  ;;  %v2777_v10 = vsel %vm9414_vm12, %v9326_v29, %v2773_v53  ;;  %vm9444_vm3 = vcmp.eq.f32.partialorder %v2823_v26, 8.507059e+37  ;;  %vm9460_vm5 = vmor %vm2819_vm6, %vm2820_vm11  ;;  %v5422_v26 = vpop.eup %5421 }
 0x49d   : > { %vm2835_vm7 = vweird.f32 %v9319_v19  ;;  %5427 = vrcp.f32 %v9402_v61  ;;  %v2792_v55 = vsel %vm9427_vm1, %v9330_v60, %v2788_v30  ;;  %v2807_v1 = vsel %vm9440_vm9, %v9339_v35, %v2803_v49 }
 0x49e   : > { %v2875_v29 = vmul.f32 %v9407_v39, %v9356_v18  ;;  %v2822_v30 = vsel %vm9460_vm5, %v9349_v63, %v2818_v47  ;;  %v2833_v60 = vadd.f32 %v9319_v19, %v2832_v17  ;;  %v2840_v35 = vand.u32 2147483648, %v9283_v3  ;;  %vm9501_vm8 = vmor %vm2834_vm15, %vm2835_vm7 }
 0x49f   : > { %v2861_v53 = vsub.f32 1.0, %v2860_v52  ;;  %5429 = vrcp.f32 %v9421_v56  ;;  %v2826_v16 = vor.u32 1.1754944e-38, %v2825_v22  ;;  %v12442_v49 = vand.u32 2147483647, %v9283_v3 }
 0x4a0   : > { %v2847_v51 = vmul.f32 %v9372_v25, %v2846_v38  ;;  %v9479_v54 = vpop.eup %5423  ;;  %v9483_v63 = vsel %vm9384_vm13, %v2781_v58, %v2777_v10  ;;  %v9487_v47 = vsel %vm9389_vm0, %v2796_v23, %v2792_v55  ;;  %v9491_v17 = vsel %vm9393_vm4, %v2811_v6, %v2807_v1 }
 0x4a1   : > { %vm9474_vm6 = vcmp.eq.f32.partialorder %v12442_v49, 8.507059e+37  ;;  %v2876_v22 = vsub.f32 1.0, %v2875_v29  ;;  %v9495_v52 = vsel %vm9444_vm3, %v2826_v16, %v2822_v30  ;;  %vm2849_vm13 = vweird.f32 %v9324_v32 }
 0x4a2   : > { %vm2850_vm14 = vweird.f32 %v9372_v25  ;;  %v4945_v23 = vmul.f32 -1.442695, %v9337_v20  ;;  %v5426_v9 = vpop.eup %5425  ;;  %v2837_v21 = vsel %vm9501_vm8, %v9319_v19, %v2833_v60  ;;  %v2841_v15 = vor.u32 1.1754944e-38, %v2840_v35 }
 0x4a3   : > { %v2853_v6 = vand.u32 2147483647, %v9324_v32  ;;  %v2862_v3 = vmul.f32 %v9381_v13, %v2861_v53  ;;  %v9513_v38 = vpop.eup %5427  ;;  %v2848_v10 = vadd.f32 %v9372_v25, %v2847_v51  ;;  %5431 = vpow2.f32 %v9346_v42  ;;  %vm9536_vm15 = vmor %vm2849_vm13, %vm2850_vm14 }
 0x4a4   : > { %v4946_v48 = vmul.f32 -1.442695, %v9344_v0  ;;  %v2946_v20 = vmul.f32 %v9479_v54, %v9374_v4  ;;  %v2855_v55 = vand.u32 2147483648, %v9324_v32  ;;  %vm2864_vm0 = vweird.f32 %v9332_v2 }
 0x4a5   : > { %v2877_v19 = vmul.f32 %v9407_v39, %v2876_v22  ;;  %5433 = vpow2.f32 %v4945_v23  ;;  %v9523_v1 = vpop.eup %5429  ;;  %v9527_v50 = vsel %vm9474_vm6, %v2841_v15, %v2837_v21  ;;  %vm2865_vm4 = vweird.f32 %v9381_v13 }
 0x4a6   : > { %v2868_v0 = vand.u32 2147483647, %v9332_v2  ;;  %v2870_v42 = vand.u32 2147483648, %v9332_v2  ;;  %v2863_v30 = vadd.f32 %v9381_v13, %v2862_v3  ;;  %vm2880_vm10 = vweird.f32 %v9407_v39  ;;  %vm9558_vm11 = vmor %vm2864_vm0, %vm2865_vm4 }
 0x4a7   : > { %v2947_v60 = vsub.f32 1.0, %v2946_v20  ;;  %v2961_v35 = vmul.f32 %v9513_v38, %v9402_v61  ;;  %v2852_v53 = vsel %vm9536_vm15, %v9372_v25, %v2848_v10  ;;  %v2883_v16 = vand.u32 2147483647, %v9356_v18 }
 0x4a8   : > { %v2885_v32 = vand.u32 2147483648, %v9356_v18  ;;  %5435 = vpow2.f32 %v4946_v48  ;;  %v2878_v49 = vadd.f32 %v9407_v39, %v2877_v19  ;;  %v9550_v7 = vadd.f32 1.0, %v5422_v26 }
 0x4a9   : > { %v2962_v51 = vsub.f32 1.0, %v2961_v35  ;;  %v2976_v22 = vmul.f32 %v9523_v1, %v9421_v56  ;;  %v5432_v58 = vpop.eup %5431  ;;  %vm2854_vm12 = vcmp.eq.f32.partialorder %v2853_v6, 8.507059e+37  ;;  %v2856_v23 = vor.u32 1.1754944e-38, %v2855_v55 }
 0x4aa   : > { %vm9562_vm1 = vcmp.eq.f32.partialorder %v2868_v0, 8.507059e+37  ;;  %vm2879_vm9 = vweird.f32 %v9356_v18  ;;  %v2867_v15 = vsel %vm9558_vm11, %v9381_v13, %v2863_v30  ;;  %v2871_v6 = vor.u32 1.1754944e-38, %v2870_v42 }
 0x4ab   : > { %v5434_v26 = vpop.eup %5433  ;;  %v9570_v3 = vadd.f32 1.0, %v5426_v9  ;;  %v2948_v2 = vmul.f32 %v9479_v54, %v2947_v60  ;;  %v9573_v10 = vsel %vm2854_vm12, %v2856_v23, %v2852_v53  ;;  %vm9577_vm3 = vmor %vm2879_vm9, %vm2880_vm10  ;;  %vm9581_vm7 = vcmp.eq.f32.partialorder %v2883_v16, 8.507059e+37 }
 0x4ac   : > { %v2886_v20 = vor.u32 1.1754944e-38, %v2885_v32  ;;  %v2977_v55 = vsub.f32 1.0, %v2976_v22  ;;  %v2882_v13 = vsel %vm9577_vm3, %v9407_v39, %v2878_v49  ;;  %v9588_v9 = vadd.f32 1.0, %v5432_v58 }
 0x4ad   : > { %v2963_v19 = vmul.f32 %v9513_v38, %v2962_v51  ;;  %5437 = vrcp.f32 %v9550_v7  ;;  %v9594_v42 = vsel %vm9562_vm1, %v2871_v6, %v2867_v15  ;;  %v9596_v29 = vadd.f32 1.0, %v5434_v26 }
 0x4ae   : > { %v5436_v0 = vpop.eup %5435  ;;  %vm2951_vm5 = vweird.f32 %v9479_v54  ;;  %v2954_v30 = vand.u32 2147483647, %v9374_v4  ;;  %v2949_v60 = vadd.f32 %v9479_v54, %v2948_v2  ;;  %v2956_v39 = vand.u32 2147483648, %v9374_v4 }
 0x4af   : > { %v2978_v35 = vmul.f32 %v9523_v1, %v2977_v55  ;;  %5439 = vrcp.f32 %v9570_v3  ;;  %v9606_v53 = vsel %vm9581_vm7, %v2886_v20, %v2882_v13  ;;  %vm2950_vm6 = vweird.f32 %v9374_v4 }
 0x4b0   : > { %vm2966_vm8 = vweird.f32 %v9513_v38  ;;  %v2969_v16 = vand.u32 2147483647, %v9402_v61  ;;  %v9611_v32 = vadd.f32 1.0, %v5436_v0  ;;  %v2964_v49 = vadd.f32 %v9513_v38, %v2963_v19  ;;  %vm9616_vm13 = vmor %vm2950_vm6, %vm2951_vm5 }
 0x4b1   : > { %v2971_v51 = vand.u32 2147483648, %v9402_v61  ;;  %5441 = vrcp.f32 %v9588_v9  ;;  %vm9620_vm14 = vcmp.eq.f32.partialorder %v2954_v30, 8.507059e+37  ;;  %vm2965_vm0 = vweird.f32 %v9402_v61 }
 0x4b2   : > { %v2984_v4 = vand.u32 2147483647, %v9421_v56  ;;  %5443 = vrcp.f32 %v9596_v29  ;;  %v2953_v25 = vsel %vm9616_vm13, %v9479_v54, %v2949_v60  ;;  %v2957_v21 = vor.u32 1.1754944e-38, %v2956_v39  ;;  %vm9636_vm15 = vmor %vm2965_vm0, %vm2966_vm8 }
 0x4b3   : > { %v9627_v23 = vpop.eup %5437  ;;  %v2979_v26 = vadd.f32 %v9523_v1, %v2978_v35  ;;  %vm2981_vm4 = vweird.f32 %v9523_v1  ;;  %vm2980_vm10 = vweird.f32 %v9421_v56  ;;  %v2986_v61 = vand.u32 2147483648, %v9421_v56 }
 0x4b4   : > { %v2991_v6 = vmul.f32 %v9627_v23, %v9550_v7  ;;  %v3001_v54 = vand.u32 2147483648, %v9550_v7  ;;  %v2968_v48 = vsel %vm9636_vm15, %v9513_v38, %v2964_v49  ;;  %vm2970_vm12 = vcmp.eq.f32.partialorder %v2969_v16, 8.507059e+37  ;;  %vm9655_vm11 = vmor %vm2980_vm10, %vm2981_vm4 }
 0x4b5   : > { %v9645_v2 = vpop.eup %5439  ;;  %v2972_v18 = vor.u32 1.1754944e-38, %v2971_v51  ;;  %5445 = vrcp.f32 %v9611_v32  ;;  %v9653_v20 = vsel %vm9620_vm14, %v2957_v21, %v2953_v25  ;;  %vm9659_vm1 = vcmp.eq.f32.partialorder %v2984_v4, 8.507059e+37 }
 0x4b6   : > { %v3006_v13 = vmul.f32 %v9645_v2, %v9570_v3  ;;  %v3016_v38 = vand.u32 2147483648, %v9570_v3  ;;  %v2983_v0 = vsel %vm9655_vm11, %v9523_v1, %v2979_v26  ;;  %v2992_v30 = vsub.f32 1.0, %v2991_v6 }
 0x4b7   : > { %v9666_v19 = vpop.eup %5441  ;;  %v2999_v60 = vand.u32 2147483647, %v9550_v7  ;;  %v3031_v39 = vand.u32 2147483648, %v9588_v9  ;;  %v9675_v16 = vsel %vm2970_vm12, %v2972_v18, %v2968_v48  ;;  %v2987_v49 = vor.u32 1.1754944e-38, %v2986_v61 }
 0x4b8   : > { %v9673_v35 = vpop.eup %5443  ;;  %v9677_v51 = vor.u32 1.1754944e-38, %v3001_v54  ;;  %v3021_v22 = vmul.f32 %v9666_v19, %v9588_v9  ;;  %vm2995_vm9 = vweird.f32 %v9550_v7  ;;  %v3007_v58 = vsub.f32 1.0, %v3006_v13 }
 0x4b9   : > { %v3014_v1 = vand.u32 2147483647, %v9570_v3  ;;  %v3029_v4 = vand.u32 2147483647, %v9588_v9  ;;  %v3036_v25 = vmul.f32 %v9673_v35, %v9596_v29  ;;  %v9688_v21 = vsel %vm9659_vm1, %v2987_v49, %v2983_v0 }
 0x4ba   : > { %vm2996_vm3 = vweird.f32 %v9627_v23  ;;  %vm3010_vm7 = vweird.f32 %v9570_v3  ;;  %v9692_v26 = vor.u32 1.1754944e-38, %v3016_v38  ;;  %v3022_v15 = vsub.f32 1.0, %v3021_v22 }
 0x4bb   : > { %v9694_v61 = vpop.eup %5445  ;;  %v2993_v6 = vmul.f32 %v9627_v23, %v2992_v30  ;;  %vm3025_vm5 = vweird.f32 %v9588_v9  ;;  %v9698_v54 = vor.u32 1.1754944e-38, %v3031_v39  ;;  %v3037_v48 = vsub.f32 1.0, %v3036_v25  ;;  %vm9756_vm11 = vmor %vm2995_vm9, %vm2996_vm3 }
 0x4bc   : > { %v3044_v18 = vand.u32 2147483647, %v9596_v29  ;;  %vm3011_vm6 = vweird.f32 %v9645_v2  ;;  %vm3040_vm8 = vweird.f32 %v9596_v29  ;;  %v3046_v56 = vand.u32 2147483648, %v9596_v29 }
 0x4bd   : > { %v3051_v55 = vmul.f32 %v9694_v61, %v9611_v32  ;;  %v3059_v13 = vand.u32 2147483647, %v9611_v32  ;;  %v3008_v38 = vmul.f32 %v9645_v2, %v3007_v58  ;;  %vm3055_vm13 = vweird.f32 %v9611_v32  ;;  %vm9768_vm1 = vmor %vm3010_vm7, %vm3011_vm6 }
 0x4be   : > { %v3070_v0 = vrot.slane %v9301_v62, 1  ;;  %v12467_v30 = vrot.slane %v9301_v62, 4  ;;  %v12468_v49 = vrot.slane %v9301_v62, 5  ;;  %v3023_v25 = vmul.f32 %v9666_v19, %v3022_v15 }
 0x4bf   : > { %v3038_v40 = vmul.f32 %v9673_v35, %v3037_v48  ;;  %v3052_v46 = vsub.f32 1.0, %v3051_v55  ;;  %v12469_v58 = vrot.slane %v9301_v62, 6  ;;  %v2994_v27 = vadd.f32 %v9627_v23, %v2993_v6 }
 0x4c0   : > { %v3081_v39 = vmul.f32 %v12467_v30, %v9483_v63  ;;  %v3082_v22 = vmul.f32 %v12468_v49, %v9487_v47  ;;  %vm9722_vm14 = vcmp.eq.f32.partialorder %v2999_v60, 8.507059e+37  ;;  %vm9726_vm0 = vcmp.eq.f32.partialorder %v3014_v1, 8.507059e+37 }
 0x4c1   : > { %v3083_v33 = vmul.f32 %v12469_v58, %v9491_v17  ;;  %vm3026_vm4 = vweird.f32 %v9666_v19  ;;  %vm3041_vm15 = vweird.f32 %v9673_v35  ;;  %v12474_v47 = vrot.slane %v9301_v62, 7 }
 0x4c2   : > { %vm9735_vm10 = vcmp.eq.f32.partialorder %v3029_v4, 8.507059e+37  ;;  %vm9739_vm12 = vcmp.eq.f32.partialorder %v3044_v18, 8.507059e+37  ;;  %v3053_v1 = vmul.f32 %v9694_v61, %v3052_v46  ;;  %v3071_v6 = vrot.slane %v9301_v62, 2  ;;  %vm9780_vm3 = vmor %vm3025_vm5, %vm3026_vm4 }
 0x4c3   : > { %v3084_v15 = vmul.f32 %v12474_v47, %v9495_v52  ;;  %v3072_v48 = vrot.slane %v9301_v62, 3  ;;  %v3085_v55 = vmul.f32 %v9527_v50, %v9301_v62  ;;  %v3009_v30 = vadd.f32 %v9645_v2, %v3008_v38  ;;  %vm9796_vm7 = vmor %vm3040_vm8, %vm3041_vm15 }
 0x4c4   : > { %v3086_v52 = vmul.f32 %v3070_v0, %v9573_v10  ;;  %v3089_v4 = vadd.f32 %v3081_v39, %v6459_v24  ;;  %v3090_v18 = vadd.f32 %v3082_v22, %v6472_v11  ;;  %v3024_v49 = vadd.f32 %v9666_v19, %v3023_v25 }
 0x4c5   : > { %v3039_v62 = vadd.f32 %v9673_v35, %v3038_v40  ;;  %v3087_v50 = vmul.f32 %v3071_v6, %v9594_v42  ;;  %v3091_v10 = vadd.f32 %v3083_v33, %v6491_v34  ;;  %v3054_v7 = vadd.f32 %v9694_v61, %v3053_v1 }
 0x4c6   : > { %vm3056_vm9 = vweird.f32 %v9694_v61  ;;  %v3088_v0 = vmul.f32 %v3072_v48, %v9606_v53  ;;  %v3092_v40 = vadd.f32 %v3084_v15, %v6504_v44  ;;  %v3047_v3 = vor.u32 1.1754944e-38, %v3046_v56 }
 0x4c7   : > { %v3061_v42 = vand.u32 2147483648, %v9611_v32  ;;  %v3093_v39 = vadd.f32 %v3085_v55, %v6535_v8  ;;  %5447 = vtanh.f32 %v3089_v4  ;;  %v2998_v53 = vsel %vm9756_vm11, %v9627_v23, %v2994_v27  ;;  %vm9811_vm5 = vmor %vm3055_vm13, %vm3056_vm9 }
 0x4c8   : > { %v3013_v22 = vsel %vm9768_vm1, %v9645_v2, %v3009_v30  ;;  %v3094_v56 = vadd.f32 %v3086_v52, %v6648_v5  ;;  %5449 = vtanh.f32 %v3090_v18  ;;  %v3028_v25 = vsel %vm9780_vm3, %v9666_v19, %v3024_v49 }
 0x4c9   : > { %v3043_v27 = vsel %vm9796_vm7, %v9673_v35, %v3039_v62  ;;  %v3095_v23 = vadd.f32 %v3087_v50, %v6677_v12  ;;  %5451 = vtanh.f32 %v3091_v10  ;;  %v3058_v2 = vsel %vm9811_vm5, %v9694_v61, %v3054_v7 }
 0x4ca   : > { %vm3060_vm6 = vcmp.eq.f32.partialorder %v3059_v13, 8.507059e+37  ;;  %v3096_v19 = vadd.f32 %v3088_v0, %v6757_v14  ;;  %5453 = vtanh.f32 %v3092_v40  ;;  %v3003_v35 = vsel %vm9722_vm14, %v9677_v51, %v2998_v53 }
 0x4cb   : > { %v3018_v32 = vsel %vm9726_vm0, %v9692_v26, %v3013_v22  ;;  %v3062_v58 = vor.u32 1.1754944e-38, %v3061_v42  ;;  %5455 = vtanh.f32 %v3093_v39  ;;  %v3033_v47 = vsel %vm9735_vm10, %v9698_v54, %v3028_v25 }
 0x4cc   : > { %v3048_v61 = vsel %vm9739_vm12, %v3047_v3, %v3043_v27  ;;  %5457 = vtanh.f32 %v3094_v56  ;;  %v3105_v13 = vsub.f32 1.0, %v9653_v20  ;;  %v3106_v59 = vsub.f32 1.0, %v9675_v16 }
 0x4cd   : > { %v5448_v15 = vpop.eup %5447  ;;  %v3063_v1 = vsel %vm3060_vm6, %v3062_v58, %v3058_v2  ;;  %5459 = vtanh.f32 %v3095_v23  ;;  %v3107_v51 = vsub.f32 1.0, %v9688_v21  ;;  %v3108_v63 = vsub.f32 1.0, %v3003_v35 }
 0x4ce   : > { %v5450_v26 = vpop.eup %5449  ;;  %5461 = vtanh.f32 %v3096_v19  ;;  %v3113_v6 = vmul.f32 %v5448_v15, %v3105_v13  ;;  %v12489_v54 = vrot.slane %v9177_v37, 7  ;;  %v3109_v48 = vsub.f32 1.0, %v3018_v32 }
 0x4cf   : > { %v5452_v60 = vpop.eup %5451  ;;  %v3110_v55 = vsub.f32 1.0, %v3033_v47  ;;  %v3114_v30 = vmul.f32 %v5450_v26, %v3106_v59  ;;  %v12490_v52 = vrot.slane %v9181_v28, 7  ;;  %v3111_v46 = vsub.f32 1.0, %v3048_v61 }
 0x4d0   : > { %v3136_v17 = vmul.f32 %v12489_v54, %v9653_v20  ;;  %v5454_v18 = vpop.eup %5453  ;;  %v3115_v49 = vmul.f32 %v5452_v60, %v3107_v51  ;;  %v12491_v62 = vrot.slane %v9185_v36, 7  ;;  %v3112_v37 = vsub.f32 1.0, %v3063_v1  ;;  %v5801_v54 = vld [vmem:[#allocation4 + $0x160] sm:$0xff]  ;;  %v5803_v60 = vld [vmem:[#allocation4 + $0x130] sm:$0xff] }
 0x4d1   : > { %v3137_v4 = vmul.f32 %v12490_v52, %v9675_v16  ;;  %v5456_v38 = vpop.eup %5455  ;;  %v3116_v20 = vmul.f32 %v5454_v18, %v3108_v63  ;;  %v12492_v7 = vrot.slane %v9198_v31, 7  ;;  %v12493_v16 = vrot.slane %v9195_v43, 7  ;;  %v5807_v52 = vld [vmem:[#allocation4 + $0xd0] sm:$0xff]  ;;  %v5809_v18 = vld [vmem:[#allocation4 + $0xa0] sm:$0xff] }
 0x4d2   : > { %v3138_v50 = vmul.f32 %v12491_v62, %v9688_v21  ;;  %v9843_v10 = vadd.f32 %v3136_v17, %v3113_v6  ;;  %v5458_v33 = vpop.eup %5457  ;;  %v3117_v28 = vmul.f32 %v5456_v38, %v3109_v48  ;;  %v12494_v53 = vrot.slane %v9200_v45, 7  ;;  %v5800_v6 = vld [vmem:[#allocation4 + $0x178] sm:$0xff]  ;;  %v5802_v17 = vld [vmem:[#allocation4 + $0x148] sm:$0xff] }
 0x4d3   : > { %v3139_v0 = vmul.f32 %v12492_v7, %v3003_v35  ;;  %v9847_v40 = vadd.f32 %v3137_v4, %v3114_v30  ;;  %v3140_v3 = vmul.f32 %v3018_v32, %v12493_v16  ;;  %v5460_v21 = vpop.eup %5459  ;;  %v3118_v39 = vmul.f32 %v5458_v33, %v3110_v55  ;;  %v5804_v48 = vld [vmem:[#allocation4 + $0x118] sm:$0xff]  ;;  %v5805_v55 = vld [vmem:[#allocation4 + $0x100] sm:$0xff]  ;;  %v5806_v30 = vld [vmem:[#allocation4 + $0xe8] sm:$0xff] }
 0x4d4   : > { %v9851_v42 = vadd.f32 %v3138_v50, %v3115_v49  ;;  %v3160_v36 = vrot.slane %v9843_v10, 4  ;;  %v3141_v22 = vmul.f32 %v12494_v53, %v3033_v47  ;;  %v5462_v56 = vpop.eup %5461  ;;  %v3119_v25 = vmul.f32 %v5460_v21, %v3111_v46  ;;  %v5808_v4 = vld [vmem:[#allocation4 + $0xb8] sm:$0xff]  ;;  %v5810_v46 = vld [vmem:[#allocation4 + $0x88] sm:$0xff]  ;;  %v5811_v49 = vld [vmem:[#allocation4 + $0x70] sm:$0xff] }
 0x4d5   : > { %v9856_v9 = vadd.f32 %v3139_v0, %v3116_v20  ;;  %v3161_v31 = vrot.slane %v9847_v40, 3  ;;  %v12495_v27 = vrot.slane %v9203_v57, 7  ;;  %v12496_v43 = vrot.slane %v9207_v41, 7  ;;  %v5812_v62 = vld [vmem:[#allocation4 + $0x58] sm:$0xff]  ;;  %v5813_v50 = vld [vmem:[#allocation4 + $0x40] sm:$0xff]  ;;  %v5814_v38 = vld [vmem:[#allocation4 + $0x28] sm:$0xff] }
 0x4d6   : > { %v3163_v2 = vrot.slane %v9851_v42, 2  ;;  %v3120_v19 = vmul.f32 %v5462_v56, %v3112_v37  ;;  %v9864_v35 = vadd.f32 %v3141_v22, %v3118_v39  ;;  %v9868_v58 = vadd.f32 %v3140_v3, %v3117_v28  ;;  %v5815_v37 = vld [vmem:[#allocation4 + $0x10] sm:$0xff]  ;;  %v12503_v7 = vld [vmem:[#allocation10_spill] sm:$0xff]  ;;  %v12504_v53 = vld [vmem:[#allocation17_spill] sm:$0xff] }
 0x4d7   : > { %v3142_v29 = vmul.f32 %v12495_v27, %v3048_v61  ;;  %v3143_v23 = vmul.f32 %v12496_v43, %v3063_v1  ;;  %v3162_v45 = vsel %vm11858_vm2, %v3161_v31, %v3160_v36  ;;  %v3165_v32 = vrot.slane %v9856_v9, 1  ;;  %v12505_v31 = vld [vmem:[#allocation12_spill] sm:$0xff] }
 0x4d8   : > { %vm12497_vm8 = vcmask 1042434   ;;  %vm12498_vm13 = vcmask 1043459   ;;  %v11849_v61 = vrot.slane %v9864_v35, 7  ;;  %vm12499_vm14 = vcmask 1044484  }
 0x4d9   : > { %v9870_v47 = vadd.f32 %v3142_v29, %v3119_v25  ;;  %v3164_v13 = vsel %vm12497_vm8, %v3163_v2, %v3162_v45  ;;  %v9873_v57 = vadd.f32 %v3143_v23, %v3120_v19  ;;  %vm12500_vm0 = vcmask 1045509   ;;  %v12506_v25 = vld [vmem:[#allocation13_spill] sm:$0xff]  ;;  %v12507_v29 = vld [vmem:[#allocation14_spill] sm:$0xff]  ;;  %v12508_v23 = vld [vmem:[#allocation11_spill] sm:$0xff] }
 0x4da   : > { %v3166_v41 = vsel %vm12498_vm13, %v3165_v32, %v3164_v13  ;;  %vm12501_vm4 = vcmask 1046534   ;;  %vm12502_vm15 = vcmask 1047559   ;;  %v12509_v19 = vld [vmem:[#allocation16_spill] sm:$0xff] }
 0x4db   : > { %v3167_v15 = vsel %vm12499_vm14, %v9868_v58, %v3166_v41  ;;  %v3170_v1 = vrot.slane %v9870_v47, 6  ;;  %v3172_v51 = vrot.slane %v9873_v57, 5 }
 0x4dc   : > { %v3169_v59 = vsel %vm12500_vm0, %v11849_v61, %v3167_v15  ;;  %v12520_v61 = vld [vmem:[#allocation28_spill] sm:$0xff] }
 0x4dd   : > { %v3171_v26 = vsel %vm12501_vm4, %v3170_v1, %v3169_v59  ;;  %v12510_v59 = vld [vmem:[#allocation25_spill] sm:$0xff] }
 0x4de   : > { %v3173_v63 = vsel %vm12502_vm15, %v3172_v51, %v3171_v26  ;;  %v12511_v26 = vld [vmem:[#allocation18_spill] sm:$0xff] }
 0x4df   : > { %3191 = vmatmul.f32.vlgmr.msra.gmra.mxu1 %v3173_v63  ;;  %3211 = vmatmul.f32.vlgmr.msra.gmra.mxu2 %v3173_v63 }
 0x4e0   : > { %3231 = vmatmul.f32.vlgmr.msrb.gmra.mxu3 %v3173_v63  ;;  %4259 = vmatpush.msra.mxu1 %v5800_v6 }
 0x4e2   : > { %4260 = vmatpush.msra.mxu1 %v5801_v54  ;;  %v12512_v54 = vld [vmem:[#allocation15_spill] sm:$0xff] }
 0x4e4   : > { %4261 = vmatpush.msra.mxu1 %v5802_v17 }
 0x4e6   : > { %4262 = vmatpush.msra.mxu1 %v5803_v60 }
 0x4e8   : > { %4263 = vmatpush.msra.mxu1 %v5804_v48 }
 0x4ea   : > { %4264 = vmatpush.msra.mxu1 %v5805_v55 }
 0x4ec   : > { %4265 = vmatpush.msra.mxu1 %v5806_v30 }
 0x4ee   : > { %4266 = vmatpush.msra.mxu1 %v5807_v52 }
 0x4f0   : > { %4267 = vmatpush.msra.mxu1 %v5808_v4 }
 0x4f2   : > { %4268 = vmatpush.msra.mxu1 %v5809_v18 }
 0x4f4   : > { %4269 = vmatpush.msra.mxu1 %v5810_v46 }
 0x4f6   : > { %4270 = vmatpush.msra.mxu1 %v5811_v49 }
 0x4f8   : > { %4271 = vmatpush.msra.mxu1 %v5812_v62 }
 0x4fa   : > { %4272 = vmatpush.msra.mxu1 %v5813_v50 }
 0x4fc   : > { %4273 = vmatpush.msra.mxu1 %v5814_v38 }
 0x4fe   : > { %4274 = vmatpush.msra.mxu1 %v5815_v37  ;;  %v12513_v37 = vld [vmem:[#allocation19_spill] sm:$0xff] }
 0x55c   : > { %v3192_v20 = vpop.f32.mrf.mxu1 }
 0x55d   : > { %v3193_v0 = vadd.f32 %v3192_v20, %v12503_v7 }
 0x55f   : > { %v3236_v33 = vrot.slane %v3193_v0, 3  ;;  %v3237_v28 = vrot.slane %v3193_v0, 4  ;;  %v3238_v16 = vrot.slane %v3193_v0, 5  ;;  %v3239_v3 = vrot.slane %v3193_v0, 6 }
 0x560   : > { %v3240_v36 = vrot.slane %v3193_v0, 7  ;;  %v3241_v21 = vrot.slane %v3193_v0, 1  ;;  %v3242_v39 = vrot.slane %v3193_v0, 2  ;;  %v3256_v22 = vadd.f32 %v3193_v0, %v12504_v53 }
 0x561   : > { %v3251_v56 = vadd.f32 %v3236_v33, %v12505_v31  ;;  %v3252_v27 = vadd.f32 %v3237_v28, %v12506_v25  ;;  %v3253_v43 = vadd.f32 %v3238_v16, %v12507_v29  ;;  %v3254_v2 = vadd.f32 %v3239_v3, %v12508_v23 }
 0x562   : > { %v3255_v45 = vadd.f32 %v3240_v36, %v12509_v19  ;;  %v4952_v32 = vmul.f32 -1.442695, %v3256_v22  ;;  %v3212_v13 = vpop.f32.mrf.mxu2  ;;  %v3257_v63 = vadd.f32 %v3241_v21, %v12511_v26  ;;  %v3258_v17 = vadd.f32 %v3242_v39, %v12512_v54 }
 0x563   : > { %v4947_v41 = vmul.f32 -1.442695, %v3251_v56  ;;  %v4948_v15 = vmul.f32 -1.442695, %v3252_v27  ;;  %v4949_v1 = vmul.f32 -1.442695, %v3253_v43  ;;  %v9894_v51 = vadd.f32 %v3212_v13, %v12510_v59 }
 0x564   : > { %v4950_v6 = vmul.f32 -1.442695, %v3254_v2  ;;  %5463 = vpow2.f32 %v4952_v32  ;;  %v4951_v60 = vmul.f32 -1.442695, %v3255_v45  ;;  %v4953_v55 = vmul.f32 -1.442695, %v3257_v63  ;;  %v3232_v32 = vpop.f32.mrf.mxu3 }
 0x565   : > { %5465 = vpow2.f32 %v4947_v41  ;;  %v3412_v48 = vrot.slane %v9894_v51, 3  ;;  %v4954_v30 = vmul.f32 -1.442695, %v3258_v17  ;;  %v3413_v18 = vrot.slane %v9894_v51, 4  ;;  %v12514_v27 = vld [vmem:[#allocation21_spill] sm:$0xff]  ;;  %v12515_v2 = vld [vmem:[#allocation22_spill] sm:$0xff] }
 0x566   : > { %5467 = vpow2.f32 %v4948_v15  ;;  %v3414_v46 = vrot.slane %v9894_v51, 5  ;;  %v3415_v38 = vrot.slane %v9894_v51, 6  ;;  %v3416_v16 = vrot.slane %v9894_v51, 7  ;;  %v12516_v15 = vld [vmem:[#allocation23_spill] sm:$0xff] }
 0x567   : > { %5469 = vpow2.f32 %v4949_v1  ;;  %v3427_v20 = vadd.f32 %v3412_v48, %v12513_v37  ;;  %v3417_v21 = vrot.slane %v9894_v51, 1  ;;  %v3418_v39 = vrot.slane %v9894_v51, 2 }
 0x568   : > { %5471 = vpow2.f32 %v4950_v6  ;;  %v3428_v43 = vadd.f32 %v3413_v18, %v12514_v27  ;;  %v3429_v45 = vadd.f32 %v3414_v46, %v12515_v2  ;;  %v3430_v1 = vadd.f32 %v3415_v38, %v12516_v15  ;;  %v12518_v18 = vld [vmem:[#allocation24_spill] sm:$0xff] }
 0x569   : > { %5473 = vpow2.f32 %v4951_v60  ;;  %v4955_v63 = vmul.f32 -1.442695, %v3427_v20  ;;  %v12517_v60 = vld [vmem:[#allocation26_spill] sm:$0xff]  ;;  %v9933_v46 = vadd.f32 %v3232_v32, %v12518_v18  ;;  %v9946_v38 = vadd.f32 %v3417_v21, %v12520_v61 }
 0x56a   : > { %v5464_v52 = vpop.eup %5463  ;;  %5475 = vpow2.f32 %v4953_v55  ;;  %v3431_v48 = vadd.f32 %v3416_v16, %v12517_v60  ;;  %v12521_v55 = vld [vmem:[#allocation20_spill] sm:$0xff] }
 0x56b   : > { %v5466_v49 = vpop.eup %5465  ;;  %5477 = vpow2.f32 %v4954_v30  ;;  %v9925_v17 = vadd.f32 1.0, %v5464_v52  ;;  %v12519_v52 = vld [vmem:[#allocation27_spill] sm:$0xff]  ;;  %v9949_v33 = vadd.f32 %v3418_v39, %v12521_v55  ;;  %v12564_v23 = vrot.slane %v9933_v46, 5 }
 0x56c   : > { %v5468_v0 = vpop.eup %5467  ;;  %v9907_v28 = vadd.f32 1.0, %v5466_v49  ;;  %v9939_v20 = vadd.f32 %v9894_v51, %v12519_v52  ;;  %v4959_v32 = vmul.f32 -1.442695, %v3431_v48  ;;  %v3594_v25 = vrot.slane %v9933_v46, 2 }
 0x56d   : > { %v5470_v3 = vpop.eup %5469  ;;  %v9910_v36 = vadd.f32 1.0, %v5468_v0  ;;  %v4956_v0 = vmul.f32 -1.442695, %v3428_v43 }
 0x56e   : > { %v5472_v22 = vpop.eup %5471  ;;  %v9914_v56 = vadd.f32 1.0, %v5470_v3  ;;  %5479 = vrcp.f32 %v9907_v28  ;;  %v4957_v3 = vmul.f32 -1.442695, %v3429_v45  ;;  %vm3296_vm10 = vweird.f32 %v9907_v28 }
 0x56f   : > { %v5474_v13 = vpop.eup %5473  ;;  %v9919_v41 = vadd.f32 1.0, %v5472_v22  ;;  %5481 = vrcp.f32 %v9910_v36  ;;  %v4958_v22 = vmul.f32 -1.442695, %v3430_v1  ;;  %v3300_v21 = vand.u32 2147483647, %v9907_v28 }
 0x570   : > { %v9923_v6 = vadd.f32 1.0, %v5474_v13  ;;  %5483 = vrcp.f32 %v9914_v56  ;;  %v5476_v49 = vpop.eup %5475  ;;  %v3302_v13 = vand.u32 2147483648, %v9907_v28  ;;  %v3315_v50 = vand.u32 2147483647, %v9910_v36 }
 0x571   : > { %5485 = vrcp.f32 %v9919_v41  ;;  %v5478_v16 = vpop.eup %5477  ;;  %v9960_v48 = vadd.f32 1.0, %v5476_v49  ;;  %vm3311_vm12 = vweird.f32 %v9910_v36  ;;  %v3317_v61 = vand.u32 2147483648, %v9910_v36 }
 0x572   : > { %5487 = vrcp.f32 %v9923_v6  ;;  %v3303_v55 = vor.u32 1.1754944e-38, %v3302_v13  ;;  %v9976_v60 = vadd.f32 1.0, %v5478_v16  ;;  %vm9982_vm11 = vcmp.eq.f32.partialorder %v3300_v21, 8.507059e+37 }
 0x573   : > { %5489 = vpow2.f32 %v4955_v63  ;;  %vm9987_vm1 = vcmp.eq.f32.partialorder %v3315_v50, 8.507059e+37  ;;  %v3318_v50 = vor.u32 1.1754944e-38, %v3317_v61  ;;  %v3332_v16 = vand.u32 2147483648, %v9914_v56 }
 0x574   : > { %v9942_v30 = vpop.eup %5479  ;;  %5491 = vrcp.f32 %v9925_v17  ;;  %vm3326_vm5 = vweird.f32 %v9914_v56  ;;  %vm3341_vm6 = vweird.f32 %v9919_v41  ;;  %v3345_v61 = vand.u32 2147483647, %v9919_v41 }
 0x575   : > { %v9951_v51 = vpop.eup %5481  ;;  %v3292_v43 = vmul.f32 %v9942_v30, %v9907_v28  ;;  %5493 = vpow2.f32 %v4956_v0  ;;  %vm3297_vm9 = vweird.f32 %v9942_v30  ;;  %v3377_v28 = vand.u32 2147483648, %v9925_v17 }
 0x576   : > { %v9958_v63 = vpop.eup %5483  ;;  %v3307_v39 = vmul.f32 %v9951_v51, %v9910_v36  ;;  %5495 = vpow2.f32 %v4957_v3  ;;  %vm3312_vm3 = vweird.f32 %v9951_v51  ;;  %vm10006_vm7 = vmor %vm3296_vm10, %vm3297_vm9  ;;  %vm10049_vm4 = vcmp.eq.f32.partialorder %v3345_v61, 8.507059e+37 }
 0x577   : > { %v9966_v62 = vpop.eup %5485  ;;  %v3293_v4 = vsub.f32 1.0, %v3292_v43  ;;  %v3322_v1 = vmul.f32 %v9958_v63, %v9914_v56  ;;  %5497 = vrcp.f32 %v9960_v48  ;;  %vm10015_vm8 = vmor %vm3311_vm12, %vm3312_vm3  ;;  %vm3327_vm13 = vweird.f32 %v9958_v63 }
 0x578   : > { %v9971_v45 = vpop.eup %5487  ;;  %v3308_v49 = vsub.f32 1.0, %v3307_v39  ;;  %v3337_v18 = vmul.f32 %v9966_v62, %v9919_v41  ;;  %5499 = vrcp.f32 %v9976_v60  ;;  %vm3342_vm0 = vweird.f32 %v9966_v62  ;;  %vm10059_vm15 = vmor %vm3326_vm5, %vm3327_vm13 }
 0x579   : > { %v5490_v52 = vpop.eup %5489  ;;  %v3294_v13 = vmul.f32 %v9942_v30, %v3293_v4  ;;  %v3323_v43 = vsub.f32 1.0, %v3322_v1  ;;  %v3330_v4 = vand.u32 2147483647, %v9914_v56  ;;  %v3352_v1 = vmul.f32 %v9971_v45, %v9923_v6 }
 0x57a   : > { %v9979_v15 = vpop.eup %5491  ;;  %v3309_v0 = vmul.f32 %v9951_v51, %v3308_v49  ;;  %v3338_v3 = vsub.f32 1.0, %v3337_v18  ;;  %v9996_v21 = vadd.f32 1.0, %v5490_v52  ;;  %5501 = vpow2.f32 %v4958_v22 }
 0x57b   : > { %v3295_v27 = vadd.f32 %v9942_v30, %v3294_v13  ;;  %v3324_v37 = vmul.f32 %v9958_v63, %v3323_v43  ;;  %v3353_v54 = vsub.f32 1.0, %v3352_v1  ;;  %v5494_v59 = vpop.eup %5493  ;;  %vm10020_vm14 = vcmp.eq.f32.partialorder %v3330_v4, 8.507059e+37 }
 0x57c   : > { %v3310_v49 = vadd.f32 %v9951_v51, %v3309_v0  ;;  %v5496_v52 = vpop.eup %5495  ;;  %v3339_v43 = vmul.f32 %v9966_v62, %v3338_v3  ;;  %5503 = vpow2.f32 %v4959_v32  ;;  %v10034_v53 = vadd.f32 1.0, %v5494_v59 }
 0x57d   : > { %v10025_v0 = vpop.eup %5497  ;;  %v3299_v22 = vsel %vm10006_vm7, %v9942_v30, %v3295_v27  ;;  %v3354_v1 = vmul.f32 %v9971_v45, %v3353_v54  ;;  %5505 = vrcp.f32 %v9996_v21  ;;  %v3325_v4 = vadd.f32 %v9958_v63, %v3324_v37 }
 0x57e   : > { %v3314_v36 = vsel %vm10015_vm8, %v9951_v51, %v3310_v49  ;;  %v3333_v3 = vor.u32 1.1754944e-38, %v3332_v16  ;;  %v10038_v19 = vadd.f32 1.0, %v5496_v52  ;;  %v3347_v32 = vand.u32 2147483648, %v9919_v41  ;;  %v10053_v51 = vpop.eup %5499 }
 0x57f   : > { %v3367_v27 = vmul.f32 %v9979_v15, %v9925_v17  ;;  %v3304_v30 = vsel %vm9982_vm11, %v3303_v55, %v3299_v22  ;;  %v3319_v59 = vsel %vm9987_vm1, %v3318_v50, %v3314_v36  ;;  %v3340_v54 = vadd.f32 %v9966_v62, %v3339_v43  ;;  %vm10080_vm11 = vmor %vm3341_vm6, %vm3342_vm0 }
 0x580   : > { %v3355_v2 = vadd.f32 %v9971_v45, %v3354_v1  ;;  %vm3357_vm10 = vweird.f32 %v9971_v45  ;;  %v3382_v39 = vmul.f32 %v10025_v0, %v9960_v48  ;;  %v5502_v49 = vpop.eup %5501  ;;  %5507 = vrcp.f32 %v10034_v53 }
 0x581   : > { %v3368_v55 = vsub.f32 1.0, %v3367_v27  ;;  %v3329_v50 = vsel %vm10059_vm15, %v9958_v63, %v3325_v4  ;;  %vm3356_vm12 = vweird.f32 %v9923_v6  ;;  %v3362_v56 = vand.u32 2147483648, %v9923_v6 }
 0x582   : > { %v10073_v18 = vpop.eup %5503  ;;  %5509 = vrcp.f32 %v10038_v19  ;;  %v3348_v52 = vor.u32 1.1754944e-38, %v3347_v32  ;;  %v3360_v13 = vand.u32 2147483647, %v9923_v6  ;;  %v3383_v63 = vsub.f32 1.0, %v3382_v39  ;;  %vm10100_vm1 = vmor %vm3356_vm12, %vm3357_vm10 }
 0x583   : > { %v10085_v43 = vpop.eup %5505  ;;  %v12538_v22 = vrot.slane %v9933_v46, 3  ;;  %v12539_v1 = vrot.slane %v9933_v46, 4  ;;  %v3344_v41 = vsel %vm10080_vm11, %v9966_v62, %v3340_v54  ;;  %v3397_v6 = vmul.f32 %v10053_v51, %v9976_v60 }
 0x584   : > { %v10108_v27 = vsel %vm10020_vm14, %v3333_v3, %v3329_v50  ;;  %v3375_v62 = vand.u32 2147483647, %v9925_v17  ;;  %v3363_v54 = vor.u32 1.1754944e-38, %v3362_v56  ;;  %v3384_v16 = vmul.f32 %v10025_v0, %v3383_v63 }
 0x585   : > { %v10089_v36 = vmul.f32 %v12538_v22, %v3304_v30  ;;  %v10093_v4 = vmul.f32 %v12539_v1, %v3319_v59  ;;  %v3359_v30 = vsel %vm10100_vm1, %v9971_v45, %v3355_v2  ;;  %v3369_v59 = vmul.f32 %v9979_v15, %v3368_v55 }
 0x586   : > { %v3398_v39 = vsub.f32 1.0, %v3397_v6  ;;  %v4960_v61 = vmul.f32 -1.442695, %v9939_v20  ;;  %v10119_v22 = vsel %vm10049_vm4, %v3348_v52, %v3344_v41  ;;  %vm3361_vm9 = vcmp.eq.f32.partialorder %v3360_v13, 8.507059e+37  ;;  %v10123_v45 = vpop.eup %5507 }
 0x587   : > { %vm3371_vm3 = vweird.f32 %v9925_v17  ;;  %v10125_v3 = vsel %vm3361_vm9, %v3363_v54, %v3359_v30  ;;  %vm3372_vm7 = vweird.f32 %v9979_v15  ;;  %vm3386_vm5 = vweird.f32 %v9960_v48 }
 0x588   : > { %v4961_v2 = vmul.f32 -1.442695, %v9946_v38  ;;  %v10130_v20 = vpop.eup %5509  ;;  %v3370_v37 = vadd.f32 %v9979_v15, %v3369_v59  ;;  %vm10133_vm6 = vcmp.eq.f32.partialorder %v3375_v62, 8.507059e+37  ;;  %vm3387_vm8 = vweird.f32 %v10025_v0  ;;  %vm10150_vm13 = vmor %vm3371_vm3, %vm3372_vm7 }
 0x589   : > { %v3399_v50 = vmul.f32 %v10053_v51, %v3398_v39  ;;  %v3385_v56 = vadd.f32 %v10025_v0, %v3384_v16  ;;  %5511 = vpow2.f32 %v4960_v61  ;;  %v4962_v52 = vmul.f32 -1.442695, %v9949_v33  ;;  %vm10164_vm14 = vmor %vm3386_vm5, %vm3387_vm8 }
 0x58a   : > { %v3468_v38 = vmul.f32 %v10085_v43, %v9996_v21  ;;  %v3378_v13 = vor.u32 1.1754944e-38, %v3377_v28  ;;  %v3390_v63 = vand.u32 2147483647, %v9960_v48  ;;  %v3392_v1 = vand.u32 2147483648, %v9960_v48 }
 0x58b   : > { %v3405_v41 = vand.u32 2147483647, %v9976_v60  ;;  %v3407_v33 = vand.u32 2147483648, %v9976_v60  ;;  %5513 = vpow2.f32 %v4961_v2  ;;  %v3483_v30 = vmul.f32 %v10123_v45, %v10034_v53 }
 0x58c   : > { %v3469_v6 = vsub.f32 1.0, %v3468_v38  ;;  %v3374_v59 = vsel %vm10150_vm13, %v9979_v15, %v3370_v37  ;;  %v3400_v62 = vadd.f32 %v10053_v51, %v3399_v50  ;;  %vm3401_vm0 = vweird.f32 %v9976_v60 }
 0x58d   : > { %vm3402_vm4 = vweird.f32 %v10053_v51  ;;  %v3389_v54 = vsel %vm10164_vm14, %v10025_v0, %v3385_v56  ;;  %5515 = vpow2.f32 %v4962_v52  ;;  %v10174_v15 = vadd.f32 1.0, %v5502_v49 }
 0x58e   : > { %v3484_v16 = vsub.f32 1.0, %v3483_v30  ;;  %vm3391_vm15 = vcmp.eq.f32.partialorder %v3390_v63, 8.507059e+37  ;;  %v3393_v48 = vor.u32 1.1754944e-38, %v3392_v1  ;;  %v3470_v39 = vmul.f32 %v10085_v43, %v3469_v6  ;;  %vm10183_vm10 = vmor %vm3401_vm0, %vm3402_vm4 }
 0x58f   : > { %v3498_v61 = vmul.f32 %v10130_v20, %v10038_v19  ;;  %v5512_v28 = vpop.eup %5511  ;;  %v10181_v60 = vsel %vm10133_vm6, %v3378_v13, %v3374_v59  ;;  %vm10187_vm12 = vcmp.eq.f32.partialorder %v3405_v41, 8.507059e+37  ;;  %v3408_v49 = vor.u32 1.1754944e-38, %v3407_v33 }
 0x590   : > { %v10192_v37 = vadd.f32 1.0, %v10073_v18  ;;  %v10194_v50 = vsel %vm3391_vm15, %v3393_v48, %v3389_v54  ;;  %v3404_v55 = vsel %vm10183_vm10, %v10053_v51, %v3400_v62  ;;  %v3485_v56 = vmul.f32 %v10123_v45, %v3484_v16 }
 0x591   : > { %v3499_v52 = vsub.f32 1.0, %v3498_v61  ;;  %v5514_v38 = vpop.eup %5513  ;;  %vm3472_vm11 = vweird.f32 %v9996_v21  ;;  %vm3473_vm1 = vweird.f32 %v10085_v43  ;;  %v3476_v13 = vand.u32 2147483647, %v9996_v21 }
 0x592   : > { %5517 = vrcp.f32 %v10174_v15  ;;  %v10204_v18 = vadd.f32 1.0, %v5512_v28  ;;  %v3471_v63 = vadd.f32 %v10085_v43, %v3470_v39  ;;  %v3478_v1 = vand.u32 2147483648, %v9996_v21  ;;  %vm10225_vm7 = vmor %vm3472_vm11, %vm3473_vm1 }
 0x593   : > { %v3500_v51 = vmul.f32 %v10130_v20, %v3499_v52  ;;  %v5516_v41 = vpop.eup %5515  ;;  %v10211_v32 = vsel %vm10187_vm12, %v3408_v49, %v3404_v55  ;;  %vm3487_vm9 = vweird.f32 %v10034_v53  ;;  %vm3488_vm3 = vweird.f32 %v10123_v45 }
 0x594   : > { %v3491_v33 = vand.u32 2147483647, %v10034_v53  ;;  %v10216_v6 = vadd.f32 1.0, %v5514_v38  ;;  %v3486_v30 = vadd.f32 %v10123_v45, %v3485_v56  ;;  %v3493_v59 = vand.u32 2147483648, %v10034_v53  ;;  %vm10249_vm8 = vmor %vm3487_vm9, %vm3488_vm3 }
 0x595   : > { %5519 = vrcp.f32 %v10192_v37  ;;  %vm10229_vm5 = vcmp.eq.f32.partialorder %v3476_v13, 8.507059e+37  ;;  %v3501_v54 = vadd.f32 %v10130_v20, %v3500_v51  ;;  %vm3503_vm6 = vweird.f32 %v10130_v20 }
 0x596   : > { %v3506_v16 = vand.u32 2147483647, %v10038_v19  ;;  %v10236_v48 = vadd.f32 1.0, %v5516_v41  ;;  %v3475_v21 = vsel %vm10225_vm7, %v10085_v43, %v3471_v63  ;;  %v3508_v39 = vand.u32 2147483648, %v10038_v19 }
 0x597   : > { %5521 = vrcp.f32 %v10204_v18  ;;  %v3479_v28 = vor.u32 1.1754944e-38, %v3478_v1  ;;  %vm10253_vm13 = vcmp.eq.f32.partialorder %v3491_v33, 8.507059e+37  ;;  %vm3502_vm14 = vweird.f32 %v10038_v19 }
 0x598   : > { %v10243_v61 = vpop.eup %5517  ;;  %v3523_v43 = vand.u32 2147483648, %v10174_v15  ;;  %v3490_v49 = vsel %vm10249_vm8, %v10123_v45, %v3486_v30  ;;  %v3494_v55 = vor.u32 1.1754944e-38, %v3493_v59  ;;  %vm10262_vm0 = vmor %vm3502_vm14, %vm3503_vm6  ;;  %5523 = vrcp.f32 %v10216_v6 }
 0x599   : > { %v3513_v53 = vmul.f32 %v10243_v61, %v10174_v15  ;;  %v10271_v52 = vsel %vm10229_vm5, %v3479_v28, %v3475_v21  ;;  %v3505_v19 = vsel %vm10262_vm0, %v10130_v20, %v3501_v54  ;;  %vm3507_vm4 = vcmp.eq.f32.partialorder %v3506_v16, 8.507059e+37 }
 0x59a   : > { %v3538_v45 = vand.u32 2147483648, %v10192_v37  ;;  %v3509_v13 = vor.u32 1.1754944e-38, %v3508_v39  ;;  %v3553_v1 = vand.u32 2147483648, %v10204_v18  ;;  %5525 = vrcp.f32 %v10236_v48 }
 0x59b   : > { %v10277_v38 = vpop.eup %5519  ;;  %v3514_v63 = vsub.f32 1.0, %v3513_v53  ;;  %v10283_v51 = vsel %vm10253_vm13, %v3494_v55, %v3490_v49  ;;  %v3521_v41 = vand.u32 2147483647, %v10174_v15  ;;  %v10286_v33 = vor.u32 1.1754944e-38, %v3523_v43 }
 0x59c   : > { %v3528_v20 = vmul.f32 %v10277_v38, %v10192_v37  ;;  %v10292_v59 = vsel %vm3507_vm4, %v3509_v13, %v3505_v19  ;;  %vm3517_vm15 = vweird.f32 %v10174_v15  ;;  %v3536_v17 = vand.u32 2147483647, %v10192_v37 }
 0x59d   : > { %v10290_v30 = vpop.eup %5521  ;;  %v3551_v62 = vand.u32 2147483647, %v10204_v18  ;;  %v3568_v54 = vand.u32 2147483648, %v10216_v6  ;;  %v3515_v16 = vmul.f32 %v10243_v61, %v3514_v63  ;;  %vm3532_vm10 = vweird.f32 %v10192_v37 }
 0x59e   : > { %v3529_v21 = vsub.f32 1.0, %v3528_v20  ;;  %v10300_v39 = vor.u32 1.1754944e-38, %v3538_v45  ;;  %v3543_v28 = vmul.f32 %v10290_v30, %v10204_v18  ;;  %v10304_v2 = vpop.eup %5523  ;;  %vm3518_vm12 = vweird.f32 %v10243_v61 }
 0x59f   : > { %vm3547_vm11 = vweird.f32 %v10204_v18  ;;  %v10308_v0 = vor.u32 1.1754944e-38, %v3553_v1  ;;  %v3566_v43 = vand.u32 2147483647, %v10216_v6  ;;  %v3581_v49 = vand.u32 2147483647, %v10236_v48  ;;  %vm10363_vm0 = vmor %vm3517_vm15, %vm3518_vm12 }
 0x5a0   : > { %v3530_v55 = vmul.f32 %v10277_v38, %v3529_v21  ;;  %vm3533_vm1 = vweird.f32 %v10277_v38  ;;  %v3544_v56 = vsub.f32 1.0, %v3543_v28  ;;  %v3558_v53 = vmul.f32 %v10304_v2, %v10216_v6  ;;  %v10317_v19 = vpop.eup %5525 }
 0x5a1   : > { %vm3562_vm9 = vweird.f32 %v10216_v6  ;;  %vm3548_vm3 = vweird.f32 %v10290_v30  ;;  %v3569_v45 = vor.u32 1.1754944e-38, %v3568_v54  ;;  %v3591_v13 = vrot.slane %v9933_v46, 6  ;;  %vm10375_vm4 = vmor %vm3532_vm10, %vm3533_vm1 }
 0x5a2   : > { %v3592_v63 = vrot.slane %v9933_v46, 7  ;;  %v3516_v1 = vadd.f32 %v10243_v61, %v3515_v16  ;;  %vm10323_vm7 = vcmp.eq.f32.partialorder %v3521_v41, 8.507059e+37  ;;  %v3545_v21 = vmul.f32 %v10290_v30, %v3544_v56  ;;  %vm10390_vm15 = vmor %vm3547_vm11, %vm3548_vm3 }
 0x5a3   : > { %v3559_v28 = vsub.f32 1.0, %v3558_v53  ;;  %vm3577_vm5 = vweird.f32 %v10236_v48  ;;  %v3605_v29 = vmul.f32 %v12564_v23, %v10108_v27  ;;  %vm10332_vm6 = vcmp.eq.f32.partialorder %v3536_v17, 8.507059e+37 }
 0x5a4   : > { %v3573_v16 = vmul.f32 %v10317_v19, %v10236_v48  ;;  %v3593_v41 = vrot.slane %v9933_v46, 1  ;;  %v3606_v56 = vmul.f32 %v3591_v13, %v10119_v22  ;;  %v3531_v53 = vadd.f32 %v10277_v38, %v3530_v55 }
 0x5a5   : > { %vm10342_vm8 = vcmp.eq.f32.partialorder %v3551_v62, 8.507059e+37  ;;  %v3560_v23 = vmul.f32 %v10304_v2, %v3559_v28  ;;  %vm3563_vm13 = vweird.f32 %v10304_v2  ;;  %vm10348_vm14 = vcmp.eq.f32.partialorder %v3566_v43, 8.507059e+37 }
 0x5a6   : > { %v3607_v17 = vmul.f32 %v3592_v63, %v10125_v3  ;;  %v3574_v26 = vsub.f32 1.0, %v3573_v16  ;;  %v3608_v22 = vmul.f32 %v10181_v60, %v9933_v46  ;;  %v3611_v62 = vadd.f32 %v10089_v36, %v6459_v24  ;;  %vm10403_vm12 = vmor %vm3562_vm9, %vm3563_vm13 }
 0x5a7   : > { %v3612_v55 = vadd.f32 %v10093_v4, %v6472_v11  ;;  %v3546_v3 = vadd.f32 %v10290_v30, %v3545_v21  ;;  %v3561_v13 = vadd.f32 %v10304_v2, %v3560_v23  ;;  %v3609_v46 = vmul.f32 %v3593_v41, %v10194_v50 }
 0x5a8   : > { %v3613_v60 = vadd.f32 %v3605_v29, %v6491_v34  ;;  %v3575_v4 = vmul.f32 %v10317_v19, %v3574_v26  ;;  %v3583_v15 = vand.u32 2147483648, %v10236_v48  ;;  %v3610_v63 = vmul.f32 %v3594_v25, %v10211_v32 }
 0x5a9   : > { %v3614_v21 = vadd.f32 %v3606_v56, %v6504_v44  ;;  %v3520_v29 = vsel %vm10363_vm0, %v10243_v61, %v3516_v1  ;;  %vm3578_vm10 = vweird.f32 %v10317_v19  ;;  %v3615_v26 = vadd.f32 %v3607_v17, %v6535_v8 }
 0x5aa   : > { %5527 = vtanh.f32 %v3611_v62  ;;  %v3535_v25 = vsel %vm10375_vm4, %v10277_v38, %v3531_v53  ;;  %v3576_v18 = vadd.f32 %v10317_v19, %v3575_v4  ;;  %v3616_v32 = vadd.f32 %v3608_v22, %v6648_v5  ;;  %vm10421_vm11 = vmor %vm3577_vm5, %vm3578_vm10 }
 0x5ab   : > { %5529 = vtanh.f32 %v3612_v55  ;;  %v3550_v61 = vsel %vm10390_vm15, %v10290_v30, %v3546_v3  ;;  %v3565_v38 = vsel %vm10403_vm12, %v10304_v2, %v3561_v13  ;;  %v3617_v1 = vadd.f32 %v3609_v46, %v6677_v12 }
 0x5ac   : > { %5531 = vtanh.f32 %v3613_v60  ;;  %v3525_v6 = vsel %vm10323_vm7, %v10286_v33, %v3520_v29  ;;  %vm10425_vm1 = vcmp.eq.f32.partialorder %v3581_v49, 8.507059e+37  ;;  %v3618_v30 = vadd.f32 %v3610_v63, %v6757_v14 }
 0x5ad   : > { %5533 = vtanh.f32 %v3614_v21  ;;  %v3540_v2 = vsel %vm10332_vm6, %v10300_v39, %v3535_v25  ;;  %v3580_v33 = vsel %vm10421_vm11, %v10317_v19, %v3576_v18  ;;  %v3584_v48 = vor.u32 1.1754944e-38, %v3583_v15 }
 0x5ae   : > { %5535 = vtanh.f32 %v3615_v26  ;;  %v3555_v49 = vsel %vm10342_vm8, %v10308_v0, %v3550_v61  ;;  %v3570_v20 = vsel %vm10348_vm14, %v3569_v45, %v3565_v38  ;;  %v3627_v41 = vsub.f32 1.0, %v10271_v52 }
 0x5af   : > { %5537 = vtanh.f32 %v3616_v32  ;;  %v3628_v39 = vsub.f32 1.0, %v10283_v51  ;;  %v3629_v54 = vsub.f32 1.0, %v10292_v59  ;;  %v3630_v53 = vsub.f32 1.0, %v3525_v6 }
 0x5b0   : > { %v5528_v56 = vpop.eup %5527  ;;  %5539 = vtanh.f32 %v3617_v1  ;;  %v3585_v23 = vsel %vm10425_vm1, %v3584_v48, %v3580_v33  ;;  %v12583_v0 = vrot.slane %v9843_v10, 7  ;;  %v3631_v17 = vsub.f32 1.0, %v3540_v2 }
 0x5b1   : > { %v5530_v19 = vpop.eup %5529  ;;  %5541 = vtanh.f32 %v3618_v30  ;;  %v3635_v31 = vmul.f32 %v5528_v56, %v3627_v41  ;;  %v3632_v22 = vsub.f32 1.0, %v3555_v49  ;;  %v12584_v55 = vrot.slane %v9847_v40, 7 }
 0x5b2   : > { %v3658_v45 = vmul.f32 %v12583_v0, %v10271_v52  ;;  %v5532_v27 = vpop.eup %5531  ;;  %v3636_v62 = vmul.f32 %v5530_v19, %v3628_v39  ;;  %v3633_v13 = vsub.f32 1.0, %v3570_v20  ;;  %v12585_v60 = vrot.slane %v9851_v42, 7 }
 0x5b3   : > { %v3659_v43 = vmul.f32 %v12584_v55, %v10283_v51  ;;  %v5534_v3 = vpop.eup %5533  ;;  %v3637_v46 = vmul.f32 %v5532_v27, %v3629_v54  ;;  %v3634_v10 = vsub.f32 1.0, %v3585_v23  ;;  %v12586_v63 = vrot.slane %v9856_v9, 7 }
 0x5b4   : > { %v3660_v36 = vmul.f32 %v12585_v60, %v10292_v59  ;;  %v10455_v4 = vadd.f32 %v3658_v45, %v3635_v31  ;;  %v5536_v15 = vpop.eup %5535  ;;  %v3638_v52 = vmul.f32 %v5534_v3, %v3630_v53  ;;  %v12587_v51 = vrot.slane %v9868_v58, 7  ;;  %v12597_v3 = vld [vmem:[#allocation18_spill] sm:$0xff] }
 0x5b5   : > { %v3661_v21 = vmul.f32 %v12586_v63, %v3525_v6  ;;  %v10459_v29 = vadd.f32 %v3659_v43, %v3636_v62  ;;  %v5538_v37 = vpop.eup %5537  ;;  %v3639_v40 = vmul.f32 %v5536_v15, %v3631_v17  ;;  %v12588_v18 = vrot.slane %v9864_v35, 7  ;;  %v12601_v63 = vld [vmem:[#allocation11_spill] sm:$0xff] }
 0x5b6   : > { %v3662_v26 = vmul.f32 %v12587_v51, %v3540_v2  ;;  %v10463_v25 = vadd.f32 %v3660_v36, %v3637_v46  ;;  %v3682_v42 = vrot.slane %v10455_v4, 5  ;;  %v5540_v59 = vpop.eup %5539  ;;  %v3640_v50 = vmul.f32 %v5538_v37, %v3632_v22  ;;  %v12598_v46 = vld [vmem:[#allocation12_spill] sm:$0xff]  ;;  %v12599_v36 = vld [vmem:[#allocation13_spill] sm:$0xff] }
 0x5b7   : > { %v3663_v32 = vmul.f32 %v3555_v49, %v12588_v18  ;;  %v10468_v61 = vadd.f32 %v3661_v21, %v3638_v52  ;;  %v3683_v9 = vrot.slane %v10459_v29, 4  ;;  %v5542_v38 = vpop.eup %5541  ;;  %v3641_v1 = vmul.f32 %v5540_v59, %v3633_v13  ;;  %v12603_v18 = vld [vmem:[#allocation17_spill] sm:$0xff] }
 0x5b8   : > { %v12589_v6 = vrot.slane %v9870_v47, 7  ;;  %v10473_v58 = vadd.f32 %v3662_v26, %v3639_v40  ;;  %v3685_v16 = vrot.slane %v10463_v25, 3  ;;  %v3642_v30 = vmul.f32 %v5542_v38, %v3634_v10  ;;  %v12600_v10 = vld [vmem:[#allocation14_spill] sm:$0xff]  ;;  %v12602_v40 = vld [vmem:[#allocation16_spill] sm:$0xff]  ;;  %v12604_v38 = vld [vmem:[#allocation25_spill] sm:$0xff] }
 0x5b9   : > { %v12590_v2 = vrot.slane %v9873_v57, 7  ;;  %v3684_v35 = vsel %vm11858_vm2, %v3683_v9, %v3682_v42  ;;  %v3687_v48 = vrot.slane %v10468_v61, 2  ;;  %vm12591_vm9 = vcmask 1042434  }
 0x5ba   : > { %v3664_v28 = vmul.f32 %v12589_v6, %v3570_v20  ;;  %v3686_v41 = vsel %vm12591_vm9, %v3685_v16, %v3684_v35  ;;  %v3689_v56 = vrot.slane %v10473_v58, 1  ;;  %v10484_v47 = vadd.f32 %v3663_v32, %v3640_v50 }
 0x5bb   : > { %v3665_v33 = vmul.f32 %v12590_v2, %v3585_v23  ;;  %vm12592_vm3 = vcmask 1043459   ;;  %vm12593_vm7 = vcmask 1044484   ;;  %vm12594_vm5 = vcmask 1045509  }
 0x5bc   : > { %v10480_v49 = vadd.f32 %v3664_v28, %v3641_v1  ;;  %v3688_v39 = vsel %vm12592_vm3, %v3687_v48, %v3686_v41  ;;  %vm12595_vm6 = vcmask 1046534   ;;  %vm12596_vm8 = vcmask 1047559  }
 0x5bd   : > { %v10486_v20 = vadd.f32 %v3665_v33, %v3642_v30  ;;  %v3690_v54 = vsel %vm12593_vm7, %v3689_v56, %v3688_v39  ;;  %v12605_v33 = vld [vmem:[#allocation15_spill] sm:$0xff] }
 0x5be   : > { %v11850_v57 = vrot.slane %v10480_v49, 7  ;;  %v3691_v53 = vsel %vm12594_vm5, %v10484_v47, %v3690_v54 }
 0x5bf   : > { %v3694_v19 = vrot.slane %v10486_v20, 6 }
 0x5c0   : > { %v3693_v23 = vsel %vm12595_vm6, %v11850_v57, %v3691_v53 }
 0x5c1   : > { %v3695_v31 = vsel %vm12596_vm8, %v3694_v19, %v3693_v23 }
 0x5c2   : > { %3713 = vmatmul.f32.vlgmr.msrb.gmra.mxu0 %v3695_v31  ;;  %3733 = vmatmul.f32.vlgmr.msrb.gmra.mxu1 %v3695_v31 }
 0x5c3   : > { %3753 = vmatmul.f32.vlgmr.msrb.gmra.mxu2 %v3695_v31  ;;  %v12606_v31 = vld [vmem:[#allocation19_spill] sm:$0xff] }
 0x63f   : > { %v3714_v0 = vpop.f32.mrf.mxu0  ;;  %v3734_v37 = vpop.f32.mrf.mxu1 }
 0x640   : > { %v3715_v45 = vadd.f32 %v3714_v0, %v12503_v7  ;;  %v10507_v1 = vadd.f32 %v3734_v37, %v12604_v38  ;;  %v12608_v37 = vld [vmem:[#allocation22_spill] sm:$0xff] }
 0x642   : > { %v3758_v27 = vrot.slane %v3715_v45, 2  ;;  %v3759_v17 = vrot.slane %v3715_v45, 3  ;;  %v3760_v22 = vrot.slane %v3715_v45, 4  ;;  %v3761_v62 = vrot.slane %v3715_v45, 5 }
 0x643   : > { %v3762_v55 = vrot.slane %v3715_v45, 6  ;;  %v3763_v43 = vrot.slane %v3715_v45, 7  ;;  %v3779_v13 = vadd.f32 %v3715_v45, %v12597_v3  ;;  %v3764_v28 = vrot.slane %v3715_v45, 1 }
 0x644   : > { %v3773_v60 = vadd.f32 %v3758_v27, %v12598_v46  ;;  %v3774_v15 = vadd.f32 %v3759_v17, %v12599_v36  ;;  %v3775_v52 = vadd.f32 %v3760_v22, %v12600_v10  ;;  %v3776_v21 = vadd.f32 %v3761_v62, %v12601_v63 }
 0x645   : > { %v3777_v51 = vadd.f32 %v3762_v55, %v12602_v40  ;;  %v4969_v26 = vmul.f32 -1.442695, %v3779_v13  ;;  %v3778_v32 = vadd.f32 %v3763_v43, %v12603_v18  ;;  %v3934_v30 = vrot.slane %v10507_v1, 2 }
 0x646   : > { %v4963_v42 = vmul.f32 -1.442695, %v3773_v60  ;;  %v4964_v59 = vmul.f32 -1.442695, %v3774_v15  ;;  %v4965_v50 = vmul.f32 -1.442695, %v3775_v52  ;;  %v3780_v35 = vadd.f32 %v3764_v28, %v12605_v33 }
 0x647   : > { %v4966_v9 = vmul.f32 -1.442695, %v3776_v21  ;;  %5543 = vpow2.f32 %v4969_v26  ;;  %v4967_v6 = vmul.f32 -1.442695, %v3777_v51  ;;  %v4968_v16 = vmul.f32 -1.442695, %v3778_v32 }
 0x648   : > { %5545 = vpow2.f32 %v4963_v42  ;;  %v3935_v48 = vrot.slane %v10507_v1, 3  ;;  %v3936_v39 = vrot.slane %v10507_v1, 4  ;;  %v3937_v54 = vrot.slane %v10507_v1, 5  ;;  %v12607_v60 = vld [vmem:[#allocation21_spill] sm:$0xff]  ;;  %v12609_v26 = vld [vmem:[#allocation23_spill] sm:$0xff]  ;;  %v12610_v32 = vld [vmem:[#allocation26_spill] sm:$0xff] }
 0x649   : > { %5547 = vpow2.f32 %v4964_v59  ;;  %v3938_v23 = vrot.slane %v10507_v1, 6  ;;  %v3949_v0 = vadd.f32 %v3934_v30, %v12606_v31  ;;  %v3939_v62 = vrot.slane %v10507_v1, 7  ;;  %v3754_v59 = vpop.f32.mrf.mxu2  ;;  %v12611_v30 = vld [vmem:[#allocation27_spill] sm:$0xff] }
 0x64a   : > { %5549 = vpow2.f32 %v4965_v50  ;;  %v4970_v43 = vmul.f32 -1.442695, %v3780_v35  ;;  %v3950_v15 = vadd.f32 %v3935_v48, %v12607_v60  ;;  %v3951_v51 = vadd.f32 %v3936_v39, %v12608_v37  ;;  %v12612_v39 = vld [vmem:[#allocation24_spill] sm:$0xff] }
 0x64b   : > { %5551 = vpow2.f32 %v4966_v9  ;;  %v3952_v42 = vadd.f32 %v3937_v54, %v12609_v26  ;;  %v3953_v9 = vadd.f32 %v3938_v23, %v12610_v32  ;;  %v3954_v35 = vadd.f32 %v3939_v62, %v12611_v30 }
 0x64c   : > { %5553 = vpow2.f32 %v4967_v6  ;;  %v4971_v6 = vmul.f32 -1.442695, %v3949_v0  ;;  %v10545_v54 = vadd.f32 %v3754_v59, %v12612_v39  ;;  %v4973_v62 = vmul.f32 -1.442695, %v3951_v51 }
 0x64d   : > { %v5544_v2 = vpop.eup %5543  ;;  %5555 = vpow2.f32 %v4968_v16  ;;  %v4975_v57 = vmul.f32 -1.442695, %v3953_v9  ;;  %v10560_v0 = vmul.f32 -1.442695, %v3954_v35 }
 0x64e   : > { %v5546_v41 = vpop.eup %5545  ;;  %v12660_v26 = vrot.slane %v10545_v54, 4 }
 0x64f   : > { %v5548_v53 = vpop.eup %5547  ;;  %v10515_v19 = vadd.f32 1.0, %v5546_v41  ;;  %v10541_v41 = vadd.f32 1.0, %v5544_v2  ;;  %v4974_v2 = vmul.f32 -1.442695, %v3952_v42 }
 0x650   : > { %v5550_v45 = vpop.eup %5549  ;;  %v10521_v22 = vadd.f32 1.0, %v5548_v53  ;;  %v12613_v53 = vld [vmem:[#allocation28_spill] sm:$0xff] }
 0x651   : > { %v5552_v55 = vpop.eup %5551  ;;  %v10524_v13 = vadd.f32 1.0, %v5550_v45  ;;  %5557 = vrcp.f32 %v10515_v19  ;;  %v3955_v23 = vadd.f32 %v10507_v1, %v12613_v53  ;;  %vm3818_vm13 = vweird.f32 %v10515_v19 }
 0x652   : > { %v5554_v52 = vpop.eup %5553  ;;  %v10528_v21 = vadd.f32 1.0, %v5552_v55  ;;  %5559 = vrcp.f32 %v10521_v22  ;;  %v4972_v55 = vmul.f32 -1.442695, %v3950_v15  ;;  %v3837_v17 = vand.u32 2147483647, %v10521_v22 }
 0x653   : > { %v10533_v50 = vadd.f32 1.0, %v5554_v52  ;;  %5561 = vrcp.f32 %v10524_v13  ;;  %v5556_v48 = vpop.eup %5555  ;;  %v10568_v51 = vmul.f32 -1.442695, %v3955_v23  ;;  %v3839_v33 = vand.u32 2147483648, %v10521_v22 }
 0x654   : > { %5563 = vrcp.f32 %v10528_v21  ;;  %v10555_v28 = vadd.f32 1.0, %v5556_v48  ;;  %v3824_v48 = vand.u32 2147483648, %v10515_v19  ;;  %vm3833_vm14 = vweird.f32 %v10521_v22 }
 0x655   : > { %5565 = vrcp.f32 %v10533_v50  ;;  %vm10596_vm4 = vcmp.eq.f32.partialorder %v3837_v17, 8.507059e+37  ;;  %vm3848_vm11 = vweird.f32 %v10524_v13  ;;  %vm3863_vm9 = vweird.f32 %v10528_v21 }
 0x656   : > { %5567 = vpow2.f32 %v4970_v43  ;;  %v3825_v63 = vor.u32 1.1754944e-38, %v3824_v48  ;;  %vm3878_vm8 = vweird.f32 %v10533_v50  ;;  %v12633_v53 = vrot.slane %v10545_v54, 3 }
 0x657   : > { %v10551_v52 = vpop.eup %5557  ;;  %5569 = vpow2.f32 %v4971_v6  ;;  %v3822_v6 = vand.u32 2147483647, %v10515_v19 }
 0x658   : > { %v10553_v16 = vpop.eup %5559  ;;  %v3814_v59 = vmul.f32 %v10551_v52, %v10515_v19  ;;  %5571 = vrcp.f32 %v10541_v41  ;;  %vm3819_vm15 = vweird.f32 %v10551_v52 }
 0x659   : > { %v10562_v45 = vpop.eup %5561  ;;  %v3829_v43 = vmul.f32 %v10553_v16, %v10521_v22  ;;  %5573 = vpow2.f32 %v4972_v55  ;;  %vm10592_vm0 = vcmp.eq.f32.partialorder %v3822_v6, 8.507059e+37  ;;  %v3840_v6 = vor.u32 1.1754944e-38, %v3839_v33  ;;  %vm10618_vm12 = vmor %vm3818_vm13, %vm3819_vm15 }
 0x65a   : > { %v10570_v42 = vpop.eup %5563  ;;  %v3815_v9 = vsub.f32 1.0, %v3814_v59  ;;  %v3844_v35 = vmul.f32 %v10562_v45, %v10524_v13  ;;  %5575 = vrcp.f32 %v10555_v28  ;;  %vm3834_vm10 = vweird.f32 %v10553_v16 }
 0x65b   : > { %v10576_v27 = vpop.eup %5565  ;;  %v3830_v56 = vsub.f32 1.0, %v3829_v43  ;;  %v3859_v23 = vmul.f32 %v10570_v42, %v10528_v21  ;;  %5577 = vpow2.f32 %v4973_v62  ;;  %v3852_v62 = vand.u32 2147483647, %v10524_v13  ;;  %vm10638_vm3 = vmor %vm3833_vm14, %vm3834_vm10 }
 0x65c   : > { %v5568_v15 = vpop.eup %5567  ;;  %v3816_v59 = vmul.f32 %v10551_v52, %v3815_v9  ;;  %v3845_v43 = vsub.f32 1.0, %v3844_v35  ;;  %v3874_v40 = vmul.f32 %v10576_v27, %v10533_v50  ;;  %5579 = vpow2.f32 %v4974_v2 }
 0x65d   : > { %v5570_v18 = vpop.eup %5569  ;;  %v3831_v55 = vmul.f32 %v10553_v16, %v3830_v56  ;;  %v3860_v10 = vsub.f32 1.0, %v3859_v23  ;;  %v10601_v35 = vadd.f32 1.0, %v5568_v15  ;;  %v3854_v15 = vand.u32 2147483648, %v10524_v13 }
 0x65e   : > { %v10590_v36 = vpop.eup %5571  ;;  %v10604_v48 = vadd.f32 1.0, %v5570_v18  ;;  %v3817_v23 = vadd.f32 %v10551_v52, %v3816_v59  ;;  %v3846_v17 = vmul.f32 %v10562_v45, %v3845_v43  ;;  %v3875_v39 = vsub.f32 1.0, %v3874_v40 }
 0x65f   : > { %v5574_v46 = vpop.eup %5573  ;;  %v3832_v7 = vadd.f32 %v10553_v16, %v3831_v55  ;;  %v3861_v18 = vmul.f32 %v10570_v42, %v3860_v10  ;;  %v3867_v59 = vand.u32 2147483647, %v10528_v21  ;;  %5581 = vpow2.f32 %v4975_v57 }
 0x660   : > { %v10611_v56 = vpop.eup %5575  ;;  %vm10623_vm1 = vcmp.eq.f32.partialorder %v3852_v62, 8.507059e+37  ;;  %v10628_v55 = vadd.f32 1.0, %v5574_v46  ;;  %5583 = vrcp.f32 %v10604_v48  ;;  %v3821_v57 = vsel %vm10618_vm12, %v10551_v52, %v3817_v23 }
 0x661   : > { %v5578_v2 = vpop.eup %5577  ;;  %vm3849_vm7 = vweird.f32 %v10562_v45  ;;  %v3836_v46 = vsel %vm10638_vm3, %v10553_v16, %v3832_v7  ;;  %v3847_v19 = vadd.f32 %v10562_v45, %v3846_v17  ;;  %v3876_v43 = vmul.f32 %v10576_v27, %v3875_v39 }
 0x662   : > { %v3889_v52 = vmul.f32 %v10611_v56, %v10555_v28  ;;  %v3855_v62 = vor.u32 1.1754944e-38, %v3854_v15  ;;  %v3862_v22 = vadd.f32 %v10570_v42, %v3861_v18  ;;  %vm3864_vm5 = vweird.f32 %v10570_v42  ;;  %v5580_v39 = vpop.eup %5579  ;;  %vm10671_vm13 = vmor %vm3848_vm11, %vm3849_vm7 }
 0x663   : > { %vm10652_vm6 = vcmp.eq.f32.partialorder %v3867_v59, 8.507059e+37  ;;  %v10656_v33 = vadd.f32 1.0, %v5578_v2  ;;  %v3869_v7 = vand.u32 2147483648, %v10528_v21  ;;  %v3904_v16 = vmul.f32 %v10590_v36, %v10541_v41  ;;  %vm10682_vm14 = vmor %vm3863_vm9, %vm3864_vm5 }
 0x664   : > { %5585 = vrcp.f32 %v10628_v55  ;;  %v3826_v17 = vsel %vm10592_vm0, %v3825_v63, %v3821_v57  ;;  %v3841_v15 = vsel %vm10596_vm4, %v3840_v6, %v3836_v46  ;;  %v3890_v59 = vsub.f32 1.0, %v3889_v52 }
 0x665   : > { %v10675_v2 = vpop.eup %5581  ;;  %v3851_v10 = vsel %vm10671_vm13, %v10562_v45, %v3847_v19  ;;  %v3877_v63 = vadd.f32 %v10576_v27, %v3876_v43  ;;  %vm3879_vm0 = vweird.f32 %v10576_v27  ;;  %5587 = vrcp.f32 %v10601_v35  ;;  %v12631_v43 = vld [vmem:[#allocation20_spill] sm:$0xff] }
 0x666   : > { %v10689_v13 = vpop.eup %5583  ;;  %v3866_v9 = vsel %vm10682_vm14, %v10570_v42, %v3862_v22  ;;  %v3882_v45 = vand.u32 2147483647, %v10533_v50  ;;  %v3884_v21 = vand.u32 2147483648, %v10533_v50  ;;  %v3905_v6 = vsub.f32 1.0, %v3904_v16  ;;  %vm10714_vm4 = vmor %vm3878_vm8, %vm3879_vm0 }
 0x667   : > { %5589 = vrcp.f32 %v10656_v33  ;;  %v12630_v57 = vrot.slane %v10545_v54, 2  ;;  %v3870_v19 = vor.u32 1.1754944e-38, %v3869_v7  ;;  %v12632_v52 = vrot.slane %v10507_v1, 1 }
 0x668   : > { %v10706_v3 = vmul.f32 %v12633_v53, %v3841_v15  ;;  %v10710_v42 = vsel %vm10623_vm1, %v3855_v62, %v3851_v10  ;;  %v3891_v7 = vmul.f32 %v10611_v56, %v3890_v59  ;;  %v3897_v16 = vand.u32 2147483647, %v10555_v28 }
 0x669   : > { %v10699_v46 = vmul.f32 %v12630_v57, %v3826_v17  ;;  %v3956_v18 = vadd.f32 %v12632_v52, %v12631_v43  ;;  %v10722_v1 = vsel %vm10652_vm6, %v3870_v19, %v3866_v9  ;;  %v3881_v53 = vsel %vm10714_vm4, %v10576_v27, %v3877_v63 }
 0x66a   : > { %vm3893_vm15 = vweird.f32 %v10555_v28  ;;  %vm3894_vm10 = vweird.f32 %v10611_v56  ;;  %v10729_v50 = vpop.eup %5585  ;;  %vm10731_vm12 = vcmp.eq.f32.partialorder %v3882_v45, 8.507059e+37  ;;  %v3885_v62 = vor.u32 1.1754944e-38, %v3884_v21 }
 0x66b   : > { %v3906_v17 = vmul.f32 %v10590_v36, %v3905_v6  ;;  %v3990_v23 = vmul.f32 %v10689_v13, %v10604_v48  ;;  %v10738_v15 = vpop.eup %5587  ;;  %v3899_v27 = vand.u32 2147483648, %v10555_v28  ;;  %v3912_v59 = vand.u32 2147483647, %v10541_v41  ;;  %vm10768_vm3 = vmor %vm3893_vm15, %vm3894_vm10 }
 0x66c   : > { %5591 = vpow2.f32 %v10560_v0  ;;  %v4978_v10 = vmul.f32 -1.442695, %v3956_v18  ;;  %v3892_v63 = vadd.f32 %v10611_v56, %v3891_v7  ;;  %vm10744_vm11 = vcmp.eq.f32.partialorder %v3897_v16, 8.507059e+37 }
 0x66d   : > { %vm3908_vm1 = vweird.f32 %v10541_v41  ;;  %v3919_v45 = vmul.f32 %v10738_v15, %v10601_v35  ;;  %v10751_v21 = vpop.eup %5589  ;;  %v3914_v6 = vand.u32 2147483648, %v10541_v41  ;;  %5593 = vpow2.f32 %v10568_v51 }
 0x66e   : > { %v3991_v57 = vsub.f32 1.0, %v3990_v23  ;;  %v4005_v0 = vmul.f32 %v10729_v50, %v10628_v55  ;;  %v3907_v19 = vadd.f32 %v10590_v36, %v3906_v17  ;;  %vm3909_vm9 = vweird.f32 %v10590_v36 }
 0x66f   : > { %v3920_v52 = vsub.f32 1.0, %v3919_v45  ;;  %v3929_v18 = vand.u32 2147483648, %v10601_v35  ;;  %v10762_v22 = vsel %vm10731_vm12, %v3885_v62, %v3881_v53  ;;  %v3900_v7 = vor.u32 1.1754944e-38, %v3899_v27  ;;  %vm10784_vm5 = vmor %vm3908_vm1, %vm3909_vm9 }
 0x670   : > { %vm10772_vm7 = vcmp.eq.f32.partialorder %v3912_v59, 8.507059e+37  ;;  %5595 = vpow2.f32 %v4978_v10  ;;  %v3896_v40 = vsel %vm10768_vm3, %v10611_v56, %v3892_v63  ;;  %v3927_v53 = vand.u32 2147483647, %v10601_v35 }
 0x671   : > { %v10780_v62 = vadd.f32 1.0, %v5580_v39  ;;  %v4006_v17 = vsub.f32 1.0, %v4005_v0  ;;  %v3915_v27 = vor.u32 1.1754944e-38, %v3914_v6  ;;  %vm3923_vm6 = vweird.f32 %v10601_v35 }
 0x672   : > { %v5592_v28 = vpop.eup %5591  ;;  %v3992_v59 = vmul.f32 %v10689_v13, %v3991_v57  ;;  %v4020_v56 = vmul.f32 %v10751_v21, %v10656_v33  ;;  %v3911_v39 = vsel %vm10784_vm5, %v10590_v36, %v3907_v19  ;;  %v3921_v10 = vmul.f32 %v10738_v15, %v3920_v52 }
 0x673   : > { %v3930_v63 = vor.u32 1.1754944e-38, %v3929_v18  ;;  %v3998_v41 = vand.u32 2147483647, %v10604_v48  ;;  %v5594_v45 = vpop.eup %5593  ;;  %v10799_v6 = vsel %vm10744_vm11, %v3900_v7, %v3896_v40  ;;  %v10802_v0 = vadd.f32 1.0, %v10675_v2 }
 0x674   : > { %vm3994_vm8 = vweird.f32 %v10604_v48  ;;  %v4021_v57 = vsub.f32 1.0, %v4020_v56  ;;  %vm10805_vm13 = vcmp.eq.f32.partialorder %v3927_v53, 8.507059e+37  ;;  %v10809_v36 = vadd.f32 1.0, %v5592_v28 }
 0x675   : > { %vm3995_vm14 = vweird.f32 %v10689_v13  ;;  %v4007_v19 = vmul.f32 %v10729_v50, %v4006_v17  ;;  %5597 = vrcp.f32 %v10780_v62  ;;  %v10816_v2 = vsel %vm10772_vm7, %v3915_v27, %v3911_v39 }
 0x676   : > { %v5596_v9 = vpop.eup %5595  ;;  %vm3924_vm0 = vweird.f32 %v10738_v15  ;;  %v3993_v52 = vadd.f32 %v10689_v13, %v3992_v59  ;;  %v4022_v18 = vmul.f32 %v10751_v21, %v4021_v57  ;;  %v3922_v7 = vadd.f32 %v10738_v15, %v3921_v10  ;;  %vm10839_vm10 = vmor %vm3994_vm8, %vm3995_vm14 }
 0x677   : > { %v10822_v40 = vadd.f32 1.0, %v5594_v45  ;;  %vm10824_vm4 = vcmp.eq.f32.partialorder %v3998_v41, 8.507059e+37  ;;  %v4000_v17 = vand.u32 2147483648, %v10604_v48  ;;  %vm4009_vm15 = vweird.f32 %v10628_v55  ;;  %vm10850_vm11 = vmor %vm3923_vm6, %vm3924_vm0 }
 0x678   : > { %v4013_v16 = vand.u32 2147483647, %v10628_v55  ;;  %v4015_v28 = vand.u32 2147483648, %v10628_v55  ;;  %5599 = vrcp.f32 %v10802_v0  ;;  %v10833_v23 = vadd.f32 1.0, %v5596_v9 }
 0x679   : > { %v4008_v59 = vadd.f32 %v10729_v50, %v4007_v19  ;;  %vm4010_vm12 = vweird.f32 %v10729_v50  ;;  %5601 = vrcp.f32 %v10809_v36  ;;  %v3997_v48 = vsel %vm10839_vm10, %v10689_v13, %v3993_v52 }
 0x67a   : > { %v4023_v39 = vadd.f32 %v10751_v21, %v4022_v18  ;;  %vm4025_vm1 = vweird.f32 %v10751_v21  ;;  %v4028_v10 = vand.u32 2147483647, %v10656_v33  ;;  %v3926_v35 = vsel %vm10850_vm11, %v10738_v15, %v3922_v7  ;;  %vm10869_vm9 = vmor %vm4009_vm15, %vm4010_vm12 }
 0x67b   : > { %v10860_v41 = vpop.eup %5597  ;;  %v4001_v45 = vor.u32 1.1754944e-38, %v4000_v17  ;;  %v4030_v57 = vand.u32 2147483648, %v10656_v33  ;;  %5603 = vrcp.f32 %v10822_v40  ;;  %vm10873_vm3 = vcmp.eq.f32.partialorder %v4013_v16, 8.507059e+37 }
 0x67c   : > { %v4016_v9 = vor.u32 1.1754944e-38, %v4015_v28  ;;  %vm4024_vm7 = vweird.f32 %v10656_v33  ;;  %v4035_v15 = vmul.f32 %v10860_v41, %v10780_v62  ;;  %v4012_v55 = vsel %vm10869_vm9, %v10729_v50, %v4008_v59 }
 0x67d   : > { %v10882_v52 = vsel %vm10824_vm4, %v4001_v45, %v3997_v48  ;;  %vm10887_vm5 = vmor %vm4024_vm7, %vm4025_vm1  ;;  %v4045_v7 = vand.u32 2147483648, %v10780_v62  ;;  %5605 = vrcp.f32 %v10833_v23  ;;  %v10897_v17 = vsel %vm10805_vm13, %v3930_v63, %v3926_v35 }
 0x67e   : > { %v10893_v33 = vpop.eup %5599  ;;  %v4027_v53 = vsel %vm10887_vm5, %v10751_v21, %v4023_v39  ;;  %vm4029_vm6 = vcmp.eq.f32.partialorder %v4028_v10, 8.507059e+37  ;;  %v4060_v50 = vand.u32 2147483648, %v10802_v0  ;;  %v4031_v28 = vor.u32 1.1754944e-38, %v4030_v57 }
 0x67f   : > { %v10903_v16 = vpop.eup %5601  ;;  %v4036_v27 = vsub.f32 1.0, %v4035_v15  ;;  %v4050_v59 = vmul.f32 %v10893_v33, %v10802_v0  ;;  %v4075_v56 = vand.u32 2147483648, %v10809_v36  ;;  %v10910_v63 = vsel %vm10873_vm3, %v4016_v9, %v4012_v55 }
 0x680   : > { %v4043_v51 = vand.u32 2147483647, %v10780_v62  ;;  %v4058_v21 = vand.u32 2147483647, %v10802_v0  ;;  %v4065_v48 = vmul.f32 %v10903_v16, %v10809_v36  ;;  %v10918_v10 = vsel %vm4029_vm6, %v4031_v28, %v4027_v53 }
 0x681   : > { %v10916_v39 = vpop.eup %5603  ;;  %vm4039_vm8 = vweird.f32 %v10780_v62  ;;  %v10921_v35 = vor.u32 1.1754944e-38, %v4045_v7  ;;  %v4051_v45 = vsub.f32 1.0, %v4050_v59  ;;  %v4073_v57 = vand.u32 2147483647, %v10809_v36 }
 0x682   : > { %vm4040_vm13 = vweird.f32 %v10860_v41  ;;  %vm4054_vm14 = vweird.f32 %v10802_v0  ;;  %v10926_v13 = vor.u32 1.1754944e-38, %v4060_v50  ;;  %v4066_v19 = vsub.f32 1.0, %v4065_v48 }
 0x683   : > { %v4080_v9 = vmul.f32 %v10916_v39, %v10822_v40  ;;  %v10930_v15 = vpop.eup %5605  ;;  %v4037_v55 = vmul.f32 %v10860_v41, %v4036_v27  ;;  %vm4069_vm0 = vweird.f32 %v10809_v36  ;;  %v10934_v18 = vor.u32 1.1754944e-38, %v4075_v56  ;;  %vm10983_vm7 = vmor %vm4039_vm8, %vm4040_vm13 }
 0x684   : > { %v4088_v7 = vand.u32 2147483647, %v10822_v40  ;;  %v4090_v53 = vand.u32 2147483648, %v10822_v40  ;;  %vm4084_vm4 = vweird.f32 %v10822_v40  ;;  %v4095_v50 = vmul.f32 %v10930_v15, %v10833_v23 }
 0x685   : > { %v4081_v28 = vsub.f32 1.0, %v4080_v9  ;;  %v4103_v59 = vand.u32 2147483647, %v10833_v23  ;;  %v4105_v48 = vand.u32 2147483648, %v10833_v23  ;;  %v4052_v27 = vmul.f32 %v10893_v33, %v4051_v45 }
 0x686   : > { %vm4055_vm15 = vweird.f32 %v10893_v33  ;;  %vm4099_vm10 = vweird.f32 %v10833_v23  ;;  %v4113_v56 = vrot.slane %v10545_v54, 5  ;;  %v4114_v43 = vrot.slane %v10545_v54, 6 }
 0x687   : > { %v4067_v9 = vmul.f32 %v10903_v16, %v4066_v19  ;;  %v4082_v30 = vmul.f32 %v10916_v39, %v4081_v28  ;;  %v4096_v32 = vsub.f32 1.0, %v4095_v50  ;;  %v4127_v37 = vmul.f32 %v12660_v26, %v10710_v42  ;;  %vm10996_vm5 = vmor %vm4054_vm14, %vm4055_vm15 }
 0x688   : > { %v4038_v60 = vadd.f32 %v10860_v41, %v4037_v55  ;;  %vm10954_vm12 = vcmp.eq.f32.partialorder %v4043_v51, 8.507059e+37  ;;  %vm10958_vm11 = vcmp.eq.f32.partialorder %v4058_v21, 8.507059e+37  ;;  %vm4070_vm1 = vweird.f32 %v10903_v16 }
 0x689   : > { %v4115_v19 = vrot.slane %v10545_v54, 7  ;;  %v4128_v28 = vmul.f32 %v4113_v56, %v10722_v1  ;;  %vm10965_vm9 = vcmp.eq.f32.partialorder %v4073_v57, 8.507059e+37  ;;  %vm4085_vm3 = vweird.f32 %v10916_v39  ;;  %vm11008_vm8 = vmor %vm4069_vm0, %vm4070_vm1 }
 0x68a   : > { %v4097_v26 = vmul.f32 %v10930_v15, %v4096_v32  ;;  %v4116_v42 = vrot.slane %v10545_v54, 1  ;;  %v4129_v51 = vmul.f32 %v4114_v43, %v10762_v22  ;;  %v4053_v21 = vadd.f32 %v10893_v33, %v4052_v27  ;;  %vm11027_vm14 = vmor %vm4084_vm4, %vm4085_vm3 }
 0x68b   : > { %v4130_v55 = vmul.f32 %v4115_v19, %v10799_v6  ;;  %v4133_v38 = vadd.f32 %v10699_v46, %v6459_v24  ;;  %v4134_v1 = vadd.f32 %v10706_v3, %v6472_v11  ;;  %v4068_v43 = vadd.f32 %v10903_v16, %v4067_v9 }
 0x68c   : > { %v4083_v22 = vadd.f32 %v10916_v39, %v4082_v30  ;;  %v4131_v6 = vmul.f32 %v10816_v2, %v10545_v54  ;;  %v4135_v46 = vadd.f32 %v4127_v37, %v6491_v34  ;;  %v4098_v62 = vadd.f32 %v10930_v15, %v4097_v26 }
 0x68d   : > { %vm4100_vm6 = vweird.f32 %v10930_v15  ;;  %v4132_v57 = vmul.f32 %v4116_v42, %v10897_v17  ;;  %v4136_v30 = vadd.f32 %v4128_v28, %v6504_v44  ;;  %vm11012_vm13 = vcmp.eq.f32.partialorder %v4088_v7, 8.507059e+37 }
 0x68e   : > { %v4091_v0 = vor.u32 1.1754944e-38, %v4090_v53  ;;  %v4137_v2 = vadd.f32 %v4129_v51, %v6535_v8  ;;  %5607 = vtanh.f32 %v4133_v38  ;;  %v4042_v17 = vsel %vm10983_vm7, %v10860_v41, %v4038_v60  ;;  %vm11042_vm0 = vmor %vm4099_vm10, %vm4100_vm6 }
 0x68f   : > { %v4057_v36 = vsel %vm10996_vm5, %v10893_v33, %v4053_v21  ;;  %v4138_v53 = vadd.f32 %v4130_v55, %v6648_v5  ;;  %5609 = vtanh.f32 %v4134_v1  ;;  %v4072_v38 = vsel %vm11008_vm8, %v10903_v16, %v4068_v43 }
 0x690   : > { %v4087_v60 = vsel %vm11027_vm14, %v10916_v39, %v4083_v22  ;;  %v4139_v41 = vadd.f32 %v4131_v6, %v6677_v12  ;;  %5611 = vtanh.f32 %v4135_v46  ;;  %v4102_v33 = vsel %vm11042_vm0, %v10930_v15, %v4098_v62 }
 0x691   : > { %vm4104_vm4 = vcmp.eq.f32.partialorder %v4103_v59, 8.507059e+37  ;;  %v4140_v16 = vadd.f32 %v4132_v57, %v6757_v14  ;;  %5613 = vtanh.f32 %v4136_v30  ;;  %v4047_v39 = vsel %vm10954_vm12, %v10921_v35, %v4042_v17 }
 0x692   : > { %v4062_v23 = vsel %vm10958_vm11, %v10926_v13, %v4057_v36  ;;  %v4106_v27 = vor.u32 1.1754944e-38, %v4105_v48  ;;  %5615 = vtanh.f32 %v4137_v2  ;;  %v4077_v56 = vsel %vm10965_vm9, %v10934_v18, %v4072_v38 }
 0x693   : > { %v4092_v15 = vsel %vm11012_vm13, %v4091_v0, %v4087_v60  ;;  %5617 = vtanh.f32 %v4138_v53  ;;  %v4149_v59 = vsub.f32 1.0, %v10882_v52  ;;  %v4150_v35 = vsub.f32 1.0, %v10910_v63 }
 0x694   : > { %v5608_v9 = vpop.eup %5607  ;;  %v4107_v19 = vsel %vm4104_vm4, %v4106_v27, %v4102_v33  ;;  %5619 = vtanh.f32 %v4139_v41  ;;  %v4151_v31 = vsub.f32 1.0, %v10918_v10  ;;  %v4152_v48 = vsub.f32 1.0, %v4047_v39 }
 0x695   : > { %v5610_v13 = vpop.eup %5609  ;;  %5621 = vtanh.f32 %v4140_v16  ;;  %v4157_v45 = vmul.f32 %v5608_v9, %v4149_v59  ;;  %v12679_v18 = vrot.slane %v10455_v4, 7  ;;  %v4153_v26 = vsub.f32 1.0, %v4062_v23 }
 0x696   : > { %v5612_v50 = vpop.eup %5611  ;;  %v4154_v42 = vsub.f32 1.0, %v4077_v56  ;;  %v4158_v51 = vmul.f32 %v5610_v13, %v4150_v35  ;;  %v12680_v21 = vrot.slane %v10459_v29, 7  ;;  %v4155_v32 = vsub.f32 1.0, %v4092_v15 }
 0x697   : > { %v4180_v28 = vmul.f32 %v12679_v18, %v10882_v52  ;;  %v5614_v1 = vpop.eup %5613  ;;  %v4159_v43 = vmul.f32 %v5612_v50, %v4151_v31  ;;  %v12681_v22 = vrot.slane %v10463_v25, 7  ;;  %v4156_v4 = vsub.f32 1.0, %v4107_v19  ;;  %v12698_v18 = vld [vmem:[#allocation25_spill] sm:$0xff] }
 0x698   : > { %v4181_v55 = vmul.f32 %v12680_v21, %v10910_v63  ;;  %v5616_v3 = vpop.eup %5615  ;;  %v4160_v52 = vmul.f32 %v5614_v1, %v4152_v48  ;;  %v12682_v62 = vrot.slane %v10468_v61, 7  ;;  %v12683_v63 = vrot.slane %v10473_v58, 7  ;;  %v12699_v21 = vld [vmem:[#allocation19_spill] sm:$0xff]  ;;  %v12700_v1 = vld [vmem:[#allocation21_spill] sm:$0xff] }
 0x699   : > { %v4182_v6 = vmul.f32 %v12681_v22, %v10918_v10  ;;  %v11074_v46 = vadd.f32 %v4180_v28, %v4157_v45  ;;  %v5618_v37 = vpop.eup %5617  ;;  %v4161_v29 = vmul.f32 %v5616_v3, %v4153_v26  ;;  %v12684_v17 = vrot.slane %v10484_v47, 7  ;;  %v12702_v3 = vld [vmem:[#allocation23_spill] sm:$0xff] }
 0x69a   : > { %v4183_v57 = vmul.f32 %v12682_v62, %v4047_v39  ;;  %v11078_v30 = vadd.f32 %v4181_v55, %v4158_v51  ;;  %v4184_v54 = vmul.f32 %v12683_v63, %v4062_v23  ;;  %v5620_v10 = vpop.eup %5619  ;;  %v4162_v2 = vmul.f32 %v5618_v37, %v4154_v42  ;;  %v12703_v37 = vld [vmem:[#allocation26_spill] sm:$0xff] }
 0x69b   : > { %v11082_v0 = vadd.f32 %v4182_v6, %v4159_v43  ;;  %v4204_v25 = vrot.slane %v11074_v46, 6  ;;  %v4185_v36 = vmul.f32 %v12684_v17, %v4077_v56  ;;  %v5622_v53 = vpop.eup %5621  ;;  %v4163_v38 = vmul.f32 %v5620_v10, %v4155_v32  ;;  %v12701_v43 = vld [vmem:[#allocation22_spill] sm:$0xff] }
 0x69c   : > { %v11087_v7 = vadd.f32 %v4183_v57, %v4160_v52  ;;  %v4205_v61 = vrot.slane %v11078_v30, 5  ;;  %v12686_v60 = vrot.slane %v10486_v20, 7  ;;  %v11092_v58 = vadd.f32 %v4184_v54, %v4161_v29 }
 0x69d   : > { %v4207_v41 = vrot.slane %v11082_v0, 4  ;;  %v4164_v33 = vmul.f32 %v5622_v53, %v4156_v4  ;;  %v11095_v16 = vadd.f32 %v4185_v36, %v4162_v2  ;;  %v12689_v23 = vrot.slane %v10480_v49, 7  ;;  %v12704_v2 = vld [vmem:[#allocation27_spill] sm:$0xff] }
 0x69e   : > { %12685 = vst [vmem:[#allocation30_spill] sm:$0xff] %v11087_v7  ;;  %v4187_v40 = vmul.f32 %v12686_v60, %v4107_v19  ;;  %v4206_v39 = vsel %vm11858_vm2, %v4205_v61, %v4204_v25  ;;  %v4209_v47 = vrot.slane %v11087_v7, 3  ;;  %vm12690_vm15 = vcmask 1042434   ;;  %v12705_v61 = vld [vmem:[#allocation20_spill] sm:$0xff] }
 0x69f   : > { %12687 = vst [vmem:[#allocation31_spill] sm:$0xff] %v11092_v58  ;;  %v4186_v27 = vmul.f32 %v4092_v15, %v12689_v23  ;;  %v4208_v56 = vsel %vm12690_vm15, %v4207_v41, %v4206_v39  ;;  %v4211_v59 = vrot.slane %v11092_v58, 2  ;;  %vm12692_vm10 = vcmask 1043459   ;;  %v12706_v39 = vld [vmem:[#allocation28_spill] sm:$0xff] }
 0x6a0   : > { %12688 = vst [vmem:[#allocation32_spill] sm:$0xff] %v11095_v16  ;;  %v11103_v20 = vadd.f32 %v4187_v40, %v4164_v33  ;;  %v4210_v9 = vsel %vm12692_vm10, %v4209_v47, %v4208_v56  ;;  %v4213_v19 = vrot.slane %v11095_v16, 1  ;;  %vm12694_vm12 = vcmask 1044484  }
 0x6a1   : > { %v11107_v35 = vadd.f32 %v4186_v27, %v4163_v38  ;;  %v4212_v31 = vsel %vm12694_vm12, %v4211_v59, %v4210_v9  ;;  %vm12695_vm11 = vcmask 1045509   ;;  %vm12696_vm1 = vcmask 1046534  }
 0x6a2   : > { %12691 = vst [vmem:[#allocation33_spill] sm:$0xff] %v11103_v20  ;;  %v4214_v13 = vsel %vm12695_vm11, %v4213_v19, %v4212_v31  ;;  %v11852_v48 = vrot.slane %v11103_v20, 7  ;;  %vm12697_vm9 = vcmask 1047559  }
 0x6a3   : > { %12693 = vst [vmem:[#allocation34_spill] sm:$0xff] %v11107_v35  ;;  %v4215_v49 = vsel %vm12696_vm1, %v11107_v35, %v4214_v13 }
 0x6a4   : > { %v4217_v15 = vsel %vm12697_vm9, %v11852_v48, %v4215_v49  ;;  %v12707_v49 = vld [vmem:[#allocation24_spill] sm:$0xff] }
 0x6a5   : > { %4235 = vmatmul.f32.vlgmr.msra.gmra.mxu3 %v4217_v15  ;;  %4255 = vmatmul.f32.vlgmr.msra.gmra.mxu0 %v4217_v15  ;;  %v12713_v48 = vld [vmem:[#allocation16_spill] sm:$0xff] }
 0x6a6   : > { %4275 = vmatmul.f32.vlgmr.msra.gmra.mxu1 %v4217_v15 }
 0x722   : > { %v4256_v45 = vpop.f32.mrf.mxu0 }
 0x723   : > { %v4257_v28 = vadd.f32 %v4256_v45, %v12698_v18  ;;  %v4276_v59 = vpop.f32.mrf.mxu1  ;;  %v12708_v45 = vld [vmem:[#allocation10_spill] sm:$0xff] }
 0x724   : > { %v11137_v15 = vadd.f32 %v4276_v59, %v12707_v49  ;;  %v12710_v59 = vld [vmem:[#allocation13_spill] sm:$0xff]  ;;  %v12712_v49 = vld [vmem:[#allocation11_spill] sm:$0xff] }
 0x725   : > { %v4456_v50 = vrot.slane %v4257_v28, 1  ;;  %v4457_v26 = vrot.slane %v4257_v28, 2  ;;  %v4458_v42 = vrot.slane %v4257_v28, 3  ;;  %v4459_v51 = vrot.slane %v4257_v28, 4 }
 0x726   : > { %v4460_v6 = vrot.slane %v4257_v28, 5  ;;  %v4461_v54 = vrot.slane %v4257_v28, 6  ;;  %v4462_v36 = vrot.slane %v4257_v28, 7  ;;  %v4478_v53 = vadd.f32 %v4257_v28, %v12705_v61 }
 0x727   : > { %v4471_v55 = vadd.f32 %v4456_v50, %v12699_v21  ;;  %v4472_v32 = vadd.f32 %v4457_v26, %v12700_v1  ;;  %v4473_v22 = vadd.f32 %v4458_v42, %v12701_v43  ;;  %v4474_v4 = vadd.f32 %v4459_v51, %v12702_v3 }
 0x728   : > { %v4475_v29 = vadd.f32 %v4460_v6, %v12703_v37  ;;  %v4476_v17 = vadd.f32 %v4461_v54, %v12704_v2  ;;  %v4477_v47 = vadd.f32 %v4462_v36, %v12706_v39  ;;  %v4994_v23 = vmul.f32 -1.442695, %v4478_v53  ;;  %v4236_v9 = vpop.f32.mrf.mxu3 }
 0x729   : > { %v4987_v52 = vmul.f32 -1.442695, %v4471_v55  ;;  %v4988_v62 = vmul.f32 -1.442695, %v4472_v32  ;;  %v4989_v57 = vmul.f32 -1.442695, %v4473_v22  ;;  %v4237_v18 = vadd.f32 %v4236_v9, %v12708_v45 }
 0x72a   : > { %v4990_v63 = vmul.f32 -1.442695, %v4474_v4  ;;  %v4991_v25 = vmul.f32 -1.442695, %v4475_v29  ;;  %v4992_v41 = vmul.f32 -1.442695, %v4476_v17 }
 0x72b   : > { %5623 = vpow2.f32 %v4987_v52  ;;  %v4993_v13 = vmul.f32 -1.442695, %v4477_v47  ;;  %v4280_v3 = vrot.slane %v4237_v18, 1  ;;  %v4283_v37 = vrot.slane %v4237_v18, 4 }
 0x72c   : > { %5625 = vpow2.f32 %v4988_v62  ;;  %v4281_v62 = vrot.slane %v4237_v18, 2  ;;  %v4284_v54 = vrot.slane %v4237_v18, 5  ;;  %v4286_v61 = vrot.slane %v4237_v18, 7 }
 0x72d   : > { %5627 = vpow2.f32 %v4989_v57  ;;  %v4282_v57 = vrot.slane %v4237_v18, 3  ;;  %v11181_v45 = vadd.f32 %v4283_v37, %v12712_v49 }
 0x72e   : > { %5629 = vpow2.f32 %v4990_v63  ;;  %v4296_v9 = vadd.f32 %v4281_v62, %v12710_v59  ;;  %v11186_v43 = vadd.f32 %v4284_v54, %v12713_v48  ;;  %v12716_v54 = vld [vmem:[#allocation15_spill] sm:$0xff] }
 0x72f   : > { %5631 = vpow2.f32 %v4991_v25  ;;  %v4285_v25 = vrot.slane %v4237_v18, 6  ;;  %v4982_v20 = vmul.f32 -1.442695, %v11181_v45 }
 0x730   : > { %v4980_v6 = vmul.f32 -1.442695, %v4296_v9  ;;  %v4983_v9 = vmul.f32 -1.442695, %v11186_v43 }
 0x731   : > { %v5624_v10 = vpop.eup %5623 }
 0x732   : > { %v5626_v38 = vpop.eup %5625  ;;  %v11125_v60 = vadd.f32 1.0, %v5624_v10 }
 0x733   : > { %v5628_v40 = vpop.eup %5627  ;;  %v11128_v27 = vadd.f32 1.0, %v5626_v38 }
 0x734   : > { %v5630_v33 = vpop.eup %5629  ;;  %v11130_v56 = vadd.f32 1.0, %v5628_v40  ;;  %5633 = vrcp.f32 %v11125_v60  ;;  %v4522_v1 = vand.u32 2147483648, %v11125_v60  ;;  %vm4516_vm3 = vweird.f32 %v11125_v60 }
 0x735   : > { %5635 = vpow2.f32 %v4992_v41  ;;  %v11133_v19 = vadd.f32 1.0, %v5630_v33  ;;  %v5632_v31 = vpop.eup %5631  ;;  %v12709_v33 = vld [vmem:[#allocation12_spill] sm:$0xff]  ;;  %v4537_v48 = vand.u32 2147483648, %v11128_v27  ;;  %v4535_v26 = vand.u32 2147483647, %v11128_v27 }
 0x736   : > { %5637 = vpow2.f32 %v4994_v23  ;;  %v11144_v42 = vadd.f32 1.0, %v5632_v31  ;;  %v4295_v39 = vadd.f32 %v4280_v3, %v12709_v33  ;;  %v12711_v31 = vld [vmem:[#allocation14_spill] sm:$0xff]  ;;  %v12714_v3 = vld [vmem:[#allocation17_spill] sm:$0xff]  ;;  %v4523_v21 = vor.u32 1.1754944e-38, %v4522_v1 }
 0x737   : > { %5639 = vrcp.f32 %v11128_v27  ;;  %v11189_v33 = vadd.f32 %v4285_v25, %v12714_v3  ;;  %v11205_v25 = vadd.f32 %v4237_v18, %v12716_v54  ;;  %v4552_v3 = vand.u32 2147483648, %v11130_v56 }
 0x738   : > { %5641 = vrcp.f32 %v11130_v56  ;;  %vm4531_vm7 = vweird.f32 %v11128_v27  ;;  %v4550_v54 = vand.u32 2147483647, %v11130_v56  ;;  %vm4546_vm8 = vweird.f32 %v11130_v56 }
 0x739   : > { %5643 = vrcp.f32 %v11133_v19  ;;  %v4565_v28 = vand.u32 2147483647, %v11133_v19  ;;  %vm4561_vm14 = vweird.f32 %v11133_v19  ;;  %v4580_v36 = vand.u32 2147483647, %v11144_v42 }
 0x73a   : > { %v11147_v51 = vpop.eup %5633  ;;  %5645 = vpow2.f32 %v4993_v13  ;;  %v11178_v13 = vadd.f32 %v4282_v57, %v12711_v31  ;;  %v12715_v57 = vld [vmem:[#allocation18_spill] sm:$0xff]  ;;  %v4520_v31 = vand.u32 2147483647, %v11125_v60  ;;  %vm11245_vm4 = vcmp.eq.f32.partialorder %v4535_v26, 8.507059e+37 }
 0x73b   : > { %v5636_v32 = vpop.eup %5635  ;;  %v4512_v63 = vmul.f32 %v11147_v51, %v11125_v60  ;;  %5647 = vrcp.f32 %v11144_v42  ;;  %v11196_v37 = vadd.f32 %v4286_v61, %v12715_v57  ;;  %v4567_v57 = vand.u32 2147483648, %v11133_v19 }
 0x73c   : > { %v5638_v4 = vpop.eup %5637  ;;  %v11163_v2 = vadd.f32 1.0, %v5636_v32  ;;  %vm4517_vm5 = vweird.f32 %v11147_v51  ;;  %vm11225_vm6 = vcmp.eq.f32.partialorder %v4520_v31, 8.507059e+37  ;;  %vm11264_vm10 = vcmp.eq.f32.partialorder %v4550_v54, 8.507059e+37 }
 0x73d   : > { %v11156_v29 = vpop.eup %5639  ;;  %v11169_v38 = vadd.f32 1.0, %v5638_v4  ;;  %v4513_v32 = vsub.f32 1.0, %v4512_v63  ;;  %v11240_v31 = vor.u32 1.1754944e-38, %v4567_v57  ;;  %vm11259_vm15 = vmor %vm4516_vm3, %vm4517_vm5  ;;  %vm4576_vm11 = vweird.f32 %v11144_v42 }
 0x73e   : > { %v11161_v10 = vpop.eup %5641  ;;  %v4527_v23 = vmul.f32 %v11156_v29, %v11128_v27  ;;  %5649 = vrcp.f32 %v11163_v2  ;;  %vm4532_vm13 = vweird.f32 %v11156_v29  ;;  %v4597_v57 = vand.u32 2147483648, %v11163_v2 }
 0x73f   : > { %v11167_v53 = vpop.eup %5643  ;;  %v4542_v4 = vmul.f32 %v11161_v10, %v11130_v56  ;;  %5651 = vrcp.f32 %v11169_v38  ;;  %v4514_v61 = vmul.f32 %v11147_v51, %v4513_v32  ;;  %v4582_v32 = vand.u32 2147483648, %v11144_v42  ;;  %vm11292_vm9 = vmor %vm4531_vm7, %vm4532_vm13 }
 0x740   : > { %v5646_v47 = vpop.eup %5645  ;;  %v4557_v62 = vmul.f32 %v11167_v53, %v11133_v19  ;;  %v4528_v49 = vsub.f32 1.0, %v4527_v23  ;;  %v11217_v23 = vor.u32 1.1754944e-38, %v4537_v48  ;;  %v11231_v48 = vor.u32 1.1754944e-38, %v4552_v3 }
 0x741   : > { %v11198_v63 = vpop.eup %5647  ;;  %v11200_v59 = vadd.f32 1.0, %v5646_v47  ;;  %v4543_v47 = vsub.f32 1.0, %v4542_v4  ;;  %v4515_v41 = vadd.f32 %v11147_v51, %v4514_v61  ;;  %vm4547_vm0 = vweird.f32 %v11161_v10 }
 0x742   : > { %v4558_v50 = vsub.f32 1.0, %v4557_v62  ;;  %v4572_v18 = vmul.f32 %v11198_v63, %v11144_v42  ;;  %v4529_v62 = vmul.f32 %v11156_v29, %v4528_v49  ;;  %v11249_v61 = vor.u32 1.1754944e-38, %v4582_v32  ;;  %vm11316_vm7 = vmor %vm4546_vm8, %vm4547_vm0 }
 0x743   : > { %5653 = vrcp.f32 %v11200_v59  ;;  %v4544_v40 = vmul.f32 %v11161_v10, %v4543_v47  ;;  %vm4562_vm12 = vweird.f32 %v11167_v53  ;;  %v4979_v32 = vmul.f32 -1.442695, %v4295_v39 }
 0x744   : > { %v11222_v4 = vpop.eup %5649  ;;  %v4559_v49 = vmul.f32 %v11167_v53, %v4558_v50  ;;  %v4573_v3 = vsub.f32 1.0, %v4572_v18  ;;  %v4530_v26 = vadd.f32 %v11156_v29, %v4529_v62  ;;  %v4519_v60 = vsel %vm11259_vm15, %v11147_v51, %v4515_v41 }
 0x745   : > { %v11234_v55 = vpop.eup %5651  ;;  %v4587_v47 = vmul.f32 %v11222_v4, %v11163_v2  ;;  %v4545_v52 = vadd.f32 %v11161_v10, %v4544_v40  ;;  %vm11276_vm1 = vcmp.eq.f32.partialorder %v4565_v28, 8.507059e+37  ;;  %v4981_v54 = vmul.f32 -1.442695, %v11178_v13 }
 0x746   : > { %v4560_v35 = vadd.f32 %v11167_v53, %v4559_v49  ;;  %v4574_v39 = vmul.f32 %v11198_v63, %v4573_v3  ;;  %5655 = vpow2.f32 %v4979_v32  ;;  %v4617_v51 = vmul.f32 %v11234_v55, %v11169_v38 }
 0x747   : > { %v4588_v16 = vsub.f32 1.0, %v4587_v47  ;;  %5657 = vpow2.f32 %v4980_v6  ;;  %v4984_v28 = vmul.f32 -1.442695, %v11189_v33  ;;  %vm4577_vm3 = vweird.f32 %v11198_v63 }
 0x748   : > { %vm11297_vm5 = vcmp.eq.f32.partialorder %v4580_v36, 8.507059e+37  ;;  %v11301_v43 = vor.u32 1.1754944e-38, %v4597_v57  ;;  %5659 = vpow2.f32 %v4981_v54  ;;  %v11307_v13 = vsel %vm11225_vm6, %v4523_v21, %v4519_v60  ;;  %vm11329_vm6 = vmor %vm4561_vm14, %vm4562_vm12 }
 0x749   : > { %v11270_v22 = vpop.eup %5653  ;;  %v4534_v27 = vsel %vm11292_vm9, %v11156_v29, %v4530_v26  ;;  %vm4591_vm13 = vweird.f32 %v11163_v2  ;;  %5661 = vpow2.f32 %v4982_v20  ;;  %v4985_v45 = vmul.f32 -1.442695, %v11196_v37  ;;  %vm11355_vm14 = vmor %vm4576_vm11, %vm4577_vm3 }
 0x74a   : > { %v4602_v6 = vmul.f32 %v11270_v22, %v11200_v59  ;;  %v4549_v21 = vsel %vm11316_vm7, %v11161_v10, %v4545_v52  ;;  %v4575_v56 = vadd.f32 %v11198_v63, %v4574_v39  ;;  %5663 = vpow2.f32 %v4983_v9 }
 0x74b   : > { %v4986_v33 = vmul.f32 -1.442695, %v11205_v25  ;;  %v4564_v20 = vsel %vm11329_vm6, %v11167_v53, %v4560_v35  ;;  %v4589_v37 = vmul.f32 %v11222_v4, %v4588_v16  ;;  %v4618_v52 = vsub.f32 1.0, %v4617_v51 }
 0x74c   : > { %5665 = vpow2.f32 %v4984_v28  ;;  %v5656_v10 = vpop.eup %5655  ;;  %v11342_v19 = vsel %vm11245_vm4, %v11217_v23, %v4534_v27  ;;  %vm4592_vm8 = vweird.f32 %v11222_v4  ;;  %v4603_v1 = vsub.f32 1.0, %v4602_v6 }
 0x74d   : > { %v5658_v25 = vpop.eup %5657  ;;  %v11349_v35 = vsel %vm11264_vm10, %v11231_v48, %v4549_v21  ;;  %v4612_v17 = vand.u32 2147483648, %v11200_v59  ;;  %5667 = vpow2.f32 %v4985_v45  ;;  %v11360_v53 = vadd.f32 1.0, %v5656_v10  ;;  %vm11398_vm0 = vmor %vm4591_vm13, %vm4592_vm8 }
 0x74e   : > { %v5660_v23 = vpop.eup %5659  ;;  %v11365_v3 = vsel %vm11276_vm1, %v11240_v31, %v4564_v20  ;;  %v4579_v48 = vsel %vm11355_vm14, %v11198_v63, %v4575_v56  ;;  %5669 = vpow2.f32 %v4986_v33  ;;  %v11370_v42 = vadd.f32 1.0, %v5658_v25 }
 0x74f   : > { %v5662_v47 = vpop.eup %5661  ;;  %v11373_v57 = vadd.f32 %v11222_v4, %v4589_v37  ;;  %v4619_v50 = vmul.f32 %v11234_v55, %v4618_v52  ;;  %v11376_v26 = vadd.f32 1.0, %v5660_v23  ;;  %5671 = vrcp.f32 %v11360_v53 }
 0x750   : > { %v5664_v18 = vpop.eup %5663  ;;  %v4604_v31 = vmul.f32 %v11270_v22, %v4603_v1  ;;  %v4627_v32 = vand.u32 2147483648, %v11169_v38  ;;  %v11381_v60 = vadd.f32 1.0, %v5662_v47  ;;  %5673 = vrcp.f32 %v11370_v42 }
 0x751   : > { %v11387_v62 = vsel %vm11297_vm5, %v11249_v61, %v4579_v48  ;;  %v11389_v54 = vor.u32 1.1754944e-38, %v4612_v17  ;;  %v11392_v9 = vadd.f32 1.0, %v5664_v18  ;;  %v4346_v61 = vand.u32 2147483648, %v11360_v53 }
 0x752   : > { %v5666_v63 = vpop.eup %5665  ;;  %5675 = vrcp.f32 %v11376_v26  ;;  %v11411_v27 = vadd.f32 %v11234_v55, %v4619_v50  ;;  %v4361_v45 = vand.u32 2147483648, %v11370_v42  ;;  %v11416_v29 = vadd.f32 %v11270_v22, %v4604_v31 }
 0x753   : > { %v5668_v41 = vpop.eup %5667  ;;  %v11418_v56 = vor.u32 1.1754944e-38, %v4627_v32  ;;  %v11420_v33 = vadd.f32 1.0, %v5666_v63  ;;  %5677 = vrcp.f32 %v11381_v60  ;;  %vm4340_vm4 = vweird.f32 %v11360_v53 }
 0x754   : > { %v5670_v21 = vpop.eup %5669  ;;  %v4344_v37 = vand.u32 2147483647, %v11360_v53  ;;  %v4376_v52 = vand.u32 2147483648, %v11376_v26  ;;  %5679 = vrcp.f32 %v11392_v9  ;;  %v11431_v1 = vadd.f32 1.0, %v5668_v41 }
 0x755   : > { %12739 = vst [vmem:[#allocation35_spill] sm:$0xff] %v11418_v56  ;;  %v11423_v20 = vpop.eup %5671  ;;  %v4347_v16 = vor.u32 1.1754944e-38, %v4346_v61  ;;  %vm4355_vm15 = vweird.f32 %v11370_v42  ;;  %v4359_v17 = vand.u32 2147483647, %v11370_v42  ;;  %v4362_v48 = vor.u32 1.1754944e-38, %v4361_v45 }
 0x756   : > { %v11429_v10 = vpop.eup %5673  ;;  %v4336_v25 = vmul.f32 %v11423_v20, %v11360_v53  ;;  %vm4370_vm10 = vweird.f32 %v11376_v26  ;;  %v4374_v47 = vand.u32 2147483647, %v11376_v26  ;;  %v4389_v50 = vand.u32 2147483647, %v11381_v60 }
 0x757   : > { %v4351_v23 = vmul.f32 %v11429_v10, %v11370_v42  ;;  %v11444_v31 = vadd.f32 1.0, %v5670_v21  ;;  %v4391_v63 = vand.u32 2147483648, %v11381_v60  ;;  %5681 = vrcp.f32 %v11420_v33 }
 0x758   : > { %v11442_v18 = vpop.eup %5675  ;;  %v4337_v32 = vsub.f32 1.0, %v4336_v25  ;;  %vm4341_vm12 = vweird.f32 %v11423_v20  ;;  %vm11449_vm11 = vcmp.eq.f32.partialorder %v4344_v37, 8.507059e+37  ;;  %v4377_v36 = vor.u32 1.1754944e-38, %v4376_v52 }
 0x759   : > { %v4352_v41 = vsub.f32 1.0, %v4351_v23  ;;  %v4366_v45 = vmul.f32 %v11442_v18, %v11376_v26  ;;  %vm4385_vm1 = vweird.f32 %v11381_v60  ;;  %v5678_v21 = vpop.eup %5677  ;;  %vm4356_vm9 = vweird.f32 %v11429_v10  ;;  %vm11484_vm8 = vmor %vm4340_vm4, %vm4341_vm12 }
 0x75a   : > { %v4338_v25 = vmul.f32 %v11423_v20, %v4337_v32  ;;  %vm11458_vm3 = vcmp.eq.f32.partialorder %v4359_v17, 8.507059e+37  ;;  %vm4400_vm5 = vweird.f32 %v11392_v9  ;;  %v4404_v37 = vand.u32 2147483647, %v11392_v9  ;;  %v5680_v23 = vpop.eup %5679  ;;  %vm11501_vm4 = vmor %vm4355_vm15, %vm4356_vm9 }
 0x75b   : > { %v4353_v28 = vmul.f32 %v11429_v10, %v4352_v41  ;;  %v4367_v39 = vsub.f32 1.0, %v4366_v45  ;;  %vm11465_vm7 = vcmp.eq.f32.partialorder %v4374_v47, 8.507059e+37  ;;  %v4381_v32 = vmul.f32 %v5678_v21, %v11381_v60 }
 0x75c   : > { %vm11470_vm13 = vcmp.eq.f32.partialorder %v4389_v50, 8.507059e+37  ;;  %v4339_v17 = vadd.f32 %v11423_v20, %v4338_v25  ;;  %v4392_v49 = vor.u32 1.1754944e-38, %v4391_v63  ;;  %v4396_v56 = vmul.f32 %v5680_v23, %v11392_v9 }
 0x75d   : > { %v4406_v14 = vand.u32 2147483648, %v11392_v9  ;;  %v4354_v41 = vadd.f32 %v11429_v10, %v4353_v28  ;;  %v4368_v47 = vmul.f32 %v11442_v18, %v4367_v39  ;;  %vm4371_vm6 = vweird.f32 %v11442_v18  ;;  %v5682_v58 = vpop.eup %5681 }
 0x75e   : > { %v4382_v45 = vsub.f32 1.0, %v4381_v32  ;;  %v4397_v63 = vsub.f32 1.0, %v4396_v56  ;;  %vm11488_vm14 = vcmp.eq.f32.partialorder %v4404_v37, 8.507059e+37  ;;  %5683 = vrcp.f32 %v11431_v1  ;;  %vm11511_vm2 = vmor %vm4370_vm10, %vm4371_vm6 }
 0x75f   : > { %v4343_v39 = vsel %vm11484_vm8, %v11423_v20, %v4339_v17  ;;  %v4369_v28 = vadd.f32 %v11442_v18, %v4368_v47  ;;  %vm4386_vm12 = vweird.f32 %v5678_v21  ;;  %v4358_v37 = vsel %vm11501_vm4, %v11429_v10, %v4354_v41 }
 0x760   : > { %v4383_v56 = vmul.f32 %v5678_v21, %v4382_v45  ;;  %v4398_v32 = vmul.f32 %v5680_v23, %v4397_v63  ;;  %vm4401_vm8 = vweird.f32 %v5680_v23  ;;  %v4411_v42 = vmul.f32 %v5682_v58, %v11420_v33  ;;  %vm4387_vm15 = vmor %vm4385_vm1, %vm4386_vm12 }
 0x761   : > { %v4373_v17 = vsel %vm11511_vm2, %v11442_v18, %v4369_v28  ;;  %v4419_v45 = vand.u32 2147483647, %v11420_v33  ;;  %v4421_v50 = vand.u32 2147483648, %v11420_v33  ;;  %v4348_v26 = vsel %vm11449_vm11, %v4347_v16, %v4343_v39  ;;  %vm4402_vm2 = vmor %vm4400_vm5, %vm4401_vm8 }
 0x762   : > { %v4384_v47 = vadd.f32 %v5678_v21, %v4383_v56  ;;  %v4399_v10 = vadd.f32 %v5680_v23, %v4398_v32  ;;  %v4407_v41 = vor.u32 1.1754944e-38, %v4406_v14  ;;  %v4412_v63 = vsub.f32 1.0, %v4411_v42 }
 0x763   : > { %v4363_v53 = vsel %vm11458_vm3, %v4362_v48, %v4358_v37  ;;  %vm4416_vm10 = vweird.f32 %v5682_v58  ;;  %5685 = vrcp.f32 %v11444_v31  ;;  %vm4622_vm9 = vweird.f32 %v11234_v55 }
 0x764   : > { %v4388_v7 = vsel %vm4387_vm15, %v5678_v21, %v4384_v47  ;;  %v5684_v18 = vpop.eup %5683  ;;  %v4378_v60 = vsel %vm11465_vm7, %v4377_v36, %v4373_v17  ;;  %v4403_v16 = vsel %vm4402_vm2, %v5680_v23, %v4399_v10  ;;  %v4413_v61 = vmul.f32 %v5682_v58, %v4412_v63 }
 0x765   : > { %v4393_v14 = vsel %vm11470_vm13, %v4392_v49, %v4388_v7  ;;  %vm4607_vm11 = vweird.f32 %v11270_v22  ;;  %v4408_v9 = vsel %vm11488_vm14, %v4407_v41, %v4403_v16  ;;  %vm11538_vm1 = vcmp.eq.f32.partialorder %v4419_v45, 8.507059e+37 }
 0x766   : > { %v4422_v48 = vor.u32 1.1754944e-38, %v4421_v50  ;;  %v4426_v21 = vmul.f32 %v5684_v18, %v11431_v1  ;;  %v12758_v52 = vand.u32 2147483647, %v11163_v2  ;;  %vm4621_vm5 = vweird.f32 %v11169_v38 }
 0x767   : > { %v4414_v7 = vadd.f32 %v5682_v58, %v4413_v61  ;;  %v4434_v49 = vand.u32 2147483647, %v11431_v1  ;;  %v12761_v6 = vrot.slane %v11137_v15, 1  ;;  %v12762_v25 = vrot.slane %v11137_v15, 2 }
 0x768   : > { %vm11545_vm3 = vcmp.eq.f32.partialorder %v12758_v52, 8.507059e+37  ;;  %vm4606_vm7 = vweird.f32 %v11200_v59  ;;  %vm12763_vm13 = vweird.f32 %v11420_v33  ;;  %v4427_v2 = vsub.f32 1.0, %v4426_v21 }
 0x769   : > { %v4647_v23 = vmul.f32 %v12761_v6, %v4348_v26  ;;  %v4648_v39 = vmul.f32 %v12762_v25, %v4363_v53  ;;  %vm4417_vm6 = vmor %vm12763_vm13, %vm4416_vm10  ;;  %v4436_v28 = vand.u32 2147483648, %v11431_v1  ;;  %v12764_v56 = vrot.slane %v11137_v15, 3  ;;  %v5686_v50 = vpop.eup %5685 }
 0x76a   : > { %v12765_v20 = vrot.slane %v11137_v15, 4  ;;  %v4418_v42 = vsel %vm4417_vm6, %v5682_v58, %v4414_v7  ;;  %vm4431_vm14 = vweird.f32 %v5684_v18  ;;  %v12766_v17 = vrot.slane %v11137_v15, 5  ;;  %vm11599_vm10 = vmor %vm4621_vm5, %vm4622_vm9 }
 0x76b   : > { %v4649_v37 = vmul.f32 %v12764_v56, %v4378_v60  ;;  %v4655_v45 = vadd.f32 %v4647_v23, %v6459_v24  ;;  %v4423_v33 = vsel %vm11538_vm1, %v4422_v48, %v4418_v42  ;;  %v4428_v26 = vmul.f32 %v5684_v18, %v4427_v2 }
 0x76c   : > { %v4650_v32 = vmul.f32 %v12765_v20, %v4393_v14  ;;  %v4651_v47 = vmul.f32 %v12766_v17, %v4408_v9  ;;  %v4656_v10 = vadd.f32 %v4648_v39, %v6472_v11  ;;  %vm4430_vm4 = vweird.f32 %v11431_v1 }
 0x76d   : > { %v4657_v41 = vadd.f32 %v4649_v37, %v6491_v34  ;;  %v4441_v63 = vmul.f32 %v5686_v50, %v11444_v31  ;;  %v12767_v58 = vrot.slane %v11137_v15, 6  ;;  %v4429_v14 = vadd.f32 %v5684_v18, %v4428_v26  ;;  %vm4432_vm15 = vmor %vm4430_vm4, %vm4431_vm14 }
 0x76e   : > { %v4658_v60 = vadd.f32 %v4650_v32, %v6504_v44  ;;  %vm4435_vm12 = vcmp.eq.f32.partialorder %v4434_v49, 8.507059e+37  ;;  %v4659_v24 = vadd.f32 %v4651_v47, %v6535_v8  ;;  %5687 = vtanh.f32 %v4655_v45 }
 0x76f   : > { %v4652_v53 = vmul.f32 %v12767_v58, %v4423_v33  ;;  %v12768_v16 = vand.u32 2147483647, %v11200_v59  ;;  %v4437_v34 = vor.u32 1.1754944e-38, %v4436_v28  ;;  %v4442_v1 = vsub.f32 1.0, %v4441_v63  ;;  %v12786_v33 = vld [vmem:[#allocation30_spill] sm:$0xff] }
 0x770   : > { %5689 = vtanh.f32 %v4656_v10  ;;  %v4433_v9 = vsel %vm4432_vm15, %v5684_v18, %v4429_v14  ;;  %v4449_v44 = vand.u32 2147483647, %v11444_v31  ;;  %v4451_v40 = vand.u32 2147483648, %v11444_v31  ;;  %v12795_v18 = vld [vmem:[#allocation34_spill] sm:$0xff] }
 0x771   : > { %vm11579_vm8 = vcmp.eq.f32.partialorder %v12768_v16, 8.507059e+37  ;;  %v4660_v61 = vadd.f32 %v4652_v53, %v6648_v5  ;;  %5691 = vtanh.f32 %v4657_v41  ;;  %v4438_v8 = vsel %vm4435_vm12, %v4437_v34, %v4433_v9  ;;  %v12791_v53 = vld [vmem:[#allocation29_spill] sm:$0xff]  ;;  %v12792_v16 = vld [vmem:[#allocation32_spill] sm:$0xff] }
 0x772   : > { %v4443_v48 = vmul.f32 %v5686_v50, %v4442_v1  ;;  %vm4446_vm2 = vweird.f32 %v5686_v50  ;;  %5693 = vtanh.f32 %v4658_v60  ;;  %v12771_v21 = vsel %vm11398_vm0, %v11222_v4, %v11373_v57  ;;  %vm11610_vm0 = vmor %vm4606_vm7, %vm4607_vm11 }
 0x773   : > { %v4599_v5 = vsel %vm11545_vm3, %v11301_v43, %v12771_v21  ;;  %v4675_v52 = vsub.f32 1.0, %v11387_v62  ;;  %v12774_v7 = vrot.slane %v11137_v15, 7  ;;  %5695 = vtanh.f32 %v4659_v24 }
 0x774   : > { %v12777_v43 = vand.u32 2147483647, %v11169_v38  ;;  %v12780_v36 = vrot.slane %v11074_v46, 7  ;;  %v4444_v6 = vadd.f32 %v5686_v50, %v4443_v48  ;;  %vm4445_vm1 = vweird.f32 %v11444_v31  ;;  %v5688_v23 = vpop.eup %5687 }
 0x775   : > { %v4653_v51 = vmul.f32 %v12774_v7, %v4438_v8  ;;  %5697 = vtanh.f32 %v4660_v61  ;;  %v4624_v59 = vsel %vm11599_vm10, %v11234_v55, %v11411_v27  ;;  %v12781_v38 = vrot.slane %v11078_v30, 7  ;;  %vm4447_vm11 = vmor %vm4445_vm1, %vm4446_vm2  ;;  %v12794_v8 = vld [vmem:[#allocation35_spill] sm:$0xff] }
 0x776   : > { %vm11616_vm9 = vcmp.eq.f32.partialorder %v12777_v43, 8.507059e+37  ;;  %v4702_v49 = vmul.f32 %v12780_v36, %v11307_v13  ;;  %v4452_v39 = vor.u32 1.1754944e-38, %v4451_v40  ;;  %v5690_v2 = vpop.eup %5689  ;;  %v4609_v31 = vsel %vm11610_vm0, %v11270_v22, %v11416_v29 }
 0x777   : > { %v4703_v25 = vmul.f32 %v12781_v38, %v11342_v19  ;;  %v4661_v46 = vadd.f32 %v4653_v51, %v6677_v12  ;;  %v4448_v28 = vsel %vm4447_vm11, %v5686_v50, %v4444_v6  ;;  %vm4450_vm3 = vcmp.eq.f32.partialorder %v4449_v44, 8.507059e+37  ;;  %v5692_v27 = vpop.eup %5691 }
 0x778   : > { %v12782_v56 = vsub.f32 1.0, %v11307_v13  ;;  %v4676_v37 = vsub.f32 1.0, %v4599_v5  ;;  %v4453_v30 = vsel %vm4450_vm3, %v4452_v39, %v4448_v28  ;;  %v12783_v20 = vsub.f32 1.0, %v11342_v19  ;;  %v5694_v42 = vpop.eup %5693 }
 0x779   : > { %5699 = vtanh.f32 %v4661_v46  ;;  %v12784_v12 = vrot.slane %v11082_v0, 7  ;;  %v4654_v47 = vmul.f32 %v4453_v30, %v11137_v15  ;;  %v12785_v22 = vsub.f32 1.0, %v11349_v35  ;;  %v5696_v13 = vpop.eup %5695  ;;  %v12789_v15 = vld [vmem:[#allocation31_spill] sm:$0xff] }
 0x77a   : > { %v4679_v55 = vmul.f32 %v5688_v23, %v12782_v56  ;;  %v4680_v32 = vmul.f32 %v5690_v2, %v12783_v20  ;;  %v4614_v50 = vsel %vm11579_vm8, %v11389_v54, %v4609_v31  ;;  %v12787_v19 = vrot.slane %v12786_v33, 7 }
 0x77b   : > { %v4704_v17 = vmul.f32 %v12784_v12, %v11349_v35  ;;  %v4681_v29 = vmul.f32 %v5692_v27, %v12785_v22  ;;  %v12788_v10 = vsub.f32 1.0, %v11365_v3  ;;  %v5698_v63 = vpop.eup %5697  ;;  %v12790_v58 = vrot.slane %v12789_v15, 7 }
 0x77c   : > { %v4710_v45 = vadd.f32 %v4702_v49, %v4679_v55  ;;  %v4705_v26 = vmul.f32 %v12787_v19, %v11365_v3  ;;  %v4711_v0 = vadd.f32 %v4703_v25, %v4680_v32  ;;  %v4662_v60 = vadd.f32 %v4654_v47, %v12791_v53  ;;  %v12801_v25 = vld [vmem:[#allocation33_spill] sm:$0xff] }
 0x77d   : > { %v4682_v41 = vmul.f32 %v5694_v42, %v12788_v10  ;;  %v4706_v35 = vmul.f32 %v12790_v58, %v11387_v62  ;;  %v4683_v14 = vmul.f32 %v5696_v13, %v4675_v52  ;;  %v4712_v24 = vadd.f32 %v4704_v17, %v4681_v29 }
 0x77e   : > { %4741 = vst [vmem:[#allocation2 - $0x7] sm:$0x80] %v4710_v45  ;;  %v12793_v54 = vrot.slane %v12792_v16, 7  ;;  %v4684_v34 = vmul.f32 %v5698_v63, %v4676_v37  ;;  %v4726_v61 = vrot.slane %v4711_v0, 7  ;;  %v4677_v9 = vsub.f32 1.0, %v4614_v50 }
 0x77f   : > { %v4713_v1 = vadd.f32 %v4705_v26, %v4682_v41  ;;  %5701 = vtanh.f32 %v4662_v60  ;;  %v4714_v3 = vadd.f32 %v4706_v35, %v4683_v14  ;;  %v4727_v44 = vrot.slane %v4712_v24, 6  ;;  %v5700_v40 = vpop.eup %5699 }
 0x780   : > { %v4707_v11 = vmul.f32 %v12793_v54, %v4599_v5  ;;  %v4629_v62 = vsel %vm11616_vm9, %v12794_v8, %v4624_v59  ;;  %v12796_v52 = vrot.slane %v12795_v18, 7  ;;  %v4685_v51 = vmul.f32 %v5700_v40, %v4677_v9 }
 0x781   : > { %v4729_v21 = vrot.slane %v4713_v1, 5  ;;  %vm12797_vm5 = vcmask 1041409   ;;  %v4731_v4 = vrot.slane %v4714_v3, 4  ;;  %vm12798_vm7 = vcmask 1042434  }
 0x782   : > { %v4715_v48 = vadd.f32 %v4707_v11, %v4684_v34  ;;  %v4708_v7 = vmul.f32 %v12796_v52, %v4614_v50  ;;  %v4728_v5 = vsel %vm12797_vm5, %v4727_v44, %v4726_v61  ;;  %vm12799_vm13 = vcmask 1043459  }
 0x783   : > { %v4730_v43 = vsel %vm12798_vm7, %v4729_v21, %v4728_v5  ;;  %v4678_v23 = vsub.f32 1.0, %v4629_v62  ;;  %vm12800_vm6 = vcmask 1044484   ;;  %v12802_v39 = vrot.slane %v12801_v25, 7 }
 0x784   : > { %v4733_v36 = vrot.slane %v4715_v48, 3  ;;  %v4716_v49 = vadd.f32 %v4708_v7, %v4685_v51  ;;  %v4732_v6 = vsel %vm12799_vm13, %v4731_v4, %v4730_v43  ;;  %vm12803_vm14 = vcmask 1045509  }
 0x785   : > { %v5702_v57 = vpop.eup %5701  ;;  %v4709_v46 = vmul.f32 %v4629_v62, %v12802_v39  ;;  %vm12804_vm4 = vcmask 1046534  }
 0x786   : > { %v4734_v38 = vsel %vm12800_vm6, %v4733_v36, %v4732_v6  ;;  %v4735_v59 = vrot.slane %v4716_v49, 2  ;;  %v4686_v2 = vmul.f32 %v5702_v57, %v4678_v23 }
 0x788   : > { %v4736_v31 = vsel %vm12803_vm14, %v4735_v59, %v4734_v38  ;;  %v4717_v28 = vadd.f32 %v4709_v46, %v4686_v2 }
 0x789   : > { %4746 = sbr.rel (%p4995_p13) target bundleno = 1936 (0x790), region = 90 }
 0x78a   : > { %v4737_v56 = vrot.slane %v4717_v28, 1 }
 0x78c   : > { %v4738_v55 = vsel %vm12804_vm4, %v4737_v56, %v4736_v31 }
 0x78d   : > { %4742 = vst [vmem:[#allocation2 + $0x1] sm:$0x7f] %v4738_v55 }
 0x78e   : > { %4747 = vst [vmem:[#allocation7 - $0x7] sm:$0x80] %v4710_v45 }
 0x78f   : > { %4748 = vst [vmem:[#allocation7 + $0x1] sm:$0x7f] %v4738_v55 }
 0x790 PF: > { %p5016_p0 = scmp.eq.s32.totalorder %s4830_s23, 1  ;;  %s4759_s15 = sshll.u32 %s11700_s5, 4  ;;  %s4760_s15 = int_to_ptr.hbm [resolvable:$true] %s4759_s15 }
 0x791   : > { %s5926_s16 = smov [#allocation7]  }
 0x792   : > { %s4757_s17 = sshll.u32 %s5926_s16, 4  ;;  %s4758_s17 = int_to_ptr.vmem [resolvable:$true] %s4757_s17 }
 0x793   : > { %5007 = dma.vmem_to_hbm [thread:$0]  (%p5016_p0), %s4758_s17, 128, %s4760_s15, [#allocation6]  }
 0x794   : > { %5899 = dma.done.wait (%p5016_p0), [#allocation6], 128  }
 0x795   : > { %5901 = vsyncadd (%p5016_p0), [#allocation6], 4294967168 }
 0x796 PF: > { %s17_s22 = sadd.s32 1, %s5920_s22   ;;  %s12805_s18 = smov %s5908_s19 }
 0x797   : > { %p14_p1 = scmp.ge.s32.totalorder %s17_s22, 4   ;;  %s12806_s19 = smov %s6009_s30 }
 0x798   : > { %s12807_s20 = smov %s5916_s21  ;;  %s12808_s21 = smov %s12810_s24 }
 0x799   :  { %16 = sbr.rel (!%p14_p1) target bundleno = 4 (0x4), region = 125 }
 0x79e   :  { %4773 = vsyncpa [#allocation5], 1 }
 0x79f   :  { %4775 = vsyncpa [#allocation5 + $0x1], 1 }
 0x7a0   :  { %4776 = vsyncpa [#allocation6], 1 }
 0x7a1   :  { %4778 = vsyncpa [#allocation6 + $0x1], 1 }

</bundles_post_ra>
